<compile_context>
chip_gen: v6e
topology: v6e:2x2x1
jax: 0.10.0
libtpu: 0.0.40
codegen_flags: <defaults>
</compile_context>

<pallas_src>
import functools

import jax
import jax.numpy as jnp
import numpy as np
from jax import lax
from jax.experimental import pallas as pl
from jax.experimental.pallas import tpu as pltpu


# ----------------------------------------------------------------------------
# Pallas kernel: multi-tap conv as accumulated MXU dots (+ bias, + optional ReLU)
# ----------------------------------------------------------------------------
def _conv_taps_kernel(*refs, n_inputs, starts, m_rows, relu):
    """refs = (x_0[, x_1], w_0[, w_1], bias, out)   (one grid step per batch item)

    x_i   : (1, L_i, Cin_i) bf16 — zero-padded, spatially flattened NHWC image
    w_i   : (T,  Cin_i, Np) bf16 — one (Cin_i, Np) weight slab per tap
    bias  : (1, Np)         f32
    out   : (1, m_rows, Np)
    For tap t the lhs is the contiguous row window x_i[starts[t]:starts[t]+m_rows]
    (`starts` are static Python ints; junk columns of the window are dropped on
    the host).  All tap dots accumulate into one f32 tile; bias/ReLU fused.
    """
    x_refs = refs[:n_inputs]
    w_refs = refs[n_inputs:2 * n_inputs]
    b_ref = refs[2 * n_inputs]
    o_ref = refs[2 * n_inputs + 1]

    acc = jnp.zeros((m_rows, o_ref.shape[-1]), jnp.float32)
    for a in range(n_inputs):
        for t, s in enumerate(starts):
            xt = x_refs[a][0, pl.ds(s, m_rows), :]            # (m_rows, Cin_a) bf16
            acc = acc + jnp.dot(xt, w_refs[a][t],
                                preferred_element_type=jnp.float32)
    y = acc + b_ref[...]
    if relu:
        y = jnp.maximum(y, 0.0)
    o_ref[0] = y.astype(o_ref.dtype)


def _conv_call(xs, ws, bias, *, taps, wp, ho, relu, out_dtype=jnp.bfloat16):
    """One fused pallas_call for a (multi-input, multi-tap) conv layer."""
    B = xs[0].shape[0]
    np_out = ws[0].shape[-1]
    for w in ws:
        assert w.shape[-1] == np_out
    m_rows = ho * wp
    starts = [kh * wp + kw for kh, kw in taps]
    for x in xs:
        assert max(starts) + m_rows <= x.shape[1], (x.shape, starts, m_rows)

    kernel = functools.partial(_conv_taps_kernel, n_inputs=len(xs),
                               starts=starts, m_rows=m_rows, relu=relu)
    in_specs = (
        [pl.BlockSpec((1,) + x.shape[1:], lambda b: (b, 0, 0)) for x in xs]
        + [pl.BlockSpec(w.shape, lambda b: (0, 0, 0)) for w in ws]
        + [pl.BlockSpec(bias.shape, lambda b: (0, 0))]
    )
    return pl.pallas_call(
        kernel,
        out_shape=jax.ShapeDtypeStruct((B, m_rows, np_out), out_dtype),
        grid=(B,),
        in_specs=in_specs,
        out_specs=pl.BlockSpec((1, m_rows, np_out), lambda b: (b, 0, 0)),
        compiler_params=pltpu.CompilerParams(
            dimension_semantics=("parallel",),          # >=2 steps -> v7x megacore
            vmem_limit_bytes=32 * 1024 * 1024),
    )(*xs, *ws, bias)


# ----------------------------------------------------------------------------
# Thin host-side glue (tiny data-movement ops only).
# ----------------------------------------------------------------------------
def _pad_flatten(x, pad_h, pad_w):
    """NHWC -> (B, Hp*Wp, C) zero-padded and spatially flattened."""
    B, H, W, C = x.shape
    xp = jnp.pad(x, ((0, 0), pad_h, pad_w, (0, 0)))
    hp = H + pad_h[0] + pad_h[1]
    wp = W + pad_w[0] + pad_w[1]
    return xp.reshape(B, hp * wp, C), wp


def _take_valid(y, ho, wp, wo):
    """(B, ho*wp, Np) kernel output -> (B, ho, wo, Np) (junk columns dropped)."""
    B, _, np_out = y.shape
    return y.reshape(B, ho, wp, np_out)[:, :, :wo, :]


def maxpool2(x):
    B, H, W, C = x.shape
    return x.reshape(B, H // 2, 2, W // 2, 2, C).max(axis=(2, 4))


def conv3x3(x, w, bias, *, relu=True):
    """3x3 / stride 1 / pad 1 conv; output channels padded to w.shape[-1]."""
    B, H, W, _ = x.shape
    xf, wp = _pad_flatten(x, (1, 2), (1, 1))     # extra bottom pad feeds junk cols only
    taps = [(kh, kw) for kh in range(3) for kw in range(3)]
    y = _conv_call([xf], [w], bias, taps=taps, wp=wp, ho=H, relu=relu)
    return _take_valid(y, H, wp, W)


def conv_transpose3x3_s2(xs, ws, bias, cout):
    """ConvTranspose2d(3, stride=2, padding=1, output_padding=1), possibly with a
    fused skip input, via the 4-phase sub-pixel decomposition (2x2-tap conv whose
    output phases are channel groups)."""
    B, H, W, _ = xs[0].shape
    flats = []
    wp = None
    for x in xs:
        xf, wp = _pad_flatten(x, (0, 2), (0, 1))
        flats.append(xf)
    taps = [(dh, dw) for dh in range(2) for dw in range(2)]
    y = _conv_call(flats, ws, bias, taps=taps, wp=wp, ho=H, relu=True)
    y = _take_valid(y, H, wp, W)                              # (B, H, W, 4*cout)
    y = y.reshape(B, H, W, 2, 2, cout)                        # (.., ph, pw, c)
    y = jnp.transpose(y, (0, 1, 3, 2, 4, 5)).reshape(B, 2 * H, 2 * W, cout)
    return y


def conv1x1(xs, ws, bias, *, relu, out_dtype):
    B, H, W, _ = xs[0].shape
    flats = [x.reshape(B, H * W, x.shape[-1]) for x in xs]
    y = _conv_call(flats, ws, bias, taps=[(0, 0)], wp=W, ho=H, relu=relu,
                   out_dtype=out_dtype)
    return y.reshape(B, H, W, y.shape[-1])


# ----------------------------------------------------------------------------
# Weight packing (PyTorch layouts -> per-tap bf16 slabs).
# ----------------------------------------------------------------------------
def _pack_conv_w(w_oihw, cin_pad, cout_pad):
    """nn.Conv2d weight [Cout, Cin, K, K] -> (K*K, cin_pad, cout_pad) bf16."""
    cout, cin, K, _ = w_oihw.shape
    w = jnp.transpose(w_oihw, (2, 3, 1, 0)).reshape(K * K, cin, cout)
    w = jnp.pad(w, ((0, 0), (0, cin_pad - cin), (0, cout_pad - cout)))
    return w.astype(jnp.bfloat16)


def _pack_convT_phase_w(w_iokk, cin_pad):
    """nn.ConvTranspose2d weight slice [Cin, Cout, 3, 3] -> (4, cin_pad, 4*Cout) bf16.

    For stride=2, padding=1, output_padding=1:
        out[2i+ph, 2j+pw] = sum W[:, :, kh, kw]^T x[i+dh, j+dw]
    with the separable index map (p, d, k) in {(0,0,1), (1,0,2), (1,1,0)} per axis.
    Tap index t = 2*dh + dw; phase p = 2*ph + pw occupies columns [p*Cout,(p+1)*Cout).
    """
    cin, cout, K, _ = w_iokk.shape
    assert K == 3
    pdk = [(0, 0, 1), (1, 0, 2), (1, 1, 0)]
    out = jnp.zeros((4, cin_pad, 4 * cout), jnp.float32)
    for ph, dh, kh in pdk:
        for pw, dw, kw in pdk:
            t = 2 * dh + dw
            p = 2 * ph + pw
            out = out.at[t, :cin, p * cout:(p + 1) * cout].set(w_iokk[:, :, kh, kw])
    return out.astype(jnp.bfloat16)


def _pack_bias(b, n_pad):
    return jnp.pad(b, (0, n_pad - b.shape[0])).reshape(1, n_pad).astype(jnp.float32)


def _pack_bias_phases(b):
    return jnp.tile(b, 4).reshape(1, -1).astype(jnp.float32)


def init_raw_params(key):
    """Random parameters in the PyTorch layouts (Conv2d: [O,I,K,K], ConvTranspose2d:
    [I,O,K,K]); values rounded to bf16 so the f32 reference and the bf16 Pallas path
    use identical weights."""
    shapes = {
        "encoder1":    ((32, 3, 3, 3), (32,)),
        "encoder2":    ((64, 32, 3, 3), (64,)),
        "encoder3":    ((128, 64, 3, 3), (128,)),
        "bottleneck":  ((256, 128, 3, 3), (256,)),
        "decoder1":    ((256, 128, 3, 3), (128,)),
        "decoder2":    ((256, 64, 3, 3), (64,)),
        "decoder3":    ((128, 32, 3, 3), (32,)),
        "final_layer": ((3, 64, 1, 1), (3,)),
    }
    raw = {}
    keys = jax.random.split(key, len(shapes))
    for k, (name, (ws, bs)) in zip(keys, shapes.items()):
        kw, kb = jax.random.split(k)
        w = jax.random.normal(kw, ws, jnp.float32) * 0.05
        b = jax.random.normal(kb, bs, jnp.float32) * 0.05
        raw[name] = {"w": w.astype(jnp.bfloat16).astype(jnp.float32),
                     "b": b.astype(jnp.bfloat16).astype(jnp.float32)}
    return raw


def pack_params(raw):
    """Pack per-layer weights for the Pallas kernels.  Activations are carried with
    channel dims padded to lane multiples; consumer weights carry matching zero rows,
    and decoder weights are split into (up-path | skip-path) row blocks to replace
    torch.cat with two accumulated dots."""
    p = {}
    p["encoder1"] = {"w": _pack_conv_w(raw["encoder1"]["w"], 3, 128),
                     "b": _pack_bias(raw["encoder1"]["b"], 128)}
    p["encoder2"] = {"w": _pack_conv_w(raw["encoder2"]["w"], 128, 128),
                     "b": _pack_bias(raw["encoder2"]["b"], 128)}
    p["encoder3"] = {"w": _pack_conv_w(raw["encoder3"]["w"], 128, 128),
                     "b": _pack_bias(raw["encoder3"]["b"], 128)}
    p["bottleneck"] = {"w": _pack_conv_w(raw["bottleneck"]["w"], 128, 256),
                       "b": _pack_bias(raw["bottleneck"]["b"], 256)}
    p["decoder1"] = {"w": _pack_convT_phase_w(raw["decoder1"]["w"], 256),
                     "b": _pack_bias_phases(raw["decoder1"]["b"])}
    wd2 = raw["decoder2"]["w"]                        # cat([dec1(128), enc3(128)])
    p["decoder2"] = {"w_main": _pack_convT_phase_w(wd2[:128], 128),
                     "w_skip": _pack_convT_phase_w(wd2[128:], 128),
                     "b": _pack_bias_phases(raw["decoder2"]["b"])}
    wd3 = raw["decoder3"]["w"]                        # cat([dec(64), enc2(64->pad128)])
    p["decoder3"] = {"w_main": _pack_convT_phase_w(wd3[:64], 64),
                     "w_skip": _pack_convT_phase_w(wd3[64:], 128),
                     "b": _pack_bias_phases(raw["decoder3"]["b"])}
    wf = raw["final_layer"]["w"]                      # cat([dec(32), enc1(32->pad128)])
    p["final_layer"] = {"w_main": _pack_conv_w(wf[:, :32], 32, 128),
                        "w_skip": _pack_conv_w(wf[:, 32:], 128, 128),
                        "b": _pack_bias(raw["final_layer"]["b"], 128)}
    return p


# ----------------------------------------------------------------------------
# Full UNet forward (NCHW in, NCHW out), matching the PyTorch module.
# ----------------------------------------------------------------------------
@jax.jit
def unet_forward(x_nchw, params):
    x = jnp.transpose(x_nchw, (0, 2, 3, 1)).astype(jnp.bfloat16)         # NHWC bf16
    enc1 = conv3x3(x, params["encoder1"]["w"], params["encoder1"]["b"])            # (B,16,16,128)
    enc2 = conv3x3(maxpool2(enc1), params["encoder2"]["w"], params["encoder2"]["b"])   # (B,8,8,128)
    enc3 = conv3x3(maxpool2(enc2), params["encoder3"]["w"], params["encoder3"]["b"])   # (B,4,4,128)
    bott = conv3x3(maxpool2(enc3), params["bottleneck"]["w"], params["bottleneck"]["b"])  # (B,2,2,256)

    dec1 = conv_transpose3x3_s2([bott], [params["decoder1"]["w"]],
                                params["decoder1"]["b"], 128)                      # (B,4,4,128)
    dec2 = conv_transpose3x3_s2([dec1, enc3],
                                [params["decoder2"]["w_main"], params["decoder2"]["w_skip"]],
                                params["decoder2"]["b"], 64)                       # (B,8,8,64)
    dec3 = conv_transpose3x3_s2([dec2, enc2],
                                [params["decoder3"]["w_main"], params["decoder3"]["w_skip"]],
                                params["decoder3"]["b"], 32)                       # (B,16,16,32)
    out = conv1x1([dec3, enc1],
                  [params["final_layer"]["w_main"], params["final_layer"]["w_skip"]],
                  params["final_layer"]["b"], relu=False, out_dtype=jnp.float32)   # (B,16,16,128)
    out = out[..., :3]
    return jnp.transpose(out, (0, 3, 1, 2))                                        # NHWC -> NCHW


# ----------------------------------------------------------------------------
# Pure-JAX f32 reference (mirrors the PyTorch module op-for-op) for validation.
# ----------------------------------------------------------------------------
@jax.jit
def unet_reference(x_nchw, raw):
    x = jnp.transpose(x_nchw, (0, 2, 3, 1)).astype(jnp.float32)
    dn = ("NHWC", "HWIO", "NHWC")

    def conv(h, w_oihw, b, pad):
        w = jnp.transpose(w_oihw, (2, 3, 1, 0))
        y = lax.conv_general_dilated(h, w, (1, 1), [(pad, pad), (pad, pad)],
                                     dimension_numbers=dn)
        return y + b

    def convT(h, w_iokk, b):
        w = jnp.transpose(w_iokk[:, :, ::-1, ::-1], (2, 3, 0, 1))
        y = lax.conv_general_dilated(h, w, (1, 1), [(1, 2), (1, 2)],
                                     lhs_dilation=(2, 2), dimension_numbers=dn)
        return y + b

    relu = jax.nn.relu
    e1 = relu(conv(x, raw["encoder1"]["w"], raw["encoder1"]["b"], 1))
    e2 = relu(conv(maxpool2(e1), raw["encoder2"]["w"], raw["encoder2"]["b"], 1))
    e3 = relu(conv(maxpool2(e2), raw["encoder3"]["w"], raw["encoder3"]["b"], 1))
    bt = relu(conv(maxpool2(e3), raw["bottleneck"]["w"], raw["bottleneck"]["b"], 1))
    d1 = relu(convT(bt, raw["decoder1"]["w"], raw["decoder1"]["b"]))
    d1 = jnp.concatenate([d1, e3], axis=-1)
    d1 = relu(convT(d1, raw["decoder2"]["w"], raw["decoder2"]["b"]))
    d2 = jnp.concatenate([d1, e2], axis=-1)
    d2 = relu(convT(d2, raw["decoder3"]["w"], raw["decoder3"]["b"]))
    d3 = jnp.concatenate([d2, e1], axis=-1)
    out = conv(d3, raw["final_layer"]["w"], raw["final_layer"]["b"], 0)
    return jnp.transpose(out, (0, 3, 1, 2))


if __name__ == "__main__":
    key = jax.random.PRNGKey(0)
    k_x, k_p = jax.random.split(key)
    # 16x16 spatial: 3 max-pools give 16 -> 8 -> 4 -> 2; decoders upsample back.
    x = jax.random.normal(k_x, (2, 3, 16, 16), jnp.float32)
    x = x.astype(jnp.bfloat16).astype(jnp.float32)          # bf16-representable input
    raw = init_raw_params(k_p)
    params = pack_params(raw)

    out = jax.block_until_ready(unet_forward(x, params))
    assert out.shape == (2, 3, 16, 16), out.shape

    ref = jax.block_until_ready(unet_reference(x, raw))
    np.testing.assert_allclose(np.asarray(out, np.float32),
                               np.asarray(ref, np.float32),
                               rtol=5e-2, atol=3e-2)
    print("KERNEL_OK")
</pallas_src>

<mosaic_0001>
module attributes {stable_mosaic.version = 11 : i64} {
  func.func @_conv_taps_kernel(%arg0: i32, %arg1: memref<1x342x3xbf16, #tpu.memory_space<vmem>>, %arg2: memref<9x3x128xbf16, #tpu.memory_space<vmem>>, %arg3: memref<1x128xf32, #tpu.memory_space<vmem>>, %arg4: memref<1x288x128xbf16, #tpu.memory_space<vmem>>) attributes {dimension_semantics = [#tpu.dimension_semantics<parallel>], iteration_bounds = array<i64: 2>, scalar_prefetch = 0 : i64, scratch_operands = 0 : i64, tpu.core_type = #tpu.core_type<tc>, window_params = [{transform_indices = @transform_0, window_bounds = array<i64: 1, 342, 3>}, {pipeline_mode = #tpu.pipeline_mode<synchronous>, transform_indices = @transform_1, window_bounds = array<i64: 9, 3, 128>}, {pipeline_mode = #tpu.pipeline_mode<synchronous>, transform_indices = @transform_2, window_bounds = array<i64: 1, 128>}, {transform_indices = @transform_3, window_bounds = array<i64: 1, 288, 128>}]} {
    %cst = arith.constant 0.000000e+00 : f32
    %0 = vector.broadcast %cst : f32 to vector<288x128xf32>
    %c0 = arith.constant 0 : index
    %c0_0 = arith.constant 0 : index
    %c0_1 = arith.constant 0 : index
    %1 = vector.load %arg1[%c0, %c0_0, %c0_1] : memref<1x342x3xbf16, #tpu.memory_space<vmem>>, vector<1x288x3xbf16>
    %2 = vector.shape_cast %1 : vector<1x288x3xbf16> to vector<288x3xbf16>
    %c0_2 = arith.constant 0 : index
    %c0_3 = arith.constant 0 : index
    %c0_4 = arith.constant 0 : index
    %3 = vector.load %arg2[%c0_2, %c0_3, %c0_4] : memref<9x3x128xbf16, #tpu.memory_space<vmem>>, vector<1x3x128xbf16>
    %4 = vector.shape_cast %3 : vector<1x3x128xbf16> to vector<3x128xbf16>
    %cst_5 = arith.constant dense<0.000000e+00> : vector<288x128xf32>
    %5 = tpu.matmul %2, %4, %cst_5 {dimension_numbers = #tpu.dot_dimension_numbers<[1], [0], [0], [1], [0, 0, 1, 1], [], []>} : vector<288x3xbf16>, vector<3x128xbf16>, vector<288x128xf32> -> vector<288x128xf32>
    %6 = arith.addf %0, %5 : vector<288x128xf32>
    %c0_6 = arith.constant 0 : index
    %c1 = arith.constant 1 : index
    %c0_7 = arith.constant 0 : index
    %7 = vector.load %arg1[%c0_6, %c1, %c0_7] : memref<1x342x3xbf16, #tpu.memory_space<vmem>>, vector<1x288x3xbf16>
    %8 = vector.shape_cast %7 : vector<1x288x3xbf16> to vector<288x3xbf16>
    %c1_8 = arith.constant 1 : index
    %c0_9 = arith.constant 0 : index
    %c0_10 = arith.constant 0 : index
    %9 = vector.load %arg2[%c1_8, %c0_9, %c0_10] : memref<9x3x128xbf16, #tpu.memory_space<vmem>>, vector<1x3x128xbf16>
    %10 = vector.shape_cast %9 : vector<1x3x128xbf16> to vector<3x128xbf16>
    %cst_11 = arith.constant dense<0.000000e+00> : vector<288x128xf32>
    %11 = tpu.matmul %8, %10, %cst_11 {dimension_numbers = #tpu.dot_dimension_numbers<[1], [0], [0], [1], [0, 0, 1, 1], [], []>} : vector<288x3xbf16>, vector<3x128xbf16>, vector<288x128xf32> -> vector<288x128xf32>
    %12 = arith.addf %6, %11 : vector<288x128xf32>
    %c0_12 = arith.constant 0 : index
    %c2 = arith.constant 2 : index
    %c0_13 = arith.constant 0 : index
    %13 = vector.load %arg1[%c0_12, %c2, %c0_13] : memref<1x342x3xbf16, #tpu.memory_space<vmem>>, vector<1x288x3xbf16>
    %14 = vector.shape_cast %13 : vector<1x288x3xbf16> to vector<288x3xbf16>
    %c2_14 = arith.constant 2 : index
    %c0_15 = arith.constant 0 : index
    %c0_16 = arith.constant 0 : index
    %15 = vector.load %arg2[%c2_14, %c0_15, %c0_16] : memref<9x3x128xbf16, #tpu.memory_space<vmem>>, vector<1x3x128xbf16>
    %16 = vector.shape_cast %15 : vector<1x3x128xbf16> to vector<3x128xbf16>
    %cst_17 = arith.constant dense<0.000000e+00> : vector<288x128xf32>
    %17 = tpu.matmul %14, %16, %cst_17 {dimension_numbers = #tpu.dot_dimension_numbers<[1], [0], [0], [1], [0, 0, 1, 1], [], []>} : vector<288x3xbf16>, vector<3x128xbf16>, vector<288x128xf32> -> vector<288x128xf32>
    %18 = arith.addf %12, %17 : vector<288x128xf32>
    %c0_18 = arith.constant 0 : index
    %c18 = arith.constant 18 : index
    %c0_19 = arith.constant 0 : index
    %19 = vector.load %arg1[%c0_18, %c18, %c0_19] : memref<1x342x3xbf16, #tpu.memory_space<vmem>>, vector<1x288x3xbf16>
    %20 = vector.shape_cast %19 : vector<1x288x3xbf16> to vector<288x3xbf16>
    %c3 = arith.constant 3 : index
    %c0_20 = arith.constant 0 : index
    %c0_21 = arith.constant 0 : index
    %21 = vector.load %arg2[%c3, %c0_20, %c0_21] : memref<9x3x128xbf16, #tpu.memory_space<vmem>>, vector<1x3x128xbf16>
    %22 = vector.shape_cast %21 : vector<1x3x128xbf16> to vector<3x128xbf16>
    %cst_22 = arith.constant dense<0.000000e+00> : vector<288x128xf32>
    %23 = tpu.matmul %20, %22, %cst_22 {dimension_numbers = #tpu.dot_dimension_numbers<[1], [0], [0], [1], [0, 0, 1, 1], [], []>} : vector<288x3xbf16>, vector<3x128xbf16>, vector<288x128xf32> -> vector<288x128xf32>
    %24 = arith.addf %18, %23 : vector<288x128xf32>
    %c0_23 = arith.constant 0 : index
    %c19 = arith.constant 19 : index
    %c0_24 = arith.constant 0 : index
    %25 = vector.load %arg1[%c0_23, %c19, %c0_24] : memref<1x342x3xbf16, #tpu.memory_space<vmem>>, vector<1x288x3xbf16>
    %26 = vector.shape_cast %25 : vector<1x288x3xbf16> to vector<288x3xbf16>
    %c4 = arith.constant 4 : index
    %c0_25 = arith.constant 0 : index
    %c0_26 = arith.constant 0 : index
    %27 = vector.load %arg2[%c4, %c0_25, %c0_26] : memref<9x3x128xbf16, #tpu.memory_space<vmem>>, vector<1x3x128xbf16>
    %28 = vector.shape_cast %27 : vector<1x3x128xbf16> to vector<3x128xbf16>
    %cst_27 = arith.constant dense<0.000000e+00> : vector<288x128xf32>
    %29 = tpu.matmul %26, %28, %cst_27 {dimension_numbers = #tpu.dot_dimension_numbers<[1], [0], [0], [1], [0, 0, 1, 1], [], []>} : vector<288x3xbf16>, vector<3x128xbf16>, vector<288x128xf32> -> vector<288x128xf32>
    %30 = arith.addf %24, %29 : vector<288x128xf32>
    %c0_28 = arith.constant 0 : index
    %c20 = arith.constant 20 : index
    %c0_29 = arith.constant 0 : index
    %31 = vector.load %arg1[%c0_28, %c20, %c0_29] : memref<1x342x3xbf16, #tpu.memory_space<vmem>>, vector<1x288x3xbf16>
    %32 = vector.shape_cast %31 : vector<1x288x3xbf16> to vector<288x3xbf16>
    %c5 = arith.constant 5 : index
    %c0_30 = arith.constant 0 : index
    %c0_31 = arith.constant 0 : index
    %33 = vector.load %arg2[%c5, %c0_30, %c0_31] : memref<9x3x128xbf16, #tpu.memory_space<vmem>>, vector<1x3x128xbf16>
    %34 = vector.shape_cast %33 : vector<1x3x128xbf16> to vector<3x128xbf16>
    %cst_32 = arith.constant dense<0.000000e+00> : vector<288x128xf32>
    %35 = tpu.matmul %32, %34, %cst_32 {dimension_numbers = #tpu.dot_dimension_numbers<[1], [0], [0], [1], [0, 0, 1, 1], [], []>} : vector<288x3xbf16>, vector<3x128xbf16>, vector<288x128xf32> -> vector<288x128xf32>
    %36 = arith.addf %30, %35 : vector<288x128xf32>
    %c0_33 = arith.constant 0 : index
    %c36 = arith.constant 36 : index
    %c0_34 = arith.constant 0 : index
    %37 = vector.load %arg1[%c0_33, %c36, %c0_34] : memref<1x342x3xbf16, #tpu.memory_space<vmem>>, vector<1x288x3xbf16>
    %38 = vector.shape_cast %37 : vector<1x288x3xbf16> to vector<288x3xbf16>
    %c6 = arith.constant 6 : index
    %c0_35 = arith.constant 0 : index
    %c0_36 = arith.constant 0 : index
    %39 = vector.load %arg2[%c6, %c0_35, %c0_36] : memref<9x3x128xbf16, #tpu.memory_space<vmem>>, vector<1x3x128xbf16>
    %40 = vector.shape_cast %39 : vector<1x3x128xbf16> to vector<3x128xbf16>
    %cst_37 = arith.constant dense<0.000000e+00> : vector<288x128xf32>
    %41 = tpu.matmul %38, %40, %cst_37 {dimension_numbers = #tpu.dot_dimension_numbers<[1], [0], [0], [1], [0, 0, 1, 1], [], []>} : vector<288x3xbf16>, vector<3x128xbf16>, vector<288x128xf32> -> vector<288x128xf32>
    %42 = arith.addf %36, %41 : vector<288x128xf32>
    %c0_38 = arith.constant 0 : index
    %c37 = arith.constant 37 : index
    %c0_39 = arith.constant 0 : index
    %43 = vector.load %arg1[%c0_38, %c37, %c0_39] : memref<1x342x3xbf16, #tpu.memory_space<vmem>>, vector<1x288x3xbf16>
    %44 = vector.shape_cast %43 : vector<1x288x3xbf16> to vector<288x3xbf16>
    %c7 = arith.constant 7 : index
    %c0_40 = arith.constant 0 : index
    %c0_41 = arith.constant 0 : index
    %45 = vector.load %arg2[%c7, %c0_40, %c0_41] : memref<9x3x128xbf16, #tpu.memory_space<vmem>>, vector<1x3x128xbf16>
    %46 = vector.shape_cast %45 : vector<1x3x128xbf16> to vector<3x128xbf16>
    %cst_42 = arith.constant dense<0.000000e+00> : vector<288x128xf32>
    %47 = tpu.matmul %44, %46, %cst_42 {dimension_numbers = #tpu.dot_dimension_numbers<[1], [0], [0], [1], [0, 0, 1, 1], [], []>} : vector<288x3xbf16>, vector<3x128xbf16>, vector<288x128xf32> -> vector<288x128xf32>
    %48 = arith.addf %42, %47 : vector<288x128xf32>
    %c0_43 = arith.constant 0 : index
    %c38 = arith.constant 38 : index
    %c0_44 = arith.constant 0 : index
    %49 = vector.load %arg1[%c0_43, %c38, %c0_44] : memref<1x342x3xbf16, #tpu.memory_space<vmem>>, vector<1x288x3xbf16>
    %50 = vector.shape_cast %49 : vector<1x288x3xbf16> to vector<288x3xbf16>
    %c8 = arith.constant 8 : index
    %c0_45 = arith.constant 0 : index
    %c0_46 = arith.constant 0 : index
    %51 = vector.load %arg2[%c8, %c0_45, %c0_46] : memref<9x3x128xbf16, #tpu.memory_space<vmem>>, vector<1x3x128xbf16>
    %52 = vector.shape_cast %51 : vector<1x3x128xbf16> to vector<3x128xbf16>
    %cst_47 = arith.constant dense<0.000000e+00> : vector<288x128xf32>
    %53 = tpu.matmul %50, %52, %cst_47 {dimension_numbers = #tpu.dot_dimension_numbers<[1], [0], [0], [1], [0, 0, 1, 1], [], []>} : vector<288x3xbf16>, vector<3x128xbf16>, vector<288x128xf32> -> vector<288x128xf32>
    %54 = arith.addf %48, %53 : vector<288x128xf32>
    %c0_48 = arith.constant 0 : index
    %c0_49 = arith.constant 0 : index
    %55 = vector.load %arg3[%c0_48, %c0_49] : memref<1x128xf32, #tpu.memory_space<vmem>>, vector<1x128xf32>
    %56 = vector.broadcast %55 : vector<1x128xf32> to vector<288x128xf32>
    %57 = arith.addf %54, %56 : vector<288x128xf32>
    %cst_50 = arith.constant 0.000000e+00 : f32
    %58 = vector.broadcast %cst_50 : f32 to vector<288x128xf32>
    %59 = arith.maximumf %57, %58 : vector<288x128xf32>
    %60 = arith.truncf %59 : vector<288x128xf32> to vector<288x128xbf16>
    %c0_51 = arith.constant 0 : index
    %c0_52 = arith.constant 0 : index
    %c0_53 = arith.constant 0 : index
    %61 = vector.load %arg4[%c0_51, %c0_52, %c0_53] : memref<1x288x128xbf16, #tpu.memory_space<vmem>>, vector<1x288x128xbf16>
    %62 = vector.shape_cast %61 : vector<1x288x128xbf16> to vector<288x128xbf16>
    %63 = vector.shape_cast %60 : vector<288x128xbf16> to vector<1x288x128xbf16>
    tpu.vector_store %arg4[%c0_51, %c0_52, %c0_53], %63 {strides = array<i32>} : memref<1x288x128xbf16, #tpu.memory_space<vmem>>, vector<1x288x128xbf16>,
    return
  }
  func.func @transform_0(%arg0: i32) -> (i32, i32, i32) {
    %c0_i32 = arith.constant 0 : i32
    %c0_i32_0 = arith.constant 0 : i32
    %c0_i32_1 = arith.constant 0 : i32
    return %arg0, %c0_i32, %c0_i32_0 : i32, i32, i32
  }
  func.func @transform_1(%arg0: i32) -> (i32, i32, i32) {
    %c0_i32 = arith.constant 0 : i32
    %c0_i32_0 = arith.constant 0 : i32
    %c0_i32_1 = arith.constant 0 : i32
    %c0_i32_2 = arith.constant 0 : i32
    return %c0_i32, %c0_i32_0, %c0_i32_1 : i32, i32, i32
  }
  func.func @transform_2(%arg0: i32) -> (i32, i32) {
    %c0_i32 = arith.constant 0 : i32
    %c0_i32_0 = arith.constant 0 : i32
    %c0_i32_1 = arith.constant 0 : i32
    return %c0_i32, %c0_i32_0 : i32, i32
  }
  func.func @transform_3(%arg0: i32) -> (i32, i32, i32) {
    %c0_i32 = arith.constant 0 : i32
    %c0_i32_0 = arith.constant 0 : i32
    %c0_i32_1 = arith.constant 0 : i32
    return %arg0, %c0_i32, %c0_i32_0 : i32, i32, i32
  }
}

module attributes {stable_mosaic.version = 11 : i64} {
  func.func @_conv_taps_kernel(%arg0: i32, %arg1: memref<1x110x128xbf16, #tpu.memory_space<vmem>>, %arg2: memref<9x128x128xbf16, #tpu.memory_space<vmem>>, %arg3: memref<1x128xf32, #tpu.memory_space<vmem>>, %arg4: memref<1x80x128xbf16, #tpu.memory_space<vmem>>) attributes {dimension_semantics = [#tpu.dimension_semantics<parallel>], iteration_bounds = array<i64: 2>, scalar_prefetch = 0 : i64, scratch_operands = 0 : i64, tpu.core_type = #tpu.core_type<tc>, window_params = [{transform_indices = @transform_0, window_bounds = array<i64: 1, 110, 128>}, {pipeline_mode = #tpu.pipeline_mode<synchronous>, transform_indices = @transform_1, window_bounds = array<i64: 9, 128, 128>}, {pipeline_mode = #tpu.pipeline_mode<synchronous>, transform_indices = @transform_2, window_bounds = array<i64: 1, 128>}, {transform_indices = @transform_3, window_bounds = array<i64: 1, 80, 128>}]} {
    %cst = arith.constant 0.000000e+00 : f32
    %0 = vector.broadcast %cst : f32 to vector<80x128xf32>
    %c0 = arith.constant 0 : index
    %c0_0 = arith.constant 0 : index
    %c0_1 = arith.constant 0 : index
    %1 = vector.load %arg1[%c0, %c0_0, %c0_1] : memref<1x110x128xbf16, #tpu.memory_space<vmem>>, vector<1x80x128xbf16>
    %2 = vector.shape_cast %1 : vector<1x80x128xbf16> to vector<80x128xbf16>
    %c0_2 = arith.constant 0 : index
    %c0_3 = arith.constant 0 : index
    %c0_4 = arith.constant 0 : index
    %3 = vector.load %arg2[%c0_2, %c0_3, %c0_4] : memref<9x128x128xbf16, #tpu.memory_space<vmem>>, vector<1x128x128xbf16>
    %4 = vector.shape_cast %3 : vector<1x128x128xbf16> to vector<128x128xbf16>
    %cst_5 = arith.constant dense<0.000000e+00> : vector<80x128xf32>
    %5 = tpu.matmul %2, %4, %cst_5 {dimension_numbers = #tpu.dot_dimension_numbers<[1], [0], [0], [1], [0, 0, 1, 1], [], []>} : vector<80x128xbf16>, vector<128x128xbf16>, vector<80x128xf32> -> vector<80x128xf32>
    %6 = arith.addf %0, %5 : vector<80x128xf32>
    %c0_6 = arith.constant 0 : index
    %c1 = arith.constant 1 : index
    %c0_7 = arith.constant 0 : index
    %7 = vector.load %arg1[%c0_6, %c1, %c0_7] : memref<1x110x128xbf16, #tpu.memory_space<vmem>>, vector<1x80x128xbf16>
    %8 = vector.shape_cast %7 : vector<1x80x128xbf16> to vector<80x128xbf16>
    %c1_8 = arith.constant 1 : index
    %c0_9 = arith.constant 0 : index
    %c0_10 = arith.constant 0 : index
    %9 = vector.load %arg2[%c1_8, %c0_9, %c0_10] : memref<9x128x128xbf16, #tpu.memory_space<vmem>>, vector<1x128x128xbf16>
    %10 = vector.shape_cast %9 : vector<1x128x128xbf16> to vector<128x128xbf16>
    %cst_11 = arith.constant dense<0.000000e+00> : vector<80x128xf32>
    %11 = tpu.matmul %8, %10, %cst_11 {dimension_numbers = #tpu.dot_dimension_numbers<[1], [0], [0], [1], [0, 0, 1, 1], [], []>} : vector<80x128xbf16>, vector<128x128xbf16>, vector<80x128xf32> -> vector<80x128xf32>
    %12 = arith.addf %6, %11 : vector<80x128xf32>
    %c0_12 = arith.constant 0 : index
    %c2 = arith.constant 2 : index
    %c0_13 = arith.constant 0 : index
    %13 = vector.load %arg1[%c0_12, %c2, %c0_13] : memref<1x110x128xbf16, #tpu.memory_space<vmem>>, vector<1x80x128xbf16>
    %14 = vector.shape_cast %13 : vector<1x80x128xbf16> to vector<80x128xbf16>
    %c2_14 = arith.constant 2 : index
    %c0_15 = arith.constant 0 : index
    %c0_16 = arith.constant 0 : index
    %15 = vector.load %arg2[%c2_14, %c0_15, %c0_16] : memref<9x128x128xbf16, #tpu.memory_space<vmem>>, vector<1x128x128xbf16>
    %16 = vector.shape_cast %15 : vector<1x128x128xbf16> to vector<128x128xbf16>
    %cst_17 = arith.constant dense<0.000000e+00> : vector<80x128xf32>
    %17 = tpu.matmul %14, %16, %cst_17 {dimension_numbers = #tpu.dot_dimension_numbers<[1], [0], [0], [1], [0, 0, 1, 1], [], []>} : vector<80x128xbf16>, vector<128x128xbf16>, vector<80x128xf32> -> vector<80x128xf32>
    %18 = arith.addf %12, %17 : vector<80x128xf32>
    %c0_18 = arith.constant 0 : index
    %c10 = arith.constant 10 : index
    %c0_19 = arith.constant 0 : index
    %19 = vector.load %arg1[%c0_18, %c10, %c0_19] : memref<1x110x128xbf16, #tpu.memory_space<vmem>>, vector<1x80x128xbf16>
    %20 = vector.shape_cast %19 : vector<1x80x128xbf16> to vector<80x128xbf16>
    %c3 = arith.constant 3 : index
    %c0_20 = arith.constant 0 : index
    %c0_21 = arith.constant 0 : index
    %21 = vector.load %arg2[%c3, %c0_20, %c0_21] : memref<9x128x128xbf16, #tpu.memory_space<vmem>>, vector<1x128x128xbf16>
    %22 = vector.shape_cast %21 : vector<1x128x128xbf16> to vector<128x128xbf16>
    %cst_22 = arith.constant dense<0.000000e+00> : vector<80x128xf32>
    %23 = tpu.matmul %20, %22, %cst_22 {dimension_numbers = #tpu.dot_dimension_numbers<[1], [0], [0], [1], [0, 0, 1, 1], [], []>} : vector<80x128xbf16>, vector<128x128xbf16>, vector<80x128xf32> -> vector<80x128xf32>
    %24 = arith.addf %18, %23 : vector<80x128xf32>
    %c0_23 = arith.constant 0 : index
    %c11 = arith.constant 11 : index
    %c0_24 = arith.constant 0 : index
    %25 = vector.load %arg1[%c0_23, %c11, %c0_24] : memref<1x110x128xbf16, #tpu.memory_space<vmem>>, vector<1x80x128xbf16>
    %26 = vector.shape_cast %25 : vector<1x80x128xbf16> to vector<80x128xbf16>
    %c4 = arith.constant 4 : index
    %c0_25 = arith.constant 0 : index
    %c0_26 = arith.constant 0 : index
    %27 = vector.load %arg2[%c4, %c0_25, %c0_26] : memref<9x128x128xbf16, #tpu.memory_space<vmem>>, vector<1x128x128xbf16>
    %28 = vector.shape_cast %27 : vector<1x128x128xbf16> to vector<128x128xbf16>
    %cst_27 = arith.constant dense<0.000000e+00> : vector<80x128xf32>
    %29 = tpu.matmul %26, %28, %cst_27 {dimension_numbers = #tpu.dot_dimension_numbers<[1], [0], [0], [1], [0, 0, 1, 1], [], []>} : vector<80x128xbf16>, vector<128x128xbf16>, vector<80x128xf32> -> vector<80x128xf32>
    %30 = arith.addf %24, %29 : vector<80x128xf32>
    %c0_28 = arith.constant 0 : index
    %c12 = arith.constant 12 : index
    %c0_29 = arith.constant 0 : index
    %31 = vector.load %arg1[%c0_28, %c12, %c0_29] : memref<1x110x128xbf16, #tpu.memory_space<vmem>>, vector<1x80x128xbf16>
    %32 = vector.shape_cast %31 : vector<1x80x128xbf16> to vector<80x128xbf16>
    %c5 = arith.constant 5 : index
    %c0_30 = arith.constant 0 : index
    %c0_31 = arith.constant 0 : index
    %33 = vector.load %arg2[%c5, %c0_30, %c0_31] : memref<9x128x128xbf16, #tpu.memory_space<vmem>>, vector<1x128x128xbf16>
    %34 = vector.shape_cast %33 : vector<1x128x128xbf16> to vector<128x128xbf16>
    %cst_32 = arith.constant dense<0.000000e+00> : vector<80x128xf32>
    %35 = tpu.matmul %32, %34, %cst_32 {dimension_numbers = #tpu.dot_dimension_numbers<[1], [0], [0], [1], [0, 0, 1, 1], [], []>} : vector<80x128xbf16>, vector<128x128xbf16>, vector<80x128xf32> -> vector<80x128xf32>
    %36 = arith.addf %30, %35 : vector<80x128xf32>
    %c0_33 = arith.constant 0 : index
    %c20 = arith.constant 20 : index
    %c0_34 = arith.constant 0 : index
    %37 = vector.load %arg1[%c0_33, %c20, %c0_34] : memref<1x110x128xbf16, #tpu.memory_space<vmem>>, vector<1x80x128xbf16>
    %38 = vector.shape_cast %37 : vector<1x80x128xbf16> to vector<80x128xbf16>
    %c6 = arith.constant 6 : index
    %c0_35 = arith.constant 0 : index
    %c0_36 = arith.constant 0 : index
    %39 = vector.load %arg2[%c6, %c0_35, %c0_36] : memref<9x128x128xbf16, #tpu.memory_space<vmem>>, vector<1x128x128xbf16>
    %40 = vector.shape_cast %39 : vector<1x128x128xbf16> to vector<128x128xbf16>
    %cst_37 = arith.constant dense<0.000000e+00> : vector<80x128xf32>
    %41 = tpu.matmul %38, %40, %cst_37 {dimension_numbers = #tpu.dot_dimension_numbers<[1], [0], [0], [1], [0, 0, 1, 1], [], []>} : vector<80x128xbf16>, vector<128x128xbf16>, vector<80x128xf32> -> vector<80x128xf32>
    %42 = arith.addf %36, %41 : vector<80x128xf32>
    %c0_38 = arith.constant 0 : index
    %c21 = arith.constant 21 : index
    %c0_39 = arith.constant 0 : index
    %43 = vector.load %arg1[%c0_38, %c21, %c0_39] : memref<1x110x128xbf16, #tpu.memory_space<vmem>>, vector<1x80x128xbf16>
    %44 = vector.shape_cast %43 : vector<1x80x128xbf16> to vector<80x128xbf16>
    %c7 = arith.constant 7 : index
    %c0_40 = arith.constant 0 : index
    %c0_41 = arith.constant 0 : index
    %45 = vector.load %arg2[%c7, %c0_40, %c0_41] : memref<9x128x128xbf16, #tpu.memory_space<vmem>>, vector<1x128x128xbf16>
    %46 = vector.shape_cast %45 : vector<1x128x128xbf16> to vector<128x128xbf16>
    %cst_42 = arith.constant dense<0.000000e+00> : vector<80x128xf32>
    %47 = tpu.matmul %44, %46, %cst_42 {dimension_numbers = #tpu.dot_dimension_numbers<[1], [0], [0], [1], [0, 0, 1, 1], [], []>} : vector<80x128xbf16>, vector<128x128xbf16>, vector<80x128xf32> -> vector<80x128xf32>
    %48 = arith.addf %42, %47 : vector<80x128xf32>
    %c0_43 = arith.constant 0 : index
    %c22 = arith.constant 22 : index
    %c0_44 = arith.constant 0 : index
    %49 = vector.load %arg1[%c0_43, %c22, %c0_44] : memref<1x110x128xbf16, #tpu.memory_space<vmem>>, vector<1x80x128xbf16>
    %50 = vector.shape_cast %49 : vector<1x80x128xbf16> to vector<80x128xbf16>
    %c8 = arith.constant 8 : index
    %c0_45 = arith.constant 0 : index
    %c0_46 = arith.constant 0 : index
    %51 = vector.load %arg2[%c8, %c0_45, %c0_46] : memref<9x128x128xbf16, #tpu.memory_space<vmem>>, vector<1x128x128xbf16>
    %52 = vector.shape_cast %51 : vector<1x128x128xbf16> to vector<128x128xbf16>
    %cst_47 = arith.constant dense<0.000000e+00> : vector<80x128xf32>
    %53 = tpu.matmul %50, %52, %cst_47 {dimension_numbers = #tpu.dot_dimension_numbers<[1], [0], [0], [1], [0, 0, 1, 1], [], []>} : vector<80x128xbf16>, vector<128x128xbf16>, vector<80x128xf32> -> vector<80x128xf32>
    %54 = arith.addf %48, %53 : vector<80x128xf32>
    %c0_48 = arith.constant 0 : index
    %c0_49 = arith.constant 0 : index
    %55 = vector.load %arg3[%c0_48, %c0_49] : memref<1x128xf32, #tpu.memory_space<vmem>>, vector<1x128xf32>
    %56 = vector.broadcast %55 : vector<1x128xf32> to vector<80x128xf32>
    %57 = arith.addf %54, %56 : vector<80x128xf32>
    %cst_50 = arith.constant 0.000000e+00 : f32
    %58 = vector.broadcast %cst_50 : f32 to vector<80x128xf32>
    %59 = arith.maximumf %57, %58 : vector<80x128xf32>
    %60 = arith.truncf %59 : vector<80x128xf32> to vector<80x128xbf16>
    %c0_51 = arith.constant 0 : index
    %c0_52 = arith.constant 0 : index
    %c0_53 = arith.constant 0 : index
    %61 = vector.load %arg4[%c0_51, %c0_52, %c0_53] : memref<1x80x128xbf16, #tpu.memory_space<vmem>>, vector<1x80x128xbf16>
    %62 = vector.shape_cast %61 : vector<1x80x128xbf16> to vector<80x128xbf16>
    %63 = vector.shape_cast %60 : vector<80x128xbf16> to vector<1x80x128xbf16>
    tpu.vector_store %arg4[%c0_51, %c0_52, %c0_53], %63 {strides = array<i32>} : memref<1x80x128xbf16, #tpu.memory_space<vmem>>, vector<1x80x128xbf16>,
    return
  }
  func.func @transform_0(%arg0: i32) -> (i32, i32, i32) {
    %c0_i32 = arith.constant 0 : i32
    %c0_i32_0 = arith.constant 0 : i32
    %c0_i32_1 = arith.constant 0 : i32
    return %arg0, %c0_i32, %c0_i32_0 : i32, i32, i32
  }
  func.func @transform_1(%arg0: i32) -> (i32, i32, i32) {
    %c0_i32 = arith.constant 0 : i32
    %c0_i32_0 = arith.constant 0 : i32
    %c0_i32_1 = arith.constant 0 : i32
    %c0_i32_2 = arith.constant 0 : i32
    return %c0_i32, %c0_i32_0, %c0_i32_1 : i32, i32, i32
  }
  func.func @transform_2(%arg0: i32) -> (i32, i32) {
    %c0_i32 = arith.constant 0 : i32
    %c0_i32_0 = arith.constant 0 : i32
    %c0_i32_1 = arith.constant 0 : i32
    return %c0_i32, %c0_i32_0 : i32, i32
  }
  func.func @transform_3(%arg0: i32) -> (i32, i32, i32) {
    %c0_i32 = arith.constant 0 : i32
    %c0_i32_0 = arith.constant 0 : i32
    %c0_i32_1 = arith.constant 0 : i32
    return %arg0, %c0_i32, %c0_i32_0 : i32, i32, i32
  }
}

module attributes {stable_mosaic.version = 11 : i64} {
  func.func @_conv_taps_kernel(%arg0: i32, %arg1: memref<1x42x128xbf16, #tpu.memory_space<vmem>>, %arg2: memref<9x128x128xbf16, #tpu.memory_space<vmem>>, %arg3: memref<1x128xf32, #tpu.memory_space<vmem>>, %arg4: memref<1x24x128xbf16, #tpu.memory_space<vmem>>) attributes {dimension_semantics = [#tpu.dimension_semantics<parallel>], iteration_bounds = array<i64: 2>, scalar_prefetch = 0 : i64, scratch_operands = 0 : i64, tpu.core_type = #tpu.core_type<tc>, window_params = [{transform_indices = @transform_0, window_bounds = array<i64: 1, 42, 128>}, {pipeline_mode = #tpu.pipeline_mode<synchronous>, transform_indices = @transform_1, window_bounds = array<i64: 9, 128, 128>}, {pipeline_mode = #tpu.pipeline_mode<synchronous>, transform_indices = @transform_2, window_bounds = array<i64: 1, 128>}, {transform_indices = @transform_3, window_bounds = array<i64: 1, 24, 128>}]} {
    %cst = arith.constant 0.000000e+00 : f32
    %0 = vector.broadcast %cst : f32 to vector<24x128xf32>
    %c0 = arith.constant 0 : index
    %c0_0 = arith.constant 0 : index
    %c0_1 = arith.constant 0 : index
    %1 = vector.load %arg1[%c0, %c0_0, %c0_1] : memref<1x42x128xbf16, #tpu.memory_space<vmem>>, vector<1x24x128xbf16>
    %2 = vector.shape_cast %1 : vector<1x24x128xbf16> to vector<24x128xbf16>
    %c0_2 = arith.constant 0 : index
    %c0_3 = arith.constant 0 : index
    %c0_4 = arith.constant 0 : index
    %3 = vector.load %arg2[%c0_2, %c0_3, %c0_4] : memref<9x128x128xbf16, #tpu.memory_space<vmem>>, vector<1x128x128xbf16>
    %4 = vector.shape_cast %3 : vector<1x128x128xbf16> to vector<128x128xbf16>
    %cst_5 = arith.constant dense<0.000000e+00> : vector<24x128xf32>
    %5 = tpu.matmul %2, %4, %cst_5 {dimension_numbers = #tpu.dot_dimension_numbers<[1], [0], [0], [1], [0, 0, 1, 1], [], []>} : vector<24x128xbf16>, vector<128x128xbf16>, vector<24x128xf32> -> vector<24x128xf32>
    %6 = arith.addf %0, %5 : vector<24x128xf32>
    %c0_6 = arith.constant 0 : index
    %c1 = arith.constant 1 : index
    %c0_7 = arith.constant 0 : index
    %7 = vector.load %arg1[%c0_6, %c1, %c0_7] : memref<1x42x128xbf16, #tpu.memory_space<vmem>>, vector<1x24x128xbf16>
    %8 = vector.shape_cast %7 : vector<1x24x128xbf16> to vector<24x128xbf16>
    %c1_8 = arith.constant 1 : index
    %c0_9 = arith.constant 0 : index
    %c0_10 = arith.constant 0 : index
    %9 = vector.load %arg2[%c1_8, %c0_9, %c0_10] : memref<9x128x128xbf16, #tpu.memory_space<vmem>>, vector<1x128x128xbf16>
    %10 = vector.shape_cast %9 : vector<1x128x128xbf16> to vector<128x128xbf16>
    %cst_11 = arith.constant dense<0.000000e+00> : vector<24x128xf32>
    %11 = tpu.matmul %8, %10, %cst_11 {dimension_numbers = #tpu.dot_dimension_numbers<[1], [0], [0], [1], [0, 0, 1, 1], [], []>} : vector<24x128xbf16>, vector<128x128xbf16>, vector<24x128xf32> -> vector<24x128xf32>
    %12 = arith.addf %6, %11 : vector<24x128xf32>
    %c0_12 = arith.constant 0 : index
    %c2 = arith.constant 2 : index
    %c0_13 = arith.constant 0 : index
    %13 = vector.load %arg1[%c0_12, %c2, %c0_13] : memref<1x42x128xbf16, #tpu.memory_space<vmem>>, vector<1x24x128xbf16>
    %14 = vector.shape_cast %13 : vector<1x24x128xbf16> to vector<24x128xbf16>
    %c2_14 = arith.constant 2 : index
    %c0_15 = arith.constant 0 : index
    %c0_16 = arith.constant 0 : index
    %15 = vector.load %arg2[%c2_14, %c0_15, %c0_16] : memref<9x128x128xbf16, #tpu.memory_space<vmem>>, vector<1x128x128xbf16>
    %16 = vector.shape_cast %15 : vector<1x128x128xbf16> to vector<128x128xbf16>
    %cst_17 = arith.constant dense<0.000000e+00> : vector<24x128xf32>
    %17 = tpu.matmul %14, %16, %cst_17 {dimension_numbers = #tpu.dot_dimension_numbers<[1], [0], [0], [1], [0, 0, 1, 1], [], []>} : vector<24x128xbf16>, vector<128x128xbf16>, vector<24x128xf32> -> vector<24x128xf32>
    %18 = arith.addf %12, %17 : vector<24x128xf32>
    %c0_18 = arith.constant 0 : index
    %c6 = arith.constant 6 : index
    %c0_19 = arith.constant 0 : index
    %19 = vector.load %arg1[%c0_18, %c6, %c0_19] : memref<1x42x128xbf16, #tpu.memory_space<vmem>>, vector<1x24x128xbf16>
    %20 = vector.shape_cast %19 : vector<1x24x128xbf16> to vector<24x128xbf16>
    %c3 = arith.constant 3 : index
    %c0_20 = arith.constant 0 : index
    %c0_21 = arith.constant 0 : index
    %21 = vector.load %arg2[%c3, %c0_20, %c0_21] : memref<9x128x128xbf16, #tpu.memory_space<vmem>>, vector<1x128x128xbf16>
    %22 = vector.shape_cast %21 : vector<1x128x128xbf16> to vector<128x128xbf16>
    %cst_22 = arith.constant dense<0.000000e+00> : vector<24x128xf32>
    %23 = tpu.matmul %20, %22, %cst_22 {dimension_numbers = #tpu.dot_dimension_numbers<[1], [0], [0], [1], [0, 0, 1, 1], [], []>} : vector<24x128xbf16>, vector<128x128xbf16>, vector<24x128xf32> -> vector<24x128xf32>
    %24 = arith.addf %18, %23 : vector<24x128xf32>
    %c0_23 = arith.constant 0 : index
    %c7 = arith.constant 7 : index
    %c0_24 = arith.constant 0 : index
    %25 = vector.load %arg1[%c0_23, %c7, %c0_24] : memref<1x42x128xbf16, #tpu.memory_space<vmem>>, vector<1x24x128xbf16>
    %26 = vector.shape_cast %25 : vector<1x24x128xbf16> to vector<24x128xbf16>
    %c4 = arith.constant 4 : index
    %c0_25 = arith.constant 0 : index
    %c0_26 = arith.constant 0 : index
    %27 = vector.load %arg2[%c4, %c0_25, %c0_26] : memref<9x128x128xbf16, #tpu.memory_space<vmem>>, vector<1x128x128xbf16>
    %28 = vector.shape_cast %27 : vector<1x128x128xbf16> to vector<128x128xbf16>
    %cst_27 = arith.constant dense<0.000000e+00> : vector<24x128xf32>
    %29 = tpu.matmul %26, %28, %cst_27 {dimension_numbers = #tpu.dot_dimension_numbers<[1], [0], [0], [1], [0, 0, 1, 1], [], []>} : vector<24x128xbf16>, vector<128x128xbf16>, vector<24x128xf32> -> vector<24x128xf32>
    %30 = arith.addf %24, %29 : vector<24x128xf32>
    %c0_28 = arith.constant 0 : index
    %c8 = arith.constant 8 : index
    %c0_29 = arith.constant 0 : index
    %31 = vector.load %arg1[%c0_28, %c8, %c0_29] : memref<1x42x128xbf16, #tpu.memory_space<vmem>>, vector<1x24x128xbf16>
    %32 = vector.shape_cast %31 : vector<1x24x128xbf16> to vector<24x128xbf16>
    %c5 = arith.constant 5 : index
    %c0_30 = arith.constant 0 : index
    %c0_31 = arith.constant 0 : index
    %33 = vector.load %arg2[%c5, %c0_30, %c0_31] : memref<9x128x128xbf16, #tpu.memory_space<vmem>>, vector<1x128x128xbf16>
    %34 = vector.shape_cast %33 : vector<1x128x128xbf16> to vector<128x128xbf16>
    %cst_32 = arith.constant dense<0.000000e+00> : vector<24x128xf32>
    %35 = tpu.matmul %32, %34, %cst_32 {dimension_numbers = #tpu.dot_dimension_numbers<[1], [0], [0], [1], [0, 0, 1, 1], [], []>} : vector<24x128xbf16>, vector<128x128xbf16>, vector<24x128xf32> -> vector<24x128xf32>
    %36 = arith.addf %30, %35 : vector<24x128xf32>
    %c0_33 = arith.constant 0 : index
    %c12 = arith.constant 12 : index
    %c0_34 = arith.constant 0 : index
    %37 = vector.load %arg1[%c0_33, %c12, %c0_34] : memref<1x42x128xbf16, #tpu.memory_space<vmem>>, vector<1x24x128xbf16>
    %38 = vector.shape_cast %37 : vector<1x24x128xbf16> to vector<24x128xbf16>
    %c6_35 = arith.constant 6 : index
    %c0_36 = arith.constant 0 : index
    %c0_37 = arith.constant 0 : index
    %39 = vector.load %arg2[%c6_35, %c0_36, %c0_37] : memref<9x128x128xbf16, #tpu.memory_space<vmem>>, vector<1x128x128xbf16>
    %40 = vector.shape_cast %39 : vector<1x128x128xbf16> to vector<128x128xbf16>
    %cst_38 = arith.constant dense<0.000000e+00> : vector<24x128xf32>
    %41 = tpu.matmul %38, %40, %cst_38 {dimension_numbers = #tpu.dot_dimension_numbers<[1], [0], [0], [1], [0, 0, 1, 1], [], []>} : vector<24x128xbf16>, vector<128x128xbf16>, vector<24x128xf32> -> vector<24x128xf32>
    %42 = arith.addf %36, %41 : vector<24x128xf32>
    %c0_39 = arith.constant 0 : index
    %c13 = arith.constant 13 : index
    %c0_40 = arith.constant 0 : index
    %43 = vector.load %arg1[%c0_39, %c13, %c0_40] : memref<1x42x128xbf16, #tpu.memory_space<vmem>>, vector<1x24x128xbf16>
    %44 = vector.shape_cast %43 : vector<1x24x128xbf16> to vector<24x128xbf16>
    %c7_41 = arith.constant 7 : index
    %c0_42 = arith.constant 0 : index
    %c0_43 = arith.constant 0 : index
    %45 = vector.load %arg2[%c7_41, %c0_42, %c0_43] : memref<9x128x128xbf16, #tpu.memory_space<vmem>>, vector<1x128x128xbf16>
    %46 = vector.shape_cast %45 : vector<1x128x128xbf16> to vector<128x128xbf16>
    %cst_44 = arith.constant dense<0.000000e+00> : vector<24x128xf32>
    %47 = tpu.matmul %44, %46, %cst_44 {dimension_numbers = #tpu.dot_dimension_numbers<[1], [0], [0], [1], [0, 0, 1, 1], [], []>} : vector<24x128xbf16>, vector<128x128xbf16>, vector<24x128xf32> -> vector<24x128xf32>
    %48 = arith.addf %42, %47 : vector<24x128xf32>
    %c0_45 = arith.constant 0 : index
    %c14 = arith.constant 14 : index
    %c0_46 = arith.constant 0 : index
    %49 = vector.load %arg1[%c0_45, %c14, %c0_46] : memref<1x42x128xbf16, #tpu.memory_space<vmem>>, vector<1x24x128xbf16>
    %50 = vector.shape_cast %49 : vector<1x24x128xbf16> to vector<24x128xbf16>
    %c8_47 = arith.constant 8 : index
    %c0_48 = arith.constant 0 : index
    %c0_49 = arith.constant 0 : index
    %51 = vector.load %arg2[%c8_47, %c0_48, %c0_49] : memref<9x128x128xbf16, #tpu.memory_space<vmem>>, vector<1x128x128xbf16>
    %52 = vector.shape_cast %51 : vector<1x128x128xbf16> to vector<128x128xbf16>
    %cst_50 = arith.constant dense<0.000000e+00> : vector<24x128xf32>
    %53 = tpu.matmul %50, %52, %cst_50 {dimension_numbers = #tpu.dot_dimension_numbers<[1], [0], [0], [1], [0, 0, 1, 1], [], []>} : vector<24x128xbf16>, vector<128x128xbf16>, vector<24x128xf32> -> vector<24x128xf32>
    %54 = arith.addf %48, %53 : vector<24x128xf32>
    %c0_51 = arith.constant 0 : index
    %c0_52 = arith.constant 0 : index
    %55 = vector.load %arg3[%c0_51, %c0_52] : memref<1x128xf32, #tpu.memory_space<vmem>>, vector<1x128xf32>
    %56 = vector.broadcast %55 : vector<1x128xf32> to vector<24x128xf32>
    %57 = arith.addf %54, %56 : vector<24x128xf32>
    %cst_53 = arith.constant 0.000000e+00 : f32
    %58 = vector.broadcast %cst_53 : f32 to vector<24x128xf32>
    %59 = arith.maximumf %57, %58 : vector<24x128xf32>
    %60 = arith.truncf %59 : vector<24x128xf32> to vector<24x128xbf16>
    %c0_54 = arith.constant 0 : index
    %c0_55 = arith.constant 0 : index
    %c0_56 = arith.constant 0 : index
    %61 = vector.load %arg4[%c0_54, %c0_55, %c0_56] : memref<1x24x128xbf16, #tpu.memory_space<vmem>>, vector<1x24x128xbf16>
    %62 = vector.shape_cast %61 : vector<1x24x128xbf16> to vector<24x128xbf16>
    %63 = vector.shape_cast %60 : vector<24x128xbf16> to vector<1x24x128xbf16>
    tpu.vector_store %arg4[%c0_54, %c0_55, %c0_56], %63 {strides = array<i32>} : memref<1x24x128xbf16, #tpu.memory_space<vmem>>, vector<1x24x128xbf16>,
    return
  }
  func.func @transform_0(%arg0: i32) -> (i32, i32, i32) {
    %c0_i32 = arith.constant 0 : i32
    %c0_i32_0 = arith.constant 0 : i32
    %c0_i32_1 = arith.constant 0 : i32
    return %arg0, %c0_i32, %c0_i32_0 : i32, i32, i32
  }
  func.func @transform_1(%arg0: i32) -> (i32, i32, i32) {
    %c0_i32 = arith.constant 0 : i32
    %c0_i32_0 = arith.constant 0 : i32
    %c0_i32_1 = arith.constant 0 : i32
    %c0_i32_2 = arith.constant 0 : i32
    return %c0_i32, %c0_i32_0, %c0_i32_1 : i32, i32, i32
  }
  func.func @transform_2(%arg0: i32) -> (i32, i32) {
    %c0_i32 = arith.constant 0 : i32
    %c0_i32_0 = arith.constant 0 : i32
    %c0_i32_1 = arith.constant 0 : i32
    return %c0_i32, %c0_i32_0 : i32, i32
  }
  func.func @transform_3(%arg0: i32) -> (i32, i32, i32) {
    %c0_i32 = arith.constant 0 : i32
    %c0_i32_0 = arith.constant 0 : i32
    %c0_i32_1 = arith.constant 0 : i32
    return %arg0, %c0_i32, %c0_i32_0 : i32, i32, i32
  }
}

module attributes {stable_mosaic.version = 11 : i64} {
  func.func @_conv_taps_kernel(%arg0: i32, %arg1: memref<1x20x128xbf16, #tpu.memory_space<vmem>>, %arg2: memref<9x128x256xbf16, #tpu.memory_space<vmem>>, %arg3: memref<1x256xf32, #tpu.memory_space<vmem>>, %arg4: memref<1x8x256xbf16, #tpu.memory_space<vmem>>) attributes {dimension_semantics = [#tpu.dimension_semantics<parallel>], iteration_bounds = array<i64: 2>, scalar_prefetch = 0 : i64, scratch_operands = 0 : i64, tpu.core_type = #tpu.core_type<tc>, window_params = [{transform_indices = @transform_0, window_bounds = array<i64: 1, 20, 128>}, {pipeline_mode = #tpu.pipeline_mode<synchronous>, transform_indices = @transform_1, window_bounds = array<i64: 9, 128, 256>}, {pipeline_mode = #tpu.pipeline_mode<synchronous>, transform_indices = @transform_2, window_bounds = array<i64: 1, 256>}, {transform_indices = @transform_3, window_bounds = array<i64: 1, 8, 256>}]} {
    %cst = arith.constant 0.000000e+00 : f32
    %0 = vector.broadcast %cst : f32 to vector<8x256xf32>
    %c0 = arith.constant 0 : index
    %c0_0 = arith.constant 0 : index
    %c0_1 = arith.constant 0 : index
    %1 = vector.load %arg1[%c0, %c0_0, %c0_1] : memref<1x20x128xbf16, #tpu.memory_space<vmem>>, vector<1x8x128xbf16>
    %2 = vector.shape_cast %1 : vector<1x8x128xbf16> to vector<8x128xbf16>
    %c0_2 = arith.constant 0 : index
    %c0_3 = arith.constant 0 : index
    %c0_4 = arith.constant 0 : index
    %3 = vector.load %arg2[%c0_2, %c0_3, %c0_4] : memref<9x128x256xbf16, #tpu.memory_space<vmem>>, vector<1x128x256xbf16>
    %4 = vector.shape_cast %3 : vector<1x128x256xbf16> to vector<128x256xbf16>
    %cst_5 = arith.constant dense<0.000000e+00> : vector<8x256xf32>
    %5 = tpu.matmul %2, %4, %cst_5 {dimension_numbers = #tpu.dot_dimension_numbers<[1], [0], [0], [1], [0, 0, 1, 1], [], []>} : vector<8x128xbf16>, vector<128x256xbf16>, vector<8x256xf32> -> vector<8x256xf32>
    %6 = arith.addf %0, %5 : vector<8x256xf32>
    %c0_6 = arith.constant 0 : index
    %c1 = arith.constant 1 : index
    %c0_7 = arith.constant 0 : index
    %7 = vector.load %arg1[%c0_6, %c1, %c0_7] : memref<1x20x128xbf16, #tpu.memory_space<vmem>>, vector<1x8x128xbf16>
    %8 = vector.shape_cast %7 : vector<1x8x128xbf16> to vector<8x128xbf16>
    %c1_8 = arith.constant 1 : index
    %c0_9 = arith.constant 0 : index
    %c0_10 = arith.constant 0 : index
    %9 = vector.load %arg2[%c1_8, %c0_9, %c0_10] : memref<9x128x256xbf16, #tpu.memory_space<vmem>>, vector<1x128x256xbf16>
    %10 = vector.shape_cast %9 : vector<1x128x256xbf16> to vector<128x256xbf16>
    %cst_11 = arith.constant dense<0.000000e+00> : vector<8x256xf32>
    %11 = tpu.matmul %8, %10, %cst_11 {dimension_numbers = #tpu.dot_dimension_numbers<[1], [0], [0], [1], [0, 0, 1, 1], [], []>} : vector<8x128xbf16>, vector<128x256xbf16>, vector<8x256xf32> -> vector<8x256xf32>
    %12 = arith.addf %6, %11 : vector<8x256xf32>
    %c0_12 = arith.constant 0 : index
    %c2 = arith.constant 2 : index
    %c0_13 = arith.constant 0 : index
    %13 = vector.load %arg1[%c0_12, %c2, %c0_13] : memref<1x20x128xbf16, #tpu.memory_space<vmem>>, vector<1x8x128xbf16>
    %14 = vector.shape_cast %13 : vector<1x8x128xbf16> to vector<8x128xbf16>
    %c2_14 = arith.constant 2 : index
    %c0_15 = arith.constant 0 : index
    %c0_16 = arith.constant 0 : index
    %15 = vector.load %arg2[%c2_14, %c0_15, %c0_16] : memref<9x128x256xbf16, #tpu.memory_space<vmem>>, vector<1x128x256xbf16>
    %16 = vector.shape_cast %15 : vector<1x128x256xbf16> to vector<128x256xbf16>
    %cst_17 = arith.constant dense<0.000000e+00> : vector<8x256xf32>
    %17 = tpu.matmul %14, %16, %cst_17 {dimension_numbers = #tpu.dot_dimension_numbers<[1], [0], [0], [1], [0, 0, 1, 1], [], []>} : vector<8x128xbf16>, vector<128x256xbf16>, vector<8x256xf32> -> vector<8x256xf32>
    %18 = arith.addf %12, %17 : vector<8x256xf32>
    %c0_18 = arith.constant 0 : index
    %c4 = arith.constant 4 : index
    %c0_19 = arith.constant 0 : index
    %19 = vector.load %arg1[%c0_18, %c4, %c0_19] : memref<1x20x128xbf16, #tpu.memory_space<vmem>>, vector<1x8x128xbf16>
    %20 = vector.shape_cast %19 : vector<1x8x128xbf16> to vector<8x128xbf16>
    %c3 = arith.constant 3 : index
    %c0_20 = arith.constant 0 : index
    %c0_21 = arith.constant 0 : index
    %21 = vector.load %arg2[%c3, %c0_20, %c0_21] : memref<9x128x256xbf16, #tpu.memory_space<vmem>>, vector<1x128x256xbf16>
    %22 = vector.shape_cast %21 : vector<1x128x256xbf16> to vector<128x256xbf16>
    %cst_22 = arith.constant dense<0.000000e+00> : vector<8x256xf32>
    %23 = tpu.matmul %20, %22, %cst_22 {dimension_numbers = #tpu.dot_dimension_numbers<[1], [0], [0], [1], [0, 0, 1, 1], [], []>} : vector<8x128xbf16>, vector<128x256xbf16>, vector<8x256xf32> -> vector<8x256xf32>
    %24 = arith.addf %18, %23 : vector<8x256xf32>
    %c0_23 = arith.constant 0 : index
    %c5 = arith.constant 5 : index
    %c0_24 = arith.constant 0 : index
    %25 = vector.load %arg1[%c0_23, %c5, %c0_24] : memref<1x20x128xbf16, #tpu.memory_space<vmem>>, vector<1x8x128xbf16>
    %26 = vector.shape_cast %25 : vector<1x8x128xbf16> to vector<8x128xbf16>
    %c4_25 = arith.constant 4 : index
    %c0_26 = arith.constant 0 : index
    %c0_27 = arith.constant 0 : index
    %27 = vector.load %arg2[%c4_25, %c0_26, %c0_27] : memref<9x128x256xbf16, #tpu.memory_space<vmem>>, vector<1x128x256xbf16>
    %28 = vector.shape_cast %27 : vector<1x128x256xbf16> to vector<128x256xbf16>
    %cst_28 = arith.constant dense<0.000000e+00> : vector<8x256xf32>
    %29 = tpu.matmul %26, %28, %cst_28 {dimension_numbers = #tpu.dot_dimension_numbers<[1], [0], [0], [1], [0, 0, 1, 1], [], []>} : vector<8x128xbf16>, vector<128x256xbf16>, vector<8x256xf32> -> vector<8x256xf32>
    %30 = arith.addf %24, %29 : vector<8x256xf32>
    %c0_29 = arith.constant 0 : index
    %c6 = arith.constant 6 : index
    %c0_30 = arith.constant 0 : index
    %31 = vector.load %arg1[%c0_29, %c6, %c0_30] : memref<1x20x128xbf16, #tpu.memory_space<vmem>>, vector<1x8x128xbf16>
    %32 = vector.shape_cast %31 : vector<1x8x128xbf16> to vector<8x128xbf16>
    %c5_31 = arith.constant 5 : index
    %c0_32 = arith.constant 0 : index
    %c0_33 = arith.constant 0 : index
    %33 = vector.load %arg2[%c5_31, %c0_32, %c0_33] : memref<9x128x256xbf16, #tpu.memory_space<vmem>>, vector<1x128x256xbf16>
    %34 = vector.shape_cast %33 : vector<1x128x256xbf16> to vector<128x256xbf16>
    %cst_34 = arith.constant dense<0.000000e+00> : vector<8x256xf32>
    %35 = tpu.matmul %32, %34, %cst_34 {dimension_numbers = #tpu.dot_dimension_numbers<[1], [0], [0], [1], [0, 0, 1, 1], [], []>} : vector<8x128xbf16>, vector<128x256xbf16>, vector<8x256xf32> -> vector<8x256xf32>
    %36 = arith.addf %30, %35 : vector<8x256xf32>
    %c0_35 = arith.constant 0 : index
    %c8 = arith.constant 8 : index
    %c0_36 = arith.constant 0 : index
    %37 = vector.load %arg1[%c0_35, %c8, %c0_36] : memref<1x20x128xbf16, #tpu.memory_space<vmem>>, vector<1x8x128xbf16>
    %38 = vector.shape_cast %37 : vector<1x8x128xbf16> to vector<8x128xbf16>
    %c6_37 = arith.constant 6 : index
    %c0_38 = arith.constant 0 : index
    %c0_39 = arith.constant 0 : index
    %39 = vector.load %arg2[%c6_37, %c0_38, %c0_39] : memref<9x128x256xbf16, #tpu.memory_space<vmem>>, vector<1x128x256xbf16>
    %40 = vector.shape_cast %39 : vector<1x128x256xbf16> to vector<128x256xbf16>
    %cst_40 = arith.constant dense<0.000000e+00> : vector<8x256xf32>
    %41 = tpu.matmul %38, %40, %cst_40 {dimension_numbers = #tpu.dot_dimension_numbers<[1], [0], [0], [1], [0, 0, 1, 1], [], []>} : vector<8x128xbf16>, vector<128x256xbf16>, vector<8x256xf32> -> vector<8x256xf32>
    %42 = arith.addf %36, %41 : vector<8x256xf32>
    %c0_41 = arith.constant 0 : index
    %c9 = arith.constant 9 : index
    %c0_42 = arith.constant 0 : index
    %43 = vector.load %arg1[%c0_41, %c9, %c0_42] : memref<1x20x128xbf16, #tpu.memory_space<vmem>>, vector<1x8x128xbf16>
    %44 = vector.shape_cast %43 : vector<1x8x128xbf16> to vector<8x128xbf16>
    %c7 = arith.constant 7 : index
    %c0_43 = arith.constant 0 : index
    %c0_44 = arith.constant 0 : index
    %45 = vector.load %arg2[%c7, %c0_43, %c0_44] : memref<9x128x256xbf16, #tpu.memory_space<vmem>>, vector<1x128x256xbf16>
    %46 = vector.shape_cast %45 : vector<1x128x256xbf16> to vector<128x256xbf16>
    %cst_45 = arith.constant dense<0.000000e+00> : vector<8x256xf32>
    %47 = tpu.matmul %44, %46, %cst_45 {dimension_numbers = #tpu.dot_dimension_numbers<[1], [0], [0], [1], [0, 0, 1, 1], [], []>} : vector<8x128xbf16>, vector<128x256xbf16>, vector<8x256xf32> -> vector<8x256xf32>
    %48 = arith.addf %42, %47 : vector<8x256xf32>
    %c0_46 = arith.constant 0 : index
    %c10 = arith.constant 10 : index
    %c0_47 = arith.constant 0 : index
    %49 = vector.load %arg1[%c0_46, %c10, %c0_47] : memref<1x20x128xbf16, #tpu.memory_space<vmem>>, vector<1x8x128xbf16>
    %50 = vector.shape_cast %49 : vector<1x8x128xbf16> to vector<8x128xbf16>
    %c8_48 = arith.constant 8 : index
    %c0_49 = arith.constant 0 : index
    %c0_50 = arith.constant 0 : index
    %51 = vector.load %arg2[%c8_48, %c0_49, %c0_50] : memref<9x128x256xbf16, #tpu.memory_space<vmem>>, vector<1x128x256xbf16>
    %52 = vector.shape_cast %51 : vector<1x128x256xbf16> to vector<128x256xbf16>
    %cst_51 = arith.constant dense<0.000000e+00> : vector<8x256xf32>
    %53 = tpu.matmul %50, %52, %cst_51 {dimension_numbers = #tpu.dot_dimension_numbers<[1], [0], [0], [1], [0, 0, 1, 1], [], []>} : vector<8x128xbf16>, vector<128x256xbf16>, vector<8x256xf32> -> vector<8x256xf32>
    %54 = arith.addf %48, %53 : vector<8x256xf32>
    %c0_52 = arith.constant 0 : index
    %c0_53 = arith.constant 0 : index
    %55 = vector.load %arg3[%c0_52, %c0_53] : memref<1x256xf32, #tpu.memory_space<vmem>>, vector<1x256xf32>
    %56 = vector.broadcast %55 : vector<1x256xf32> to vector<8x256xf32>
    %57 = arith.addf %54, %56 : vector<8x256xf32>
    %cst_54 = arith.constant 0.000000e+00 : f32
    %58 = vector.broadcast %cst_54 : f32 to vector<8x256xf32>
    %59 = arith.maximumf %57, %58 : vector<8x256xf32>
    %60 = arith.truncf %59 : vector<8x256xf32> to vector<8x256xbf16>
    %c0_55 = arith.constant 0 : index
    %c0_56 = arith.constant 0 : index
    %c0_57 = arith.constant 0 : index
    %61 = vector.load %arg4[%c0_55, %c0_56, %c0_57] : memref<1x8x256xbf16, #tpu.memory_space<vmem>>, vector<1x8x256xbf16>
    %62 = vector.shape_cast %61 : vector<1x8x256xbf16> to vector<8x256xbf16>
    %63 = vector.shape_cast %60 : vector<8x256xbf16> to vector<1x8x256xbf16>
    tpu.vector_store %arg4[%c0_55, %c0_56, %c0_57], %63 {strides = array<i32>} : memref<1x8x256xbf16, #tpu.memory_space<vmem>>, vector<1x8x256xbf16>,
    return
  }
  func.func @transform_0(%arg0: i32) -> (i32, i32, i32) {
    %c0_i32 = arith.constant 0 : i32
    %c0_i32_0 = arith.constant 0 : i32
    %c0_i32_1 = arith.constant 0 : i32
    return %arg0, %c0_i32, %c0_i32_0 : i32, i32, i32
  }
  func.func @transform_1(%arg0: i32) -> (i32, i32, i32) {
    %c0_i32 = arith.constant 0 : i32
    %c0_i32_0 = arith.constant 0 : i32
    %c0_i32_1 = arith.constant 0 : i32
    %c0_i32_2 = arith.constant 0 : i32
    return %c0_i32, %c0_i32_0, %c0_i32_1 : i32, i32, i32
  }
  func.func @transform_2(%arg0: i32) -> (i32, i32) {
    %c0_i32 = arith.constant 0 : i32
    %c0_i32_0 = arith.constant 0 : i32
    %c0_i32_1 = arith.constant 0 : i32
    return %c0_i32, %c0_i32_0 : i32, i32
  }
  func.func @transform_3(%arg0: i32) -> (i32, i32, i32) {
    %c0_i32 = arith.constant 0 : i32
    %c0_i32_0 = arith.constant 0 : i32
    %c0_i32_1 = arith.constant 0 : i32
    return %arg0, %c0_i32, %c0_i32_0 : i32, i32, i32
  }
}

module attributes {stable_mosaic.version = 11 : i64} {
  func.func @_conv_taps_kernel(%arg0: i32, %arg1: memref<1x30x128xbf16, #tpu.memory_space<vmem>>, %arg2: memref<1x30x128xbf16, #tpu.memory_space<vmem>>, %arg3: memref<4x128x256xbf16, #tpu.memory_space<vmem>>, %arg4: memref<4x128x256xbf16, #tpu.memory_space<vmem>>, %arg5: memref<1x256xf32, #tpu.memory_space<vmem>>, %arg6: memref<1x20x256xbf16, #tpu.memory_space<vmem>>) attributes {dimension_semantics = [#tpu.dimension_semantics<parallel>], iteration_bounds = array<i64: 2>, scalar_prefetch = 0 : i64, scratch_operands = 0 : i64, tpu.core_type = #tpu.core_type<tc>, window_params = [{transform_indices = @transform_0, window_bounds = array<i64: 1, 30, 128>}, {transform_indices = @transform_1, window_bounds = array<i64: 1, 30, 128>}, {pipeline_mode = #tpu.pipeline_mode<synchronous>, transform_indices = @transform_2, window_bounds = array<i64: 4, 128, 256>}, {pipeline_mode = #tpu.pipeline_mode<synchronous>, transform_indices = @transform_3, window_bounds = array<i64: 4, 128, 256>}, {pipeline_mode = #tpu.pipeline_mode<synchronous>, transform_indices = @transform_4, window_bounds = array<i64: 1, 256>}, {transform_indices = @transform_5, window_bounds = array<i64: 1, 20, 256>}]} {
    %cst = arith.constant 0.000000e+00 : f32
    %0 = vector.broadcast %cst : f32 to vector<20x256xf32>
    %c0 = arith.constant 0 : index
    %c0_0 = arith.constant 0 : index
    %c0_1 = arith.constant 0 : index
    %1 = vector.load %arg1[%c0, %c0_0, %c0_1] : memref<1x30x128xbf16, #tpu.memory_space<vmem>>, vector<1x20x128xbf16>
    %2 = vector.shape_cast %1 : vector<1x20x128xbf16> to vector<20x128xbf16>
    %c0_2 = arith.constant 0 : index
    %c0_3 = arith.constant 0 : index
    %c0_4 = arith.constant 0 : index
    %3 = vector.load %arg3[%c0_2, %c0_3, %c0_4] : memref<4x128x256xbf16, #tpu.memory_space<vmem>>, vector<1x128x256xbf16>
    %4 = vector.shape_cast %3 : vector<1x128x256xbf16> to vector<128x256xbf16>
    %cst_5 = arith.constant dense<0.000000e+00> : vector<20x256xf32>
    %5 = tpu.matmul %2, %4, %cst_5 {dimension_numbers = #tpu.dot_dimension_numbers<[1], [0], [0], [1], [0, 0, 1, 1], [], []>} : vector<20x128xbf16>, vector<128x256xbf16>, vector<20x256xf32> -> vector<20x256xf32>
    %6 = arith.addf %0, %5 : vector<20x256xf32>
    %c0_6 = arith.constant 0 : index
    %c1 = arith.constant 1 : index
    %c0_7 = arith.constant 0 : index
    %7 = vector.load %arg1[%c0_6, %c1, %c0_7] : memref<1x30x128xbf16, #tpu.memory_space<vmem>>, vector<1x20x128xbf16>
    %8 = vector.shape_cast %7 : vector<1x20x128xbf16> to vector<20x128xbf16>
    %c1_8 = arith.constant 1 : index
    %c0_9 = arith.constant 0 : index
    %c0_10 = arith.constant 0 : index
    %9 = vector.load %arg3[%c1_8, %c0_9, %c0_10] : memref<4x128x256xbf16, #tpu.memory_space<vmem>>, vector<1x128x256xbf16>
    %10 = vector.shape_cast %9 : vector<1x128x256xbf16> to vector<128x256xbf16>
    %cst_11 = arith.constant dense<0.000000e+00> : vector<20x256xf32>
    %11 = tpu.matmul %8, %10, %cst_11 {dimension_numbers = #tpu.dot_dimension_numbers<[1], [0], [0], [1], [0, 0, 1, 1], [], []>} : vector<20x128xbf16>, vector<128x256xbf16>, vector<20x256xf32> -> vector<20x256xf32>
    %12 = arith.addf %6, %11 : vector<20x256xf32>
    %c0_12 = arith.constant 0 : index
    %c5 = arith.constant 5 : index
    %c0_13 = arith.constant 0 : index
    %13 = vector.load %arg1[%c0_12, %c5, %c0_13] : memref<1x30x128xbf16, #tpu.memory_space<vmem>>, vector<1x20x128xbf16>
    %14 = vector.shape_cast %13 : vector<1x20x128xbf16> to vector<20x128xbf16>
    %c2 = arith.constant 2 : index
    %c0_14 = arith.constant 0 : index
    %c0_15 = arith.constant 0 : index
    %15 = vector.load %arg3[%c2, %c0_14, %c0_15] : memref<4x128x256xbf16, #tpu.memory_space<vmem>>, vector<1x128x256xbf16>
    %16 = vector.shape_cast %15 : vector<1x128x256xbf16> to vector<128x256xbf16>
    %cst_16 = arith.constant dense<0.000000e+00> : vector<20x256xf32>
    %17 = tpu.matmul %14, %16, %cst_16 {dimension_numbers = #tpu.dot_dimension_numbers<[1], [0], [0], [1], [0, 0, 1, 1], [], []>} : vector<20x128xbf16>, vector<128x256xbf16>, vector<20x256xf32> -> vector<20x256xf32>
    %18 = arith.addf %12, %17 : vector<20x256xf32>
    %c0_17 = arith.constant 0 : index
    %c6 = arith.constant 6 : index
    %c0_18 = arith.constant 0 : index
    %19 = vector.load %arg1[%c0_17, %c6, %c0_18] : memref<1x30x128xbf16, #tpu.memory_space<vmem>>, vector<1x20x128xbf16>
    %20 = vector.shape_cast %19 : vector<1x20x128xbf16> to vector<20x128xbf16>
    %c3 = arith.constant 3 : index
    %c0_19 = arith.constant 0 : index
    %c0_20 = arith.constant 0 : index
    %21 = vector.load %arg3[%c3, %c0_19, %c0_20] : memref<4x128x256xbf16, #tpu.memory_space<vmem>>, vector<1x128x256xbf16>
    %22 = vector.shape_cast %21 : vector<1x128x256xbf16> to vector<128x256xbf16>
    %cst_21 = arith.constant dense<0.000000e+00> : vector<20x256xf32>
    %23 = tpu.matmul %20, %22, %cst_21 {dimension_numbers = #tpu.dot_dimension_numbers<[1], [0], [0], [1], [0, 0, 1, 1], [], []>} : vector<20x128xbf16>, vector<128x256xbf16>, vector<20x256xf32> -> vector<20x256xf32>
    %24 = arith.addf %18, %23 : vector<20x256xf32>
    %c0_22 = arith.constant 0 : index
    %c0_23 = arith.constant 0 : index
    %c0_24 = arith.constant 0 : index
    %25 = vector.load %arg2[%c0_22, %c0_23, %c0_24] : memref<1x30x128xbf16, #tpu.memory_space<vmem>>, vector<1x20x128xbf16>
    %26 = vector.shape_cast %25 : vector<1x20x128xbf16> to vector<20x128xbf16>
    %c0_25 = arith.constant 0 : index
    %c0_26 = arith.constant 0 : index
    %c0_27 = arith.constant 0 : index
    %27 = vector.load %arg4[%c0_25, %c0_26, %c0_27] : memref<4x128x256xbf16, #tpu.memory_space<vmem>>, vector<1x128x256xbf16>
    %28 = vector.shape_cast %27 : vector<1x128x256xbf16> to vector<128x256xbf16>
    %cst_28 = arith.constant dense<0.000000e+00> : vector<20x256xf32>
    %29 = tpu.matmul %26, %28, %cst_28 {dimension_numbers = #tpu.dot_dimension_numbers<[1], [0], [0], [1], [0, 0, 1, 1], [], []>} : vector<20x128xbf16>, vector<128x256xbf16>, vector<20x256xf32> -> vector<20x256xf32>
    %30 = arith.addf %24, %29 : vector<20x256xf32>
    %c0_29 = arith.constant 0 : index
    %c1_30 = arith.constant 1 : index
    %c0_31 = arith.constant 0 : index
    %31 = vector.load %arg2[%c0_29, %c1_30, %c0_31] : memref<1x30x128xbf16, #tpu.memory_space<vmem>>, vector<1x20x128xbf16>
    %32 = vector.shape_cast %31 : vector<1x20x128xbf16> to vector<20x128xbf16>
    %c1_32 = arith.constant 1 : index
    %c0_33 = arith.constant 0 : index
    %c0_34 = arith.constant 0 : index
    %33 = vector.load %arg4[%c1_32, %c0_33, %c0_34] : memref<4x128x256xbf16, #tpu.memory_space<vmem>>, vector<1x128x256xbf16>
    %34 = vector.shape_cast %33 : vector<1x128x256xbf16> to vector<128x256xbf16>
    %cst_35 = arith.constant dense<0.000000e+00> : vector<20x256xf32>
    %35 = tpu.matmul %32, %34, %cst_35 {dimension_numbers = #tpu.dot_dimension_numbers<[1], [0], [0], [1], [0, 0, 1, 1], [], []>} : vector<20x128xbf16>, vector<128x256xbf16>, vector<20x256xf32> -> vector<20x256xf32>
    %36 = arith.addf %30, %35 : vector<20x256xf32>
    %c0_36 = arith.constant 0 : index
    %c5_37 = arith.constant 5 : index
    %c0_38 = arith.constant 0 : index
    %37 = vector.load %arg2[%c0_36, %c5_37, %c0_38] : memref<1x30x128xbf16, #tpu.memory_space<vmem>>, vector<1x20x128xbf16>
    %38 = vector.shape_cast %37 : vector<1x20x128xbf16> to vector<20x128xbf16>
    %c2_39 = arith.constant 2 : index
    %c0_40 = arith.constant 0 : index
    %c0_41 = arith.constant 0 : index
    %39 = vector.load %arg4[%c2_39, %c0_40, %c0_41] : memref<4x128x256xbf16, #tpu.memory_space<vmem>>, vector<1x128x256xbf16>
    %40 = vector.shape_cast %39 : vector<1x128x256xbf16> to vector<128x256xbf16>
    %cst_42 = arith.constant dense<0.000000e+00> : vector<20x256xf32>
    %41 = tpu.matmul %38, %40, %cst_42 {dimension_numbers = #tpu.dot_dimension_numbers<[1], [0], [0], [1], [0, 0, 1, 1], [], []>} : vector<20x128xbf16>, vector<128x256xbf16>, vector<20x256xf32> -> vector<20x256xf32>
    %42 = arith.addf %36, %41 : vector<20x256xf32>
    %c0_43 = arith.constant 0 : index
    %c6_44 = arith.constant 6 : index
    %c0_45 = arith.constant 0 : index
    %43 = vector.load %arg2[%c0_43, %c6_44, %c0_45] : memref<1x30x128xbf16, #tpu.memory_space<vmem>>, vector<1x20x128xbf16>
    %44 = vector.shape_cast %43 : vector<1x20x128xbf16> to vector<20x128xbf16>
    %c3_46 = arith.constant 3 : index
    %c0_47 = arith.constant 0 : index
    %c0_48 = arith.constant 0 : index
    %45 = vector.load %arg4[%c3_46, %c0_47, %c0_48] : memref<4x128x256xbf16, #tpu.memory_space<vmem>>, vector<1x128x256xbf16>
    %46 = vector.shape_cast %45 : vector<1x128x256xbf16> to vector<128x256xbf16>
    %cst_49 = arith.constant dense<0.000000e+00> : vector<20x256xf32>
    %47 = tpu.matmul %44, %46, %cst_49 {dimension_numbers = #tpu.dot_dimension_numbers<[1], [0], [0], [1], [0, 0, 1, 1], [], []>} : vector<20x128xbf16>, vector<128x256xbf16>, vector<20x256xf32> -> vector<20x256xf32>
    %48 = arith.addf %42, %47 : vector<20x256xf32>
    %c0_50 = arith.constant 0 : index
    %c0_51 = arith.constant 0 : index
    %49 = vector.load %arg5[%c0_50, %c0_51] : memref<1x256xf32, #tpu.memory_space<vmem>>, vector<1x256xf32>
    %50 = vector.broadcast %49 : vector<1x256xf32> to vector<20x256xf32>
    %51 = arith.addf %48, %50 : vector<20x256xf32>
    %cst_52 = arith.constant 0.000000e+00 : f32
    %52 = vector.broadcast %cst_52 : f32 to vector<20x256xf32>
    %53 = arith.maximumf %51, %52 : vector<20x256xf32>
    %54 = arith.truncf %53 : vector<20x256xf32> to vector<20x256xbf16>
    %c0_53 = arith.constant 0 : index
    %c0_54 = arith.constant 0 : index
    %c0_55 = arith.constant 0 : index
    %55 = vector.load %arg6[%c0_53, %c0_54, %c0_55] : memref<1x20x256xbf16, #tpu.memory_space<vmem>>, vector<1x20x256xbf16>
    %56 = vector.shape_cast %55 : vector<1x20x256xbf16> to vector<20x256xbf16>
    %57 = vector.shape_cast %54 : vector<20x256xbf16> to vector<1x20x256xbf16>
    tpu.vector_store %arg6[%c0_53, %c0_54, %c0_55], %57 {strides = array<i32>} : memref<1x20x256xbf16, #tpu.memory_space<vmem>>, vector<1x20x256xbf16>,
    return
  }
  func.func @transform_0(%arg0: i32) -> (i32, i32, i32) {
    %c0_i32 = arith.constant 0 : i32
    %c0_i32_0 = arith.constant 0 : i32
    %c0_i32_1 = arith.constant 0 : i32
    return %arg0, %c0_i32, %c0_i32_0 : i32, i32, i32
  }
  func.func @transform_1(%arg0: i32) -> (i32, i32, i32) {
    %c0_i32 = arith.constant 0 : i32
    %c0_i32_0 = arith.constant 0 : i32
    %c0_i32_1 = arith.constant 0 : i32
    return %arg0, %c0_i32, %c0_i32_0 : i32, i32, i32
  }
  func.func @transform_2(%arg0: i32) -> (i32, i32, i32) {
    %c0_i32 = arith.constant 0 : i32
    %c0_i32_0 = arith.constant 0 : i32
    %c0_i32_1 = arith.constant 0 : i32
    %c0_i32_2 = arith.constant 0 : i32
    return %c0_i32, %c0_i32_0, %c0_i32_1 : i32, i32, i32
  }
  func.func @transform_3(%arg0: i32) -> (i32, i32, i32) {
    %c0_i32 = arith.constant 0 : i32
    %c0_i32_0 = arith.constant 0 : i32
    %c0_i32_1 = arith.constant 0 : i32
    %c0_i32_2 = arith.constant 0 : i32
    return %c0_i32, %c0_i32_0, %c0_i32_1 : i32, i32, i32
  }
  func.func @transform_4(%arg0: i32) -> (i32, i32) {
    %c0_i32 = arith.constant 0 : i32
    %c0_i32_0 = arith.constant 0 : i32
    %c0_i32_1 = arith.constant 0 : i32
    return %c0_i32, %c0_i32_0 : i32, i32
  }
  func.func @transform_5(%arg0: i32) -> (i32, i32, i32) {
    %c0_i32 = arith.constant 0 : i32
    %c0_i32_0 = arith.constant 0 : i32
    %c0_i32_1 = arith.constant 0 : i32
    return %arg0, %c0_i32, %c0_i32_0 : i32, i32, i32
  }
}

module attributes {stable_mosaic.version = 11 : i64} {
  func.func @_conv_taps_kernel(%arg0: i32, %arg1: memref<1x12x256xbf16, #tpu.memory_space<vmem>>, %arg2: memref<4x256x512xbf16, #tpu.memory_space<vmem>>, %arg3: memref<1x512xf32, #tpu.memory_space<vmem>>, %arg4: memref<1x6x512xbf16, #tpu.memory_space<vmem>>) attributes {dimension_semantics = [#tpu.dimension_semantics<parallel>], iteration_bounds = array<i64: 2>, scalar_prefetch = 0 : i64, scratch_operands = 0 : i64, tpu.core_type = #tpu.core_type<tc>, window_params = [{transform_indices = @transform_0, window_bounds = array<i64: 1, 12, 256>}, {pipeline_mode = #tpu.pipeline_mode<synchronous>, transform_indices = @transform_1, window_bounds = array<i64: 4, 256, 512>}, {pipeline_mode = #tpu.pipeline_mode<synchronous>, transform_indices = @transform_2, window_bounds = array<i64: 1, 512>}, {transform_indices = @transform_3, window_bounds = array<i64: 1, 6, 512>}]} {
    %cst = arith.constant 0.000000e+00 : f32
    %0 = vector.broadcast %cst : f32 to vector<6x512xf32>
    %c0 = arith.constant 0 : index
    %c0_0 = arith.constant 0 : index
    %c0_1 = arith.constant 0 : index
    %1 = vector.load %arg1[%c0, %c0_0, %c0_1] : memref<1x12x256xbf16, #tpu.memory_space<vmem>>, vector<1x6x256xbf16>
    %2 = vector.shape_cast %1 : vector<1x6x256xbf16> to vector<6x256xbf16>
    %c0_2 = arith.constant 0 : index
    %c0_3 = arith.constant 0 : index
    %c0_4 = arith.constant 0 : index
    %3 = vector.load %arg2[%c0_2, %c0_3, %c0_4] : memref<4x256x512xbf16, #tpu.memory_space<vmem>>, vector<1x256x512xbf16>
    %4 = vector.shape_cast %3 : vector<1x256x512xbf16> to vector<256x512xbf16>
    %cst_5 = arith.constant dense<0.000000e+00> : vector<6x512xf32>
    %5 = tpu.matmul %2, %4, %cst_5 {dimension_numbers = #tpu.dot_dimension_numbers<[1], [0], [0], [1], [0, 0, 1, 1], [], []>} : vector<6x256xbf16>, vector<256x512xbf16>, vector<6x512xf32> -> vector<6x512xf32>
    %6 = arith.addf %0, %5 : vector<6x512xf32>
    %c0_6 = arith.constant 0 : index
    %c1 = arith.constant 1 : index
    %c0_7 = arith.constant 0 : index
    %7 = vector.load %arg1[%c0_6, %c1, %c0_7] : memref<1x12x256xbf16, #tpu.memory_space<vmem>>, vector<1x6x256xbf16>
    %8 = vector.shape_cast %7 : vector<1x6x256xbf16> to vector<6x256xbf16>
    %c1_8 = arith.constant 1 : index
    %c0_9 = arith.constant 0 : index
    %c0_10 = arith.constant 0 : index
    %9 = vector.load %arg2[%c1_8, %c0_9, %c0_10] : memref<4x256x512xbf16, #tpu.memory_space<vmem>>, vector<1x256x512xbf16>
    %10 = vector.shape_cast %9 : vector<1x256x512xbf16> to vector<256x512xbf16>
    %cst_11 = arith.constant dense<0.000000e+00> : vector<6x512xf32>
    %11 = tpu.matmul %8, %10, %cst_11 {dimension_numbers = #tpu.dot_dimension_numbers<[1], [0], [0], [1], [0, 0, 1, 1], [], []>} : vector<6x256xbf16>, vector<256x512xbf16>, vector<6x512xf32> -> vector<6x512xf32>
    %12 = arith.addf %6, %11 : vector<6x512xf32>
    %c0_12 = arith.constant 0 : index
    %c3 = arith.constant 3 : index
    %c0_13 = arith.constant 0 : index
    %13 = vector.load %arg1[%c0_12, %c3, %c0_13] : memref<1x12x256xbf16, #tpu.memory_space<vmem>>, vector<1x6x256xbf16>
    %14 = vector.shape_cast %13 : vector<1x6x256xbf16> to vector<6x256xbf16>
    %c2 = arith.constant 2 : index
    %c0_14 = arith.constant 0 : index
    %c0_15 = arith.constant 0 : index
    %15 = vector.load %arg2[%c2, %c0_14, %c0_15] : memref<4x256x512xbf16, #tpu.memory_space<vmem>>, vector<1x256x512xbf16>
    %16 = vector.shape_cast %15 : vector<1x256x512xbf16> to vector<256x512xbf16>
    %cst_16 = arith.constant dense<0.000000e+00> : vector<6x512xf32>
    %17 = tpu.matmul %14, %16, %cst_16 {dimension_numbers = #tpu.dot_dimension_numbers<[1], [0], [0], [1], [0, 0, 1, 1], [], []>} : vector<6x256xbf16>, vector<256x512xbf16>, vector<6x512xf32> -> vector<6x512xf32>
    %18 = arith.addf %12, %17 : vector<6x512xf32>
    %c0_17 = arith.constant 0 : index
    %c4 = arith.constant 4 : index
    %c0_18 = arith.constant 0 : index
    %19 = vector.load %arg1[%c0_17, %c4, %c0_18] : memref<1x12x256xbf16, #tpu.memory_space<vmem>>, vector<1x6x256xbf16>
    %20 = vector.shape_cast %19 : vector<1x6x256xbf16> to vector<6x256xbf16>
    %c3_19 = arith.constant 3 : index
    %c0_20 = arith.constant 0 : index
    %c0_21 = arith.constant 0 : index
    %21 = vector.load %arg2[%c3_19, %c0_20, %c0_21] : memref<4x256x512xbf16, #tpu.memory_space<vmem>>, vector<1x256x512xbf16>
    %22 = vector.shape_cast %21 : vector<1x256x512xbf16> to vector<256x512xbf16>
    %cst_22 = arith.constant dense<0.000000e+00> : vector<6x512xf32>
    %23 = tpu.matmul %20, %22, %cst_22 {dimension_numbers = #tpu.dot_dimension_numbers<[1], [0], [0], [1], [0, 0, 1, 1], [], []>} : vector<6x256xbf16>, vector<256x512xbf16>, vector<6x512xf32> -> vector<6x512xf32>
    %24 = arith.addf %18, %23 : vector<6x512xf32>
    %c0_23 = arith.constant 0 : index
    %c0_24 = arith.constant 0 : index
    %25 = vector.load %arg3[%c0_23, %c0_24] : memref<1x512xf32, #tpu.memory_space<vmem>>, vector<1x512xf32>
    %26 = vector.broadcast %25 : vector<1x512xf32> to vector<6x512xf32>
    %27 = arith.addf %24, %26 : vector<6x512xf32>
    %cst_25 = arith.constant 0.000000e+00 : f32
    %28 = vector.broadcast %cst_25 : f32 to vector<6x512xf32>
    %29 = arith.maximumf %27, %28 : vector<6x512xf32>
    %30 = arith.truncf %29 : vector<6x512xf32> to vector<6x512xbf16>
    %c0_26 = arith.constant 0 : index
    %c0_27 = arith.constant 0 : index
    %c0_28 = arith.constant 0 : index
    %31 = vector.load %arg4[%c0_26, %c0_27, %c0_28] : memref<1x6x512xbf16, #tpu.memory_space<vmem>>, vector<1x6x512xbf16>
    %32 = vector.shape_cast %31 : vector<1x6x512xbf16> to vector<6x512xbf16>
    %33 = vector.shape_cast %30 : vector<6x512xbf16> to vector<1x6x512xbf16>
    tpu.vector_store %arg4[%c0_26, %c0_27, %c0_28], %33 {strides = array<i32>} : memref<1x6x512xbf16, #tpu.memory_space<vmem>>, vector<1x6x512xbf16>,
    return
  }
  func.func @transform_0(%arg0: i32) -> (i32, i32, i32) {
    %c0_i32 = arith.constant 0 : i32
    %c0_i32_0 = arith.constant 0 : i32
    %c0_i32_1 = arith.constant 0 : i32
    return %arg0, %c0_i32, %c0_i32_0 : i32, i32, i32
  }
  func.func @transform_1(%arg0: i32) -> (i32, i32, i32) {
    %c0_i32 = arith.constant 0 : i32
    %c0_i32_0 = arith.constant 0 : i32
    %c0_i32_1 = arith.constant 0 : i32
    %c0_i32_2 = arith.constant 0 : i32
    return %c0_i32, %c0_i32_0, %c0_i32_1 : i32, i32, i32
  }
  func.func @transform_2(%arg0: i32) -> (i32, i32) {
    %c0_i32 = arith.constant 0 : i32
    %c0_i32_0 = arith.constant 0 : i32
    %c0_i32_1 = arith.constant 0 : i32
    return %c0_i32, %c0_i32_0 : i32, i32
  }
  func.func @transform_3(%arg0: i32) -> (i32, i32, i32) {
    %c0_i32 = arith.constant 0 : i32
    %c0_i32_0 = arith.constant 0 : i32
    %c0_i32_1 = arith.constant 0 : i32
    return %arg0, %c0_i32, %c0_i32_0 : i32, i32, i32
  }
}

module attributes {stable_mosaic.version = 11 : i64} {
  func.func @_conv_taps_kernel(%arg0: i32, %arg1: memref<1x90x64xbf16, #tpu.memory_space<vmem>>, %arg2: memref<1x90x128xbf16, #tpu.memory_space<vmem>>, %arg3: memref<4x64x128xbf16, #tpu.memory_space<vmem>>, %arg4: memref<4x128x128xbf16, #tpu.memory_space<vmem>>, %arg5: memref<1x128xf32, #tpu.memory_space<vmem>>, %arg6: memref<1x72x128xbf16, #tpu.memory_space<vmem>>) attributes {dimension_semantics = [#tpu.dimension_semantics<parallel>], iteration_bounds = array<i64: 2>, scalar_prefetch = 0 : i64, scratch_operands = 0 : i64, tpu.core_type = #tpu.core_type<tc>, window_params = [{transform_indices = @transform_0, window_bounds = array<i64: 1, 90, 64>}, {transform_indices = @transform_1, window_bounds = array<i64: 1, 90, 128>}, {pipeline_mode = #tpu.pipeline_mode<synchronous>, transform_indices = @transform_2, window_bounds = array<i64: 4, 64, 128>}, {pipeline_mode = #tpu.pipeline_mode<synchronous>, transform_indices = @transform_3, window_bounds = array<i64: 4, 128, 128>}, {pipeline_mode = #tpu.pipeline_mode<synchronous>, transform_indices = @transform_4, window_bounds = array<i64: 1, 128>}, {transform_indices = @transform_5, window_bounds = array<i64: 1, 72, 128>}]} {
    %cst = arith.constant 0.000000e+00 : f32
    %0 = vector.broadcast %cst : f32 to vector<72x128xf32>
    %c0 = arith.constant 0 : index
    %c0_0 = arith.constant 0 : index
    %c0_1 = arith.constant 0 : index
    %1 = vector.load %arg1[%c0, %c0_0, %c0_1] : memref<1x90x64xbf16, #tpu.memory_space<vmem>>, vector<1x72x64xbf16>
    %2 = vector.shape_cast %1 : vector<1x72x64xbf16> to vector<72x64xbf16>
    %c0_2 = arith.constant 0 : index
    %c0_3 = arith.constant 0 : index
    %c0_4 = arith.constant 0 : index
    %3 = vector.load %arg3[%c0_2, %c0_3, %c0_4] : memref<4x64x128xbf16, #tpu.memory_space<vmem>>, vector<1x64x128xbf16>
    %4 = vector.shape_cast %3 : vector<1x64x128xbf16> to vector<64x128xbf16>
    %cst_5 = arith.constant dense<0.000000e+00> : vector<72x128xf32>
    %5 = tpu.matmul %2, %4, %cst_5 {dimension_numbers = #tpu.dot_dimension_numbers<[1], [0], [0], [1], [0, 0, 1, 1], [], []>} : vector<72x64xbf16>, vector<64x128xbf16>, vector<72x128xf32> -> vector<72x128xf32>
    %6 = arith.addf %0, %5 : vector<72x128xf32>
    %c0_6 = arith.constant 0 : index
    %c1 = arith.constant 1 : index
    %c0_7 = arith.constant 0 : index
    %7 = vector.load %arg1[%c0_6, %c1, %c0_7] : memref<1x90x64xbf16, #tpu.memory_space<vmem>>, vector<1x72x64xbf16>
    %8 = vector.shape_cast %7 : vector<1x72x64xbf16> to vector<72x64xbf16>
    %c1_8 = arith.constant 1 : index
    %c0_9 = arith.constant 0 : index
    %c0_10 = arith.constant 0 : index
    %9 = vector.load %arg3[%c1_8, %c0_9, %c0_10] : memref<4x64x128xbf16, #tpu.memory_space<vmem>>, vector<1x64x128xbf16>
    %10 = vector.shape_cast %9 : vector<1x64x128xbf16> to vector<64x128xbf16>
    %cst_11 = arith.constant dense<0.000000e+00> : vector<72x128xf32>
    %11 = tpu.matmul %8, %10, %cst_11 {dimension_numbers = #tpu.dot_dimension_numbers<[1], [0], [0], [1], [0, 0, 1, 1], [], []>} : vector<72x64xbf16>, vector<64x128xbf16>, vector<72x128xf32> -> vector<72x128xf32>
    %12 = arith.addf %6, %11 : vector<72x128xf32>
    %c0_12 = arith.constant 0 : index
    %c9 = arith.constant 9 : index
    %c0_13 = arith.constant 0 : index
    %13 = vector.load %arg1[%c0_12, %c9, %c0_13] : memref<1x90x64xbf16, #tpu.memory_space<vmem>>, vector<1x72x64xbf16>
    %14 = vector.shape_cast %13 : vector<1x72x64xbf16> to vector<72x64xbf16>
    %c2 = arith.constant 2 : index
    %c0_14 = arith.constant 0 : index
    %c0_15 = arith.constant 0 : index
    %15 = vector.load %arg3[%c2, %c0_14, %c0_15] : memref<4x64x128xbf16, #tpu.memory_space<vmem>>, vector<1x64x128xbf16>
    %16 = vector.shape_cast %15 : vector<1x64x128xbf16> to vector<64x128xbf16>
    %cst_16 = arith.constant dense<0.000000e+00> : vector<72x128xf32>
    %17 = tpu.matmul %14, %16, %cst_16 {dimension_numbers = #tpu.dot_dimension_numbers<[1], [0], [0], [1], [0, 0, 1, 1], [], []>} : vector<72x64xbf16>, vector<64x128xbf16>, vector<72x128xf32> -> vector<72x128xf32>
    %18 = arith.addf %12, %17 : vector<72x128xf32>
    %c0_17 = arith.constant 0 : index
    %c10 = arith.constant 10 : index
    %c0_18 = arith.constant 0 : index
    %19 = vector.load %arg1[%c0_17, %c10, %c0_18] : memref<1x90x64xbf16, #tpu.memory_space<vmem>>, vector<1x72x64xbf16>
    %20 = vector.shape_cast %19 : vector<1x72x64xbf16> to vector<72x64xbf16>
    %c3 = arith.constant 3 : index
    %c0_19 = arith.constant 0 : index
    %c0_20 = arith.constant 0 : index
    %21 = vector.load %arg3[%c3, %c0_19, %c0_20] : memref<4x64x128xbf16, #tpu.memory_space<vmem>>, vector<1x64x128xbf16>
    %22 = vector.shape_cast %21 : vector<1x64x128xbf16> to vector<64x128xbf16>
    %cst_21 = arith.constant dense<0.000000e+00> : vector<72x128xf32>
    %23 = tpu.matmul %20, %22, %cst_21 {dimension_numbers = #tpu.dot_dimension_numbers<[1], [0], [0], [1], [0, 0, 1, 1], [], []>} : vector<72x64xbf16>, vector<64x128xbf16>, vector<72x128xf32> -> vector<72x128xf32>
    %24 = arith.addf %18, %23 : vector<72x128xf32>
    %c0_22 = arith.constant 0 : index
    %c0_23 = arith.constant 0 : index
    %c0_24 = arith.constant 0 : index
    %25 = vector.load %arg2[%c0_22, %c0_23, %c0_24] : memref<1x90x128xbf16, #tpu.memory_space<vmem>>, vector<1x72x128xbf16>
    %26 = vector.shape_cast %25 : vector<1x72x128xbf16> to vector<72x128xbf16>
    %c0_25 = arith.constant 0 : index
    %c0_26 = arith.constant 0 : index
    %c0_27 = arith.constant 0 : index
    %27 = vector.load %arg4[%c0_25, %c0_26, %c0_27] : memref<4x128x128xbf16, #tpu.memory_space<vmem>>, vector<1x128x128xbf16>
    %28 = vector.shape_cast %27 : vector<1x128x128xbf16> to vector<128x128xbf16>
    %cst_28 = arith.constant dense<0.000000e+00> : vector<72x128xf32>
    %29 = tpu.matmul %26, %28, %cst_28 {dimension_numbers = #tpu.dot_dimension_numbers<[1], [0], [0], [1], [0, 0, 1, 1], [], []>} : vector<72x128xbf16>, vector<128x128xbf16>, vector<72x128xf32> -> vector<72x128xf32>
    %30 = arith.addf %24, %29 : vector<72x128xf32>
    %c0_29 = arith.constant 0 : index
    %c1_30 = arith.constant 1 : index
    %c0_31 = arith.constant 0 : index
    %31 = vector.load %arg2[%c0_29, %c1_30, %c0_31] : memref<1x90x128xbf16, #tpu.memory_space<vmem>>, vector<1x72x128xbf16>
    %32 = vector.shape_cast %31 : vector<1x72x128xbf16> to vector<72x128xbf16>
    %c1_32 = arith.constant 1 : index
    %c0_33 = arith.constant 0 : index
    %c0_34 = arith.constant 0 : index
    %33 = vector.load %arg4[%c1_32, %c0_33, %c0_34] : memref<4x128x128xbf16, #tpu.memory_space<vmem>>, vector<1x128x128xbf16>
    %34 = vector.shape_cast %33 : vector<1x128x128xbf16> to vector<128x128xbf16>
    %cst_35 = arith.constant dense<0.000000e+00> : vector<72x128xf32>
    %35 = tpu.matmul %32, %34, %cst_35 {dimension_numbers = #tpu.dot_dimension_numbers<[1], [0], [0], [1], [0, 0, 1, 1], [], []>} : vector<72x128xbf16>, vector<128x128xbf16>, vector<72x128xf32> -> vector<72x128xf32>
    %36 = arith.addf %30, %35 : vector<72x128xf32>
    %c0_36 = arith.constant 0 : index
    %c9_37 = arith.constant 9 : index
    %c0_38 = arith.constant 0 : index
    %37 = vector.load %arg2[%c0_36, %c9_37, %c0_38] : memref<1x90x128xbf16, #tpu.memory_space<vmem>>, vector<1x72x128xbf16>
    %38 = vector.shape_cast %37 : vector<1x72x128xbf16> to vector<72x128xbf16>
    %c2_39 = arith.constant 2 : index
    %c0_40 = arith.constant 0 : index
    %c0_41 = arith.constant 0 : index
    %39 = vector.load %arg4[%c2_39, %c0_40, %c0_41] : memref<4x128x128xbf16, #tpu.memory_space<vmem>>, vector<1x128x128xbf16>
    %40 = vector.shape_cast %39 : vector<1x128x128xbf16> to vector<128x128xbf16>
    %cst_42 = arith.constant dense<0.000000e+00> : vector<72x128xf32>
    %41 = tpu.matmul %38, %40, %cst_42 {dimension_numbers = #tpu.dot_dimension_numbers<[1], [0], [0], [1], [0, 0, 1, 1], [], []>} : vector<72x128xbf16>, vector<128x128xbf16>, vector<72x128xf32> -> vector<72x128xf32>
    %42 = arith.addf %36, %41 : vector<72x128xf32>
    %c0_43 = arith.constant 0 : index
    %c10_44 = arith.constant 10 : index
    %c0_45 = arith.constant 0 : index
    %43 = vector.load %arg2[%c0_43, %c10_44, %c0_45] : memref<1x90x128xbf16, #tpu.memory_space<vmem>>, vector<1x72x128xbf16>
    %44 = vector.shape_cast %43 : vector<1x72x128xbf16> to vector<72x128xbf16>
    %c3_46 = arith.constant 3 : index
    %c0_47 = arith.constant 0 : index
    %c0_48 = arith.constant 0 : index
    %45 = vector.load %arg4[%c3_46, %c0_47, %c0_48] : memref<4x128x128xbf16, #tpu.memory_space<vmem>>, vector<1x128x128xbf16>
    %46 = vector.shape_cast %45 : vector<1x128x128xbf16> to vector<128x128xbf16>
    %cst_49 = arith.constant dense<0.000000e+00> : vector<72x128xf32>
    %47 = tpu.matmul %44, %46, %cst_49 {dimension_numbers = #tpu.dot_dimension_numbers<[1], [0], [0], [1], [0, 0, 1, 1], [], []>} : vector<72x128xbf16>, vector<128x128xbf16>, vector<72x128xf32> -> vector<72x128xf32>
    %48 = arith.addf %42, %47 : vector<72x128xf32>
    %c0_50 = arith.constant 0 : index
    %c0_51 = arith.constant 0 : index
    %49 = vector.load %arg5[%c0_50, %c0_51] : memref<1x128xf32, #tpu.memory_space<vmem>>, vector<1x128xf32>
    %50 = vector.broadcast %49 : vector<1x128xf32> to vector<72x128xf32>
    %51 = arith.addf %48, %50 : vector<72x128xf32>
    %cst_52 = arith.constant 0.000000e+00 : f32
    %52 = vector.broadcast %cst_52 : f32 to vector<72x128xf32>
    %53 = arith.maximumf %51, %52 : vector<72x128xf32>
    %54 = arith.truncf %53 : vector<72x128xf32> to vector<72x128xbf16>
    %c0_53 = arith.constant 0 : index
    %c0_54 = arith.constant 0 : index
    %c0_55 = arith.constant 0 : index
    %55 = vector.load %arg6[%c0_53, %c0_54, %c0_55] : memref<1x72x128xbf16, #tpu.memory_space<vmem>>, vector<1x72x128xbf16>
    %56 = vector.shape_cast %55 : vector<1x72x128xbf16> to vector<72x128xbf16>
    %57 = vector.shape_cast %54 : vector<72x128xbf16> to vector<1x72x128xbf16>
    tpu.vector_store %arg6[%c0_53, %c0_54, %c0_55], %57 {strides = array<i32>} : memref<1x72x128xbf16, #tpu.memory_space<vmem>>, vector<1x72x128xbf16>,
    return
  }
  func.func @transform_0(%arg0: i32) -> (i32, i32, i32) {
    %c0_i32 = arith.constant 0 : i32
    %c0_i32_0 = arith.constant 0 : i32
    %c0_i32_1 = arith.constant 0 : i32
    return %arg0, %c0_i32, %c0_i32_0 : i32, i32, i32
  }
  func.func @transform_1(%arg0: i32) -> (i32, i32, i32) {
    %c0_i32 = arith.constant 0 : i32
    %c0_i32_0 = arith.constant 0 : i32
    %c0_i32_1 = arith.constant 0 : i32
    return %arg0, %c0_i32, %c0_i32_0 : i32, i32, i32
  }
  func.func @transform_2(%arg0: i32) -> (i32, i32, i32) {
    %c0_i32 = arith.constant 0 : i32
    %c0_i32_0 = arith.constant 0 : i32
    %c0_i32_1 = arith.constant 0 : i32
    %c0_i32_2 = arith.constant 0 : i32
    return %c0_i32, %c0_i32_0, %c0_i32_1 : i32, i32, i32
  }
  func.func @transform_3(%arg0: i32) -> (i32, i32, i32) {
    %c0_i32 = arith.constant 0 : i32
    %c0_i32_0 = arith.constant 0 : i32
    %c0_i32_1 = arith.constant 0 : i32
    %c0_i32_2 = arith.constant 0 : i32
    return %c0_i32, %c0_i32_0, %c0_i32_1 : i32, i32, i32
  }
  func.func @transform_4(%arg0: i32) -> (i32, i32) {
    %c0_i32 = arith.constant 0 : i32
    %c0_i32_0 = arith.constant 0 : i32
    %c0_i32_1 = arith.constant 0 : i32
    return %c0_i32, %c0_i32_0 : i32, i32
  }
  func.func @transform_5(%arg0: i32) -> (i32, i32, i32) {
    %c0_i32 = arith.constant 0 : i32
    %c0_i32_0 = arith.constant 0 : i32
    %c0_i32_1 = arith.constant 0 : i32
    return %arg0, %c0_i32, %c0_i32_0 : i32, i32, i32
  }
}

module attributes {stable_mosaic.version = 11 : i64} {
  func.func @_conv_taps_kernel(%arg0: i32, %arg1: memref<1x256x32xbf16, #tpu.memory_space<vmem>>, %arg2: memref<1x256x128xbf16, #tpu.memory_space<vmem>>, %arg3: memref<1x32x128xbf16, #tpu.memory_space<vmem>>, %arg4: memref<1x128x128xbf16, #tpu.memory_space<vmem>>, %arg5: memref<1x128xf32, #tpu.memory_space<vmem>>, %arg6: memref<1x256x128xf32, #tpu.memory_space<vmem>>) attributes {dimension_semantics = [#tpu.dimension_semantics<parallel>], iteration_bounds = array<i64: 2>, scalar_prefetch = 0 : i64, scratch_operands = 0 : i64, tpu.core_type = #tpu.core_type<tc>, window_params = [{transform_indices = @transform_0, window_bounds = array<i64: 1, 256, 32>}, {transform_indices = @transform_1, window_bounds = array<i64: 1, 256, 128>}, {pipeline_mode = #tpu.pipeline_mode<synchronous>, transform_indices = @transform_2, window_bounds = array<i64: 1, 32, 128>}, {pipeline_mode = #tpu.pipeline_mode<synchronous>, transform_indices = @transform_3, window_bounds = array<i64: 1, 128, 128>}, {pipeline_mode = #tpu.pipeline_mode<synchronous>, transform_indices = @transform_4, window_bounds = array<i64: 1, 128>}, {transform_indices = @transform_5, window_bounds = array<i64: 1, 256, 128>}]} {
    %cst = arith.constant 0.000000e+00 : f32
    %0 = vector.broadcast %cst : f32 to vector<256x128xf32>
    %c0 = arith.constant 0 : index
    %c0_0 = arith.constant 0 : index
    %c0_1 = arith.constant 0 : index
    %1 = vector.load %arg1[%c0, %c0_0, %c0_1] : memref<1x256x32xbf16, #tpu.memory_space<vmem>>, vector<1x256x32xbf16>
    %2 = vector.shape_cast %1 : vector<1x256x32xbf16> to vector<256x32xbf16>
    %c0_2 = arith.constant 0 : index
    %c0_3 = arith.constant 0 : index
    %c0_4 = arith.constant 0 : index
    %3 = vector.load %arg3[%c0_2, %c0_3, %c0_4] : memref<1x32x128xbf16, #tpu.memory_space<vmem>>, vector<1x32x128xbf16>
    %4 = vector.shape_cast %3 : vector<1x32x128xbf16> to vector<32x128xbf16>
    %cst_5 = arith.constant dense<0.000000e+00> : vector<256x128xf32>
    %5 = tpu.matmul %2, %4, %cst_5 {dimension_numbers = #tpu.dot_dimension_numbers<[1], [0], [0], [1], [0, 0, 1, 1], [], []>} : vector<256x32xbf16>, vector<32x128xbf16>, vector<256x128xf32> -> vector<256x128xf32>
    %6 = arith.addf %0, %5 : vector<256x128xf32>
    %c0_6 = arith.constant 0 : index
    %c0_7 = arith.constant 0 : index
    %c0_8 = arith.constant 0 : index
    %7 = vector.load %arg2[%c0_6, %c0_7, %c0_8] : memref<1x256x128xbf16, #tpu.memory_space<vmem>>, vector<1x256x128xbf16>
    %8 = vector.shape_cast %7 : vector<1x256x128xbf16> to vector<256x128xbf16>
    %c0_9 = arith.constant 0 : index
    %c0_10 = arith.constant 0 : index
    %c0_11 = arith.constant 0 : index
    %9 = vector.load %arg4[%c0_9, %c0_10, %c0_11] : memref<1x128x128xbf16, #tpu.memory_space<vmem>>, vector<1x128x128xbf16>
    %10 = vector.shape_cast %9 : vector<1x128x128xbf16> to vector<128x128xbf16>
    %cst_12 = arith.constant dense<0.000000e+00> : vector<256x128xf32>
    %11 = tpu.matmul %8, %10, %cst_12 {dimension_numbers = #tpu.dot_dimension_numbers<[1], [0], [0], [1], [0, 0, 1, 1], [], []>} : vector<256x128xbf16>, vector<128x128xbf16>, vector<256x128xf32> -> vector<256x128xf32>
    %12 = arith.addf %6, %11 : vector<256x128xf32>
    %c0_13 = arith.constant 0 : index
    %c0_14 = arith.constant 0 : index
    %13 = vector.load %arg5[%c0_13, %c0_14] : memref<1x128xf32, #tpu.memory_space<vmem>>, vector<1x128xf32>
    %14 = vector.broadcast %13 : vector<1x128xf32> to vector<256x128xf32>
    %15 = arith.addf %12, %14 : vector<256x128xf32>
    %c0_15 = arith.constant 0 : index
    %c0_16 = arith.constant 0 : index
    %c0_17 = arith.constant 0 : index
    %16 = vector.load %arg6[%c0_15, %c0_16, %c0_17] : memref<1x256x128xf32, #tpu.memory_space<vmem>>, vector<1x256x128xf32>
    %17 = vector.shape_cast %16 : vector<1x256x128xf32> to vector<256x128xf32>
    %18 = vector.shape_cast %15 : vector<256x128xf32> to vector<1x256x128xf32>
    tpu.vector_store %arg6[%c0_15, %c0_16, %c0_17], %18 {strides = array<i32>} : memref<1x256x128xf32, #tpu.memory_space<vmem>>, vector<1x256x128xf32>,
    return
  }
  func.func @transform_0(%arg0: i32) -> (i32, i32, i32) {
    %c0_i32 = arith.constant 0 : i32
    %c0_i32_0 = arith.constant 0 : i32
    %c0_i32_1 = arith.constant 0 : i32
    return %arg0, %c0_i32, %c0_i32_0 : i32, i32, i32
  }
  func.func @transform_1(%arg0: i32) -> (i32, i32, i32) {
    %c0_i32 = arith.constant 0 : i32
    %c0_i32_0 = arith.constant 0 : i32
    %c0_i32_1 = arith.constant 0 : i32
    return %arg0, %c0_i32, %c0_i32_0 : i32, i32, i32
  }
  func.func @transform_2(%arg0: i32) -> (i32, i32, i32) {
    %c0_i32 = arith.constant 0 : i32
    %c0_i32_0 = arith.constant 0 : i32
    %c0_i32_1 = arith.constant 0 : i32
    %c0_i32_2 = arith.constant 0 : i32
    return %c0_i32, %c0_i32_0, %c0_i32_1 : i32, i32, i32
  }
  func.func @transform_3(%arg0: i32) -> (i32, i32, i32) {
    %c0_i32 = arith.constant 0 : i32
    %c0_i32_0 = arith.constant 0 : i32
    %c0_i32_1 = arith.constant 0 : i32
    %c0_i32_2 = arith.constant 0 : i32
    return %c0_i32, %c0_i32_0, %c0_i32_1 : i32, i32, i32
  }
  func.func @transform_4(%arg0: i32) -> (i32, i32) {
    %c0_i32 = arith.constant 0 : i32
    %c0_i32_0 = arith.constant 0 : i32
    %c0_i32_1 = arith.constant 0 : i32
    return %c0_i32, %c0_i32_0 : i32, i32
  }
  func.func @transform_5(%arg0: i32) -> (i32, i32, i32) {
    %c0_i32 = arith.constant 0 : i32
    %c0_i32_0 = arith.constant 0 : i32
    %c0_i32_1 = arith.constant 0 : i32
    return %arg0, %c0_i32, %c0_i32_0 : i32, i32, i32
  }
}

</mosaic_0001>

<bundles_post_ra>
// kernel: unet_forward.8
= control target key start
LH: loop header
LB: loop body
LE: loop exit
PB: predicated region body
PF: predicated region fallthrough
CT: control target
= control target key end

     0   :  { %s4975_s12 = smov 0   ;;  %s6345_s0 = inlined_call_operand.vmem [shape: bf16[2,342,3], index: 0, kind: input, shape index: {}]   ;;  %s6346_s1 = inlined_call_operand.vmem [shape: bf16[9,3,128], index: 1, kind: input, shape index: {}]   ;;  %s6347_s2 = inlined_call_operand.vmem [shape: f32[1,128], index: 2, kind: input, shape index: {}]   ;;  %s6348_s3 = inlined_call_operand.vmem [shape: bf16[2,288,128], index: 3, kind: output, shape index: {}]  }
   0x1 LB: > { %s3937_s13 = sadd.s32 4294967295, %s4952_s12   ;;  %p3941_p0 = scmp.ge.s32.totalorder %s4952_s12, 1  ;;  %s4952_s12 = sphi %s4975_s12, %s13_s12  }
   0x2   : > { %p137_p1 = scmp.lt.s32.totalorder %s4952_s12, 3 }
   0x4   : > { %p138_p2 = pnand %p3941_p0, %p137_p1 }
   0x6   : > { %141 = sbr.rel (%p138_p2) target bundleno = 556 (0x22c), region = 32 }
   0xb   : > { %v3944_v0 = vld [vmem:[%s6346_s1 + $0x2] sm:$0x3]  ;;  %vm509_vm0 = vcmask 1040384   ;;  %vm510_vm1 = vcmask 1041408   ;;  %p161_p3 = scmp.lt.s32.totalorder %s3937_s13, 1  ;;  %v4954_v1 = vmov 65535  }
   0xc   : > { %v511_v2 = vsel %vm509_vm0, 4294967295, %v4954_v1  ;;  %v4000_v3 = vld [vmem:[%s6346_s1 + $0x4] sm:$0x3]  ;;  %v208_v5 = vld [vmem:[%s6346_s1] sm:$0x3]  ;;  %vm454_vm3 = vcmask 23552  }
   0xd   : > { %v4989_v4 = vsel %vm510_vm1, %v511_v2, 0  ;;  %s6388_s13 = smov (!%p161_p3, %s3937_s13), 1  ;;  %vm305_vm2 = vsmask.f32 7424  ;;  %v4020_v13 = vld [vmem:[%s6346_s1 + $0x6] sm:$0x3] }
   0xe   : > { %v514_v6 = vand.u32 %v3944_v0, %v4989_v4  ;;  %v4998_v7 = vand.u32 %v4000_v3, %v4989_v4  ;;  %v5001_v8 = vand.u32 %v4989_v4, %v208_v5  ;;  %s4873_s20 = smul.u32 172, %s6388_s13  ;;  %v4058_v14 = vld [vmem:[%s6346_s1 + $0x8] sm:$0x3]  ;;  %v5049_v30 = vand.u32 %v4020_v13, %v4989_v4 }
   0xf   : > { %v5057_v35 = vand.u32 %v4058_v14, %v4989_v4  ;;  %vm915_vm4 = vcmask 1046528   ;;  %vm2115_vm5 = vcmask 1045504   ;;  %vm1668_vm6 = vsmask.f32 6400  ;;  %s4874_s11 = smul.u32 144, %s6388_s13 }
  0x10   : > { %4529 = vmatprep.subr.bf16.mxu0 %v514_v6  ;;  %4871 = vmatprep.subr.bf16.mxu1 %v514_v6  ;;  %s5007_s23 = scalar_lea.vmem %s6345_s0, %s4873_s20  ;;  %vm3315_vm7 = vcmask 1044480   ;;  %vm2868_vm8 = vsmask.f32 5376 }
  0x11   : > { %4530 = vmatpush3.bf16.msra.mxu0 %v514_v6  ;;  %4872 = vmatpush3.bf16.msra.mxu1 %v514_v6  ;;  %v172_v9 = vld [vmem:[%s5007_s23] sm:$0xf]  ;;  %v5011_v10 = vld [vmem:[%s5007_s23 + $0x4] sm:$0xf]  ;;  %v5019_v12 = vld [vmem:[%s5007_s23 + $0x8] sm:$0xff]   ;;  %s6260_s13 = scalar_lea.vmem %s6348_s3, %s4874_s11 }
  0x12   : > { %4605 = vmatprep.subr.bf16.mxu0 %v4998_v7  ;;  %4567 = vmatprep.subr.bf16.mxu1 %v5001_v8  ;;  %v5016_v11 = vcombine.low %v172_v9, %v5011_v10  ;;  %v314_v17 = vshll.u32 %v5019_v12, 16  ;;  %v318_v18 = vshrl.u32 %v5019_v12, 16  ;;  %v5032_v19 = vld [vmem:[%s5007_s23 + $0x50] sm:$0xff]   ;;  %v5035_v20 = vld [vmem:[%s5007_s23 + $0x58] sm:$0xff]   ;;  %v5046_v29 = vld [vmem:[%s5007_s23 + $0x60] sm:$0xff]  }
  0x13   : > { %v5038_v21 = vld [vmem:[%s5007_s23 + $0x10] sm:$0xff]   ;;  %v386_v24 = vshll.u32 %v5032_v19, 16  ;;  %v390_v25 = vshrl.u32 %v5032_v19, 16  ;;  %v394_v26 = vshll.u32 %v5035_v20, 16  ;;  %v398_v27 = vshrl.u32 %v5035_v20, 16  ;;  %v5054_v34 = vld [vmem:[%s5007_s23 + $0x18] sm:$0xff]  }
  0x14   : > { %v307_v15 = vshrl.u32 %v5016_v11, 16  ;;  %v309_v16 = vshll.u32 %v5016_v11, 16  ;;  %v316_v23 = vrot.slane %v314_v17, 1  ;;  %v322_v28 = vshll.u32 %v5038_v21, 16  ;;  %v5065_v43 = vld [vmem:[%s5007_s23 + $0x68] sm:$0xff]   ;;  %v5069_v45 = vld [vmem:[%s5007_s23 + $0x20] sm:$0xff]  }
  0x15   : > { %v5051_v33 = vrot.slane %v386_v24, 1  ;;  %v396_v36 = vrot.slane %v394_v26, 1  ;;  %v402_v38 = vshll.u32 %v5046_v29, 16  ;;  %v326_v39 = vshrl.u32 %v5038_v21, 16  ;;  %v5074_v50 = vld [vmem:[%s5007_s23 + $0x70] sm:$0xff]   ;;  %v5081_v55 = vld [vmem:[%s5007_s23 + $0x28] sm:$0xff]  }
  0x16   : > { %v311_v22 = vrot.slane %v309_v16, 1  ;;  %v320_v32 = vor.u32 %v318_v18, %v316_v23  ;;  %v324_v37 = vrot.slane %v322_v28, 1  ;;  %v330_v42 = vshll.u32 %v5054_v34, 16  ;;  %v5097_v3 = vld [vmem:[%s5007_s23 + $0x78] sm:$0xff]   ;;  %v5106_v16 = vld [vmem:[%s5007_s23 + $0x30] sm:$0xff]   ;;  %v5109_v17 = vld [vmem:[%s5007_s23 + $0x80] sm:$0xff]  }
  0x17   : > { %v392_v41 = vor.u32 %v390_v25, %v5051_v33  ;;  %v406_v44 = vshrl.u32 %v5046_v29, 16  ;;  %v400_v46 = vor.u32 %v398_v27, %v396_v36  ;;  %v404_v48 = vrot.slane %v402_v38, 1 }
  0x18   : > { %v312_v31 = vor.u32 %v311_v22, %v307_v15  ;;  %v325_v47 = vsel %vm305_vm2, %v320_v32, %v324_v37  ;;  %v328_v49 = vor.u32 %v326_v39, %v324_v37  ;;  %v332_v52 = vrot.slane %v330_v42, 1 }
  0x19   : > { %v397_v51 = vsel %vm305_vm2, %v392_v41, %v396_v36  ;;  %v410_v53 = vshll.u32 %v5065_v43, 16  ;;  %v334_v54 = vshrl.u32 %v5054_v34, 16  ;;  %v405_v56 = vsel %vm305_vm2, %v400_v46, %v404_v48  ;;  %v5123_v36 = vld [vmem:[%s5007_s23 + $0x88] sm:$0xff]   ;;  %v5132_v46 = vld [vmem:[%s5007_s23 + $0x40] sm:$0xff]  }
  0x1a   : > { %v317_v40 = vsel %vm305_vm2, %v312_v31, %v316_v23  ;;  %4551 = vmatprep.mubr.msk.bf16.mxu1 %vm454_vm3, %v397_v51  ;;  %v408_v57 = vor.u32 %v406_v44, %v404_v48  ;;  %v338_v58 = vshll.u32 %v5069_v45, 16  ;;  %v414_v59 = vshrl.u32 %v5065_v43, 16  ;;  %v5118_v31 = vld [vmem:[%s5007_s23 + $0x38] sm:$0xff]   ;;  %v4901_v51 = vld [vmem:[%s5007_s23 + $0x90] ss:$0 sps:$4 sm:$0x11]  }
  0x1b   : > { %4531 = vmatprep.mubr.msk.bf16.mxu0 %vm454_vm3, %v317_v40  ;;  %4552 = vmatmul.mubr.msk.bf16.vlgmr.msra.gmra.mxu1 %vm454_vm3, %v405_v56  ;;  %v333_v60 = vsel %vm305_vm2, %v328_v49, %v332_v52  ;;  %v412_v61 = vrot.slane %v410_v53, 1  ;;  %v336_v62 = vor.u32 %v334_v54, %v332_v52  ;;  %v418_v63 = vshll.u32 %v5074_v50, 16 }
  0x1c   : > { %4532 = vmatmul.mubr.msk.bf16.vlgmr.msra.gmra.mxu0 %vm454_vm3, %v325_v47  ;;  %4568 = vmatpush3.bf16.msra.mxu1 %v5001_v8  ;;  %v340_v0 = vrot.slane %v338_v58, 1  ;;  %v342_v1 = vshrl.u32 %v5069_v45, 16  ;;  %v346_v2 = vshll.u32 %v5081_v55, 16  ;;  %v422_v9 = vshrl.u32 %v5074_v50, 16  ;;  %v5135_v47 = vld [vmem:[%s5007_s23 + $0x48] sm:$0xff]  }
  0x1d   : > { %4606 = vmatpush3.bf16.msra.mxu0 %v4998_v7  ;;  %4535 = vmatprep.mubr.msk.bf16.mxu0 %vm454_vm3, %v333_v60  ;;  %v413_v5 = vsel %vm305_vm2, %v408_v57, %v412_v61  ;;  %v416_v6 = vor.u32 %v414_v59, %v412_v61  ;;  %v420_v7 = vrot.slane %v418_v63, 1  ;;  %v426_v15 = vshll.u32 %v5097_v3, 16 }
  0x1e   : > { %4681 = vmatprep.subr.bf16.mxu0 %v5057_v35  ;;  %4643 = vmatprep.subr.bf16.mxu1 %v5049_v30  ;;  %v341_v8 = vsel %vm305_vm2, %v336_v62, %v340_v0  ;;  %v344_v13 = vor.u32 %v342_v1, %v340_v0  ;;  %v348_v14 = vrot.slane %v346_v2, 1  ;;  %v350_v23 = vshrl.u32 %v5081_v55, 16 }
  0x1f   : > { %4555 = vmatprep.mubr.msk.bf16.mxu1 %vm454_vm3, %v413_v5  ;;  %v421_v18 = vsel %vm305_vm2, %v416_v6, %v420_v7  ;;  %v424_v22 = vor.u32 %v422_v9, %v420_v7  ;;  %v430_v24 = vshrl.u32 %v5097_v3, 16  ;;  %v428_v26 = vrot.slane %v426_v15, 1  ;;  %v909_v6 = vld [vmem:[%s5007_s23] sm:$0xe] }
  0x20   : > { %v349_v25 = vsel %vm305_vm2, %v344_v13, %v348_v14  ;;  %v354_v27 = vshll.u32 %v5106_v16, 16  ;;  %v434_v28 = vshll.u32 %v5109_v17, 16  ;;  %v358_v32 = vshrl.u32 %v5106_v16, 16 }
  0x21   : > { %v429_v37 = vsel %vm305_vm2, %v424_v22, %v428_v26  ;;  %v352_v38 = vor.u32 %v350_v23, %v348_v14  ;;  %v362_v41 = vshll.u32 %v5118_v31, 16  ;;  %v438_v42 = vshrl.u32 %v5109_v17, 16 }
  0x22   : > { %v356_v39 = vrot.slane %v354_v27, 1  ;;  %v436_v40 = vrot.slane %v434_v28, 1  ;;  %v442_v44 = vshll.u32 %v5123_v36, 16  ;;  %v432_v48 = vor.u32 %v430_v24, %v428_v26 }
  0x23   : > { %4556 = vmatmul.mubr.msk.bf16.gmra.mxu1 %vm454_vm3, %v421_v18  ;;  %v364_v52 = vrot.slane %v362_v41, 1  ;;  %v370_v56 = vshll.u32 %v5132_v46, 16  ;;  %v366_v58 = vshrl.u32 %v5118_v31, 16  ;;  %v374_v60 = vshrl.u32 %v5132_v46, 16 }
  0x24   : > { %4536 = vmatmul.mubr.msk.bf16.gmra.mxu0 %vm454_vm3, %v341_v8  ;;  %4559 = vmatprep.mubr.msk.bf16.mxu1 %vm454_vm3, %v429_v37  ;;  %v360_v49 = vor.u32 %v358_v32, %v356_v39  ;;  %v440_v53 = vor.u32 %v438_v42, %v436_v40  ;;  %v444_v54 = vrot.slane %v442_v44, 1  ;;  %v357_v57 = vsel %vm305_vm2, %v352_v38, %v356_v39  ;;  %v4078_v37 = vld [vmem:[%s6346_s1 + $0xa] sm:$0x3] }
  0x25   : > { %4539 = vmatprep.mubr.msk.bf16.mxu0 %vm454_vm3, %v349_v25  ;;  %v378_v61 = vshll.u32 %v5135_v47, 16  ;;  %v437_v62 = vsel %vm305_vm2, %v432_v48, %v436_v40  ;;  %v446_v63 = vshrl.u32 %v5123_v36, 16  ;;  %v450_v0 = vshll.u32 %v4901_v51, 16  ;;  %v4098_v40 = vld [vmem:[%s6346_s1 + $0xc] sm:$0x3] }
  0x26   : > { %v365_v59 = vsel %vm305_vm2, %v360_v49, %v364_v52  ;;  %v445_v1 = vsel %vm305_vm2, %v440_v53, %v444_v54  ;;  %v372_v2 = vrot.slane %v370_v56, 1  ;;  %v368_v5 = vor.u32 %v366_v58, %v364_v52  ;;  %v2109_v52 = vld [vmem:[%s5007_s23 + $0x8] sm:$0xc]  ;;  %v5232_v53 = vld [vmem:[%s5007_s23 + $0x10] sm:$0xff]   ;;  %v5241_v58 = vld [vmem:[%s5007_s23 + $0x20] sm:$0xff]  }
  0x27   : > { %v380_v9 = vrot.slane %v378_v61, 1  ;;  %v448_v8 = vor.u32 %v446_v63, %v444_v54  ;;  %v452_v13 = vrot.slane %v450_v0, 1  ;;  %v382_v15 = vshrl.u32 %v5135_v47, 16  ;;  %v5247_v61 = vld [vmem:[%s5007_s23 + $0x28] sm:$0xff]  }
  0x28   : > { %v376_v7 = vor.u32 %v374_v60, %v372_v2  ;;  %v373_v14 = vsel %vm305_vm2, %v368_v5, %v372_v2  ;;  %v4001_v22 = vcombine.low %v909_v6, %v5011_v10  ;;  %v949_v24 = vrot.slane %v5123_v36, 1  ;;  %v5265_v6 = vld [vmem:[%s5007_s23 + $0x38] sm:$0xff]  }
  0x29   : > { %v453_v23 = vsel %vm305_vm2, %v448_v8, %v452_v13  ;;  %v384_v25 = vor.u32 %v382_v15, %v380_v9  ;;  %v951_v26 = vrot.slane %v4901_v51, 1  ;;  %v917_v28 = vrot.slane %v5019_v12, 1  ;;  %v5275_v13 = vld [vmem:[%s5007_s23 + $0x40] sm:$0xff]   ;;  %v5280_v15 = vld [vmem:[%s5007_s23 + $0x48] sm:$0xff]  }
  0x2a   : > { %v381_v18 = vsel %vm305_vm2, %v376_v7, %v380_v9  ;;  %v916_v27 = vrot.slane %v4001_v22, 1  ;;  %v5178_v39 = vand.u32 %v4078_v37, %v4989_v4  ;;  %v5195_v44 = vand.u32 %v4098_v40, %v4989_v4 }
  0x2b   : > { %4560 = vmatmul.mubr.msk.bf16.gmra.mxu1 %vm454_vm3, %v437_v62  ;;  %v5168_v10 = vsel %vm915_vm4, %v949_v24, %v951_v26  ;;  %v389_v32 = vsel %vm305_vm2, %v384_v25, %v5051_v33  ;;  %v921_v33 = vrot.slane %v5054_v34, 1  ;;  %v931_v51 = vrot.slane %v5132_v46, 1 }
  0x2c   : > { %4540 = vmatmul.mubr.msk.bf16.gmra.mxu0 %vm454_vm3, %v357_v57  ;;  %4563 = vmatprep.mubr.msk.bf16.mxu1 %vm454_vm3, %v445_v1  ;;  %v918_v38 = vsel %vm915_vm4, %v916_v27, %v917_v28  ;;  %v5237_v57 = vld [vmem:[%s5007_s23 + $0x18] sm:$0xff]   ;;  %v2121_v63 = vrot.slane %v5241_v58, 2  ;;  %v935_v0 = vrot.slane %v5032_v19, 1  ;;  %v5256_v1 = vld [vmem:[%s5007_s23 + $0x30] sm:$0xff]   ;;  %v937_v5 = vrot.slane %v5035_v20, 1 }
  0x2d   : > { %4543 = vmatprep.mubr.msk.bf16.mxu0 %vm454_vm3, %v365_v59  ;;  %v2119_v60 = vrot.slane %v5237_v57, 2  ;;  %v2123_v9 = vrot.slane %v5247_v61, 2  ;;  %v2125_v8 = vrot.slane %v5256_v1, 2  ;;  %v2129_v25 = vrot.slane %v5275_v13, 2 }
  0x2e   : > { %v2131_v26 = vrot.slane %v5280_v15, 2  ;;  %v939_v27 = vrot.slane %v5046_v29, 1  ;;  %v941_v37 = vrot.slane %v5065_v43, 1 }
  0x2f   : > { %v5268_v7 = vsel %vm2115_vm5, %v2119_v60, %v2121_v63  ;;  %v5286_v22 = vsel %vm2115_vm5, %v2123_v9, %v2125_v8 }
  0x30   : > { %v942_v40 = vsel %vm915_vm4, %v939_v27, %v941_v37 }
  0x33   : > { %4564 = vmatmul.mubr.msk.bf16.gmra.mxu1 %vm454_vm3, %v453_v23 }
  0x34   : > { %4544 = vmatmul.mubr.msk.bf16.gmra.mxu0 %vm454_vm3, %v373_v14  ;;  %4569 = vmatprep.mubr.msk.bf16.mxu1 %vm454_vm3, %v5016_v11  ;;  %v919_v11 = vrot.slane %v5038_v21, 1  ;;  %v2127_v14 = vrot.slane %v5265_v6, 2 }
  0x35   : > { %4547 = vmatprep.mubr.msk.bf16.mxu0 %vm454_vm3, %v381_v18  ;;  %v5283_v18 = vsel %vm2115_vm5, %v2121_v63, %v2123_v9 }
  0x36   : > { %v920_v41 = vsel %vm915_vm4, %v917_v28, %v919_v11  ;;  %v922_v42 = vsel %vm915_vm4, %v919_v11, %v921_v33  ;;  %v5290_v23 = vsel %vm2115_vm5, %v2125_v8, %v2127_v14  ;;  %v5298_v28 = vsel %vm2115_vm5, %v2127_v14, %v2129_v25 }
  0x37   : > { %v940_v11 = vsel %vm915_vm4, %v937_v5, %v939_v27 }
  0x3b   : > { %4570 = vmatmul.mubr.msk.bf16.vlgmr.msra.gmra.mxu1 %vm454_vm3, %v5019_v12  ;;  %v923_v12 = vrot.slane %v5069_v45, 1 }
  0x3c   : > { %4548 = vmatmul.mubr.msk.bf16.gmra.mxu0 %vm454_vm3, %v389_v32  ;;  %4644 = vmatpush3.bf16.msra.mxu1 %v5049_v30  ;;  %v5301_v32 = vsel %vm2115_vm5, %v2129_v25, %v2131_v26  ;;  %v1690_v25 = vshll.u32 %v5237_v57, 16 }
  0x3d   : > { %4607 = vmatprep.mubr.msk.bf16.mxu0 %vm454_vm3, %v918_v38  ;;  %4573 = vmatprep.mubr.msk.bf16.mxu1 %vm454_vm3, %v5038_v21  ;;  %v925_v21 = vrot.slane %v5081_v55, 1  ;;  %v924_v30 = vsel %vm915_vm4, %v921_v33, %v923_v12  ;;  %v5309_v38 = vld [vmem:[%s5007_s23 + $0x50] sm:$0xff]   ;;  %v5313_v33 = vld [vmem:[%s5007_s23 + $0x58] sm:$0xff]  }
  0x3e   : > { %4719 = vmatprep.subr.bf16.mxu1 %v5178_v39 }
  0x3f   : > { %v926_v48 = vsel %vm915_vm4, %v923_v12, %v925_v21 }
  0x43   : > { %4574 = vmatmul.mubr.msk.bf16.gmra.mxu1 %vm454_vm3, %v5054_v34  ;;  %v927_v34 = vrot.slane %v5106_v16, 1 }
  0x44   : > { %4608 = vmatmul.mubr.msk.bf16.vlgmr.msra.gmra.mxu0 %vm454_vm3, %v920_v41  ;;  %4577 = vmatprep.mubr.msk.bf16.mxu1 %vm454_vm3, %v5069_v45  ;;  %v2133_v41 = vrot.slane %v5309_v38, 2 }
  0x45   : > { %4682 = vmatpush3.bf16.msra.mxu0 %v5057_v35  ;;  %4611 = vmatprep.mubr.msk.bf16.mxu0 %vm454_vm3, %v922_v42  ;;  %v929_v35 = vrot.slane %v5118_v31, 1  ;;  %v928_v45 = vsel %vm915_vm4, %v925_v21, %v927_v34  ;;  %v945_v21 = vrot.slane %v5097_v3, 1 }
  0x46   : > { %4757 = vmatprep.subr.bf16.mxu0 %v5195_v44  ;;  %v5320_v42 = vsel %vm2115_vm5, %v2131_v26, %v2133_v41 }
  0x47   : > { %v930_v49 = vsel %vm915_vm4, %v927_v34, %v929_v35  ;;  %v932_v56 = vsel %vm915_vm4, %v929_v35, %v931_v51  ;;  %v5338_v35 = vld [vmem:[%s5007_s23 + $0x68] sm:$0xff]  }
  0x4b   : > { %4578 = vmatmul.mubr.msk.bf16.gmra.mxu1 %vm454_vm3, %v5081_v55  ;;  %v933_v55 = vrot.slane %v5135_v47, 1 }
  0x4c   : > { %4612 = vmatmul.mubr.msk.bf16.gmra.mxu0 %vm454_vm3, %v924_v30  ;;  %4581 = vmatprep.mubr.msk.bf16.mxu1 %vm454_vm3, %v5106_v16  ;;  %v5229_v16 = vld [vmem:[%s5007_s23 + $0xc] sm:$0xf]  ;;  %v1223_v30 = vld [vmem:[%s5007_s23 + $0x8] sm:$0xe] }
  0x4d   : > { %4615 = vmatprep.mubr.msk.bf16.mxu0 %vm454_vm3, %v926_v48  ;;  %v4079_v54 = vcombine.low %v2109_v52, %v5229_v16  ;;  %v5334_v48 = vld [vmem:[%s5007_s23 + $0x60] sm:$0xff]   ;;  %v947_v52 = vrot.slane %v5109_v17, 1 }
  0x4f   : > { %v2116_v59 = vrot.slane %v4079_v54, 2  ;;  %v948_v63 = vsel %vm915_vm4, %v945_v21, %v947_v52 }
  0x53   : > { %4582 = vmatmul.mubr.msk.bf16.gmra.mxu1 %vm454_vm3, %v5118_v31  ;;  %v934_v31 = vsel %vm915_vm4, %v931_v51, %v933_v55  ;;  %v4021_v51 = vcombine.low %v1223_v30, %v5229_v16  ;;  %v1692_v30 = vrot.slane %v1690_v25, 2 }
  0x54   : > { %4616 = vmatmul.mubr.msk.bf16.gmra.mxu0 %vm454_vm3, %v928_v45  ;;  %4585 = vmatprep.mubr.msk.bf16.mxu1 %vm454_vm3, %v5132_v46  ;;  %v2117_v46 = vrot.slane %v5232_v53, 2 }
  0x55   : > { %4619 = vmatprep.mubr.msk.bf16.mxu0 %vm454_vm3, %v930_v49  ;;  %v2137_v49 = vrot.slane %v5334_v48, 2  ;;  %v1673_v16 = vshll.u32 %v4021_v51, 16 }
  0x56   : > { %v5250_v62 = vsel %vm2115_vm5, %v2116_v59, %v2117_v46  ;;  %v5259_v2 = vsel %vm2115_vm5, %v2117_v46, %v2119_v60  ;;  %v1355_v59 = vrot.slane %v4021_v51, 1  ;;  %v1356_v46 = vrot.slane %v5232_v53, 1  ;;  %v5361_v60 = vld [vmem:[%s5007_s23 + $0x70] sm:$0xff]  }
  0x57   : > { %v1675_v9 = vrot.slane %v1673_v16, 2 }
  0x5b   : > { %4586 = vmatmul.mubr.msk.bf16.gmra.mxu1 %vm454_vm3, %v5135_v47  ;;  %v936_v47 = vsel %vm915_vm4, %v933_v55, %v935_v0  ;;  %v1670_v55 = vshrl.u32 %v4021_v51, 16 }
  0x5c   : > { %4620 = vmatmul.mubr.msk.bf16.gmra.mxu0 %vm454_vm3, %v932_v56  ;;  %4589 = vmatprep.mubr.msk.bf16.mxu1 %vm454_vm3, %v5032_v19  ;;  %v938_v19 = vsel %vm915_vm4, %v935_v0, %v937_v5  ;;  %v1678_v56 = vshrl.u32 %v5232_v53, 16  ;;  %v950_v0 = vsel %vm915_vm4, %v947_v52, %v949_v24  ;;  %v5368_v5 = vld [vmem:[%s5007_s23 + $0x78] sm:$0xff]   ;;  %v1687_v24 = vshrl.u32 %v5237_v57, 16 }
  0x5d   : > { %4623 = vmatprep.mubr.msk.bf16.mxu0 %vm454_vm3, %v934_v31  ;;  %v1681_v31 = vshll.u32 %v5232_v53, 16  ;;  %v1357_v53 = vsel %vm915_vm4, %v1355_v59, %v1356_v46  ;;  %v1708_v59 = vshll.u32 %v5247_v61, 16 }
  0x5e   : > { %v1680_v8 = vrot.slane %v1678_v56, 1 }
  0x5f   : > { %v1683_v14 = vrot.slane %v1681_v31, 2 }
  0x63   : > { %4590 = vmatmul.mubr.msk.bf16.gmra.mxu1 %vm454_vm3, %v5035_v20  ;;  %v2135_v20 = vrot.slane %v5313_v33, 2 }
  0x64   : > { %4624 = vmatmul.mubr.msk.bf16.gmra.mxu0 %vm454_vm3, %v936_v47  ;;  %4593 = vmatprep.mubr.msk.bf16.mxu1 %vm454_vm3, %v5046_v29  ;;  %v943_v29 = vrot.slane %v5074_v50, 1  ;;  %v2141_v47 = vrot.slane %v5361_v60, 2 }
  0x65   : > { %4627 = vmatprep.mubr.msk.bf16.mxu0 %vm454_vm3, %v938_v19  ;;  %v5325_v12 = vsel %vm2115_vm5, %v2133_v41, %v2135_v20  ;;  %v1358_v41 = vrot.slane %v5237_v57, 1 }
  0x66   : > { %v944_v34 = vsel %vm915_vm4, %v941_v37, %v943_v29  ;;  %v946_v45 = vsel %vm915_vm4, %v943_v29, %v945_v21  ;;  %v1684_v37 = vor.u32 %v1683_v14, %v1680_v8  ;;  %v5391_v29 = vld [vmem:[%s5007_s23 + $0x80] sm:$0xff]   ;;  %v1689_v21 = vrot.slane %v1687_v24, 1  ;;  %v5429_v14 = vld [vmem:[%s5007_s23 + $0x90] sm:$0xff]  }
  0x67   : > { %v1359_v57 = vsel %vm915_vm4, %v1356_v46, %v1358_v41  ;;  %v1714_v46 = vshrl.u32 %v5256_v1, 16  ;;  %v1364_v8 = vrot.slane %v5256_v1, 1 }
  0x68   : > { %v1693_v31 = vor.u32 %v1692_v30, %v1689_v21  ;;  %v1726_v30 = vshll.u32 %v5265_v6, 16 }
  0x69   : > { %v1716_v24 = vrot.slane %v1714_v46, 1 }
  0x6b   : > { %4594 = vmatmul.mubr.msk.bf16.gmra.mxu1 %vm454_vm3, %v5065_v43  ;;  %v2139_v43 = vrot.slane %v5338_v35, 2 }
  0x6c   : > { %4628 = vmatmul.mubr.msk.bf16.gmra.mxu0 %vm454_vm3, %v940_v11  ;;  %4597 = vmatprep.mubr.msk.bf16.mxu1 %vm454_vm3, %v5074_v50  ;;  %v5346_v50 = vsel %vm2115_vm5, %v2135_v20, %v2137_v49  ;;  %v1696_v11 = vshrl.u32 %v5241_v58, 16  ;;  %v1360_v20 = vrot.slane %v5241_v58, 1 }
  0x6d   : > { %4631 = vmatprep.mubr.msk.bf16.mxu0 %vm454_vm3, %v942_v40  ;;  %v5351_v54 = vsel %vm2115_vm5, %v2137_v49, %v2139_v43  ;;  %v5375_v19 = vsel %vm2115_vm5, %v2139_v43, %v2141_v47  ;;  %v1699_v40 = vshll.u32 %v5241_v58, 16  ;;  %v2145_v43 = vrot.slane %v5391_v29, 2 }
  0x6e   : > { %v1698_v49 = vrot.slane %v1696_v11, 1  ;;  %v1361_v52 = vsel %vm915_vm4, %v1358_v41, %v1360_v20  ;;  %v2149_v11 = vrot.slane %v5429_v14, 2 }
  0x6f   : > { %v1701_v51 = vrot.slane %v1699_v40, 2 }
  0x73   : > { %4598 = vmatmul.mubr.msk.bf16.gmra.mxu1 %vm454_vm3, %v5097_v3  ;;  %v1672_v3 = vrot.slane %v1670_v55, 1  ;;  %v1705_v55 = vshrl.u32 %v5247_v61, 16 }
  0x74   : > { %4632 = vmatmul.mubr.msk.bf16.gmra.mxu0 %vm454_vm3, %v944_v34  ;;  %4601 = vmatprep.mubr.msk.bf16.mxu1 %vm454_vm3, %v5109_v17  ;;  %v2143_v17 = vrot.slane %v5368_v5, 2  ;;  %v5394_v34 = vld [vmem:[%s5007_s23 + $0x88] sm:$0xff]  }
  0x75   : > { %4635 = vmatprep.mubr.msk.bf16.mxu0 %vm454_vm3, %v946_v45  ;;  %v1676_v27 = vor.u32 %v1675_v9, %v1672_v3  ;;  %v2147_v58 = vrot.slane %v5394_v34, 2  ;;  %v1362_v3 = vrot.slane %v5247_v61, 1  ;;  %v4156_v9 = vld [vmem:[%s6346_s1 + $0x10] sm:$0x3] }
  0x76   : > { %v5381_v26 = vsel %vm2115_vm5, %v2141_v47, %v2143_v17  ;;  %v5411_v56 = vsel %vm2115_vm5, %v2143_v17, %v2145_v43  ;;  %v1694_v47 = vsel %vm1668_vm6, %v1684_v37, %v1693_v31  ;;  %v1707_v17 = vrot.slane %v1705_v55, 1 }
  0x77   : > { %v1685_v45 = vsel %vm1668_vm6, %v1676_v27, %v1684_v37  ;;  %v5438_v27 = vand.u32 %v4156_v9, %v4989_v4  ;;  %v1365_v37 = vsel %vm915_vm4, %v1362_v3, %v1364_v8  ;;  %v5446_v41 = vsel %vm2115_vm5, %v2147_v58, %v2149_v11 }
  0x78   : > { %v1753_v9 = vshll.u32 %v5309_v38, 16 }
  0x7b   : > { %4602 = vmatmul.mubr.msk.bf16.gmra.mxu1 %vm454_vm3, %v5123_v36  ;;  %v4136_v36 = vld [vmem:[%s6346_s1 + $0xe] sm:$0x3] }
  0x7c   : > { %4636 = vmatmul.mubr.msk.bf16.gmra.mxu0 %vm454_vm3, %v948_v63  ;;  %4645 = vmatprep.mubr.msk.bf16.mxu1 %vm454_vm3, %v1357_v53  ;;  %v5408_v16 = vand.u32 %v4136_v36, %v4989_v4  ;;  %v1702_v63 = vor.u32 %v1701_v51, %v1698_v49  ;;  %v1710_v53 = vrot.slane %v1708_v59, 2  ;;  %v1723_v4 = vshrl.u32 %v5265_v6, 16 }
  0x7d   : > { %4639 = vmatprep.mubr.msk.bf16.mxu0 %vm454_vm3, %v950_v0  ;;  %v1717_v0 = vshll.u32 %v5256_v1, 16  ;;  %v1363_v1 = vsel %vm915_vm4, %v1360_v20, %v1362_v3  ;;  %v1735_v49 = vshll.u32 %v5275_v13, 16  ;;  %v1368_v51 = vrot.slane %v5275_v13, 1 }
  0x7e   : > { %v1703_v25 = vsel %vm1668_vm6, %v1693_v31, %v1702_v63  ;;  %v1711_v21 = vor.u32 %v1710_v53, %v1707_v17  ;;  %v1750_v3 = vshrl.u32 %v5309_v38, 16  ;;  %v5477_v17 = vld [vmem:[%s5007_s23 + $0x14] sm:$0xf]  ;;  %v3309_v53 = vld [vmem:[%s5007_s23 + $0x10] sm:$0x8] }
  0x7f   : > { %v1719_v61 = vrot.slane %v1717_v0, 2  ;;  %v1737_v31 = vrot.slane %v1735_v49, 2 }
  0x81   : > { %v1720_v36 = vor.u32 %v1719_v61, %v1716_v24 }
  0x83   : > { %4646 = vmatmul.mubr.msk.bf16.vlgmr.msra.gmra.mxu1 %vm454_vm3, %v1359_v57  ;;  %v1725_v57 = vrot.slane %v1723_v4, 1  ;;  %v5487_v4 = vld [vmem:[%s5007_s23 + $0x20] sm:$0xff]  }
  0x84   : > { %4640 = vmatmul.mubr.msk.bf16.gmra.mxu0 %vm454_vm3, %v5168_v10  ;;  %v5417_v10 = vsel %vm2115_vm5, %v2145_v43, %v2147_v58  ;;  %4720 = vmatpush3.bf16.msra.mxu1 %v5178_v39  ;;  %v5434_v39 = vld [vmem:[%s5007_s23 + $0x98] ss:$0 sps:$4 sm:$0x33]   ;;  %v1712_v43 = vsel %vm1668_vm6, %v1702_v63, %v1711_v21  ;;  %v1728_v58 = vrot.slane %v1726_v30, 2  ;;  %v1744_v63 = vshll.u32 %v5280_v15, 16 }
  0x85   : > { %4683 = vmatprep.mubr.msk.bf16.mxu0 %vm454_vm3, %v1685_v45  ;;  %4649 = vmatprep.mubr.msk.bf16.mxu1 %vm454_vm3, %v1361_v52  ;;  %v2151_v40 = vrot.slane %v5434_v39, 2  ;;  %v1732_v45 = vshrl.u32 %v5275_v13, 16  ;;  %v1721_v52 = vsel %vm1668_vm6, %v1711_v21, %v1720_v36  ;;  %v1741_v13 = vshrl.u32 %v5280_v15, 16 }
  0x86   : > { %4795 = vmatprep.subr.bf16.mxu1 %v5408_v16  ;;  %v1746_v61 = vrot.slane %v1744_v63, 2  ;;  %v1755_v21 = vrot.slane %v1753_v9, 2 }
  0x87   : > { %v5453_v20 = vsel %vm2115_vm5, %v2149_v11, %v2151_v40  ;;  %v1734_v55 = vrot.slane %v1732_v45, 1  ;;  %v5482_v11 = vld [vmem:[%s5007_s23 + $0x18] sm:$0xff]   ;;  %v6349_v45 = vrot.slane %v5487_v4, 3 }
  0x88   : > { %v3317_v30 = vrot.slane %v5482_v11, 3 }
  0x89   : > { %v1738_v0 = vor.u32 %v1737_v31, %v1734_v55  ;;  %v1374_v31 = vrot.slane %v5313_v33, 1 }
  0x8a   : > { %v5506_v55 = vsel %vm3315_vm7, %v3317_v30, %v6349_v45 }
  0x8b   : > { %4650 = vmatmul.mubr.msk.bf16.gmra.mxu1 %vm454_vm3, %v1363_v1  ;;  %v4157_v1 = vcombine.low %v3309_v53, %v5477_v17 }
  0x8c   : > { %4684 = vmatmul.mubr.msk.bf16.vlgmr.msra.gmra.mxu0 %vm454_vm3, %v1694_v47  ;;  %4653 = vmatprep.mubr.msk.bf16.mxu1 %vm454_vm3, %v1365_v37  ;;  %v1372_v47 = vrot.slane %v5309_v38, 1  ;;  %v1752_v37 = vrot.slane %v1750_v3, 1 }
  0x8d   : > { %4758 = vmatpush3.bf16.msra.mxu0 %v5195_v44  ;;  %4687 = vmatprep.mubr.msk.bf16.mxu0 %vm454_vm3, %v1703_v25  ;;  %v1366_v44 = vrot.slane %v5265_v6, 1  ;;  %v1729_v6 = vor.u32 %v1728_v58, %v1725_v57  ;;  %v1743_v25 = vrot.slane %v1741_v13, 1  ;;  %v3316_v38 = vrot.slane %v4157_v1, 3 }
  0x8e   : > { %4833 = vmatprep.subr.bf16.mxu0 %v5438_v27  ;;  %v1768_v58 = vshrl.u32 %v5334_v48, 16  ;;  %v1380_v1 = vrot.slane %v5361_v60, 1 }
  0x8f   : > { %v1367_v59 = vsel %vm915_vm4, %v1364_v8, %v1366_v44  ;;  %v1369_v46 = vsel %vm915_vm4, %v1366_v44, %v1368_v51  ;;  %v1370_v8 = vrot.slane %v5280_v15, 1  ;;  %v1730_v24 = vsel %vm1668_vm6, %v1720_v36, %v1729_v6 }
  0x90   : > { %v1739_v40 = vsel %vm1668_vm6, %v1729_v6, %v1738_v0  ;;  %v1747_v49 = vor.u32 %v1746_v61, %v1743_v25  ;;  %v1759_v44 = vshrl.u32 %v5313_v33, 16  ;;  %v5498_v57 = vsel %vm3315_vm7, %v3316_v38, %v3317_v30 }
  0x91   : > { %v1371_v15 = vsel %vm915_vm4, %v1368_v51, %v1370_v8  ;;  %v1373_v36 = vsel %vm915_vm4, %v1370_v8, %v1372_v47  ;;  %v1756_v51 = vor.u32 %v1755_v21, %v1752_v37  ;;  %v1770_v3 = vrot.slane %v1768_v58, 1 }
  0x92   : > { %v1761_v6 = vrot.slane %v1759_v44, 1  ;;  %v1375_v8 = vsel %vm915_vm4, %v1372_v47, %v1374_v31  ;;  %v1786_v25 = vshrl.u32 %v5361_v60, 16  ;;  %v1789_v61 = vshll.u32 %v5361_v60, 16 }
  0x93   : > { %4654 = vmatmul.mubr.msk.bf16.gmra.mxu1 %vm454_vm3, %v1367_v59  ;;  %v1376_v59 = vrot.slane %v5334_v48, 1  ;;  %v1757_v63 = vsel %vm1668_vm6, %v1747_v49, %v1756_v51  ;;  %v1378_v47 = vrot.slane %v5338_v35, 1  ;;  %v1798_v60 = vshll.u32 %v5368_v5, 16 }
  0x94   : > { %4688 = vmatmul.mubr.msk.bf16.gmra.mxu0 %vm454_vm3, %v1712_v43  ;;  %4657 = vmatprep.mubr.msk.bf16.mxu1 %vm454_vm3, %v1369_v46  ;;  %v1762_v43 = vshll.u32 %v5313_v33, 16  ;;  %v1748_v46 = vsel %vm1668_vm6, %v1738_v0, %v1747_v49  ;;  %v1777_v33 = vshrl.u32 %v5338_v35, 16  ;;  %v1788_v38 = vrot.slane %v1786_v25, 1 }
  0x95   : > { %4691 = vmatprep.mubr.msk.bf16.mxu0 %vm454_vm3, %v1721_v52  ;;  %v1771_v52 = vshll.u32 %v5334_v48, 16  ;;  %v1377_v53 = vsel %vm915_vm4, %v1374_v31, %v1376_v59  ;;  %v1780_v48 = vshll.u32 %v5338_v35, 16  ;;  %v1791_v30 = vrot.slane %v1789_v61, 2 }
  0x96   : > { %v1764_v13 = vrot.slane %v1762_v43, 2  ;;  %v1779_v37 = vrot.slane %v1777_v33, 1  ;;  %v1381_v49 = vsel %vm915_vm4, %v1378_v47, %v1380_v1  ;;  %v1795_v35 = vshrl.u32 %v5368_v5, 16 }
  0x97   : > { %v1773_v9 = vrot.slane %v1771_v52, 2  ;;  %v1782_v21 = vrot.slane %v1780_v48, 2  ;;  %v1792_v43 = vor.u32 %v1791_v30, %v1788_v38  ;;  %v1807_v58 = vshll.u32 %v5391_v29, 16  ;;  %v4922_v38 = vld [vmem:[%s5007_s23 + $0x98] ss:$0 sps:$4 sm:$0x11]  }
  0x98   : > { %v1382_v52 = vrot.slane %v5368_v5, 1  ;;  %v1384_v31 = vrot.slane %v5391_v29, 1  ;;  %v1813_v5 = vshrl.u32 %v5394_v34, 16  ;;  %v1822_v33 = vshrl.u32 %v5429_v14, 16 }
  0x99   : > { %v1774_v0 = vor.u32 %v1773_v9, %v1770_v3  ;;  %v1783_v44 = vor.u32 %v1782_v21, %v1779_v37  ;;  %v1809_v3 = vrot.slane %v1807_v58, 2  ;;  %v1825_v48 = vshll.u32 %v5429_v14, 16 }
  0x9a   : > { %v1383_v9 = vsel %vm915_vm4, %v1380_v1, %v1382_v52  ;;  %v1388_v25 = vrot.slane %v5429_v14, 1  ;;  %v1824_v37 = vrot.slane %v1822_v33, 1  ;;  %v1831_v14 = vshrl.u32 %v5434_v39, 16 }
  0x9b   : > { %4658 = vmatmul.mubr.msk.bf16.gmra.mxu1 %vm454_vm3, %v1371_v15  ;;  %v1827_v21 = vrot.slane %v1825_v48, 2 }
  0x9c   : > { %4692 = vmatmul.mubr.msk.bf16.gmra.mxu0 %vm454_vm3, %v1730_v24  ;;  %4661 = vmatprep.mubr.msk.bf16.mxu1 %vm454_vm3, %v1373_v36  ;;  %v1765_v24 = vor.u32 %v1764_v13, %v1761_v6  ;;  %v1379_v36 = vsel %vm915_vm4, %v1376_v59, %v1378_v47  ;;  %v1784_v59 = vsel %vm1668_vm6, %v1774_v0, %v1783_v44  ;;  %v1800_v6 = vrot.slane %v1798_v60, 2 }
  0x9d   : > { %4695 = vmatprep.mubr.msk.bf16.mxu0 %vm454_vm3, %v1739_v40  ;;  %v1793_v13 = vsel %vm1668_vm6, %v1783_v44, %v1792_v43  ;;  %v1815_v47 = vrot.slane %v1813_v5, 1  ;;  %v1390_v44 = vrot.slane %v4922_v38, 1  ;;  %v5611_v5 = vld [vmem:[%s5007_s23 + $0x40] sm:$0xff]  }
  0x9e   : > { %v1766_v40 = vsel %vm1668_vm6, %v1756_v51, %v1765_v24  ;;  %v1775_v15 = vsel %vm1668_vm6, %v1765_v24, %v1774_v0  ;;  %v1804_v51 = vshrl.u32 %v5391_v29, 16  ;;  %v1816_v29 = vshll.u32 %v5394_v34, 16 }
  0x9f   : > { %v1386_v0 = vrot.slane %v5394_v34, 1 }
  0xa0   : > { %v1818_v1 = vrot.slane %v1816_v29, 2 }
  0xa1   : > { %v1389_v30 = vsel %vm915_vm4, %v1386_v0, %v1388_v25 }
  0xa2   : > { %v1819_v34 = vor.u32 %v1818_v1, %v1815_v47  ;;  %v5637_v47 = vld [vmem:[%s5007_s23 + $0x50] sm:$0xff]  }
  0xa3   : > { %4662 = vmatmul.mubr.msk.bf16.gmra.mxu1 %vm454_vm3, %v1375_v8  ;;  %v1385_v8 = vsel %vm915_vm4, %v1382_v52, %v1384_v31 }
  0xa4   : > { %4696 = vmatmul.mubr.msk.bf16.gmra.mxu0 %vm454_vm3, %v1748_v46  ;;  %4665 = vmatprep.mubr.msk.bf16.mxu1 %vm454_vm3, %v1377_v53  ;;  %v1797_v46 = vrot.slane %v1795_v35, 1  ;;  %v2423_v35 = vld [vmem:[%s5007_s23 + $0x10] sm:$0xc] }
  0xa5   : > { %4699 = vmatprep.mubr.msk.bf16.mxu0 %vm454_vm3, %v1757_v63  ;;  %v1806_v63 = vrot.slane %v1804_v51, 1  ;;  %v5568_v52 = vcombine.low %v2423_v35, %v5477_v17 }
  0xa6   : > { %v1801_v53 = vor.u32 %v1800_v6, %v1797_v46  ;;  %v2556_v46 = vrot.slane %v5482_v11, 2 }
  0xa7   : > { %v1810_v24 = vor.u32 %v1809_v3, %v1806_v63  ;;  %v2558_v63 = vrot.slane %v5487_v4, 2 }
  0xa8   : > { %v1802_v61 = vsel %vm1668_vm6, %v1792_v43, %v1801_v53  ;;  %v1833_v43 = vrot.slane %v1831_v14, 1 }
  0xa9   : > { %v1820_v60 = vsel %vm1668_vm6, %v1810_v24, %v1819_v34 }
  0xab   : > { %4666 = vmatmul.mubr.msk.bf16.gmra.mxu1 %vm454_vm3, %v1379_v36  ;;  %v1834_v36 = vshll.u32 %v5434_v39, 16 }
  0xac   : > { %4700 = vmatmul.mubr.msk.bf16.gmra.mxu0 %vm454_vm3, %v1766_v40  ;;  %4669 = vmatprep.mubr.msk.bf16.mxu1 %vm454_vm3, %v1381_v49  ;;  %v1811_v40 = vsel %vm1668_vm6, %v1801_v53, %v1810_v24  ;;  %v1828_v49 = vor.u32 %v1827_v21, %v1824_v37  ;;  %v5598_v53 = vld [vmem:[%s5007_s23 + $0x38] sm:$0xff]  }
  0xad   : > { %4703 = vmatprep.mubr.msk.bf16.mxu0 %vm454_vm3, %v1775_v15  ;;  %v1387_v15 = vsel %vm915_vm4, %v1384_v31, %v1386_v0  ;;  %v1836_v51 = vrot.slane %v1834_v36, 2  ;;  %v1391_v31 = vsel %vm915_vm4, %v1388_v25, %v1390_v44  ;;  %v5645_v37 = vld [vmem:[%s5007_s23 + $0x58] sm:$0xff]   ;;  %v5669_v44 = vld [vmem:[%s5007_s23 + $0x60] sm:$0xff]  }
  0xae   : > { %v1829_v58 = vsel %vm1668_vm6, %v1819_v34, %v1828_v49  ;;  %v2572_v34 = vrot.slane %v5645_v37, 2 }
  0xaf   : > { %v1837_v39 = vor.u32 %v1836_v51, %v1833_v43  ;;  %v5677_v43 = vld [vmem:[%s5007_s23 + $0x68] sm:$0xff]  }
  0xb1   : > { %v1838_v17 = vsel %vm1668_vm6, %v1828_v49, %v1837_v39 }
  0xb3   : > { %4670 = vmatmul.mubr.msk.bf16.gmra.mxu1 %vm454_vm3, %v1383_v9  ;;  %v5594_v9 = vld [vmem:[%s5007_s23 + $0x30] sm:$0xff]  }
  0xb4   : > { %4704 = vmatmul.mubr.msk.bf16.gmra.mxu0 %vm454_vm3, %v1784_v59  ;;  %4673 = vmatprep.mubr.msk.bf16.mxu1 %vm454_vm3, %v1385_v8  ;;  %v2555_v59 = vrot.slane %v5568_v52, 2 }
  0xb5   : > { %4707 = vmatprep.mubr.msk.bf16.mxu0 %vm454_vm3, %v1793_v13  ;;  %v5581_v13 = vld [vmem:[%s5007_s23 + $0x28] sm:$0xff]  }
  0xb6   : > { %v2557_v6 = vsel %vm2115_vm5, %v2555_v59, %v2556_v46  ;;  %v2560_v3 = vrot.slane %v5581_v13, 2  ;;  %v2576_v59 = vrot.slane %v5677_v43, 2 }
  0xb8   : > { %v2561_v8 = vsel %vm2115_vm5, %v2558_v63, %v2560_v3 }
  0xbb   : > { %4674 = vmatmul.mubr.msk.bf16.gmra.mxu1 %vm454_vm3, %v1387_v15  ;;  %v2570_v15 = vrot.slane %v5637_v47, 2 }
  0xbc   : > { %4708 = vmatmul.mubr.msk.bf16.gmra.mxu0 %vm454_vm3, %v1802_v61  ;;  %4677 = vmatprep.mubr.msk.bf16.mxu1 %vm454_vm3, %v1389_v30 }
  0xbd   : > { %4711 = vmatprep.mubr.msk.bf16.mxu0 %vm454_vm3, %v1811_v40 }
  0xc3   : > { %4678 = vmatmul.mubr.msk.bf16.gmra.mxu1 %vm454_vm3, %v1391_v31 }
  0xc4   : > { %4712 = vmatmul.mubr.msk.bf16.gmra.mxu0 %vm454_vm3, %v1820_v60  ;;  %4721 = vmatprep.mubr.msk.bf16.mxu1 %vm454_vm3, %v5250_v62  ;;  %v2559_v62 = vsel %vm2115_vm5, %v2556_v46, %v2558_v63  ;;  %v5701_v63 = vld [vmem:[%s5007_s23 + $0x70] sm:$0xff]  }
  0xc5   : > { %4715 = vmatprep.mubr.msk.bf16.mxu0 %vm454_vm3, %v1829_v58  ;;  %v2574_v58 = vrot.slane %v5669_v44, 2 }
  0xcb   : > { %4722 = vmatmul.mubr.msk.bf16.vlgmr.msra.gmra.mxu1 %vm454_vm3, %v5259_v2  ;;  %v2562_v2 = vrot.slane %v5594_v9, 2 }
  0xcc   : > { %4716 = vmatmul.mubr.msk.bf16.gmra.mxu0 %vm454_vm3, %v1838_v17  ;;  %4796 = vmatpush3.bf16.msra.mxu1 %v5408_v16 }
  0xcd   : > { %4759 = vmatprep.mubr.msk.bf16.mxu0 %vm454_vm3, %v2557_v6  ;;  %4725 = vmatprep.mubr.msk.bf16.mxu1 %vm454_vm3, %v5268_v7  ;;  %v2564_v7 = vrot.slane %v5598_v53, 2  ;;  %v2563_v16 = vsel %vm2115_vm5, %v2560_v3, %v2562_v2  ;;  %v2575_v6 = vsel %vm2115_vm5, %v2572_v34, %v2574_v58 }
  0xcf   : > { %v2565_v29 = vsel %vm2115_vm5, %v2562_v2, %v2564_v7 }
  0xd3   : > { %4726 = vmatmul.mubr.msk.bf16.gmra.mxu1 %vm454_vm3, %v5283_v18  ;;  %v2566_v18 = vrot.slane %v5611_v5, 2 }
  0xd4   : > { %4760 = vmatmul.mubr.msk.bf16.vlgmr.msra.gmra.mxu0 %vm454_vm3, %v2559_v62  ;;  %4729 = vmatprep.mubr.msk.bf16.mxu1 %vm454_vm3, %v5286_v22 }
  0xd5   : > { %4834 = vmatpush3.bf16.msra.mxu0 %v5438_v27  ;;  %4763 = vmatprep.mubr.msk.bf16.mxu0 %vm454_vm3, %v2561_v8  ;;  %v5615_v27 = vld [vmem:[%s5007_s23 + $0x48] sm:$0xff]   ;;  %v2567_v61 = vsel %vm2115_vm5, %v2564_v7, %v2566_v18  ;;  %v5709_v8 = vld [vmem:[%s5007_s23 + $0x78] sm:$0xff]   ;;  %v2578_v7 = vrot.slane %v5701_v63, 2 }
  0xd6   : > { %v2568_v48 = vrot.slane %v5615_v27, 2 }
  0xd8   : > { %v2571_v49 = vsel %vm2115_vm5, %v2568_v48, %v2570_v15 }
  0xdb   : > { %v5622_v33 = vpop.f32.mrf.mxu1  ;;  %4730 = vmatmul.mubr.msk.bf16.gmra.mxu1 %vm454_vm3, %v5290_v23  ;;  %v2569_v23 = vsel %vm2115_vm5, %v2566_v18, %v2568_v48  ;;  %v2580_v18 = vrot.slane %v5709_v8, 2 }
  0xdc   : > { %v5617_v24 = vpop.f32.mrf.mxu0  ;;  %4764 = vmatmul.mubr.msk.bf16.gmra.mxu0 %vm454_vm3, %v2563_v16  ;;  %4733 = vmatprep.mubr.msk.bf16.mxu1 %vm454_vm3, %v5298_v28 }
  0xdd   : > { %4767 = vmatprep.mubr.msk.bf16.mxu0 %vm454_vm3, %v2565_v29  ;;  %v5631_v0 = vpop.f32.mrf.mxu1 }
  0xde   : > { %v5626_v22 = vpop.f32.mrf.mxu0 }
  0xdf   : > { %v5639_v1 = vpop.f32.mrf.mxu1 }
  0xe0   : > { %v5633_v25 = vpop.f32.mrf.mxu0 }
  0xe1   : > { %v5647_v21 = vpop.f32.mrf.mxu1 }
  0xe2   : > { %v5641_v40 = vpop.f32.mrf.mxu0 }
  0xe3   : > { %v5654_v38 = vpop.f32.mrf.mxu1  ;;  %4734 = vmatmul.mubr.msk.bf16.gmra.mxu1 %vm454_vm3, %v5301_v32  ;;  %v2573_v32 = vsel %vm2115_vm5, %v2570_v15, %v2572_v34  ;;  %v5733_v15 = vld [vmem:[%s5007_s23 + $0x80] sm:$0xff]  }
  0xe4   : > { %v5649_v28 = vpop.f32.mrf.mxu0  ;;  %4768 = vmatmul.mubr.msk.bf16.gmra.mxu0 %vm454_vm3, %v2567_v61  ;;  %4737 = vmatprep.mubr.msk.bf16.mxu1 %vm454_vm3, %v5320_v42  ;;  %6364 = vst [vmem:[#allocation10_spill] sm:$0xff] %v5733_v15 }
  0xe5   : > { %4771 = vmatprep.mubr.msk.bf16.mxu0 %vm454_vm3, %v2569_v23  ;;  %v5663_v14 = vpop.f32.mrf.mxu1  ;;  %v2579_v23 = vsel %vm2115_vm5, %v2576_v59, %v2578_v7 }
  0xe6   : > { %v5658_v30 = vpop.f32.mrf.mxu0 }
  0xe7   : > { %v5671_v35 = vpop.f32.mrf.mxu1 }
  0xe8   : > { %v5665_v36 = vpop.f32.mrf.mxu0  ;;  %6356 = vst [vmem:[#allocation2_spill] sm:$0xff] %v5671_v35 }
  0xe9   : > { %v5679_v51 = vpop.f32.mrf.mxu1 }
  0xea   : > { %v5673_v60 = vpop.f32.mrf.mxu0  ;;  %6357 = vst [vmem:[#allocation3_spill] sm:$0xff] %v5679_v51 }
  0xeb   : > { %v5686_v31 = vpop.f32.mrf.mxu1  ;;  %4738 = vmatmul.mubr.msk.bf16.gmra.mxu1 %vm454_vm3, %v5325_v12  ;;  %v2577_v12 = vsel %vm2115_vm5, %v2574_v58, %v2576_v59 }
  0xec   : > { %v5681_v42 = vpop.f32.mrf.mxu0  ;;  %4772 = vmatmul.mubr.msk.bf16.gmra.mxu0 %vm454_vm3, %v2571_v49  ;;  %6358 = vst [vmem:[#allocation4_spill] sm:$0xff] %v5686_v31  ;;  %4741 = vmatprep.mubr.msk.bf16.mxu1 %vm454_vm3, %v5346_v50 }
  0xed   : > { %4775 = vmatprep.mubr.msk.bf16.mxu0 %vm454_vm3, %v2573_v32  ;;  %v5695_v46 = vpop.f32.mrf.mxu1  ;;  %v5741_v32 = vld [vmem:[%s5007_s23 + $0x88] sm:$0xff]  }
  0xee   : > { %v5690_v39 = vpop.f32.mrf.mxu0  ;;  %6359 = vst [vmem:[#allocation5_spill] sm:$0xff] %v5695_v46  ;;  %6366 = vst [vmem:[#allocation12_spill] sm:$0xff] %v5741_v32  ;;  %v5773_v46 = vld [vmem:[%s5007_s23 + $0x98] sm:$0xff]  }
  0xef   : > { %v5703_v3 = vpop.f32.mrf.mxu1  ;;  %6368 = vst [vmem:[#allocation14_spill] sm:$0xff] %v5773_v46 }
  0xf0   : > { %v5697_v17 = vpop.f32.mrf.mxu0  ;;  %6360 = vst [vmem:[#allocation6_spill] sm:$0xff] %v5703_v3  ;;  %v5767_v3 = vld [vmem:[%s5007_s23 + $0x90] sm:$0xff]  }
  0xf1   : > { %v5711_v2 = vpop.f32.mrf.mxu1 }
  0xf2   : > { %v5705_v62 = vpop.f32.mrf.mxu0  ;;  %6361 = vst [vmem:[#allocation7_spill] sm:$0xff] %v5711_v2 }
  0xf3   : > { %v5718_v16 = vpop.f32.mrf.mxu1  ;;  %4742 = vmatmul.mubr.msk.bf16.gmra.mxu1 %vm454_vm3, %v5351_v54  ;;  %v2581_v54 = vsel %vm2115_vm5, %v2578_v7, %v2580_v18  ;;  %v2584_v7 = vrot.slane %v5741_v32, 2 }
  0xf4   : > { %v5713_v50 = vpop.f32.mrf.mxu0  ;;  %4776 = vmatmul.mubr.msk.bf16.gmra.mxu0 %vm454_vm3, %v2575_v6  ;;  %6362 = vst [vmem:[#allocation8_spill] sm:$0xff] %v5718_v16  ;;  %4745 = vmatprep.mubr.msk.bf16.mxu1 %vm454_vm3, %v5375_v19  ;;  %v2582_v19 = vrot.slane %v5733_v15, 2 }
  0xf5   : > { %4779 = vmatprep.mubr.msk.bf16.mxu0 %vm454_vm3, %v2577_v12  ;;  %v5727_v48 = vpop.f32.mrf.mxu1 }
  0xf6   : > { %v5722_v29 = vpop.f32.mrf.mxu0  ;;  %6363 = vst [vmem:[#allocation9_spill] sm:$0xff] %v5727_v48  ;;  %v2878_v48 = vshrl.u32 %v5482_v11, 16  ;;  %v2583_v2 = vsel %vm2115_vm5, %v2580_v18, %v2582_v19 }
  0xf7   : > { %v5735_v34 = vpop.f32.mrf.mxu1 }
  0xf8   : > { %v5729_v61 = vpop.f32.mrf.mxu0  ;;  %6365 = vst [vmem:[#allocation11_spill] sm:$0xff] %v5735_v34  ;;  %v2873_v34 = vshll.u32 %v5568_v52, 16 }
  0xf9   : > { %v5743_v58 = vpop.f32.mrf.mxu1 }
  0xfa   : > { %v5737_v49 = vpop.f32.mrf.mxu0  ;;  %6367 = vst [vmem:[#allocation13_spill] sm:$0xff] %v5743_v58  ;;  %v2875_v32 = vrot.slane %v2873_v34, 3 }
  0xfb   : > { %v4571_v59 = vpop.f32.mrf.mxu1  ;;  %4746 = vmatmul.mubr.msk.bf16.gmra.mxu1 %vm454_vm3, %v5381_v26  ;;  %v2881_v26 = vshll.u32 %v5482_v11, 16 }
  0xfc   : > { %v5745_v6 = vpop.f32.mrf.mxu0  ;;  %4780 = vmatmul.mubr.msk.bf16.gmra.mxu0 %vm454_vm3, %v2579_v23  ;;  %v775_v45 = vadd.f32 %v4571_v59, %v5617_v24  ;;  %4749 = vmatprep.mubr.msk.bf16.mxu1 %vm454_vm3, %v5411_v56  ;;  %v2585_v56 = vsel %vm2115_vm5, %v2582_v19, %v2584_v7  ;;  %v2586_v19 = vrot.slane %v5767_v3, 2 }
  0xfd   : > { %4783 = vmatprep.mubr.msk.bf16.mxu0 %vm454_vm3, %v2581_v54  ;;  %v766_v23 = vpop.f32.mrf.mxu1  ;;  %v2870_v54 = vshrl.u32 %v5568_v52, 16 }
  0xfe   : > { %v5752_v12 = vpop.f32.mrf.mxu0  ;;  %v767_v16 = vadd.f32 %v766_v23, %v5626_v22  ;;  %v2880_v22 = vrot.slane %v2878_v48, 2  ;;  %v2883_v23 = vrot.slane %v2881_v26, 3 }
  0xff   : > { %v4572_v24 = vpop.f32.mrf.mxu1  ;;  %v2872_v11 = vrot.slane %v2870_v54, 2 }
 0x100   : > { %v5758_v58 = vpop.f32.mrf.mxu0  ;;  %v778_v31 = vadd.f32 %v4572_v24, %v5633_v25  ;;  %v2588_v24 = vrot.slane %v5773_v46, 2  ;;  %v2884_v26 = vor.u32 %v2883_v23, %v2880_v22 }
 0x101   : > { %v769_v52 = vpop.f32.mrf.mxu1  ;;  %v2876_v54 = vor.u32 %v2875_v32, %v2872_v11 }
 0x102   : > { %v5769_v59 = vpop.f32.mrf.mxu0  ;;  %v770_v18 = vadd.f32 %v769_v52, %v5641_v40  ;;  %v2890_v40 = vshll.u32 %v5487_v4, 16 }
 0x103   : > { %v4575_v35 = vpop.f32.mrf.mxu1  ;;  %4750 = vmatmul.mubr.msk.bf16.gmra.mxu1 %vm454_vm3, %v5417_v10  ;;  %v2896_v10 = vshrl.u32 %v5581_v13, 16 }
 0x104   : > { %v4609_v51 = vpop.f32.mrf.mxu0  ;;  %4784 = vmatmul.mubr.msk.bf16.gmra.mxu0 %vm454_vm3, %v2583_v2  ;;  %v791_v2 = vadd.f32 %v4575_v35, %v5649_v28  ;;  %4753 = vmatprep.mubr.msk.bf16.mxu1 %vm454_vm3, %v5446_v41  ;;  %v2587_v35 = vsel %vm2115_vm5, %v2584_v7, %v2586_v19  ;;  %v4943_v41 = vld [vmem:[%s5007_s23 + $0xa0] ss:$0 sps:$4 sm:$0x33]   ;;  %v2892_v22 = vrot.slane %v2890_v40, 3  ;;  %v2908_v40 = vshll.u32 %v5594_v9, 16 }
 0x105   : > { %v5778_v15 = vadd.f32 %v4609_v51, %v775_v45  ;;  %4787 = vmatprep.mubr.msk.bf16.mxu0 %vm454_vm3, %v2585_v56  ;;  %v2887_v45 = vshrl.u32 %v5487_v4, 16  ;;  %v782_v51 = vpop.f32.mrf.mxu1  ;;  %v2899_v56 = vshll.u32 %v5581_v13, 16 }
 0x106   : > { %v1044_v25 = vpop.f32.mrf.mxu0  ;;  %v783_v52 = vadd.f32 %v782_v51, %v5658_v30  ;;  %v2885_v30 = vsel %vm2868_vm8, %v2876_v54, %v2884_v26 }
 0x107   : > { %6369 = vst [vmem:[#allocation15_spill] sm:$0xff] %v5778_v15  ;;  %v5786_v48 = vadd.f32 %v1044_v25, %v767_v16  ;;  %v4576_v16 = vpop.f32.mrf.mxu1  ;;  %v2889_v11 = vrot.slane %v2887_v45, 2  ;;  %v2901_v7 = vrot.slane %v2899_v56, 3  ;;  %v2905_v45 = vshrl.u32 %v5594_v9, 16 }
 0x108   : > { %v4610_v34 = vpop.f32.mrf.mxu0  ;;  %v794_v15 = vadd.f32 %v4576_v16, %v5665_v36  ;;  %v2914_v56 = vshrl.u32 %v5598_v53, 16 }
 0x109   : > { %6370 = vst [vmem:[#allocation16_spill] sm:$0xff] %v5786_v48  ;;  %v5795_v28 = vadd.f32 %v4610_v34, %v778_v31  ;;  %v2589_v48 = vsel %vm2115_vm5, %v2586_v19, %v2588_v24  ;;  %v785_v23 = vpop.f32.mrf.mxu1  ;;  %v2898_v31 = vrot.slane %v2896_v10, 2  ;;  %v2590_v19 = vrot.slane %v4943_v41, 2 }
 0x10a   : > { %v1047_v25 = vpop.f32.mrf.mxu0  ;;  %v786_v51 = vadd.f32 %v785_v23, %v5673_v60  ;;  %v2893_v60 = vor.u32 %v2892_v22, %v2889_v11  ;;  %v2910_v23 = vrot.slane %v2908_v40, 3 }
 0x10b   : > { %v5801_v32 = vadd.f32 %v1047_v25, %v770_v18  ;;  %v4579_v36 = vpop.f32.mrf.mxu1  ;;  %4754 = vmatmul.mubr.msk.bf16.gmra.mxu1 %vm454_vm3, %v5453_v20  ;;  %v2591_v16 = vsel %vm2115_vm5, %v2588_v24, %v2590_v19 }
 0x10c   : > { %v4613_v46 = vpop.f32.mrf.mxu0  ;;  %4788 = vmatmul.mubr.msk.bf16.gmra.mxu0 %vm454_vm3, %v2587_v35  ;;  %v807_v54 = vadd.f32 %v4579_v36, %v5681_v42  ;;  %4797 = vmatprep.mubr.msk.bf16.mxu1 %vm454_vm3, %v2885_v30  ;;  %v2917_v35 = vshll.u32 %v5598_v53, 16  ;;  %v2894_v22 = vsel %vm2868_vm8, %v2884_v26, %v2893_v60 }
 0x10d   : > { %v5806_v34 = vadd.f32 %v4613_v46, %v791_v2  ;;  %4791 = vmatprep.mubr.msk.bf16.mxu0 %vm454_vm3, %v2589_v48  ;;  %v798_v46 = vpop.f32.mrf.mxu1  ;;  %v2902_v48 = vor.u32 %v2901_v7, %v2898_v31 }
 0x10e   : > { %v1060_v18 = vpop.f32.mrf.mxu0  ;;  %v799_v20 = vadd.f32 %v798_v46, %v5690_v39  ;;  %v2919_v36 = vrot.slane %v2917_v35, 3 }
 0x10f   : > { %v5814_v10 = vadd.f32 %v1060_v18, %v783_v52  ;;  %v4580_v25 = vpop.f32.mrf.mxu1  ;;  %v2907_v52 = vrot.slane %v2905_v45, 2  ;;  %v2903_v39 = vsel %vm2868_vm8, %v2893_v60, %v2902_v48  ;;  %v3321_v18 = vrot.slane %v5581_v13, 3 }
 0x110   : > { %v4614_v2 = vpop.f32.mrf.mxu0  ;;  %v810_v30 = vadd.f32 %v4580_v25, %v5697_v17  ;;  %v6371_v25 = vrot.slane %v5487_v4, 3 }
 0x111   : > { %v5820_v41 = vadd.f32 %v4614_v2, %v794_v15  ;;  %v801_v31 = vpop.f32.mrf.mxu1  ;;  %v2916_v15 = vrot.slane %v2914_v56, 2  ;;  %v2911_v26 = vor.u32 %v2910_v23, %v2907_v52  ;;  %v2932_v2 = vshrl.u32 %v5615_v27, 16 }
 0x112   : > { %v1063_v42 = vpop.f32.mrf.mxu0  ;;  %v802_v24 = vadd.f32 %v801_v31, %v5705_v62  ;;  %v2923_v62 = vshrl.u32 %v5611_v5, 16  ;;  %v2935_v56 = vshll.u32 %v5615_v27, 16 }
 0x113   : > { %v5824_v11 = vadd.f32 %v1063_v42, %v786_v51  ;;  %v4583_v17 = vpop.f32.mrf.mxu1  ;;  %4798 = vmatmul.mubr.msk.bf16.vlgmr.msra.gmra.mxu1 %vm454_vm3, %v2894_v22  ;;  %v3322_v42 = vsel %vm3315_vm7, %v6371_v25, %v3321_v18 }
 0x114   : > { %v4617_v7 = vpop.f32.mrf.mxu0  ;;  %4792 = vmatmul.mubr.msk.bf16.gmra.mxu0 %vm454_vm3, %v2591_v16  ;;  %v823_v45 = vadd.f32 %v4583_v17, %v5713_v50  ;;  %4801 = vmatprep.mubr.msk.bf16.mxu1 %vm454_vm3, %v2903_v39  ;;  %v2912_v16 = vsel %vm2868_vm8, %v2902_v48, %v2911_v26  ;;  %v2925_v22 = vrot.slane %v2923_v62, 2  ;;  %v3325_v17 = vrot.slane %v5598_v53, 3 }
 0x115   : > { %v5830_v19 = vadd.f32 %v4617_v7, %v807_v54  ;;  %4835 = vmatprep.mubr.msk.bf16.mxu0 %vm454_vm3, %v5498_v57  ;;  %v2926_v54 = vshll.u32 %v5611_v5, 16  ;;  %v814_v60 = vpop.f32.mrf.mxu1  ;;  %v2920_v57 = vor.u32 %v2919_v36, %v2916_v15  ;;  %v2937_v15 = vrot.slane %v2935_v56, 3 }
 0x116   : > { %v1076_v51 = vpop.f32.mrf.mxu0  ;;  %v815_v35 = vadd.f32 %v814_v60, %v5722_v29  ;;  %v2950_v60 = vshrl.u32 %v5645_v37, 16 }
 0x117   : > { %v5837_v40 = vadd.f32 %v1076_v51, %v799_v20  ;;  %v4584_v50 = vpop.f32.mrf.mxu1  ;;  %v2928_v31 = vrot.slane %v2926_v54, 3  ;;  %v2921_v29 = vsel %vm2868_vm8, %v2911_v26, %v2920_v57  ;;  %v2944_v51 = vshll.u32 %v5637_v47, 16 }
 0x118   : > { %v4618_v46 = vpop.f32.mrf.mxu0  ;;  %v826_v52 = vadd.f32 %v4584_v50, %v5729_v61  ;;  %v3323_v61 = vrot.slane %v5594_v9, 3 }
 0x119   : > { %v5845_v13 = vadd.f32 %v4618_v46, %v810_v30  ;;  %v817_v7 = vpop.f32.mrf.mxu1  ;;  %v2934_v30 = vrot.slane %v2932_v2, 2  ;;  %v2953_v46 = vshll.u32 %v5645_v37, 16 }
 0x11a   : > { %v1079_v20 = vpop.f32.mrf.mxu0  ;;  %v818_v48 = vadd.f32 %v817_v7, %v5737_v49  ;;  %v2929_v49 = vor.u32 %v2928_v31, %v2925_v22  ;;  %v3324_v56 = vsel %vm3315_vm7, %v3321_v18, %v3323_v61 }
 0x11b   : > { %v5852_v23 = vadd.f32 %v1079_v20, %v802_v24  ;;  %v4587_v36 = vpop.f32.mrf.mxu1  ;;  %4802 = vmatmul.mubr.msk.bf16.gmra.mxu1 %vm454_vm3, %v2912_v16  ;;  %v2938_v9 = vor.u32 %v2937_v15, %v2934_v30  ;;  %v2946_v16 = vrot.slane %v2944_v51, 3  ;;  %v2955_v18 = vrot.slane %v2953_v46, 3 }
 0x11c   : > { %v4621_v39 = vpop.f32.mrf.mxu0  ;;  %4836 = vmatmul.mubr.msk.bf16.vlgmr.msra.gmra.mxu0 %vm454_vm3, %v5506_v55  ;;  %v2941_v55 = vshrl.u32 %v5637_v47, 16  ;;  %v839_v26 = vadd.f32 %v4587_v36, %v5745_v6  ;;  %4805 = vmatprep.mubr.msk.bf16.mxu1 %vm454_vm3, %v2921_v29  ;;  %v2930_v22 = vsel %vm2868_vm8, %v2920_v57, %v2929_v49  ;;  %v2959_v36 = vshrl.u32 %v5669_v44, 16 }
 0x11d   : > { %v5858_v4 = vadd.f32 %v4621_v39, %v823_v45  ;;  %4839 = vmatprep.mubr.msk.bf16.mxu0 %vm454_vm3, %v3322_v42  ;;  %v830_v45 = vpop.f32.mrf.mxu1 }
 0x11e   : > { %v1092_v24 = vpop.f32.mrf.mxu0  ;;  %v831_v53 = vadd.f32 %v830_v45, %v5752_v12  ;;  %v2943_v20 = vrot.slane %v2941_v55, 2  ;;  %v2939_v12 = vsel %vm2868_vm8, %v2929_v49, %v2938_v9 }
 0x11f   : > { %v5867_v62 = vadd.f32 %v1092_v24, %v815_v35  ;;  %v4588_v50 = vpop.f32.mrf.mxu1  ;;  %v3326_v35 = vsel %vm3315_vm7, %v3323_v61, %v3325_v17 }
 0x120   : > { %v4622_v54 = vpop.f32.mrf.mxu0  ;;  %v842_v25 = vadd.f32 %v4588_v50, %v5758_v58  ;;  %v3327_v58 = vrot.slane %v5611_v5, 3  ;;  %v2947_v15 = vor.u32 %v2946_v16, %v2943_v20  ;;  %v2968_v5 = vshrl.u32 %v5677_v43, 16 }
 0x121   : > { %v5873_v2 = vadd.f32 %v4622_v54, %v826_v52  ;;  %v833_v31 = vpop.f32.mrf.mxu1  ;;  %v2952_v52 = vrot.slane %v2950_v60, 2  ;;  %v2961_v50 = vrot.slane %v2959_v36, 2  ;;  %v2989_v36 = vshll.u32 %v5709_v8, 16 }
 0x122   : > { %v1095_v6 = vpop.f32.mrf.mxu0  ;;  %v834_v39 = vadd.f32 %v833_v31, %v5769_v59  ;;  %v2962_v59 = vshll.u32 %v5669_v44, 16  ;;  %v3328_v45 = vsel %vm3315_vm7, %v3325_v17, %v3327_v58  ;;  %v2948_v60 = vsel %vm2868_vm8, %v2938_v9, %v2947_v15 }
 0x123   : > { %v5878_v42 = vadd.f32 %v1095_v6, %v818_v48  ;;  %v4591_v30 = vpop.f32.mrf.mxu1  ;;  %4806 = vmatmul.mubr.msk.bf16.gmra.mxu1 %vm454_vm3, %v2930_v22  ;;  %v3329_v48 = vrot.slane %v5615_v27, 3  ;;  %v2956_v51 = vor.u32 %v2955_v18, %v2952_v52  ;;  %v2977_v52 = vshrl.u32 %v5701_v63, 16 }
 0x124   : > { %v4625_v7 = vpop.f32.mrf.mxu0  ;;  %4840 = vmatmul.mubr.msk.bf16.gmra.mxu0 %vm454_vm3, %v3324_v56  ;;  %4809 = vmatprep.mubr.msk.bf16.mxu1 %vm454_vm3, %v2939_v12  ;;  %v2964_v6 = vrot.slane %v2962_v59, 3  ;;  %v3333_v12 = vrot.slane %v5645_v37, 3  ;;  %v2980_v18 = vshll.u32 %v5701_v63, 16 }
 0x125   : > { %v5884_v29 = vadd.f32 %v4625_v7, %v839_v26  ;;  %4843 = vmatprep.mubr.msk.bf16.mxu0 %vm454_vm3, %v3326_v35  ;;  %v846_v24 = vpop.f32.mrf.mxu1  ;;  %v2971_v26 = vshll.u32 %v5677_v43, 16  ;;  %v3330_v46 = vsel %vm3315_vm7, %v3327_v58, %v3329_v48  ;;  %v2957_v16 = vsel %vm2868_vm8, %v2947_v15, %v2956_v51 }
 0x126   : > { %v1108_v57 = vpop.f32.mrf.mxu0  ;;  %v847_v22 = vadd.f32 %v846_v24, %v5631_v0  ;;  %v2965_v0 = vor.u32 %v2964_v6, %v2961_v50  ;;  %v2986_v15 = vshrl.u32 %v5709_v8, 16 }
 0x127   : > { %v5890_v61 = vadd.f32 %v1108_v57, %v831_v53  ;;  %v4592_v27 = vpop.f32.mrf.mxu1  ;;  %v855_v53 = vadd.f32 %v4591_v30, %v5622_v33  ;;  %v2973_v17 = vrot.slane %v2971_v26, 3  ;;  %v3331_v33 = vrot.slane %v5637_v47, 3 }
 0x128   : > { %v4626_v55 = vpop.f32.mrf.mxu0  ;;  %v2979_v26 = vrot.slane %v2977_v52, 2  ;;  %v2988_v50 = vrot.slane %v2986_v15, 2 }
 0x129   : > { %v5897_v49 = vadd.f32 %v4626_v55, %v842_v25  ;;  %v849_v35 = vpop.f32.mrf.mxu1  ;;  %v2970_v25 = vrot.slane %v2968_v5, 2  ;;  %v3332_v24 = vsel %vm3315_vm7, %v3329_v48, %v3331_v33  ;;  %v3334_v5 = vsel %vm3315_vm7, %v3331_v33, %v3333_v12 }
 0x12a   : > { %v1111_v54 = vpop.f32.mrf.mxu0  ;;  %v850_v37 = vadd.f32 %v849_v35, %v5647_v21  ;;  %v2991_v48 = vrot.slane %v2989_v36, 3 }
 0x12b   : > { %v5903_v56 = vadd.f32 %v1111_v54, %v834_v39  ;;  %v4595_v9 = vpop.f32.mrf.mxu1  ;;  %4810 = vmatmul.mubr.msk.bf16.gmra.mxu1 %vm454_vm3, %v2948_v60  ;;  %v858_v39 = vadd.f32 %v4592_v27, %v5639_v1  ;;  %v2974_v47 = vor.u32 %v2973_v17, %v2970_v25  ;;  %v2966_v60 = vsel %vm2868_vm8, %v2956_v51, %v2965_v0  ;;  %v6372_v17 = vld [vmem:[#allocation2_spill] sm:$0xff] }
 0x12c   : > { %v4629_v20 = vpop.f32.mrf.mxu0  ;;  %4844 = vmatmul.mubr.msk.bf16.gmra.mxu0 %vm454_vm3, %v3328_v45  ;;  %4813 = vmatprep.mubr.msk.bf16.mxu1 %vm454_vm3, %v2957_v16  ;;  %v2982_v45 = vrot.slane %v2980_v18, 3  ;;  %v871_v27 = vadd.f32 %v4595_v9, %v5654_v38  ;;  %v3335_v38 = vrot.slane %v5669_v44, 3  ;;  %v3337_v25 = vrot.slane %v5677_v43, 3 }
 0x12d   : > { %v5908_v31 = vadd.f32 %v4629_v20, %v855_v53  ;;  %4847 = vmatprep.mubr.msk.bf16.mxu0 %vm454_vm3, %v3330_v46  ;;  %v862_v30 = vpop.f32.mrf.mxu1  ;;  %v2975_v21 = vsel %vm2868_vm8, %v2965_v0, %v2974_v47  ;;  %v2992_v44 = vor.u32 %v2991_v48, %v2988_v50  ;;  %v6377_v48 = vld [vmem:[#allocation5_spill] sm:$0xff] }
 0x12e   : > { %v1124_v7 = vpop.f32.mrf.mxu0  ;;  %v863_v6 = vadd.f32 %v862_v30, %v5663_v14  ;;  %v2983_v16 = vor.u32 %v2982_v45, %v2979_v26  ;;  %v6373_v14 = vld [vmem:[#allocation10_spill] sm:$0xff]  ;;  %v3336_v36 = vsel %vm3315_vm7, %v3333_v12, %v3335_v38 }
 0x12f   : > { %v5917_v58 = vadd.f32 %v1124_v7, %v847_v22  ;;  %v4596_v55 = vpop.f32.mrf.mxu1  ;;  %v2995_v9 = vshrl.u32 %v6373_v14, 16  ;;  %v2998_v7 = vshll.u32 %v6373_v14, 16 }
 0x130   : > { %v4630_v57 = vpop.f32.mrf.mxu0  ;;  %v874_v22 = vadd.f32 %v4596_v55, %v6372_v17  ;;  %v2984_v55 = vsel %vm2868_vm8, %v2974_v47, %v2983_v16  ;;  %v3339_v47 = vrot.slane %v5701_v63, 3  ;;  %v3341_v17 = vrot.slane %v5709_v8, 3  ;;  %v6380_v8 = vld [vmem:[#allocation7_spill] sm:$0xff] }
 0x131   : > { %v5923_v59 = vadd.f32 %v4630_v57, %v858_v39  ;;  %v865_v46 = vpop.f32.mrf.mxu1  ;;  %v6374_v39 = vld [vmem:[#allocation12_spill] sm:$0xff]  ;;  %v6375_v57 = vld [vmem:[#allocation3_spill] sm:$0xff] }
 0x132   : > { %v1127_v1 = vpop.f32.mrf.mxu0  ;;  %v3004_v0 = vshrl.u32 %v6374_v39, 16  ;;  %v3007_v30 = vshll.u32 %v6374_v39, 16  ;;  %v866_v15 = vadd.f32 %v865_v46, %v6375_v57  ;;  %v2993_v46 = vsel %vm2868_vm8, %v2983_v16, %v2992_v44  ;;  %v6379_v57 = vld [vmem:[#allocation14_spill] sm:$0xff] }
 0x133   : > { %v5928_v54 = vadd.f32 %v1127_v1, %v850_v37  ;;  %v4599_v20 = vpop.f32.mrf.mxu1  ;;  %4814 = vmatmul.mubr.msk.bf16.gmra.mxu1 %vm454_vm3, %v2966_v60  ;;  %v3338_v1 = vsel %vm3315_vm7, %v3335_v38, %v3337_v25  ;;  %v3000_v60 = vrot.slane %v2998_v7, 3  ;;  %v3016_v16 = vshll.u32 %v5767_v3, 16 }
 0x134   : > { %v4633_v53 = vpop.f32.mrf.mxu0  ;;  %4848 = vmatmul.mubr.msk.bf16.gmra.mxu0 %vm454_vm3, %v3332_v24  ;;  %4817 = vmatprep.mubr.msk.bf16.mxu1 %vm454_vm3, %v2975_v21  ;;  %v3006_v50 = vrot.slane %v3004_v0, 2  ;;  %v3009_v12 = vrot.slane %v3007_v30, 3 }
 0x135   : > { %v5934_v35 = vadd.f32 %v4633_v53, %v871_v27  ;;  %4851 = vmatprep.mubr.msk.bf16.mxu0 %vm454_vm3, %v3334_v5  ;;  %v878_v52 = vpop.f32.mrf.mxu1  ;;  %v6376_v5 = vld [vmem:[#allocation4_spill] sm:$0xff]  ;;  %v2997_v27 = vrot.slane %v2995_v9, 2  ;;  %v6378_v9 = vld [vmem:[#allocation6_spill] sm:$0xff] }
 0x136   : > { %v1140_v51 = vpop.f32.mrf.mxu0  ;;  %v887_v26 = vadd.f32 %v4599_v20, %v6376_v5  ;;  %v3010_v30 = vor.u32 %v3009_v12, %v3006_v50 }
 0x137   : > { %v5941_v33 = vadd.f32 %v1140_v51, %v863_v6  ;;  %v4600_v37 = vpop.f32.mrf.mxu1  ;;  %v879_v6 = vadd.f32 %v878_v52, %v6377_v48  ;;  %v3001_v52 = vor.u32 %v3000_v60, %v2997_v27  ;;  %v5980_v27 = vld [vmem:[%s5007_s23 + $0xa0] ss:$0 sps:$4 sm:$0x77]   ;;  %v6381_v60 = vld [vmem:[#allocation8_spill] sm:$0xff] }
 0x138   : > { %v4634_v18 = vpop.f32.mrf.mxu0  ;;  %v890_v7 = vadd.f32 %v4600_v37, %v6378_v9 }
 0x139   : > { %v5949_v43 = vadd.f32 %v4634_v18, %v874_v22  ;;  %v881_v53 = vpop.f32.mrf.mxu1  ;;  %v3013_v22 = vshrl.u32 %v5767_v3, 16  ;;  %v3002_v48 = vsel %vm2868_vm8, %v2992_v44, %v3001_v52 }
 0x13a   : > { %v1143_v24 = vpop.f32.mrf.mxu0 }
 0x13b   : > { %v5955_v45 = vadd.f32 %v1143_v24, %v866_v15  ;;  %v4603_v38 = vpop.f32.mrf.mxu1  ;;  %4818 = vmatmul.mubr.msk.bf16.gmra.mxu1 %vm454_vm3, %v2984_v55  ;;  %v3022_v15 = vshrl.u32 %v6379_v57, 16  ;;  %v882_v24 = vadd.f32 %v881_v53, %v6380_v8  ;;  %v3345_v8 = vrot.slane %v6374_v39, 3 }
 0x13c   : > { %v4637_v21 = vpop.f32.mrf.mxu0  ;;  %4852 = vmatmul.mubr.msk.bf16.gmra.mxu0 %vm454_vm3, %v3336_v36  ;;  %4821 = vmatprep.mubr.msk.bf16.mxu1 %vm454_vm3, %v2993_v46  ;;  %v3025_v36 = vshll.u32 %v6379_v57, 16  ;;  %v3018_v46 = vrot.slane %v3016_v16, 3  ;;  %v903_v50 = vadd.f32 %v4603_v38, %v6381_v60  ;;  %v3343_v38 = vrot.slane %v6373_v14, 3 }
 0x13d   : > { %v5960_v51 = vadd.f32 %v4637_v21, %v887_v26  ;;  %4855 = vmatprep.mubr.msk.bf16.mxu0 %vm454_vm3, %v3338_v1  ;;  %v894_v0 = vpop.f32.mrf.mxu1  ;;  %v3340_v1 = vsel %vm3315_vm7, %v3337_v25, %v3339_v47  ;;  %v3342_v26 = vsel %vm3315_vm7, %v3339_v47, %v3341_v17  ;;  %v3015_v21 = vrot.slane %v3013_v22, 2 }
 0x13e   : > { %v1156_v20 = vpop.f32.mrf.mxu0  ;;  %v3011_v25 = vsel %vm2868_vm8, %v3001_v52, %v3010_v30  ;;  %v3027_v9 = vrot.slane %v3025_v36, 3  ;;  %v6383_v52 = vld [vmem:[#allocation11_spill] sm:$0xff] }
 0x13f   : > { %v5969_v18 = vadd.f32 %v1156_v20, %v879_v6  ;;  %v4604_v37 = vpop.f32.mrf.mxu1  ;;  %v3024_v20 = vrot.slane %v3022_v15, 2  ;;  %v6384_v36 = vld [vmem:[#allocation15_spill] sm:$0xff] }
 0x140   : > { %v4638_v63 = vpop.f32.mrf.mxu0  ;;  %v906_v15 = vadd.f32 %v4604_v37, %v6383_v52 }
 0x141   : > { %v5975_v55 = vadd.f32 %v4638_v63, %v890_v7  ;;  %v897_v6 = vpop.f32.mrf.mxu1  ;;  %v6382_v7 = vld [vmem:[#allocation9_spill] sm:$0xff]  ;;  %v3019_v63 = vor.u32 %v3018_v46, %v3015_v21  ;;  %v3028_v60 = vor.u32 %v3027_v9, %v3024_v20  ;;  %v6386_v21 = vld [vmem:[#allocation16_spill] sm:$0xff] }
 0x142   : > { %v1159_v5 = vpop.f32.mrf.mxu0  ;;  %v895_v47 = vadd.f32 %v894_v0, %v6382_v7 }
 0x143   : > { %v5983_v12 = vadd.f32 %v1159_v5, %v882_v24  ;;  %v4647_v16 = vpop.f32.mrf.mxu1  ;;  %4822 = vmatmul.mubr.msk.bf16.gmra.mxu1 %vm454_vm3, %v3002_v48  ;;  %v3031_v24 = vshrl.u32 %v5980_v27, 16  ;;  %v3034_v5 = vshll.u32 %v5980_v27, 16 }
 0x144   : > { %v4641_v53 = vpop.f32.mrf.mxu0  ;;  %4856 = vmatmul.mubr.msk.bf16.gmra.mxu0 %vm454_vm3, %v3340_v1  ;;  %v1628_v1 = vadd.f32 %v4647_v16, %v6384_v36  ;;  %4825 = vmatprep.mubr.msk.bf16.mxu1 %vm454_vm3, %v3011_v25  ;;  %v3346_v16 = vsel %vm3315_vm7, %v3343_v38, %v3345_v8 }
 0x145   : > { %v5989_v22 = vadd.f32 %v4641_v53, %v903_v50  ;;  %4859 = vmatprep.mubr.msk.bf16.mxu0 %vm454_vm3, %v3342_v26  ;;  %v1483_v14 = vpop.f32.mrf.mxu1  ;;  %v6385_v50 = vld [vmem:[#allocation13_spill] sm:$0xff]  ;;  %v3344_v53 = vsel %vm3315_vm7, %v3341_v17, %v3343_v38  ;;  %v3033_v52 = vrot.slane %v3031_v24, 2  ;;  %v3036_v20 = vrot.slane %v3034_v5, 3 }
 0x146   : > { %v1172_v44 = vpop.f32.mrf.mxu0  ;;  %v898_v48 = vadd.f32 %v897_v6, %v6385_v50  ;;  %v1626_v46 = vadd.f32 %v1483_v14, %v6386_v21  ;;  %v3349_v24 = vrot.slane %v6379_v57, 3 }
 0x147   : > { %v5998_v0 = vadd.f32 %v1172_v44, %v895_v47  ;;  %v4648_v37 = vpop.f32.mrf.mxu1  ;;  %v3020_v47 = vsel %vm2868_vm8, %v3010_v30, %v3019_v63  ;;  %v3347_v30 = vrot.slane %v5767_v3, 3 }
 0x148   : > { %v4642_v26 = vpop.f32.mrf.mxu0  ;;  %v1629_v25 = vadd.f32 %v4648_v37, %v5795_v28 }
 0x149   : > { %v6004_v39 = vadd.f32 %v4642_v26, %v906_v15  ;;  %v1486_v9 = vpop.f32.mrf.mxu1  ;;  %v3029_v15 = vsel %vm2868_vm8, %v3019_v63, %v3028_v60  ;;  %v3037_v63 = vor.u32 %v3036_v20, %v3033_v52  ;;  %v3348_v3 = vsel %vm3315_vm7, %v3345_v8, %v3347_v30 }
 0x14a   : > { %v1175_v7 = vpop.f32.mrf.mxu0  ;;  %v1627_v17 = vadd.f32 %v1486_v9, %v5801_v32  ;;  %v3351_v8 = vrot.slane %v5980_v27, 3 }
 0x14b   : > { %v6010_v44 = vadd.f32 %v1175_v7, %v898_v48  ;;  %v4651_v38 = vpop.f32.mrf.mxu1  ;;  %4826 = vmatmul.mubr.msk.bf16.gmra.mxu1 %vm454_vm3, %v3020_v47 }
 0x14c   : > { %v4685_v6 = vpop.f32.mrf.mxu0  ;;  %4860 = vmatmul.mubr.msk.bf16.gmra.mxu0 %vm454_vm3, %v3344_v53  ;;  %v1632_v5 = vadd.f32 %v4651_v38, %v5806_v34  ;;  %4829 = vmatprep.mubr.msk.bf16.mxu1 %vm454_vm3, %v3029_v15  ;;  %v3350_v53 = vsel %vm3315_vm7, %v3347_v30, %v3349_v24 }
 0x14d   : > { %v6015_v36 = vadd.f32 %v4685_v6, %v1628_v1  ;;  %4863 = vmatprep.mubr.msk.bf16.mxu0 %vm454_vm3, %v3346_v16  ;;  %v1499_v32 = vpop.f32.mrf.mxu1 }
 0x14e   : > { %v1930_v28 = vpop.f32.mrf.mxu0  ;;  %v1630_v26 = vadd.f32 %v1499_v32, %v5814_v10 }
 0x14f   : > { %v6022_v14 = vadd.f32 %v1930_v28, %v1626_v46  ;;  %v4652_v48 = vpop.f32.mrf.mxu1  ;;  %v3038_v46 = vsel %vm2868_vm8, %v3028_v60, %v3037_v63 }
 0x150   : > { %v4686_v1 = vpop.f32.mrf.mxu0  ;;  %v1633_v57 = vadd.f32 %v4652_v48, %v5820_v41 }
 0x151   : > { %v6026_v50 = vadd.f32 %v4686_v1, %v1629_v25  ;;  %v1502_v37 = vpop.f32.mrf.mxu1 }
 0x152   : > { %v1933_v21 = vpop.f32.mrf.mxu0  ;;  %v1631_v10 = vadd.f32 %v1502_v37, %v5824_v11  ;;  %v3352_v11 = vsel %vm3315_vm7, %v3349_v24, %v3351_v8 }
 0x153   : > { %v6031_v34 = vadd.f32 %v1933_v21, %v1627_v17  ;;  %v4655_v16 = vpop.f32.mrf.mxu1  ;;  %4830 = vmatmul.mubr.msk.bf16.gmra.mxu1 %vm454_vm3, %v3038_v46 }
 0x154   : > { %v4689_v7 = vpop.f32.mrf.mxu0  ;;  %4864 = vmatmul.mubr.msk.bf16.gmra.mxu0 %vm454_vm3, %v3348_v3  ;;  %v1636_v25 = vadd.f32 %v4655_v16, %v5830_v19 }
 0x155   : > { %v6036_v47 = vadd.f32 %v4689_v7, %v1632_v5  ;;  %4867 = vmatprep.mubr.msk.bf16.mxu0 %vm454_vm3, %v3350_v53  ;;  %v1515_v60 = vpop.f32.mrf.mxu1 }
 0x156   : > { %v1946_v41 = vpop.f32.mrf.mxu0  ;;  %v1634_v9 = vadd.f32 %v1515_v60, %v5837_v40 }
 0x157   : > { %v6042_v52 = vadd.f32 %v1946_v41, %v1630_v26  ;;  %v4656_v15 = vpop.f32.mrf.mxu1 }
 0x158   : > { %v4690_v20 = vpop.f32.mrf.mxu0  ;;  %v1637_v27 = vadd.f32 %v4656_v15, %v5845_v13 }
 0x159   : > { %v6045_v6 = vadd.f32 %v4690_v20, %v1633_v57  ;;  %v1518_v38 = vpop.f32.mrf.mxu1 }
 0x15a   : > { %v1949_v17 = vpop.f32.mrf.mxu0  ;;  %v1635_v19 = vadd.f32 %v1518_v38, %v5852_v23 }
 0x15b   : > { %v6049_v30 = vadd.f32 %v1949_v17, %v1631_v10  ;;  %v4659_v63 = vpop.f32.mrf.mxu1 }
 0x15c   : > { %v4693_v28 = vpop.f32.mrf.mxu0  ;;  %4868 = vmatmul.mubr.msk.bf16.gmra.mxu0 %vm454_vm3, %v3352_v11  ;;  %v1640_v32 = vadd.f32 %v4659_v63, %v5858_v4 }
 0x15d   : > { %v6053_v5 = vadd.f32 %v4693_v28, %v1636_v25  ;;  %v1531_v24 = vpop.f32.mrf.mxu1 }
 0x15e   : > { %v1962_v40 = vpop.f32.mrf.mxu0  ;;  %v1638_v13 = vadd.f32 %v1531_v24, %v5867_v62 }
 0x15f   : > { %v6056_v1 = vadd.f32 %v1962_v40, %v1634_v9  ;;  %v4660_v48 = vpop.f32.mrf.mxu1 }
 0x160   : > { %v4694_v26 = vpop.f32.mrf.mxu0  ;;  %v1641_v53 = vadd.f32 %v4660_v48, %v5873_v2 }
 0x161   : > { %v6059_v3 = vadd.f32 %v4694_v26, %v1637_v27  ;;  %v1534_v23 = vpop.f32.mrf.mxu1 }
 0x162   : > { %v1965_v21 = vpop.f32.mrf.mxu0  ;;  %v1639_v37 = vadd.f32 %v1534_v23, %v5878_v42 }
 0x163   : > { %v6062_v57 = vadd.f32 %v1965_v21, %v1635_v19  ;;  %v4663_v4 = vpop.f32.mrf.mxu1 }
 0x164   : > { %v4697_v46 = vpop.f32.mrf.mxu0  ;;  %v1644_v8 = vadd.f32 %v4663_v4, %v5884_v29 }
 0x165   : > { %v6065_v7 = vadd.f32 %v4697_v46, %v1640_v32  ;;  %v1547_v62 = vpop.f32.mrf.mxu1 }
 0x166   : > { %v1978_v10 = vpop.f32.mrf.mxu0  ;;  %v1642_v25 = vadd.f32 %v1547_v62, %v5890_v61 }
 0x167   : > { %v6068_v16 = vadd.f32 %v1978_v10, %v1638_v13  ;;  %v4664_v2 = vpop.f32.mrf.mxu1 }
 0x168   : > { %v4698_v41 = vpop.f32.mrf.mxu0  ;;  %v1645_v9 = vadd.f32 %v4664_v2, %v5897_v49 }
 0x169   : > { %v6071_v60 = vadd.f32 %v4698_v41, %v1641_v53  ;;  %v1550_v42 = vpop.f32.mrf.mxu1 }
 0x16a   : > { %v1981_v20 = vpop.f32.mrf.mxu0  ;;  %v1643_v17 = vadd.f32 %v1550_v42, %v5903_v56 }
 0x16b   : > { %v6074_v11 = vadd.f32 %v1981_v20, %v1639_v37  ;;  %v4667_v29 = vpop.f32.mrf.mxu1 }
 0x16c   : > { %v4701_v15 = vpop.f32.mrf.mxu0  ;;  %v1648_v28 = vadd.f32 %v4667_v29, %v5908_v31 }
 0x16d   : > { %v6077_v27 = vadd.f32 %v4701_v15, %v1644_v8  ;;  %v1563_v61 = vpop.f32.mrf.mxu1 }
 0x16e   : > { %v1994_v38 = vpop.f32.mrf.mxu0  ;;  %v1646_v40 = vadd.f32 %v1563_v61, %v5917_v58 }
 0x16f   : > { %v6080_v19 = vadd.f32 %v1994_v38, %v1642_v25  ;;  %v4668_v49 = vpop.f32.mrf.mxu1 }
 0x170   : > { %v4702_v63 = vpop.f32.mrf.mxu0  ;;  %v1649_v26 = vadd.f32 %v4668_v49, %v5923_v59 }
 0x171   : > { %v6083_v32 = vadd.f32 %v4702_v63, %v1645_v9  ;;  %v1566_v56 = vpop.f32.mrf.mxu1 }
 0x172   : > { %v1997_v24 = vpop.f32.mrf.mxu0  ;;  %v1647_v21 = vadd.f32 %v1566_v56, %v5928_v54 }
 0x173   : > { %v6086_v13 = vadd.f32 %v1997_v24, %v1643_v17  ;;  %v4671_v31 = vpop.f32.mrf.mxu1 }
 0x174   : > { %v4705_v48 = vpop.f32.mrf.mxu0  ;;  %v1652_v46 = vadd.f32 %v4671_v31, %v5934_v35 }
 0x175   : > { %v6089_v53 = vadd.f32 %v4705_v48, %v1648_v28  ;;  %v1579_v58 = vpop.f32.mrf.mxu1 }
 0x176   : > { %v2010_v23 = vpop.f32.mrf.mxu0  ;;  %v1650_v10 = vadd.f32 %v1579_v58, %v5941_v33 }
 0x177   : > { %v6092_v37 = vadd.f32 %v2010_v23, %v1646_v40  ;;  %v4672_v59 = vpop.f32.mrf.mxu1 }
 0x178   : > { %v4706_v4 = vpop.f32.mrf.mxu0  ;;  %v1653_v41 = vadd.f32 %v4672_v59, %v5949_v43 }
 0x179   : > { %v6095_v8 = vadd.f32 %v4706_v4, %v1649_v26  ;;  %v1582_v54 = vpop.f32.mrf.mxu1 }
 0x17a   : > { %v2013_v62 = vpop.f32.mrf.mxu0  ;;  %v1651_v20 = vadd.f32 %v1582_v54, %v5955_v45 }
 0x17b   : > { %v6098_v25 = vadd.f32 %v2013_v62, %v1647_v21  ;;  %v4675_v35 = vpop.f32.mrf.mxu1 }
 0x17c   : > { %v4709_v2 = vpop.f32.mrf.mxu0  ;;  %v1656_v15 = vadd.f32 %v4675_v35, %v5960_v51 }
 0x17d   : > { %v6101_v9 = vadd.f32 %v4709_v2, %v1652_v46  ;;  %v1595_v33 = vpop.f32.mrf.mxu1 }
 0x17e   : > { %v2026_v42 = vpop.f32.mrf.mxu0  ;;  %v1654_v38 = vadd.f32 %v1595_v33, %v5969_v18 }
 0x17f   : > { %v6104_v17 = vadd.f32 %v2026_v42, %v1650_v10  ;;  %v4676_v43 = vpop.f32.mrf.mxu1 }
 0x180   : > { %v4710_v29 = vpop.f32.mrf.mxu0  ;;  %v1657_v63 = vadd.f32 %v4676_v43, %v5975_v55 }
 0x181   : > { %v6107_v28 = vadd.f32 %v4710_v29, %v1653_v41  ;;  %v1598_v45 = vpop.f32.mrf.mxu1 }
 0x182   : > { %v2029_v61 = vpop.f32.mrf.mxu0  ;;  %v1655_v24 = vadd.f32 %v1598_v45, %v5983_v12 }
 0x183   : > { %v6110_v40 = vadd.f32 %v2029_v61, %v1651_v20  ;;  %v4679_v51 = vpop.f32.mrf.mxu1 }
 0x184   : > { %v4713_v49 = vpop.f32.mrf.mxu0  ;;  %v1660_v48 = vadd.f32 %v4679_v51, %v5989_v22 }
 0x185   : > { %v6113_v26 = vadd.f32 %v4713_v49, %v1656_v15  ;;  %v1611_v18 = vpop.f32.mrf.mxu1 }
 0x186   : > { %v2042_v56 = vpop.f32.mrf.mxu0  ;;  %v1658_v23 = vadd.f32 %v1611_v18, %v5998_v0 }
 0x187   : > { %v6116_v21 = vadd.f32 %v2042_v56, %v1654_v38  ;;  %v4680_v55 = vpop.f32.mrf.mxu1 }
 0x188   : > { %v4714_v31 = vpop.f32.mrf.mxu0  ;;  %v1661_v4 = vadd.f32 %v4680_v55, %v6004_v39 }
 0x189   : > { %v6119_v46 = vadd.f32 %v4714_v31, %v1657_v63  ;;  %v1614_v12 = vpop.f32.mrf.mxu1 }
 0x18a   : > { %v2045_v58 = vpop.f32.mrf.mxu0  ;;  %v1659_v62 = vadd.f32 %v1614_v12, %v6010_v44 }
 0x18b   : > { %v6122_v10 = vadd.f32 %v2045_v58, %v1655_v24  ;;  %v4723_v22 = vpop.f32.mrf.mxu1 }
 0x18c   : > { %v4717_v59 = vpop.f32.mrf.mxu0  ;;  %v2389_v2 = vadd.f32 %v4723_v22, %v6015_v36 }
 0x18d   : > { %v6125_v41 = vadd.f32 %v4717_v59, %v1660_v48  ;;  %v2244_v0 = vpop.f32.mrf.mxu1 }
 0x18e   : > { %v2058_v54 = vpop.f32.mrf.mxu0  ;;  %v2387_v42 = vadd.f32 %v2244_v0, %v6022_v14 }
 0x18f   : > { %v6128_v20 = vadd.f32 %v2058_v54, %v1658_v23  ;;  %v4724_v39 = vpop.f32.mrf.mxu1 }
 0x190   : > { %v4718_v35 = vpop.f32.mrf.mxu0  ;;  %v2390_v29 = vadd.f32 %v4724_v39, %v6026_v50 }
 0x191   : > { %v6131_v15 = vadd.f32 %v4718_v35, %v1661_v4  ;;  %v2247_v44 = vpop.f32.mrf.mxu1 }
 0x192   : > { %v2061_v33 = vpop.f32.mrf.mxu0  ;;  %v2388_v61 = vadd.f32 %v2247_v44, %v6031_v34 }
 0x193   : > { %v6134_v38 = vadd.f32 %v2061_v33, %v1659_v62  ;;  %v4727_v36 = vpop.f32.mrf.mxu1 }
 0x194   : > { %v4761_v43 = vpop.f32.mrf.mxu0  ;;  %v2393_v49 = vadd.f32 %v4727_v36, %v6036_v47 }
 0x195   : > { %v6137_v63 = vadd.f32 %v4761_v43, %v2389_v2  ;;  %v2260_v14 = vpop.f32.mrf.mxu1 }
 0x196   : > { %v2683_v45 = vpop.f32.mrf.mxu0  ;;  %v2391_v56 = vadd.f32 %v2260_v14, %v6042_v52 }
 0x197   : > { %v6140_v24 = vadd.f32 %v2683_v45, %v2387_v42  ;;  %v4728_v50 = vpop.f32.mrf.mxu1 }
 0x198   : > { %v4762_v51 = vpop.f32.mrf.mxu0  ;;  %v2394_v31 = vadd.f32 %v4728_v50, %v6045_v6 }
 0x199   : > { %v6143_v48 = vadd.f32 %v4762_v51, %v2390_v29  ;;  %v2263_v34 = vpop.f32.mrf.mxu1 }
 0x19a   : > { %v2686_v18 = vpop.f32.mrf.mxu0  ;;  %v2392_v58 = vadd.f32 %v2263_v34, %v6049_v30 }
 0x19b   : > { %v6146_v23 = vadd.f32 %v2686_v18, %v2388_v61  ;;  %v4731_v47 = vpop.f32.mrf.mxu1 }
 0x19c   : > { %v4765_v55 = vpop.f32.mrf.mxu0  ;;  %v2397_v59 = vadd.f32 %v4731_v47, %v6053_v5 }
 0x19d   : > { %v6149_v4 = vadd.f32 %v4765_v55, %v2393_v49  ;;  %v2276_v52 = vpop.f32.mrf.mxu1 }
 0x19e   : > { %v2699_v12 = vpop.f32.mrf.mxu0  ;;  %v2395_v54 = vadd.f32 %v2276_v52, %v6056_v1 }
 0x19f   : > { %v6152_v62 = vadd.f32 %v2699_v12, %v2391_v56  ;;  %v4732_v6 = vpop.f32.mrf.mxu1 }
 0x1a0   : > { %v4766_v22 = vpop.f32.mrf.mxu0  ;;  %v2398_v35 = vadd.f32 %v4732_v6, %v6059_v3 }
 0x1a1   : > { %v6155_v2 = vadd.f32 %v4766_v22, %v2394_v31  ;;  %v2279_v30 = vpop.f32.mrf.mxu1 }
 0x1a2   : > { %v2702_v0 = vpop.f32.mrf.mxu0  ;;  %v2396_v33 = vadd.f32 %v2279_v30, %v6062_v57 }
 0x1a3   : > { %v6158_v42 = vadd.f32 %v2702_v0, %v2392_v58  ;;  %v4735_v5 = vpop.f32.mrf.mxu1 }
 0x1a4   : > { %v4769_v39 = vpop.f32.mrf.mxu0  ;;  %v2401_v43 = vadd.f32 %v4735_v5, %v6065_v7 }
 0x1a5   : > { %v6161_v29 = vadd.f32 %v4769_v39, %v2397_v59  ;;  %v2292_v1 = vpop.f32.mrf.mxu1 }
 0x1a6   : > { %v2715_v44 = vpop.f32.mrf.mxu0  ;;  %v2399_v45 = vadd.f32 %v2292_v1, %v6068_v16 }
 0x1a7   : > { %v6164_v61 = vadd.f32 %v2715_v44, %v2395_v54  ;;  %v4736_v3 = vpop.f32.mrf.mxu1 }
 0x1a8   : > { %v4770_v36 = vpop.f32.mrf.mxu0  ;;  %v2402_v51 = vadd.f32 %v4736_v3, %v6071_v60 }
 0x1a9   : > { %v6167_v49 = vadd.f32 %v4770_v36, %v2398_v35  ;;  %v2295_v57 = vpop.f32.mrf.mxu1 }
 0x1aa   : > { %v2718_v14 = vpop.f32.mrf.mxu0  ;;  %v2400_v18 = vadd.f32 %v2295_v57, %v6074_v11 }
 0x1ab   : > { %v6170_v56 = vadd.f32 %v2718_v14, %v2396_v33  ;;  %v4739_v7 = vpop.f32.mrf.mxu1 }
 0x1ac   : > { %v4773_v50 = vpop.f32.mrf.mxu0  ;;  %v2405_v55 = vadd.f32 %v4739_v7, %v6077_v27 }
 0x1ad   : > { %v6173_v31 = vadd.f32 %v4773_v50, %v2401_v43  ;;  %v2308_v16 = vpop.f32.mrf.mxu1 }
 0x1ae   : > { %v2731_v34 = vpop.f32.mrf.mxu0  ;;  %v2403_v12 = vadd.f32 %v2308_v16, %v6080_v19 }
 0x1af   : > { %v6176_v58 = vadd.f32 %v2731_v34, %v2399_v45  ;;  %v4740_v60 = vpop.f32.mrf.mxu1 }
 0x1b0   : > { %v4774_v47 = vpop.f32.mrf.mxu0  ;;  %v2406_v22 = vadd.f32 %v4740_v60, %v6083_v32 }
 0x1b1   : > { %v6179_v59 = vadd.f32 %v4774_v47, %v2402_v51  ;;  %v2311_v11 = vpop.f32.mrf.mxu1 }
 0x1b2   : > { %v2734_v52 = vpop.f32.mrf.mxu0  ;;  %v2404_v0 = vadd.f32 %v2311_v11, %v6086_v13 }
 0x1b3   : > { %v6182_v54 = vadd.f32 %v2734_v52, %v2400_v18  ;;  %v4743_v27 = vpop.f32.mrf.mxu1 }
 0x1b4   : > { %v4777_v6 = vpop.f32.mrf.mxu0  ;;  %v2409_v39 = vadd.f32 %v4743_v27, %v6089_v53 }
 0x1b5   : > { %v6185_v35 = vadd.f32 %v4777_v6, %v2405_v55  ;;  %v2324_v19 = vpop.f32.mrf.mxu1 }
 0x1b6   : > { %v2747_v30 = vpop.f32.mrf.mxu0  ;;  %v2407_v44 = vadd.f32 %v2324_v19, %v6092_v37 }
 0x1b7   : > { %v6188_v33 = vadd.f32 %v2747_v30, %v2403_v12  ;;  %v4744_v32 = vpop.f32.mrf.mxu1 }
 0x1b8   : > { %v4778_v5 = vpop.f32.mrf.mxu0  ;;  %v2410_v36 = vadd.f32 %v4744_v32, %v6095_v8 }
 0x1b9   : > { %v6191_v43 = vadd.f32 %v4778_v5, %v2406_v22  ;;  %v2327_v13 = vpop.f32.mrf.mxu1 }
 0x1ba   : > { %v2750_v1 = vpop.f32.mrf.mxu0  ;;  %v2408_v14 = vadd.f32 %v2327_v13, %v6098_v25 }
 0x1bb   : > { %v6194_v45 = vadd.f32 %v2750_v1, %v2404_v0  ;;  %v4747_v53 = vpop.f32.mrf.mxu1 }
 0x1bc   : > { %v4781_v3 = vpop.f32.mrf.mxu0  ;;  %v2413_v50 = vadd.f32 %v4747_v53, %v6101_v9 }
 0x1bd   : > { %v6197_v51 = vadd.f32 %v4781_v3, %v2409_v39  ;;  %v2340_v37 = vpop.f32.mrf.mxu1 }
 0x1be   : > { %v2763_v57 = vpop.f32.mrf.mxu0  ;;  %v2411_v34 = vadd.f32 %v2340_v37, %v6104_v17 }
 0x1bf   : > { %v6200_v18 = vadd.f32 %v2763_v57, %v2407_v44  ;;  %v4748_v8 = vpop.f32.mrf.mxu1 }
 0x1c0   : > { %v4782_v7 = vpop.f32.mrf.mxu0  ;;  %v2414_v47 = vadd.f32 %v4748_v8, %v6107_v28 }
 0x1c1   : > { %v6203_v55 = vadd.f32 %v4782_v7, %v2410_v36  ;;  %v2343_v25 = vpop.f32.mrf.mxu1 }
 0x1c2   : > { %v2766_v16 = vpop.f32.mrf.mxu0  ;;  %v2412_v52 = vadd.f32 %v2343_v25, %v6110_v40 }
 0x1c3   : > { %v6206_v12 = vadd.f32 %v2766_v16, %v2408_v14  ;;  %v4751_v9 = vpop.f32.mrf.mxu1 }
 0x1c4   : > { %v4785_v60 = vpop.f32.mrf.mxu0  ;;  %v2417_v6 = vadd.f32 %v4751_v9, %v6113_v26 }
 0x1c5   : > { %v6209_v22 = vadd.f32 %v4785_v60, %v2413_v50  ;;  %v2356_v17 = vpop.f32.mrf.mxu1 }
 0x1c6   : > { %v2779_v11 = vpop.f32.mrf.mxu0  ;;  %v2415_v30 = vadd.f32 %v2356_v17, %v6116_v21 }
 0x1c7   : > { %v6212_v0 = vadd.f32 %v2779_v11, %v2411_v34  ;;  %v4752_v28 = vpop.f32.mrf.mxu1 }
 0x1c8   : > { %v4786_v27 = vpop.f32.mrf.mxu0  ;;  %v2418_v5 = vadd.f32 %v4752_v28, %v6119_v46 }
 0x1c9   : > { %v6215_v39 = vadd.f32 %v4786_v27, %v2414_v47  ;;  %v2359_v40 = vpop.f32.mrf.mxu1 }
 0x1ca   : > { %v2782_v19 = vpop.f32.mrf.mxu0  ;;  %v2416_v1 = vadd.f32 %v2359_v40, %v6122_v10 }
 0x1cb   : > { %v6218_v44 = vadd.f32 %v2782_v19, %v2412_v52  ;;  %v4755_v26 = vpop.f32.mrf.mxu1 }
 0x1cc   : > { %v4789_v32 = vpop.f32.mrf.mxu0  ;;  %v2421_v3 = vadd.f32 %v4755_v26, %v6125_v41 }
 0x1cd   : > { %v6221_v36 = vadd.f32 %v4789_v32, %v2417_v6  ;;  %v2372_v21 = vpop.f32.mrf.mxu1 }
 0x1ce   : > { %v2795_v13 = vpop.f32.mrf.mxu0  ;;  %v2419_v57 = vadd.f32 %v2372_v21, %v6128_v20 }
 0x1cf   : > { %v6224_v14 = vadd.f32 %v2795_v13, %v2415_v30  ;;  %v4756_v46 = vpop.f32.mrf.mxu1 }
 0x1d0   : > { %v4790_v53 = vpop.f32.mrf.mxu0  ;;  %v2422_v7 = vadd.f32 %v4756_v46, %v6131_v15 }
 0x1d1   : > { %v6227_v50 = vadd.f32 %v4790_v53, %v2418_v5  ;;  %v2375_v10 = vpop.f32.mrf.mxu1  ;;  %v6246_v5 = vld [vmem:[%s6347_s2] ss:$0 sm:$0xff] }
 0x1d2   : > { %v2798_v37 = vpop.f32.mrf.mxu0  ;;  %v2420_v16 = vadd.f32 %v2375_v10, %v6134_v38 }
 0x1d3   : > { %v6230_v34 = vadd.f32 %v2798_v37, %v2416_v1  ;;  %v4799_v41 = vpop.f32.mrf.mxu1 }
 0x1d4   : > { %v4793_v8 = vpop.f32.mrf.mxu0  ;;  %v3275_v15 = vadd.f32 %v4799_v41, %v6137_v63 }
 0x1d5   : > { %v6233_v47 = vadd.f32 %v4793_v8, %v2421_v3  ;;  %v3130_v52 = vpop.f32.mrf.mxu1 }
 0x1d6   : > { %v2811_v25 = vpop.f32.mrf.mxu0  ;;  %v3273_v38 = vadd.f32 %v3130_v52, %v6140_v24 }
 0x1d7   : > { %v6235_v60 = vadd.f32 %v2811_v25, %v2419_v57  ;;  %v4800_v11 = vpop.f32.mrf.mxu1 }
 0x1d8   : > { %v4794_v20 = vpop.f32.mrf.mxu0  ;;  %v3276_v32 = vadd.f32 %v4800_v11, %v6143_v48 }
 0x1d9   : > { %v6237_v9 = vadd.f32 %v4794_v20, %v2422_v7  ;;  %v3133_v27 = vpop.f32.mrf.mxu1 }
 0x1da   : > { %v2814_v6 = vpop.f32.mrf.mxu0  ;;  %v3274_v13 = vadd.f32 %v3133_v27, %v6146_v23 }
 0x1db   : > { %v6240_v17 = vadd.f32 %v2814_v6, %v2420_v16  ;;  %v4803_v19 = vpop.f32.mrf.mxu1 }
 0x1dc   : > { %v4837_v30 = vpop.f32.mrf.mxu0  ;;  %v3279_v57 = vadd.f32 %v4803_v19, %v6149_v4 }
 0x1dd   : > { %v3589_v28 = vadd.f32 %v4837_v30, %v3275_v15  ;;  %v3146_v26 = vpop.f32.mrf.mxu1 }
 0x1de   : > { %v3444_v40 = vpop.f32.mrf.mxu0  ;;  %v3277_v25 = vadd.f32 %v3146_v26, %v6152_v62 }
 0x1df   : > { %v3587_v1 = vadd.f32 %v3444_v40, %v3273_v38  ;;  %v3632_v3 = vadd.f32 %v6246_v5, %v3589_v28  ;;  %v4804_v53 = vpop.f32.mrf.mxu1 }
 0x1e0   : > { %v4838_v63 = vpop.f32.mrf.mxu0  ;;  %v3280_v11 = vadd.f32 %v4804_v53, %v6155_v2 }
 0x1e1   : > { %v3590_v21 = vadd.f32 %v4838_v63, %v3276_v32  ;;  %v3630_v46 = vadd.f32 %v6246_v5, %v3587_v1  ;;  %v3149_v10 = vpop.f32.mrf.mxu1  ;;  %v3668_v8 = vmax.f32 %v3632_v3, 0.0 }
 0x1e2   : > { %v3447_v24 = vpop.f32.mrf.mxu0  ;;  %v3278_v62 = vadd.f32 %v3149_v10, %v6158_v42 }
 0x1e3   : > { %v3633_v37 = vadd.f32 %v6246_v5, %v3590_v21  ;;  %v3588_v7 = vadd.f32 %v3447_v24, %v3274_v13  ;;  %v4807_v4 = vpop.f32.mrf.mxu1  ;;  %v3666_v20 = vmax.f32 %v3630_v46, 0.0 }
 0x1e4   : > { %v4841_v48 = vpop.f32.mrf.mxu0  ;;  %v3283_v26 = vadd.f32 %v4807_v4, %v6161_v29 }
 0x1e5   : > { %v3669_v16 = vmax.f32 %v3633_v37, 0.0  ;;  %v3631_v41 = vadd.f32 %v6246_v5, %v3588_v7  ;;  %v3593_v23 = vadd.f32 %v4841_v48, %v3279_v57  ;;  %v3162_v27 = vpop.f32.mrf.mxu1 }
 0x1e6   : > { %v3460_v52 = vpop.f32.mrf.mxu0  ;;  %v3281_v46 = vadd.f32 %v3162_v27, %v6164_v61 }
 0x1e7   : > { %v4259_v6 = vpack.c.bf16 %v3669_v16, %v3668_v8  ;;  %v3667_v15 = vmax.f32 %v3631_v41, 0.0  ;;  %v3591_v30 = vadd.f32 %v3460_v52, %v3277_v25  ;;  %v3636_v19 = vadd.f32 %v6246_v5, %v3593_v23  ;;  %v4808_v32 = vpop.f32.mrf.mxu1 }
 0x1e8   : > { %v4842_v38 = vpop.f32.mrf.mxu0  ;;  %v3284_v29 = vadd.f32 %v4808_v32, %v6167_v49 }
 0x1e9   : > { %4341 = vst [vmem:[%s6260_s13 + $0x8] sm:$0xff] %v4259_v6   ;;  %v4254_v28 = vpack.c.bf16 %v3667_v15, %v3666_v20  ;;  %v3594_v40 = vadd.f32 %v4842_v38, %v3280_v11  ;;  %v3634_v63 = vadd.f32 %v6246_v5, %v3591_v30  ;;  %v3165_v3 = vpop.f32.mrf.mxu1  ;;  %v3672_v53 = vmax.f32 %v3636_v19, 0.0 }
 0x1ea   : > { %v3463_v1 = vpop.f32.mrf.mxu0  ;;  %v3282_v25 = vadd.f32 %v3165_v3, %v6170_v56 }
 0x1eb   : > { %4255 = vst [vmem:[%s6260_s13] sm:$0xff] %v4254_v28   ;;  %v3637_v2 = vadd.f32 %v6246_v5, %v3594_v40  ;;  %v3592_v13 = vadd.f32 %v3463_v1, %v3278_v62  ;;  %v4811_v37 = vpop.f32.mrf.mxu1  ;;  %v3670_v10 = vmax.f32 %v3634_v63, 0.0 }
 0x1ec   : > { %v4845_v21 = vpop.f32.mrf.mxu0  ;;  %v3287_v6 = vadd.f32 %v4811_v37, %v6173_v31 }
 0x1ed   : > { %v3673_v24 = vmax.f32 %v3637_v2, 0.0  ;;  %v3635_v42 = vadd.f32 %v6246_v5, %v3592_v13  ;;  %v3597_v57 = vadd.f32 %v4845_v21, %v3283_v26  ;;  %v3178_v16 = vpop.f32.mrf.mxu1 }
 0x1ee   : > { %v3476_v7 = vpop.f32.mrf.mxu0  ;;  %v3285_v40 = vadd.f32 %v3178_v16, %v6176_v58 }
 0x1ef   : > { %v4269_v48 = vpack.c.bf16 %v3673_v24, %v3672_v53  ;;  %v3671_v8 = vmax.f32 %v3635_v42, 0.0  ;;  %v3595_v41 = vadd.f32 %v3476_v7, %v3281_v46  ;;  %v3640_v52 = vadd.f32 %v6246_v5, %v3597_v57  ;;  %v4812_v11 = vpop.f32.mrf.mxu1 }
 0x1f0   : > { %v4846_v23 = vpop.f32.mrf.mxu0  ;;  %v3288_v31 = vadd.f32 %v4812_v11, %v6179_v59 }
 0x1f1   : > { %4343 = vst [vmem:[%s6260_s13 + $0x18] sm:$0xff] %v4269_v48   ;;  %v4264_v4 = vpack.c.bf16 %v3671_v8, %v3670_v10  ;;  %v3598_v20 = vadd.f32 %v4846_v23, %v3284_v29  ;;  %v3638_v15 = vadd.f32 %v6246_v5, %v3595_v41  ;;  %v3181_v30 = vpop.f32.mrf.mxu1  ;;  %v3676_v62 = vmax.f32 %v3640_v52, 0.0 }
 0x1f2   : > { %v3479_v61 = vpop.f32.mrf.mxu0  ;;  %v3286_v53 = vadd.f32 %v3181_v30, %v6182_v54 }
 0x1f3   : > { %4342 = vst [vmem:[%s6260_s13 + $0x10] sm:$0xff] %v4264_v4   ;;  %v3641_v49 = vadd.f32 %v6246_v5, %v3598_v20  ;;  %v3596_v27 = vadd.f32 %v3479_v61, %v3282_v25  ;;  %v4815_v32 = vpop.f32.mrf.mxu1  ;;  %v3674_v26 = vmax.f32 %v3638_v15, 0.0 }
 0x1f4   : > { %v4849_v38 = vpop.f32.mrf.mxu0  ;;  %v3291_v37 = vadd.f32 %v4815_v32, %v6185_v35 }
 0x1f5   : > { %v3677_v28 = vmax.f32 %v3641_v49, 0.0  ;;  %v3639_v56 = vadd.f32 %v6246_v5, %v3596_v27  ;;  %v3601_v19 = vadd.f32 %v4849_v38, %v3287_v6  ;;  %v3194_v13 = vpop.f32.mrf.mxu1 }
 0x1f6   : > { %v3492_v1 = vpop.f32.mrf.mxu0  ;;  %v3289_v23 = vadd.f32 %v3194_v13, %v6188_v33 }
 0x1f7   : > { %v4279_v63 = vpack.c.bf16 %v3677_v28, %v3676_v62  ;;  %v3675_v2 = vmax.f32 %v3639_v56, 0.0  ;;  %v3599_v3 = vadd.f32 %v3492_v1, %v3285_v40  ;;  %v3644_v42 = vadd.f32 %v6246_v5, %v3601_v19  ;;  %v4816_v46 = vpop.f32.mrf.mxu1 }
 0x1f8   : > { %v4850_v21 = vpop.f32.mrf.mxu0  ;;  %v3292_v35 = vadd.f32 %v4816_v46, %v6191_v43 }
 0x1f9   : > { %4345 = vst [vmem:[%s6260_s13 + $0x28] sm:$0xff] %v4279_v63   ;;  %v4274_v24 = vpack.c.bf16 %v3675_v2, %v3674_v26  ;;  %v3602_v57 = vadd.f32 %v4850_v21, %v3288_v31  ;;  %v3642_v7 = vadd.f32 %v6246_v5, %v3599_v3  ;;  %v3197_v29 = vpop.f32.mrf.mxu1  ;;  %v3680_v8 = vmax.f32 %v3644_v42, 0.0 }
 0x1fa   : > { %v3495_v58 = vpop.f32.mrf.mxu0  ;;  %v3290_v49 = vadd.f32 %v3197_v29, %v6194_v45 }
 0x1fb   : > { %4344 = vst [vmem:[%s6260_s13 + $0x20] sm:$0xff] %v4274_v24   ;;  %v3645_v59 = vadd.f32 %v6246_v5, %v3602_v57  ;;  %v3600_v10 = vadd.f32 %v3495_v58, %v3286_v53  ;;  %v4819_v25 = vpop.f32.mrf.mxu1  ;;  %v3678_v52 = vmax.f32 %v3642_v7, 0.0 }
 0x1fc   : > { %v4853_v48 = vpop.f32.mrf.mxu0  ;;  %v3295_v28 = vadd.f32 %v4819_v25, %v6197_v51 }
 0x1fd   : > { %v3681_v16 = vmax.f32 %v3645_v59, 0.0  ;;  %v3643_v54 = vadd.f32 %v6246_v5, %v3600_v10  ;;  %v3605_v41 = vadd.f32 %v4853_v48, %v3291_v37  ;;  %v3210_v61 = vpop.f32.mrf.mxu1 }
 0x1fe   : > { %v3508_v4 = vpop.f32.mrf.mxu0  ;;  %v3293_v63 = vadd.f32 %v3210_v61, %v6200_v18 }
 0x1ff   : > { %v4289_v20 = vpack.c.bf16 %v3681_v16, %v3680_v8  ;;  %v3679_v11 = vmax.f32 %v3643_v54, 0.0  ;;  %v3603_v6 = vadd.f32 %v3508_v4, %v3289_v23  ;;  %v3648_v30 = vadd.f32 %v6246_v5, %v3605_v41  ;;  %v4820_v62 = vpop.f32.mrf.mxu1 }
 0x200   : > { %v4854_v15 = vpop.f32.mrf.mxu0  ;;  %v3296_v51 = vadd.f32 %v4820_v62, %v6203_v55 }
 0x201   : > { %4347 = vst [vmem:[%s6260_s13 + $0x38] sm:$0xff] %v4289_v20   ;;  %v4284_v27 = vpack.c.bf16 %v3679_v11, %v3678_v52  ;;  %v3606_v38 = vadd.f32 %v4854_v15, %v3292_v35  ;;  %v3646_v56 = vadd.f32 %v6246_v5, %v3603_v6  ;;  %v3213_v40 = vpop.f32.mrf.mxu1  ;;  %v3684_v1 = vmax.f32 %v3648_v30, 0.0 }
 0x202   : > { %v3511_v33 = vpop.f32.mrf.mxu0  ;;  %v3294_v46 = vadd.f32 %v3213_v40, %v6206_v12 }
 0x203   : > { %4346 = vst [vmem:[%s6260_s13 + $0x30] sm:$0xff] %v4284_v27   ;;  %v3649_v43 = vadd.f32 %v6246_v5, %v3606_v38  ;;  %v3604_v19 = vadd.f32 %v3511_v33, %v3290_v49  ;;  %v4823_v2 = vpop.f32.mrf.mxu1  ;;  %v3682_v3 = vmax.f32 %v3646_v56, 0.0 }
 0x204   : > { %v4857_v32 = vpop.f32.mrf.mxu0  ;;  %v3299_v10 = vadd.f32 %v4823_v2, %v6209_v22 }
 0x205   : > { %v3685_v26 = vmax.f32 %v3649_v43, 0.0  ;;  %v3647_v45 = vadd.f32 %v6246_v5, %v3604_v19  ;;  %v3609_v31 = vadd.f32 %v4857_v32, %v3295_v28  ;;  %v3226_v24 = vpop.f32.mrf.mxu1 }
 0x206   : > { %v3524_v13 = vpop.f32.mrf.mxu0  ;;  %v3297_v25 = vadd.f32 %v3226_v24, %v6212_v0 }
 0x207   : > { %v4299_v21 = vpack.c.bf16 %v3685_v26, %v3684_v1  ;;  %v3683_v53 = vmax.f32 %v3647_v45, 0.0  ;;  %v3607_v42 = vadd.f32 %v3524_v13, %v3293_v63  ;;  %v3652_v37 = vadd.f32 %v6246_v5, %v3609_v31  ;;  %v4824_v59 = vpop.f32.mrf.mxu1 }
 0x208   : > { %v4858_v57 = vpop.f32.mrf.mxu0  ;;  %v3300_v22 = vadd.f32 %v4824_v59, %v6215_v39 }
 0x209   : > { %4349 = vst [vmem:[%s6260_s13 + $0x48] sm:$0xff] %v4299_v21   ;;  %v4294_v58 = vpack.c.bf16 %v3683_v53, %v3682_v3  ;;  %v3610_v7 = vadd.f32 %v4858_v57, %v3296_v51  ;;  %v3650_v29 = vadd.f32 %v6246_v5, %v3607_v42  ;;  %v3229_v8 = vpop.f32.mrf.mxu1  ;;  %v3688_v54 = vmax.f32 %v3652_v37, 0.0 }
 0x20a   : > { %v3527_v18 = vpop.f32.mrf.mxu0  ;;  %v3298_v49 = vadd.f32 %v3229_v8, %v6218_v44 }
 0x20b   : > { %4348 = vst [vmem:[%s6260_s13 + $0x40] sm:$0xff] %v4294_v58   ;;  %v3653_v55 = vadd.f32 %v6246_v5, %v3610_v7  ;;  %v3608_v48 = vadd.f32 %v3527_v18, %v3294_v46  ;;  %v4827_v4 = vpop.f32.mrf.mxu1  ;;  %v3686_v35 = vmax.f32 %v3650_v29, 0.0 }
 0x20c   : > { %v4861_v16 = vpop.f32.mrf.mxu0  ;;  %v3303_v33 = vadd.f32 %v4827_v4, %v6221_v36 }
 0x20d   : > { %v3689_v41 = vmax.f32 %v3653_v55, 0.0  ;;  %v3651_v12 = vadd.f32 %v6246_v5, %v3608_v48  ;;  %v3613_v23 = vadd.f32 %v4861_v16, %v3299_v10  ;;  %v3242_v61 = vpop.f32.mrf.mxu1 }
 0x20e   : > { %v3540_v52 = vpop.f32.mrf.mxu0  ;;  %v3301_v26 = vadd.f32 %v3242_v61, %v6224_v14 }
 0x20f   : > { %v4309_v20 = vpack.c.bf16 %v3689_v41, %v3688_v54  ;;  %v3687_v11 = vmax.f32 %v3651_v12, 0.0  ;;  %v3611_v6 = vadd.f32 %v3540_v52, %v3297_v25  ;;  %v3656_v30 = vadd.f32 %v6246_v5, %v3613_v23  ;;  %v4828_v62 = vpop.f32.mrf.mxu1 }
 0x210   : > { %v4862_v15 = vpop.f32.mrf.mxu0  ;;  %v3304_v36 = vadd.f32 %v4828_v62, %v6227_v50 }
 0x211   : > { %4351 = vst [vmem:[%s6260_s13 + $0x58] sm:$0xff] %v4309_v20   ;;  %v4304_v27 = vpack.c.bf16 %v3687_v11, %v3686_v35  ;;  %v3614_v38 = vadd.f32 %v4862_v15, %v3300_v22  ;;  %v3654_v28 = vadd.f32 %v6246_v5, %v3611_v6  ;;  %v3245_v43 = vpop.f32.mrf.mxu1  ;;  %v3692_v40 = vmax.f32 %v3656_v30, 0.0 }
 0x212   : > { %v3543_v0 = vpop.f32.mrf.mxu0  ;;  %v3302_v24 = vadd.f32 %v3245_v43, %v6230_v34 }
 0x213   : > { %4350 = vst [vmem:[%s6260_s13 + $0x50] sm:$0xff] %v4304_v27   ;;  %v3657_v39 = vadd.f32 %v6246_v5, %v3614_v38  ;;  %v3612_v56 = vadd.f32 %v3543_v0, %v3298_v49  ;;  %v4831_v45 = vpop.f32.mrf.mxu1  ;;  %v3690_v63 = vmax.f32 %v3654_v28, 0.0 }
 0x214   : > { %v4865_v19 = vpop.f32.mrf.mxu0  ;;  %v3307_v58 = vadd.f32 %v4831_v45, %v6233_v47 }
 0x215   : > { %v3693_v32 = vmax.f32 %v3657_v39, 0.0  ;;  %v3655_v44 = vadd.f32 %v6246_v5, %v3612_v56  ;;  %v3617_v1 = vadd.f32 %v4865_v19, %v3303_v33  ;;  %v3258_v51 = vpop.f32.mrf.mxu1 }
 0x216   : > { %v3556_v31 = vpop.f32.mrf.mxu0  ;;  %v3305_v10 = vadd.f32 %v3258_v51, %v6235_v60 }
 0x217   : > { %v4319_v2 = vpack.c.bf16 %v3693_v32, %v3692_v40  ;;  %v3691_v13 = vmax.f32 %v3655_v44, 0.0  ;;  %v3660_v3 = vadd.f32 %v6246_v5, %v3617_v1  ;;  %v3615_v21 = vadd.f32 %v3556_v31, %v3301_v26  ;;  %v4832_v46 = vpop.f32.mrf.mxu1 }
 0x218   : > { %v4866_v53 = vpop.f32.mrf.mxu0  ;;  %v3308_v48 = vadd.f32 %v4832_v46, %v6237_v9 }
 0x219   : > { %4353 = vst [vmem:[%s6260_s13 + $0x68] sm:$0xff] %v4319_v2   ;;  %v4314_v42 = vpack.c.bf16 %v3691_v13, %v3690_v63  ;;  %v3618_v57 = vadd.f32 %v4866_v53, %v3304_v36  ;;  %v3658_v37 = vadd.f32 %v6246_v5, %v3615_v21  ;;  %v3696_v59 = vmax.f32 %v3660_v3, 0.0  ;;  %v3261_v8 = vpop.f32.mrf.mxu1 }
 0x21a   : > { %v3559_v14 = vpop.f32.mrf.mxu0  ;;  %v3306_v25 = vadd.f32 %v3261_v8, %v6240_v17 }
 0x21b   : > { %4352 = vst [vmem:[%s6260_s13 + $0x60] sm:$0xff] %v4314_v42   ;;  %v3661_v50 = vadd.f32 %v6246_v5, %v3618_v57  ;;  %v3616_v7 = vadd.f32 %v3559_v14, %v3302_v24  ;;  %v3694_v47 = vmax.f32 %v3658_v37, 0.0 }
 0x21c   : > { %v4869_v18 = vpop.f32.mrf.mxu0 }
 0x21d   : > { %v3697_v29 = vmax.f32 %v3661_v50, 0.0  ;;  %v3659_v34 = vadd.f32 %v6246_v5, %v3616_v7  ;;  %v3621_v55 = vadd.f32 %v4869_v18, %v3307_v58 }
 0x21e   : > { %v3572_v16 = vpop.f32.mrf.mxu0 }
 0x21f   : > { %v4329_v54 = vpack.c.bf16 %v3697_v29, %v3696_v59  ;;  %v3695_v41 = vmax.f32 %v3659_v34, 0.0  ;;  %v3619_v12 = vadd.f32 %v3572_v16, %v3305_v10  ;;  %v3664_v60 = vadd.f32 %v6246_v5, %v3621_v55 }
 0x220   : > { %v4870_v23 = vpop.f32.mrf.mxu0 }
 0x221   : > { %4355 = vst [vmem:[%s6260_s13 + $0x78] sm:$0xff] %v4329_v54   ;;  %v4324_v4 = vpack.c.bf16 %v3695_v41, %v3694_v47  ;;  %v3622_v52 = vadd.f32 %v4870_v23, %v3308_v48  ;;  %v3662_v9 = vadd.f32 %v6246_v5, %v3619_v12  ;;  %v3700_v11 = vmax.f32 %v3664_v60, 0.0 }
 0x222   : > { %v3575_v35 = vpop.f32.mrf.mxu0 }
 0x223   : > { %4354 = vst [vmem:[%s6260_s13 + $0x70] sm:$0xff] %v4324_v4   ;;  %v3665_v22 = vadd.f32 %v6246_v5, %v3622_v52  ;;  %v3620_v20 = vadd.f32 %v3575_v35, %v3306_v25  ;;  %v3698_v15 = vmax.f32 %v3662_v9, 0.0 }
 0x225   : > { %v3701_v61 = vmax.f32 %v3665_v22, 0.0  ;;  %v3663_v6 = vadd.f32 %v6246_v5, %v3620_v20 }
 0x227   : > { %v4339_v49 = vpack.c.bf16 %v3701_v61, %v3700_v11  ;;  %v3699_v27 = vmax.f32 %v3663_v6, 0.0 }
 0x229   : > { %4357 = vst [vmem:[%s6260_s13 + $0x88] sm:$0xff] %v4339_v49   ;;  %v4334_v17 = vpack.c.bf16 %v3699_v27, %v3698_v15 }
 0x22b   : > { %4356 = vst [vmem:[%s6260_s13 + $0x80] sm:$0xff] %v4334_v17  }
 0x22c PF: > { %s13_s12 = sadd.s32 1, %s4952_s12  }
 0x22d   : > { %p10_p4 = scmp.ge.s32.totalorder %s13_s12, 4  }
 0x22f   :  { %12 = sbr.rel (!%p10_p4) target bundleno = 1 (0x1), region = 70 }

// kernel: unet_forward.10
= control target key start
LH: loop header
LB: loop body
LE: loop exit
PB: predicated region body
PF: predicated region fallthrough
CT: control target
= control target key end

     0   :  { %s2060_s12 = smov 0   ;;  %s2368_s0 = inlined_call_operand.vmem [shape: bf16[2,42,128], index: 0, kind: input, shape index: {}]   ;;  %s2369_s1 = inlined_call_operand.vmem [shape: bf16[9,128,128], index: 1, kind: input, shape index: {}]   ;;  %s2370_s2 = inlined_call_operand.vmem [shape: f32[1,128], index: 2, kind: input, shape index: {}]   ;;  %s2371_s3 = inlined_call_operand.vmem [shape: bf16[2,24,128], index: 3, kind: output, shape index: {}]  }
   0x1 LB: > { %s1433_s13 = sadd.s32 4294967295, %s2038_s12   ;;  %p1437_p0 = scmp.ge.s32.totalorder %s2038_s12, 1  ;;  %s2038_s12 = sphi %s2060_s12, %s13_s12  }
   0x2   : > { %p137_p1 = scmp.lt.s32.totalorder %s2038_s12, 3 }
   0x4   : > { %p138_p2 = pnand %p1437_p0, %p137_p1 }
   0x5   : > { %p161_p3 = scmp.lt.s32.totalorder (!%p138_p2), %s1433_s13, 1 }
   0x6   : > { %141 = sbr.rel (%p138_p2) target bundleno = 380 (0x17c), region = 32 }
   0xb   : > { %v1947_v0 = vld [vmem:[%s2369_s1 + $0x78] sm:$0xff]   ;;  %v1949_v2 = vld [vmem:[%s2369_s1 + $0x70] sm:$0xff]   ;;  %v1951_v4 = vld [vmem:[%s2369_s1 + $0x68] sm:$0xff]   ;;  %s2373_s13 = smov (!%p161_p3, %s1433_s13), 1  ;;  %vm219_vm0 = vsmask.f32 7424 }
   0xc   : > { %v1948_v1 = vld [vmem:[%s2369_s1 + $0x38] sm:$0xff]   ;;  %1757 = vmatprep.subr.bf16.mxu0 %v1947_v0  ;;  %v1950_v3 = vld [vmem:[%s2369_s1 + $0x30] sm:$0xff]   ;;  %v1952_v5 = vld [vmem:[%s2369_s1 + $0x28] sm:$0xff]   ;;  %s1937_s30 = smul.u32 24, %s2373_s13  ;;  %vm453_vm1 = vcmask 1046528   ;;  %vm583_vm2 = vcmask 1044480  }
   0xd   : > { %1777 = vmatprep.subr.bf16.mxu1 %v1948_v1  ;;  %1758 = vmatpush3.bf16.msra.mxu0 %v1947_v0  ;;  %v1953_v6 = vld [vmem:[%s2369_s1 + $0x60] sm:$0xff]   ;;  %v1955_v8 = vld [vmem:[%s2369_s1 + $0x58] sm:$0xff]   ;;  %v1957_v10 = vld [vmem:[%s2369_s1 + $0x50] sm:$0xff]   ;;  %vm709_vm3 = vsmask.f32 4352  ;;  %vm979_vm4 = vcmask 1045504  }
   0xe   : > { %1778 = vmatpush3.bf16.msra.mxu1 %v1948_v1  ;;  %1759 = vmatprep.subr.bf16.mxu0 %v1949_v2  ;;  %v1954_v7 = vld [vmem:[%s2369_s1 + $0x20] sm:$0xff]   ;;  %v1956_v9 = vld [vmem:[%s2369_s1 + $0x18] sm:$0xff]   ;;  %s2104_s10 = scalar_lea.vmem %s2368_s0, %s1937_s30  ;;  %v1958_v14 = vld [vmem:[%s2369_s1 + $0x10] sm:$0xff]   ;;  %vm1105_vm5 = vsmask.f32 5376 }
   0xf   : > { %1779 = vmatprep.subr.bf16.mxu1 %v1950_v3  ;;  %v172_v11 = vld [vmem:[%s2104_s10] sm:$0xf]  ;;  %v2111_v12 = vld [vmem:[%s2104_s10 + $0x4] sm:$0xf]  ;;  %v2114_v13 = vld [vmem:[%s2104_s10 + $0x8] sm:$0xf] }
  0x10   : > { %v191_v15 = vld [vmem:[%s2104_s10 + $0xc] sm:$0x1]  ;;  %v1456_v16 = vcombine.low %v172_v11, %v2111_v12  ;;  %v1961_v26 = vld [vmem:[%s2369_s1 + $0x40] sm:$0xff]   ;;  %v1966_v30 = vld [vmem:[%s2369_s1 + $0xb8] sm:$0xff]   ;;  %v1466_v33 = vcombine.low %v2114_v13, %v2114_v13 }
  0x11   : > { %1760 = vmatpush3.bf16.msra.mxu0 %v1949_v2  ;;  %v2122_v17 = vcombine.low %v2114_v13, %v191_v15  ;;  %v1959_v20 = vld [vmem:[%s2369_s1 + $0x48] sm:$0xff]   ;;  %v1962_v27 = vld [vmem:[%s2369_s1] sm:$0xff]   ;;  %v1967_v31 = vld [vmem:[%s2369_s1 + $0xf8] sm:$0xff]   ;;  %v1567_v15 = vcombine.low %v2111_v12, %v2114_v13 }
  0x12   : > { %1780 = vmatpush3.bf16.msra.mxu1 %v1950_v3  ;;  %1761 = vmatprep.subr.bf16.mxu0 %v1951_v4  ;;  %v221_v18 = vshrl.u32 %v1456_v16, 16  ;;  %v223_v19 = vshll.u32 %v1456_v16, 16  ;;  %v1960_v22 = vld [vmem:[%s2369_s1 + $0x8] sm:$0xff]   ;;  %v1968_v34 = vld [vmem:[%s2369_s1 + $0xb0] sm:$0xff]   ;;  %v432_v36 = vld [vmem:[%s2104_s10] sm:$0xe] }
  0x13   : > { %1781 = vmatprep.subr.bf16.mxu1 %v1952_v5  ;;  %1793 = vmatprep.mubr.bf16.mxu1 %v1456_v16  ;;  %v228_v21 = vshll.u32 %v2122_v17, 16  ;;  %v232_v29 = vshrl.u32 %v2122_v17, 16  ;;  %v1969_v35 = vld [vmem:[%s2369_s1 + $0xf0] sm:$0xff]   ;;  %v1491_v37 = vcombine.low %v432_v36, %v2111_v12  ;;  %v455_v38 = vrot.slane %v2122_v17, 1  ;;  %v558_v39 = vld [vmem:[%s2104_s10] sm:$0x8] }
  0x14   : > { %v225_v23 = vrot.slane %v223_v19, 1  ;;  %v559_v40 = vld [vmem:[%s2104_s10 + $0xc] sm:$0x7]  ;;  %v1516_v42 = vcombine.low %v558_v39, %v2111_v12  ;;  %v1972_v49 = vld [vmem:[%s2369_s1 + $0xa0] sm:$0xff]   ;;  %v1974_v52 = vld [vmem:[%s2369_s1 + $0x98] sm:$0xff]  }
  0x15   : > { %1762 = vmatpush3.bf16.msra.mxu0 %v1951_v4  ;;  %v230_v24 = vrot.slane %v228_v21, 1  ;;  %v1970_v41 = vld [vmem:[%s2369_s1 + $0xa8] sm:$0xff]   ;;  %v1517_v43 = vcombine.low %v2114_v13, %v559_v40  ;;  %v454_v45 = vrot.slane %v1491_v37, 1  ;;  %v1973_v51 = vld [vmem:[%s2369_s1 + $0xe0] sm:$0xff]   ;;  %v1975_v53 = vld [vmem:[%s2369_s1 + $0xd8] sm:$0xff]  }
  0x16   : > { %1782 = vmatpush3.bf16.msra.mxu1 %v1952_v5  ;;  %1763 = vmatprep.subr.bf16.mxu0 %v1953_v6  ;;  %v226_v25 = vor.u32 %v225_v23, %v221_v18  ;;  %v1971_v44 = vld [vmem:[%s2369_s1 + $0xe8] sm:$0xff]   ;;  %v584_v46 = vrot.slane %v1516_v42, 3  ;;  %v1976_v54 = vld [vmem:[%s2369_s1 + $0x90] sm:$0xff]   ;;  %v711_v58 = vshrl.u32 %v1516_v42, 16  ;;  %v714_v59 = vshll.u32 %v1516_v42, 16  ;;  %v1980_v0 = vld [vmem:[%s2369_s1 + $0x80] sm:$0xff]  }
  0x17   : > { %1783 = vmatprep.subr.bf16.mxu1 %v1954_v7  ;;  %v234_v32 = vor.u32 %v232_v29, %v230_v24  ;;  %v2166_v47 = vrot.slane %v1517_v43, 3  ;;  %v456_v48 = vsel %vm453_vm1, %v454_v45, %v455_v38  ;;  %v1977_v55 = vld [vmem:[%s2369_s1 + $0xd0] sm:$0xff]   ;;  %v1978_v56 = vld [vmem:[%s2369_s1 + $0x88] sm:$0xff]   ;;  %v1981_v1 = vld [vmem:[%s2369_s1 + $0xc0] sm:$0xff]  }
  0x18   : > { %v231_v28 = vsel %vm219_vm0, %v226_v25, %v230_v24  ;;  %v2195_v57 = vld [vmem:[%s2104_s10 + $0xc] sm:$0xf]  ;;  %v713_v2 = vrot.slane %v711_v58, 3  ;;  %v716_v3 = vrot.slane %v714_v59, 4  ;;  %v1988_v11 = vld [vmem:[%s2369_s1 + $0x170] sm:$0xff]   ;;  %v1991_v12 = vld [vmem:[%s2369_s1 + $0x120] sm:$0xff]  }
  0x19   : > { %1764 = vmatpush3.bf16.msra.mxu0 %v1953_v6  ;;  %1773 = vmatprep.mubr.bf16.mxu0 %v231_v28  ;;  %v586_v50 = vsel %vm583_vm2, %v584_v46, %v2166_v47  ;;  %v1542_v60 = vcombine.low %v2114_v13, %v2195_v57  ;;  %v1979_v61 = vld [vmem:[%s2369_s1 + $0xc8] sm:$0xff]   ;;  %v1983_v6 = vld [vmem:[%s2369_s1 + $0x138] sm:$0xff]   ;;  %v1992_v13 = vld [vmem:[%s2369_s1 + $0x160] sm:$0xff]  }
  0x1a   : > { %1784 = vmatpush3.bf16.msra.mxu1 %v1954_v7  ;;  %1765 = vmatprep.subr.bf16.mxu0 %v1955_v8  ;;  %v1986_v7 = vld [vmem:[%s2369_s1 + $0x178] sm:$0xff]   ;;  %v1989_v16 = vld [vmem:[%s2369_s1 + $0x128] sm:$0xff]   ;;  %v1084_v19 = vld [vmem:[%s2104_s10 + $0x10] sm:$0x7] }
  0x1b   : > { %1785 = vmatprep.subr.bf16.mxu1 %v1956_v9  ;;  %v719_v62 = vshrl.u32 %v1542_v60, 16  ;;  %v722_v63 = vshll.u32 %v1542_v60, 16  ;;  %v1990_v17 = vld [vmem:[%s2369_s1 + $0x168] sm:$0xff]   ;;  %v1994_v21 = vld [vmem:[%s2369_s1 + $0x158] sm:$0xff]   ;;  %v1224_v24 = vld [vmem:[%s2104_s10 + $0x4] sm:$0x8] }
  0x1c   : > { %v950_v18 = vld [vmem:[%s2104_s10 + $0xc] sm:$0xf]  ;;  %v949_v23 = vld [vmem:[%s2104_s10 + $0x8] sm:$0xf]  ;;  %v948_v28 = vld [vmem:[%s2104_s10 + $0x4] sm:$0xc] }
  0x1d   : > { %1766 = vmatpush3.bf16.msra.mxu0 %v1955_v8  ;;  %v721_v4 = vrot.slane %v719_v62, 3  ;;  %v724_v5 = vrot.slane %v722_v63, 4  ;;  %v717_v8 = vor.u32 %v716_v3, %v713_v2  ;;  %v1644_v25 = vcombine.low %v1224_v24, %v949_v23  ;;  %v1996_v29 = vld [vmem:[%s2369_s1 + $0x150] sm:$0xff]   ;;  %v1999_v40 = vld [vmem:[%s2369_s1 + $0x100] sm:$0xff]   ;;  %v2008_v58 = vld [vmem:[%s2369_s1 + $0x1a8] sm:$0xff]  }
  0x1e   : > { %1786 = vmatpush3.bf16.msra.mxu1 %v1956_v9  ;;  %1767 = vmatprep.subr.bf16.mxu0 %v1957_v10  ;;  %v2009_v59 = vld [vmem:[%s2369_s1 + $0x1e8] sm:$0xff]   ;;  %v2010_v60 = vld [vmem:[%s2369_s1 + $0x1a0] sm:$0xff]   ;;  %v2012_v62 = vld [vmem:[%s2369_s1 + $0x198] sm:$0xff]  }
  0x1f   : > { %1787 = vmatprep.subr.bf16.mxu1 %v1958_v14  ;;  %v2214_v9 = vor.u32 %v724_v5, %v721_v4  ;;  %v2013_v63 = vld [vmem:[%s2369_s1 + $0x1d8] sm:$0xff]   ;;  %v2016_v2 = vld [vmem:[%s2369_s1 + $0x188] sm:$0xff]   ;;  %v2018_v4 = vld [vmem:[%s2369_s1 + $0x180] sm:$0xff]  }
  0x20   : > { %v2017_v3 = vld [vmem:[%s2369_s1 + $0x1c8] sm:$0xff]   ;;  %v2019_v5 = vld [vmem:[%s2369_s1 + $0x1c0] sm:$0xff]  }
  0x21   : > { %1768 = vmatpush3.bf16.msra.mxu0 %v1957_v10  ;;  %v1987_v10 = vld [vmem:[%s2369_s1 + $0x130] sm:$0xff]  }
  0x22   : > { %1788 = vmatpush3.bf16.msra.mxu1 %v1958_v14  ;;  %1769 = vmatprep.subr.bf16.mxu0 %v1959_v20  ;;  %v726_v14 = vsel %vm709_vm3, %v717_v8, %v2214_v9  ;;  %v2025_v8 = vld [vmem:[%s2369_s1 + $0x228] sm:$0xff]  }
  0x23   : > { %1789 = vmatprep.subr.bf16.mxu1 %v1960_v22 }
  0x25   : > { %1770 = vmatpush3.bf16.msra.mxu0 %v1959_v20  ;;  %v1993_v20 = vld [vmem:[%s2369_s1 + $0x118] sm:$0xff]  }
  0x26   : > { %1790 = vmatpush3.bf16.msra.mxu1 %v1960_v22  ;;  %1771 = vmatprep.subr.bf16.mxu0 %v1961_v26  ;;  %v2248_v22 = vcombine.low %v950_v18, %v1084_v19 }
  0x27   : > { %1791 = vmatprep.subr.bf16.mxu1 %v1962_v27 }
  0x28   : > { %v1118_v39 = vshll.u32 %v2248_v22, 16 }
  0x29   : > { %1772 = vmatpush3.bf16.msra.mxu0 %v1961_v26  ;;  %v1246_v26 = vrot.slane %v2248_v22, 3 }
  0x2a   : > { %1792 = vmatpush3.bf16.msra.mxu1 %v1962_v27  ;;  %1797 = vmatprep.subr.bf16.mxu0 %v1966_v30  ;;  %v1995_v27 = vld [vmem:[%s2369_s1 + $0x110] sm:$0xff]   ;;  %v1120_v46 = vrot.slane %v1118_v39, 3 }
  0x2b   : > { %1817 = vmatprep.subr.bf16.mxu1 %v1967_v31 }
  0x2c   : > { %1774 = vmatmul.mubr.bf16.vlgmr.msra.gmra.mxu0 %v234_v32 }
  0x2d   : > { %1794 = vmatmul.mubr.bf16.vlgmr.msra.gmra.mxu1 %v1466_v33  ;;  %1798 = vmatpush3.bf16.msra.mxu0 %v1966_v30  ;;  %v1245_v30 = vrot.slane %v1644_v25, 3  ;;  %v1997_v33 = vld [vmem:[%s2369_s1 + $0x108] sm:$0xff]  }
  0x2e   : > { %1818 = vmatpush3.bf16.msra.mxu1 %v1967_v31  ;;  %1799 = vmatprep.subr.bf16.mxu0 %v1968_v34  ;;  %v1593_v31 = vcombine.low %v948_v28, %v949_v23 }
  0x2f   : > { %1819 = vmatprep.subr.bf16.mxu1 %v1969_v35  ;;  %1813 = vmatprep.mubr.bf16.mxu0 %v456_v48  ;;  %v2263_v32 = vsel %vm583_vm2, %v1245_v30, %v1246_v26  ;;  %v2005_v48 = vld [vmem:[%s2369_s1 + $0x1f8] sm:$0xff]  }
  0x30   : > { %1833 = vmatprep.mubr.bf16.mxu1 %v586_v50  ;;  %v1107_v36 = vshrl.u32 %v1593_v31, 16  ;;  %v1110_v37 = vshll.u32 %v1593_v31, 16 }
  0x31   : > { %1800 = vmatpush3.bf16.msra.mxu0 %v1968_v34  ;;  %v1998_v34 = vld [vmem:[%s2369_s1 + $0x148] sm:$0xff]  }
  0x32   : > { %1820 = vmatpush3.bf16.msra.mxu1 %v1969_v35  ;;  %1801 = vmatprep.subr.bf16.mxu0 %v1970_v41  ;;  %v951_v35 = vld [vmem:[%s2104_s10 + $0x10] sm:$0x3]  ;;  %v1109_v43 = vrot.slane %v1107_v36, 2  ;;  %s1938_s10 = smul.u32 12, %s2373_s13 }
  0x33   : > { %1821 = vmatprep.subr.bf16.mxu1 %v1971_v44  ;;  %v1594_v42 = vcombine.low %v950_v18, %v951_v35 }
  0x34   : > { %s170_s19 = scalar_lea.vmem %s2371_s3, %s1938_s10 }
  0x35   : > { %1802 = vmatpush3.bf16.msra.mxu0 %v1970_v41  ;;  %v2000_v41 = vld [vmem:[%s2369_s1 + $0x140] sm:$0xff]   ;;  %v981_v50 = vrot.slane %v1594_v42, 2 }
  0x36   : > { %1822 = vmatpush3.bf16.msra.mxu1 %v1971_v44  ;;  %1803 = vmatprep.subr.bf16.mxu0 %v1972_v49  ;;  %v1112_v44 = vrot.slane %v1110_v37, 3 }
  0x37   : > { %1823 = vmatprep.subr.bf16.mxu1 %v1973_v51 }
  0x39   : > { %1804 = vmatpush3.bf16.msra.mxu0 %v1972_v49  ;;  %v980_v49 = vrot.slane %v1593_v31, 2 }
  0x3a   : > { %1824 = vmatpush3.bf16.msra.mxu1 %v1973_v51  ;;  %1805 = vmatprep.subr.bf16.mxu0 %v1974_v52  ;;  %v1568_v51 = vcombine.low %v2195_v57, %v2195_v57 }
  0x3b   : > { %1825 = vmatprep.subr.bf16.mxu1 %v1975_v53 }
  0x3d   : > { %1806 = vmatpush3.bf16.msra.mxu0 %v1974_v52  ;;  %v1113_v52 = vor.u32 %v1112_v44, %v1109_v43 }
  0x3e   : > { %1826 = vmatpush3.bf16.msra.mxu1 %v1975_v53  ;;  %1807 = vmatprep.subr.bf16.mxu0 %v1976_v54 }
  0x3f   : > { %1827 = vmatprep.subr.bf16.mxu1 %v1977_v55 }
  0x41   : > { %1808 = vmatpush3.bf16.msra.mxu0 %v1976_v54  ;;  %v2006_v54 = vld [vmem:[%s2369_s1 + $0x1b0] sm:$0xff]  }
  0x42   : > { %1828 = vmatpush3.bf16.msra.mxu1 %v1977_v55  ;;  %1809 = vmatprep.subr.bf16.mxu0 %v1978_v56  ;;  %v2007_v55 = vld [vmem:[%s2369_s1 + $0x1f0] sm:$0xff]  }
  0x43   : > { %1829 = vmatprep.subr.bf16.mxu1 %v1979_v61 }
  0x45   : > { %1810 = vmatpush3.bf16.msra.mxu0 %v1978_v56  ;;  %v982_v56 = vsel %vm979_vm4, %v980_v49, %v981_v50 }
  0x46   : > { %1830 = vmatpush3.bf16.msra.mxu1 %v1979_v61  ;;  %1811 = vmatprep.subr.bf16.mxu0 %v1980_v0  ;;  %v2011_v61 = vld [vmem:[%s2369_s1 + $0x1e0] sm:$0xff]  }
  0x47   : > { %1831 = vmatprep.subr.bf16.mxu1 %v1981_v1 }
  0x49   : > { %1812 = vmatpush3.bf16.msra.mxu0 %v1980_v0  ;;  %v2014_v0 = vld [vmem:[%s2369_s1 + $0x190] sm:$0xff]  }
  0x4a   : > { %1832 = vmatpush3.bf16.msra.mxu1 %v1981_v1  ;;  %1837 = vmatprep.subr.bf16.mxu0 %v1983_v6  ;;  %v2015_v1 = vld [vmem:[%s2369_s1 + $0x1d0] sm:$0xff]  }
  0x4b   : > { %1857 = vmatprep.subr.bf16.mxu1 %v1986_v7 }
  0x4c   : > { %1814 = vmatmul.mubr.bf16.vlgmr.msra.gmra.mxu0 %v455_v38  ;;  %v1115_v38 = vshrl.u32 %v2248_v22, 16 }
  0x4d   : > { %1838 = vmatpush3.bf16.msra.mxu0 %v1983_v6  ;;  %1834 = vmatmul.mubr.bf16.vlgmr.msra.gmra.mxu1 %v2166_v47  ;;  %v2002_v47 = vld [vmem:[%s2369_s1 + $0x1b8] sm:$0xff]  }
  0x4e   : > { %1858 = vmatpush3.bf16.msra.mxu1 %v1986_v7  ;;  %1839 = vmatprep.subr.bf16.mxu0 %v1987_v10  ;;  %v1117_v45 = vrot.slane %v1115_v38, 2  ;;  %v2023_v6 = vld [vmem:[%s2369_s1 + $0x238] sm:$0xff]   ;;  %v2024_v7 = vld [vmem:[%s2369_s1 + $0x230] sm:$0xff]  }
  0x4f   : > { %1859 = vmatprep.subr.bf16.mxu1 %v1988_v11  ;;  %1853 = vmatprep.mubr.bf16.mxu0 %v726_v14  ;;  %v2029_v14 = vld [vmem:[%s2369_s1 + $0x208] sm:$0xff]  }
  0x50   : > { %1873 = vmatprep.mubr.bf16.mxu1 %v1567_v15  ;;  %v1121_v53 = vor.u32 %v1120_v46, %v1117_v45  ;;  %v2030_v15 = vld [vmem:[%s2369_s1 + $0x200] sm:$0xff]  }
  0x51   : > { %1840 = vmatpush3.bf16.msra.mxu0 %v1987_v10  ;;  %v2027_v10 = vld [vmem:[%s2369_s1 + $0x218] sm:$0xff]  }
  0x52   : > { %1860 = vmatpush3.bf16.msra.mxu1 %v1988_v11  ;;  %1841 = vmatprep.subr.bf16.mxu0 %v1989_v16  ;;  %v1122_v57 = vsel %vm1105_vm5, %v1113_v52, %v1121_v53  ;;  %v2028_v11 = vld [vmem:[%s2369_s1 + $0x210] sm:$0xff]  }
  0x53   : > { %1861 = vmatprep.subr.bf16.mxu1 %v1990_v17 }
  0x55   : > { %1842 = vmatpush3.bf16.msra.mxu0 %v1989_v16 }
  0x56   : > { %1862 = vmatpush3.bf16.msra.mxu1 %v1990_v17  ;;  %1843 = vmatprep.subr.bf16.mxu0 %v1991_v12 }
  0x57   : > { %1863 = vmatprep.subr.bf16.mxu1 %v1992_v13 }
  0x59   : > { %1844 = vmatpush3.bf16.msra.mxu0 %v1991_v12 }
  0x5a   : > { %1864 = vmatpush3.bf16.msra.mxu1 %v1992_v13  ;;  %1845 = vmatprep.subr.bf16.mxu0 %v1993_v20 }
  0x5b   : > { %1865 = vmatprep.subr.bf16.mxu1 %v1994_v21 }
  0x5d   : > { %1846 = vmatpush3.bf16.msra.mxu0 %v1993_v20 }
  0x5e   : > { %1866 = vmatpush3.bf16.msra.mxu1 %v1994_v21  ;;  %1847 = vmatprep.subr.bf16.mxu0 %v1995_v27 }
  0x5f   : > { %1867 = vmatprep.subr.bf16.mxu1 %v1996_v29 }
  0x61   : > { %1848 = vmatpush3.bf16.msra.mxu0 %v1995_v27 }
  0x62   : > { %1868 = vmatpush3.bf16.msra.mxu1 %v1996_v29  ;;  %1849 = vmatprep.subr.bf16.mxu0 %v1997_v33 }
  0x63   : > { %1869 = vmatprep.subr.bf16.mxu1 %v1998_v34 }
  0x65   : > { %1850 = vmatpush3.bf16.msra.mxu0 %v1997_v33 }
  0x66   : > { %1870 = vmatpush3.bf16.msra.mxu1 %v1998_v34  ;;  %1851 = vmatprep.subr.bf16.mxu0 %v1999_v40 }
  0x67   : > { %1871 = vmatprep.subr.bf16.mxu1 %v2000_v41 }
  0x69   : > { %1852 = vmatpush3.bf16.msra.mxu0 %v1999_v40 }
  0x6a   : > { %1872 = vmatpush3.bf16.msra.mxu1 %v2000_v41  ;;  %1877 = vmatprep.subr.bf16.mxu0 %v2002_v47 }
  0x6b   : > { %1897 = vmatprep.subr.bf16.mxu1 %v2005_v48 }
  0x6c   : > { %1854 = vmatmul.mubr.bf16.vlgmr.msra.gmra.mxu0 %v2214_v9  ;;  %v2026_v9 = vld [vmem:[%s2369_s1 + $0x220] sm:$0xff]  }
  0x6d   : > { %1878 = vmatpush3.bf16.msra.mxu0 %v2002_v47  ;;  %1874 = vmatmul.mubr.bf16.vlgmr.msra.gmra.mxu1 %v1568_v51 }
  0x6e   : > { %1898 = vmatpush3.bf16.msra.mxu1 %v2005_v48  ;;  %1879 = vmatprep.subr.bf16.mxu0 %v2006_v54 }
  0x6f   : > { %1899 = vmatprep.subr.bf16.mxu1 %v2007_v55  ;;  %1893 = vmatprep.mubr.bf16.mxu0 %v982_v56 }
  0x70   : > { %1913 = vmatprep.mubr.bf16.mxu1 %v1122_v57 }
  0x71   : > { %1880 = vmatpush3.bf16.msra.mxu0 %v2006_v54 }
  0x72   : > { %1900 = vmatpush3.bf16.msra.mxu1 %v2007_v55  ;;  %1881 = vmatprep.subr.bf16.mxu0 %v2008_v58 }
  0x73   : > { %1901 = vmatprep.subr.bf16.mxu1 %v2009_v59 }
  0x75   : > { %1882 = vmatpush3.bf16.msra.mxu0 %v2008_v58 }
  0x76   : > { %1902 = vmatpush3.bf16.msra.mxu1 %v2009_v59  ;;  %1883 = vmatprep.subr.bf16.mxu0 %v2010_v60 }
  0x77   : > { %1903 = vmatprep.subr.bf16.mxu1 %v2011_v61 }
  0x79   : > { %1884 = vmatpush3.bf16.msra.mxu0 %v2010_v60 }
  0x7a   : > { %1904 = vmatpush3.bf16.msra.mxu1 %v2011_v61  ;;  %1885 = vmatprep.subr.bf16.mxu0 %v2012_v62 }
  0x7b   : > { %1905 = vmatprep.subr.bf16.mxu1 %v2013_v63 }
  0x7d   : > { %1886 = vmatpush3.bf16.msra.mxu0 %v2012_v62 }
  0x7e   : > { %1906 = vmatpush3.bf16.msra.mxu1 %v2013_v63  ;;  %1887 = vmatprep.subr.bf16.mxu0 %v2014_v0 }
  0x7f   : > { %1907 = vmatprep.subr.bf16.mxu1 %v2015_v1 }
  0x81   : > { %1888 = vmatpush3.bf16.msra.mxu0 %v2014_v0  ;;  %v1653_v0 = vld [vmem:[%s2370_s2] ss:$0 sm:$0xff] }
  0x82   : > { %1908 = vmatpush3.bf16.msra.mxu1 %v2015_v1  ;;  %1889 = vmatprep.subr.bf16.mxu0 %v2016_v2 }
  0x83   : > { %1909 = vmatprep.subr.bf16.mxu1 %v2017_v3 }
  0x85   : > { %1890 = vmatpush3.bf16.msra.mxu0 %v2016_v2 }
  0x86   : > { %1910 = vmatpush3.bf16.msra.mxu1 %v2017_v3  ;;  %1891 = vmatprep.subr.bf16.mxu0 %v2018_v4 }
  0x87   : > { %1911 = vmatprep.subr.bf16.mxu1 %v2019_v5 }
  0x89   : > { %1892 = vmatpush3.bf16.msra.mxu0 %v2018_v4 }
  0x8a   : > { %1912 = vmatpush3.bf16.msra.mxu1 %v2019_v5  ;;  %1917 = vmatprep.subr.bf16.mxu0 %v2023_v6 }
  0x8c   : > { %1894 = vmatmul.mubr.bf16.vlgmr.msra.gmra.mxu0 %v981_v50 }
  0x8d   : > { %1918 = vmatpush3.bf16.msra.mxu0 %v2023_v6  ;;  %1914 = vmatmul.mubr.bf16.vlgmr.msra.gmra.mxu1 %v1121_v53 }
  0x8e   : > { %1919 = vmatprep.subr.bf16.mxu0 %v2024_v7  ;;  %1933 = vmatprep.mubr.bf16.mxu0 %v2263_v32 }
  0x91   : > { %1920 = vmatpush3.bf16.msra.mxu0 %v2024_v7 }
  0x92   : > { %1921 = vmatprep.subr.bf16.mxu0 %v2025_v8 }
  0x95   : > { %1922 = vmatpush3.bf16.msra.mxu0 %v2025_v8 }
  0x96   : > { %1923 = vmatprep.subr.bf16.mxu0 %v2026_v9 }
  0x99   : > { %1924 = vmatpush3.bf16.msra.mxu0 %v2026_v9 }
  0x9a   : > { %1925 = vmatprep.subr.bf16.mxu0 %v2027_v10 }
  0x9d   : > { %1926 = vmatpush3.bf16.msra.mxu0 %v2027_v10 }
  0x9e   : > { %1927 = vmatprep.subr.bf16.mxu0 %v2028_v11 }
  0xa1   : > { %1928 = vmatpush3.bf16.msra.mxu0 %v2028_v11 }
  0xa2   : > { %1929 = vmatprep.subr.bf16.mxu0 %v2029_v14 }
  0xa5   : > { %1930 = vmatpush3.bf16.msra.mxu0 %v2029_v14 }
  0xa6   : > { %1931 = vmatprep.subr.bf16.mxu0 %v2030_v15 }
  0xa9   : > { %1932 = vmatpush3.bf16.msra.mxu0 %v2030_v15 }
  0xac   : > { %1934 = vmatmul.mubr.bf16.vlgmr.msra.gmra.mxu0 %v1246_v26 }
  0xec   : > { %v1775_v16 = vpop.f32.mrf.mxu0 }
  0xed   : > { %v1795_v17 = vpop.f32.mrf.mxu1 }
  0xee   : > { %v427_v12 = vadd.f32 %v1795_v17, %v1775_v16  ;;  %v319_v13 = vpop.f32.mrf.mxu0 }
  0xef   : > { %v418_v18 = vpop.f32.mrf.mxu1 }
  0xf0   : > { %v419_v19 = vadd.f32 %v418_v18, %v319_v13  ;;  %v1776_v20 = vpop.f32.mrf.mxu0 }
  0xf1   : > { %v1796_v21 = vpop.f32.mrf.mxu1 }
  0xf2   : > { %v322_v23 = vpop.f32.mrf.mxu0 }
  0xf3   : > { %v421_v24 = vpop.f32.mrf.mxu1 }
  0xf4   : > { %v422_v25 = vadd.f32 %v421_v24, %v322_v23 }
 0x10c   : > { %v1815_v27 = vpop.f32.mrf.mxu0 }
 0x10d   : > { %v557_v28 = vadd.f32 %v1815_v27, %v427_v12  ;;  %v1835_v29 = vpop.f32.mrf.mxu1 }
 0x10e   : > { %v541_v30 = vpop.f32.mrf.mxu0 }
 0x10f   : > { %v555_v31 = vadd.f32 %v541_v30, %v419_v19  ;;  %v687_v32 = vadd.f32 %v1835_v29, %v557_v28  ;;  %v671_v33 = vpop.f32.mrf.mxu1 }
 0x110   : > { %v1816_v22 = vpop.f32.mrf.mxu0 }
 0x111   : > { %v685_v26 = vadd.f32 %v671_v33, %v555_v31  ;;  %v1836_v34 = vpop.f32.mrf.mxu1 }
 0x112   : > { %v544_v35 = vpop.f32.mrf.mxu0 }
 0x113   : > { %v674_v36 = vpop.f32.mrf.mxu1  ;;  %v556_v51 = vadd.f32 %v544_v35, %v422_v25 }
 0x115   : > { %v686_v54 = vadd.f32 %v674_v36, %v556_v51 }
 0x12c   : > { %v1855_v37 = vpop.f32.mrf.mxu0 }
 0x12d   : > { %v1875_v38 = vpop.f32.mrf.mxu1  ;;  %v827_v52 = vadd.f32 %v1855_v37, %v687_v32 }
 0x12e   : > { %v811_v39 = vpop.f32.mrf.mxu0 }
 0x12f   : > { %v931_v40 = vpop.f32.mrf.mxu1  ;;  %v825_v53 = vadd.f32 %v811_v39, %v685_v26  ;;  %v947_v55 = vadd.f32 %v1875_v38, %v827_v52 }
 0x130   : > { %v1856_v41 = vpop.f32.mrf.mxu0 }
 0x131   : > { %v1876_v42 = vpop.f32.mrf.mxu1  ;;  %v945_v56 = vadd.f32 %v931_v40, %v825_v53 }
 0x132   : > { %v814_v43 = vpop.f32.mrf.mxu0 }
 0x133   : > { %v934_v44 = vpop.f32.mrf.mxu1  ;;  %v826_v57 = vadd.f32 %v814_v43, %v686_v54 }
 0x135   : > { %v946_v61 = vadd.f32 %v934_v44, %v826_v57 }
 0x14c   : > { %v1895_v45 = vpop.f32.mrf.mxu0 }
 0x14d   : > { %v1915_v46 = vpop.f32.mrf.mxu1  ;;  %v1083_v58 = vadd.f32 %v1895_v45, %v947_v55 }
 0x14e   : > { %v1067_v47 = vpop.f32.mrf.mxu0 }
 0x14f   : > { %v1207_v48 = vpop.f32.mrf.mxu1  ;;  %v1081_v59 = vadd.f32 %v1067_v47, %v945_v56  ;;  %v1223_v62 = vadd.f32 %v1915_v46, %v1083_v58 }
 0x150   : > { %v1896_v49 = vpop.f32.mrf.mxu0 }
 0x151   : > { %v1916_v50 = vpop.f32.mrf.mxu1  ;;  %v1221_v1 = vadd.f32 %v1207_v48, %v1081_v59 }
 0x152   : > { %v1070_v60 = vpop.f32.mrf.mxu0 }
 0x153   : > { %v1082_v2 = vadd.f32 %v1070_v60, %v946_v61  ;;  %v1210_v4 = vpop.f32.mrf.mxu1 }
 0x155   : > { %v1222_v9 = vadd.f32 %v1210_v4, %v1082_v2 }
 0x16c   : > { %v1935_v63 = vpop.f32.mrf.mxu0 }
 0x16d   : > { %v1348_v3 = vadd.f32 %v1935_v63, %v1223_v62 }
 0x16e   : > { %v1332_v5 = vpop.f32.mrf.mxu0 }
 0x16f   : > { %v1358_v6 = vadd.f32 %v1653_v0, %v1348_v3  ;;  %v1346_v7 = vadd.f32 %v1332_v5, %v1221_v1 }
 0x170   : > { %v1936_v8 = vpop.f32.mrf.mxu0 }
 0x171   : > { %v1361_v10 = vmax.f32 %v1358_v6, 0.0  ;;  %v1356_v15 = vadd.f32 %v1653_v0, %v1346_v7 }
 0x172   : > { %v1335_v11 = vpop.f32.mrf.mxu0 }
 0x173   : > { %v1661_v14 = vpack.c.bf16 %v1361_v10, %v1361_v10  ;;  %v1347_v16 = vadd.f32 %v1335_v11, %v1222_v9  ;;  %v1359_v12 = vmax.f32 %v1356_v15, 0.0 }
 0x175   : > { %1377 = vst [vmem:[%s170_s19 + $0x8] sm:$0xf] %v1661_v14  ;;  %v1357_v17 = vadd.f32 %v1653_v0, %v1347_v16 }
 0x177   : > { %v1360_v13 = vmax.f32 %v1357_v17, 0.0 }
 0x179   : > { %v1665_v18 = vpack.c.bf16 %v1360_v13, %v1359_v12 }
 0x17b   : > { %1666 = vst [vmem:[%s170_s19] sm:$0xff] %v1665_v18  }
 0x17c PF: > { %s13_s12 = sadd.s32 1, %s2038_s12  }
 0x17d   : > { %p10_p4 = scmp.ge.s32.totalorder %s13_s12, 4  }
 0x17f   :  { %12 = sbr.rel (!%p10_p4) target bundleno = 1 (0x1), region = 70 }

// kernel: unet_forward.9
= control target key start
LH: loop header
LB: loop body
LE: loop exit
PB: predicated region body
PF: predicated region fallthrough
CT: control target
= control target key end

     0   :  { %s2884_s12 = smov 0   ;;  %s3530_s0 = inlined_call_operand.vmem [shape: bf16[2,110,128], index: 0, kind: input, shape index: {}]   ;;  %s3531_s1 = inlined_call_operand.vmem [shape: bf16[9,128,128], index: 1, kind: input, shape index: {}]   ;;  %s3532_s2 = inlined_call_operand.vmem [shape: f32[1,128], index: 2, kind: input, shape index: {}]   ;;  %s3533_s3 = inlined_call_operand.vmem [shape: bf16[2,80,128], index: 3, kind: output, shape index: {}]  }
   0x1 LB: > { %s2008_s13 = sadd.s32 4294967295, %s2860_s12   ;;  %p2012_p0 = scmp.ge.s32.totalorder %s2860_s12, 1  ;;  %s2860_s12 = sphi %s2884_s12, %s13_s12  }
   0x2   : > { %p137_p1 = scmp.lt.s32.totalorder %s2860_s12, 3 }
   0x4   : > { %p138_p2 = pnand %p2012_p0, %p137_p1 }
   0x5   : > { %p161_p3 = scmp.lt.s32.totalorder (!%p138_p2), %s2008_s13, 1 }
   0x6   : > { %141 = sbr.rel (%p138_p2) target bundleno = 426 (0x1aa), region = 32 }
   0xb   : > { %v2759_v0 = vld [vmem:[%s3531_s1 + $0x78] sm:$0xff]   ;;  %v2862_v1 = vmov 0.0   ;;  %v2761_v3 = vld [vmem:[%s3531_s1 + $0x70] sm:$0xff]   ;;  %vm2863_vm0 = vmmov 0   ;;  %s3535_s13 = smov (!%p161_p3, %s2008_s13), 1  ;;  %v2763_v5 = vld [vmem:[%s3531_s1 + $0x68] sm:$0xff]  }
   0xc   : > { %2407 = vmatprep.subr.bf16.mxu0 %v2862_v1  ;;  %2443 = vmatprep.subr.bf16.mxu1 %v2862_v1  ;;  %v2760_v2 = vld [vmem:[%s3531_s1 + $0x38] sm:$0xff]   ;;  %v2762_v4 = vld [vmem:[%s3531_s1 + $0x30] sm:$0xff]   ;;  %v2764_v6 = vld [vmem:[%s3531_s1 + $0x28] sm:$0xff]   ;;  %s2747_s26 = smul.u32 56, %s3535_s13  ;;  %vm244_vm1 = vsmask.f32 7424 }
   0xd   : > { %2408 = vmatpush3.bf16.msra.mxu0 %v2759_v0  ;;  %2423 = vmatprep.mubr.msk.bf16.mxu0 %vm2863_vm0, %v2862_v1  ;;  %v2765_v7 = vld [vmem:[%s3531_s1 + $0x60] sm:$0xff]   ;;  %v2767_v9 = vld [vmem:[%s3531_s1 + $0x58] sm:$0xff]   ;;  %v2769_v13 = vld [vmem:[%s3531_s1 + $0x50] sm:$0xff]   ;;  %vm562_vm2 = vcmask 1046528   ;;  %vm934_vm3 = vsmask.f32 6400 }
   0xe   : > { %2444 = vmatpush3.bf16.msra.mxu1 %v2760_v2  ;;  %2409 = vmatprep.subr.bf16.mxu0 %v2862_v1  ;;  %v2766_v8 = vld [vmem:[%s3531_s1 + $0x20] sm:$0xff]   ;;  %s2934_s6 = scalar_lea.vmem %s3530_s0, %s2747_s26  ;;  %v2768_v10 = vld [vmem:[%s3531_s1 + $0x18] sm:$0xff]   ;;  %v2770_v16 = vld [vmem:[%s3531_s1 + $0x10] sm:$0xff]   ;;  %vm1145_vm4 = vcmask 1045504   ;;  %vm1517_vm5 = vsmask.f32 5376 }
   0xf   : > { %2445 = vmatprep.subr.bf16.mxu1 %v2862_v1  ;;  %2459 = vmatprep.mubr.msk.bf16.mxu1 %vm2863_vm0, %v2862_v1  ;;  %v172_v11 = vld [vmem:[%s2934_s6] sm:$0xf]  ;;  %v2946_v12 = vld [vmem:[%s2934_s6 + $0x4] sm:$0xf]  ;;  %v2953_v15 = vld [vmem:[%s2934_s6 + $0x8] sm:$0xff]   ;;  %vm1728_vm6 = vcmask 1044480  }
  0x10   : > { %v2031_v14 = vcombine.low %v172_v11, %v2946_v12  ;;  %v2771_v18 = vld [vmem:[%s3531_s1 + $0x48] sm:$0xff]   ;;  %v253_v21 = vshll.u32 %v2953_v15, 16  ;;  %v2773_v23 = vld [vmem:[%s3531_s1 + $0x40] sm:$0xff]   ;;  %v2976_v27 = vld [vmem:[%s2934_s6 + $0x10] sm:$0xff]   ;;  %v257_v30 = vshrl.u32 %v2953_v15, 16  ;;  %s2748_s18 = smul.u32 40, %s3535_s13 }
  0x11   : > { %2410 = vmatpush3.bf16.msra.mxu0 %v2761_v3  ;;  %v2772_v22 = vld [vmem:[%s3531_s1 + $0x8] sm:$0xff]   ;;  %v2774_v24 = vld [vmem:[%s3531_s1] sm:$0xff]   ;;  %v2777_v28 = vld [vmem:[%s3531_s1 + $0xb8] sm:$0xff]   ;;  %v261_v31 = vshll.u32 %v2976_v27, 16  ;;  %v265_v41 = vshrl.u32 %v2976_v27, 16 }
  0x12   : > { %2446 = vmatpush3.bf16.msra.mxu1 %v2762_v4  ;;  %2411 = vmatprep.subr.bf16.mxu0 %v2862_v1  ;;  %v248_v17 = vshll.u32 %v2031_v14, 16  ;;  %v246_v19 = vshrl.u32 %v2031_v14, 16  ;;  %v255_v26 = vrot.slane %v253_v21, 1  ;;  %v2780_v32 = vld [vmem:[%s3531_s1 + $0xf8] sm:$0xff]   ;;  %v2778_v34 = vld [vmem:[%s3531_s1 + $0xb0] sm:$0xff]   ;;  %v2781_v40 = vld [vmem:[%s3531_s1 + $0xa8] sm:$0xff]   ;;  %s3507_s20 = scalar_lea.vmem %s3533_s3, %s2748_s18 }
  0x13   : > { %2447 = vmatprep.subr.bf16.mxu1 %v2862_v1  ;;  %v2992_v33 = vld [vmem:[%s2934_s6 + $0x18] sm:$0xff]   ;;  %v263_v36 = vrot.slane %v261_v31, 1  ;;  %v2782_v37 = vld [vmem:[%s3531_s1 + $0xf0] sm:$0xff]   ;;  %v2785_v42 = vld [vmem:[%s3531_s1 + $0xe8] sm:$0xff]   ;;  %v566_v21 = vrot.slane %v2976_v27, 1 }
  0x14   : > { %v250_v20 = vrot.slane %v248_v17, 1  ;;  %v259_v35 = vor.u32 %v257_v30, %v255_v26  ;;  %v269_v38 = vshll.u32 %v2992_v33, 16  ;;  %v2784_v44 = vld [vmem:[%s3531_s1 + $0xa0] sm:$0xff]   ;;  %v2786_v48 = vld [vmem:[%s3531_s1 + $0x98] sm:$0xff]   ;;  %v273_v50 = vshrl.u32 %v2992_v33, 16  ;;  %v2790_v56 = vld [vmem:[%s3531_s1 + $0x90] sm:$0xff]  }
  0x15   : > { %2412 = vmatpush3.bf16.msra.mxu0 %v2763_v5  ;;  %v3021_v45 = vld [vmem:[%s2934_s6 + $0x20] sm:$0xff]   ;;  %v267_v46 = vor.u32 %v265_v41, %v263_v36  ;;  %v2789_v52 = vld [vmem:[%s3531_s1 + $0xd8] sm:$0xff]   ;;  %v3044_v53 = vld [vmem:[%s2934_s6 + $0x28] ss:$0 sps:$4 sm:$0x11]  }
  0x16   : > { %2448 = vmatpush3.bf16.msra.mxu1 %v2764_v6  ;;  %2413 = vmatprep.subr.bf16.mxu0 %v2862_v1  ;;  %v251_v25 = vor.u32 %v250_v20, %v246_v19  ;;  %v264_v39 = vsel %vm244_vm1, %v259_v35, %v263_v36  ;;  %v271_v43 = vrot.slane %v269_v38, 1  ;;  %v2787_v47 = vld [vmem:[%s3531_s1 + $0xe0] sm:$0xff]   ;;  %v277_v51 = vshll.u32 %v3021_v45, 16  ;;  %v2791_v57 = vld [vmem:[%s3531_s1 + $0xd0] sm:$0xff]   ;;  %v2792_v61 = vld [vmem:[%s3531_s1 + $0x88] sm:$0xff]  }
  0x17   : > { %2449 = vmatprep.subr.bf16.mxu1 %v2862_v1  ;;  %v281_v59 = vshrl.u32 %v3021_v45, 16  ;;  %v285_v60 = vshll.u32 %v3044_v53, 16  ;;  %v2794_v62 = vld [vmem:[%s3531_s1 + $0xc8] sm:$0xff]   ;;  %v2795_v63 = vld [vmem:[%s3531_s1 + $0x80] sm:$0xff]   ;;  %v2800_v17 = vld [vmem:[%s3531_s1 + $0x138] sm:$0xff]   ;;  %v570_v38 = vrot.slane %v3021_v45, 1 }
  0x18   : > { %v256_v29 = vsel %vm244_vm1, %v251_v25, %v255_v26  ;;  %v272_v49 = vsel %vm244_vm1, %v267_v46, %v271_v43  ;;  %v275_v54 = vor.u32 %v273_v50, %v271_v43  ;;  %v279_v55 = vrot.slane %v277_v51, 1  ;;  %v2796_v3 = vld [vmem:[%s3531_s1 + $0xc0] sm:$0xff]   ;;  %v3086_v6 = vld [vmem:[%s2934_s6 + $0x8] sm:$0xf]  ;;  %v3113_v19 = vld [vmem:[%s2934_s6 + $0x14] sm:$0xff]  }
  0x19   : > { %2414 = vmatpush3.bf16.msra.mxu0 %v2765_v7  ;;  %v287_v2 = vrot.slane %v285_v60, 1  ;;  %v541_v4 = vld [vmem:[%s2934_s6] sm:$0xe]  ;;  %v710_v5 = vld [vmem:[%s2934_s6 + $0x4] sm:$0xe]  ;;  %v2801_v20 = vld [vmem:[%s3531_s1 + $0x130] sm:$0xff]  }
  0x1a   : > { %2450 = vmatpush3.bf16.msra.mxu1 %v2766_v8  ;;  %2415 = vmatprep.subr.bf16.mxu0 %v2862_v1  ;;  %v280_v58 = vsel %vm244_vm1, %v275_v54, %v279_v55  ;;  %v283_v0 = vor.u32 %v281_v59, %v279_v55  ;;  %v2069_v8 = vcombine.low %v541_v4, %v2946_v12  ;;  %v564_v12 = vrot.slane %v2953_v15, 1  ;;  %v2804_v25 = vld [vmem:[%s3531_s1 + $0x128] sm:$0xff]   ;;  %v2807_v30 = vld [vmem:[%s3531_s1 + $0x120] sm:$0xff]   ;;  %v2814_v41 = vld [vmem:[%s3531_s1 + $0x150] sm:$0xff]  }
  0x1b   : > { %2451 = vmatprep.subr.bf16.mxu1 %v2862_v1  ;;  %v3166_v36 = vld [vmem:[%s2934_s6 + $0x24] sm:$0xff]   ;;  %v2816_v43 = vld [vmem:[%s2934_s6 + $0x2c] ss:$0 sps:$4 sm:$0x11]  }
  0x1c   : > { %v288_v7 = vsel %vm244_vm1, %v283_v0, %v287_v2  ;;  %v563_v11 = vrot.slane %v2069_v8, 1  ;;  %v2817_v46 = vld [vmem:[%s3531_s1 + $0x148] sm:$0xff]   ;;  %v2819_v54 = vld [vmem:[%s3531_s1 + $0x140] sm:$0xff]   ;;  %v953_v2 = vshrl.u32 %v3113_v19, 16 }
  0x1d   : > { %2416 = vmatpush3.bf16.msra.mxu0 %v2767_v9  ;;  %v3092_v9 = vcombine.low %v710_v5, %v3086_v6  ;;  %v1124_v55 = vld [vmem:[%s2934_s6 + $0x4] sm:$0xc] }
  0x1e   : > { %2452 = vmatpush3.bf16.msra.mxu1 %v2768_v10  ;;  %2417 = vmatprep.subr.bf16.mxu0 %v2862_v1  ;;  %v3095_v10 = vld [vmem:[%s2934_s6 + $0xc] sm:$0xff]   ;;  %v955_v8 = vrot.slane %v953_v2, 1 }
  0x1f   : > { %2453 = vmatprep.subr.bf16.mxu1 %v2862_v1  ;;  %v944_v50 = vshrl.u32 %v3095_v10, 16  ;;  %v947_v51 = vshll.u32 %v3095_v10, 16  ;;  %v1147_v5 = vrot.slane %v3095_v10, 2 }
  0x21   : > { %2418 = vmatpush3.bf16.msra.mxu0 %v2769_v13  ;;  %v766_v13 = vrot.slane %v3092_v9, 1  ;;  %v946_v59 = vrot.slane %v944_v50, 1  ;;  %v949_v60 = vrot.slane %v947_v51, 2  ;;  %v3311_v51 = vld [vmem:[%s2934_s6 + $0x10] sm:$0xff]  }
  0x22   : > { %2454 = vmatpush3.bf16.msra.mxu1 %v2770_v16  ;;  %2419 = vmatprep.subr.bf16.mxu0 %v2862_v1  ;;  %v565_v16 = vsel %vm562_vm2, %v563_v11, %v564_v12 }
  0x23   : > { %2455 = vmatprep.subr.bf16.mxu1 %v2862_v1  ;;  %v950_v0 = vor.u32 %v949_v60, %v946_v59  ;;  %v1530_v59 = vshll.u32 %v3311_v51, 16  ;;  %v2837_v60 = vld [vmem:[%s3531_s1 + $0x1c0] sm:$0xff]  }
  0x25   : > { %2420 = vmatpush3.bf16.msra.mxu0 %v2771_v18 }
  0x26   : > { %2456 = vmatpush3.bf16.msra.mxu1 %v2772_v22  ;;  %2421 = vmatprep.subr.bf16.mxu0 %v2862_v1  ;;  %v769_v22 = vrot.slane %v3113_v19, 1 }
  0x27   : > { %2457 = vmatprep.subr.bf16.mxu1 %v2862_v1 }
  0x29   : > { %2422 = vmatpush3.bf16.msra.mxu0 %v2773_v23  ;;  %v2805_v23 = vld [vmem:[%s3531_s1 + $0x170] sm:$0xff]  }
  0x2a   : > { %2458 = vmatpush3.bf16.msra.mxu1 %v2774_v24  ;;  %2479 = vmatprep.subr.bf16.mxu0 %v2862_v1  ;;  %v567_v24 = vsel %vm562_vm2, %v564_v12, %v566_v21  ;;  %v2823_v12 = vld [vmem:[%s3531_s1 + $0x1f8] sm:$0xff]  }
  0x2b   : > { %2515 = vmatprep.subr.bf16.mxu1 %v2862_v1 }
  0x2c   : > { %2424 = vmatmul.mubr.bf16.vlgmr.msra.gmra.mxu0 %v256_v29  ;;  %v568_v29 = vrot.slane %v2992_v33, 1 }
  0x2d   : > { %2460 = vmatmul.mubr.bf16.vlgmr.msra.gmra.mxu1 %v2031_v14  ;;  %2480 = vmatpush3.bf16.msra.mxu0 %v2777_v28  ;;  %v767_v14 = vrot.slane %v3095_v10, 1  ;;  %v2808_v28 = vld [vmem:[%s3531_s1 + $0x168] sm:$0xff]   ;;  %v2822_v10 = vld [vmem:[%s3531_s1 + $0x1b0] sm:$0xff]  }
  0x2e   : > { %2481 = vmatprep.subr.bf16.mxu0 %v2862_v1  ;;  %2427 = vmatprep.mubr.msk.bf16.mxu0 %vm2863_vm0, %v2862_v1 }
  0x2f   : > { %2463 = vmatprep.mubr.msk.bf16.mxu1 %vm2863_vm0, %v2862_v1  ;;  %2516 = vmatpush3.bf16.msra.mxu1 %v2780_v32  ;;  %v768_v18 = vsel %vm562_vm2, %v766_v13, %v767_v14  ;;  %v770_v26 = vsel %vm562_vm2, %v767_v14, %v769_v22  ;;  %v2810_v32 = vld [vmem:[%s3531_s1 + $0x160] sm:$0xff]  }
  0x30   : > { %2517 = vmatprep.subr.bf16.mxu1 %v2862_v1 }
  0x31   : > { %2482 = vmatpush3.bf16.msra.mxu0 %v2778_v34  ;;  %v2809_v34 = vld [vmem:[%s3531_s1 + $0x118] sm:$0xff]  }
  0x32   : > { %2483 = vmatprep.subr.bf16.mxu0 %v2862_v1 }
  0x33   : > { %2518 = vmatpush3.bf16.msra.mxu1 %v2782_v37  ;;  %v2812_v37 = vld [vmem:[%s3531_s1 + $0x158] sm:$0xff]  }
  0x34   : > { %2428 = vmatmul.mubr.bf16.gmra.mxu0 %v264_v39  ;;  %2519 = vmatprep.subr.bf16.mxu1 %v2862_v1  ;;  %v2813_v39 = vld [vmem:[%s3531_s1 + $0x110] sm:$0xff]  }
  0x35   : > { %2464 = vmatmul.mubr.bf16.gmra.mxu1 %v2953_v15  ;;  %2484 = vmatpush3.bf16.msra.mxu0 %v2781_v40  ;;  %v2803_v15 = vld [vmem:[%s3531_s1 + $0x178] sm:$0xff]   ;;  %v773_v40 = vrot.slane %v3166_v36, 1 }
  0x36   : > { %2431 = vmatprep.mubr.msk.bf16.mxu0 %vm2863_vm0, %v2862_v1  ;;  %2467 = vmatprep.mubr.msk.bf16.mxu1 %vm2863_vm0, %v2862_v1 }
  0x37   : > { %2485 = vmatprep.subr.bf16.mxu0 %v2862_v1  ;;  %2520 = vmatpush3.bf16.msra.mxu1 %v2785_v42  ;;  %v571_v42 = vsel %vm562_vm2, %v568_v29, %v570_v38 }
  0x38   : > { %2521 = vmatprep.subr.bf16.mxu1 %v2862_v1 }
  0x39   : > { %2486 = vmatpush3.bf16.msra.mxu0 %v2784_v44 }
  0x3a   : > { %2487 = vmatprep.subr.bf16.mxu0 %v2862_v1 }
  0x3b   : > { %2522 = vmatpush3.bf16.msra.mxu1 %v2787_v47  ;;  %v572_v47 = vrot.slane %v3044_v53, 1  ;;  %v2818_v53 = vld [vmem:[%s3531_s1 + $0x100] sm:$0xff]  }
  0x3c   : > { %2432 = vmatmul.mubr.bf16.gmra.mxu0 %v272_v49  ;;  %2523 = vmatprep.subr.bf16.mxu1 %v2862_v1  ;;  %v939_v49 = vshll.u32 %v3092_v9, 16 }
  0x3d   : > { %2468 = vmatmul.mubr.bf16.gmra.mxu1 %v2976_v27  ;;  %2488 = vmatpush3.bf16.msra.mxu0 %v2786_v48  ;;  %v3139_v27 = vld [vmem:[%s2934_s6 + $0x1c] sm:$0xff]   ;;  %v936_v48 = vshrl.u32 %v3092_v9, 16 }
  0x3e   : > { %2435 = vmatprep.mubr.msk.bf16.mxu0 %vm2863_vm0, %v2862_v1  ;;  %2471 = vmatprep.mubr.msk.bf16.mxu1 %vm2863_vm0, %v2862_v1  ;;  %v771_v31 = vrot.slane %v3139_v27, 1  ;;  %v962_v14 = vshrl.u32 %v3139_v27, 16 }
  0x3f   : > { %2489 = vmatprep.subr.bf16.mxu0 %v2862_v1  ;;  %2524 = vmatpush3.bf16.msra.mxu1 %v2789_v52  ;;  %v775_v52 = vrot.slane %v2816_v43, 1  ;;  %v2832_v43 = vld [vmem:[%s3531_s1 + $0x1d0] sm:$0xff]  }
  0x40   : > { %2525 = vmatprep.subr.bf16.mxu1 %v2862_v1  ;;  %v772_v35 = vsel %vm562_vm2, %v769_v22, %v771_v31  ;;  %v774_v44 = vsel %vm562_vm2, %v771_v31, %v773_v40 }
  0x41   : > { %2490 = vmatpush3.bf16.msra.mxu0 %v2790_v56  ;;  %v573_v56 = vsel %vm562_vm2, %v570_v38, %v572_v47 }
  0x42   : > { %2491 = vmatprep.subr.bf16.mxu0 %v2862_v1 }
  0x43   : > { %2526 = vmatpush3.bf16.msra.mxu1 %v2791_v57  ;;  %v938_v57 = vrot.slane %v936_v48, 1 }
  0x44   : > { %2436 = vmatmul.mubr.bf16.gmra.mxu0 %v280_v58  ;;  %2527 = vmatprep.subr.bf16.mxu1 %v2862_v1  ;;  %v941_v58 = vrot.slane %v939_v49, 2 }
  0x45   : > { %2472 = vmatmul.mubr.bf16.gmra.mxu1 %v2992_v33  ;;  %2439 = vmatprep.mubr.msk.bf16.mxu0 %vm2863_vm0, %v2862_v1  ;;  %v569_v33 = vsel %vm562_vm2, %v566_v21, %v568_v29  ;;  %v964_v21 = vrot.slane %v962_v14, 1  ;;  %v1151_v29 = vrot.slane %v3139_v27, 2 }
  0x46   : > { %2475 = vmatprep.mubr.msk.bf16.mxu1 %vm2863_vm0, %v2862_v1  ;;  %2492 = vmatpush3.bf16.msra.mxu0 %v2792_v61  ;;  %v776_v61 = vsel %vm562_vm2, %v773_v40, %v775_v52  ;;  %v2835_v52 = vld [vmem:[%s3531_s1 + $0x1c8] sm:$0xff]  }
  0x47   : > { %2528 = vmatpush3.bf16.msra.mxu1 %v2794_v62  ;;  %2493 = vmatprep.subr.bf16.mxu0 %v2862_v1  ;;  %v2149_v62 = vcombine.low %v1124_v55, %v3086_v6  ;;  %v2836_v55 = vld [vmem:[%s3531_s1 + $0x180] sm:$0xff]  }
  0x48   : > { %2529 = vmatprep.subr.bf16.mxu1 %v2862_v1 }
  0x49   : > { %v1146_v4 = vrot.slane %v2149_v62, 2 }
  0x4a   : > { %2494 = vmatpush3.bf16.msra.mxu0 %v2795_v63  ;;  %v942_v63 = vor.u32 %v941_v58, %v938_v57  ;;  %v1527_v58 = vshrl.u32 %v3311_v51, 16 }
  0x4b   : > { %2530 = vmatpush3.bf16.msra.mxu1 %v2796_v3  ;;  %2551 = vmatprep.subr.bf16.mxu0 %v2862_v1  ;;  %v956_v3 = vshll.u32 %v3113_v19, 16  ;;  %v1148_v11 = vsel %vm1145_vm4, %v1146_v4, %v1147_v5  ;;  %v3334_v4 = vld [vmem:[%s2934_s6 + $0x18] sm:$0xff]  }
  0x4c   : > { %2440 = vmatmul.mubr.bf16.gmra.mxu0 %v288_v7  ;;  %2587 = vmatprep.subr.bf16.mxu1 %v2862_v1  ;;  %v951_v6 = vsel %vm934_vm3, %v942_v63, %v950_v0  ;;  %v2821_v7 = vld [vmem:[%s3531_s1 + $0x1b8] sm:$0xff]   ;;  %v1529_v2 = vrot.slane %v1527_v58, 2 }
  0x4d   : > { %2476 = vmatmul.mubr.bf16.gmra.mxu1 %v3021_v45  ;;  %2495 = vmatprep.mubr.msk.bf16.mxu0 %vm2863_vm0, %v2862_v1  ;;  %v2815_v45 = vld [vmem:[%s3531_s1 + $0x108] sm:$0xff]   ;;  %v958_v9 = vrot.slane %v956_v3, 2  ;;  %v1532_v3 = vrot.slane %v1530_v59, 3 }
  0x4e   : > { %2531 = vmatprep.mubr.msk.bf16.mxu1 %vm2863_vm0, %v2862_v1 }
  0x4f   : > { %v959_v13 = vor.u32 %v958_v9, %v955_v8  ;;  %v1533_v8 = vor.u32 %v1532_v3, %v1529_v2  ;;  %v1536_v9 = vshrl.u32 %v3334_v4, 16 }
  0x51   : > { %v1538_v14 = vrot.slane %v1536_v9, 2 }
  0x54   : > { %2496 = vmatmul.mubr.bf16.vlgmr.msra.gmra.mxu0 %v565_v16  ;;  %v965_v16 = vshll.u32 %v3139_v27, 16 }
  0x55   : > { %2532 = vmatmul.mubr.bf16.vlgmr.msra.gmra.mxu1 %v768_v18  ;;  %2552 = vmatpush3.bf16.msra.mxu0 %v2800_v17  ;;  %v1149_v17 = vrot.slane %v3113_v19, 2  ;;  %v2825_v18 = vld [vmem:[%s3531_s1 + $0x1f0] sm:$0xff]  }
  0x56   : > { %2553 = vmatprep.subr.bf16.mxu0 %v2862_v1  ;;  %2499 = vmatprep.mubr.msk.bf16.mxu0 %vm2863_vm0, %v2862_v1  ;;  %v967_v22 = vrot.slane %v965_v16, 2 }
  0x57   : > { %2535 = vmatprep.mubr.msk.bf16.mxu1 %vm2863_vm0, %v2862_v1  ;;  %2588 = vmatpush3.bf16.msra.mxu1 %v2803_v15  ;;  %v960_v15 = vsel %vm934_vm3, %v950_v0, %v959_v13  ;;  %v1150_v19 = vsel %vm1145_vm4, %v1147_v5, %v1149_v17  ;;  %v1152_v27 = vsel %vm1145_vm4, %v1149_v17, %v1151_v29  ;;  %v3351_v17 = vld [vmem:[%s2934_s6 + $0x20] sm:$0xff]  }
  0x58   : > { %2589 = vmatprep.subr.bf16.mxu1 %v2862_v1 }
  0x59   : > { %2554 = vmatpush3.bf16.msra.mxu0 %v2801_v20  ;;  %v2824_v20 = vld [vmem:[%s3531_s1 + $0x1a8] sm:$0xff]  }
  0x5a   : > { %2555 = vmatprep.subr.bf16.mxu0 %v2862_v1 }
  0x5b   : > { %2590 = vmatpush3.bf16.msra.mxu1 %v2805_v23  ;;  %v2827_v23 = vld [vmem:[%s3531_s1 + $0x1e8] sm:$0xff]  }
  0x5c   : > { %2500 = vmatmul.mubr.bf16.gmra.mxu0 %v567_v24  ;;  %2591 = vmatprep.subr.bf16.mxu1 %v2862_v1  ;;  %v968_v24 = vor.u32 %v967_v22, %v964_v21  ;;  %v1545_v21 = vshrl.u32 %v3351_v17, 16  ;;  %v1548_v22 = vshll.u32 %v3351_v17, 16 }
  0x5d   : > { %2536 = vmatmul.mubr.bf16.gmra.mxu1 %v770_v26  ;;  %2556 = vmatpush3.bf16.msra.mxu0 %v2804_v25  ;;  %v2826_v25 = vld [vmem:[%s3531_s1 + $0x1a0] sm:$0xff]   ;;  %v971_v26 = vshrl.u32 %v3166_v36, 16 }
  0x5e   : > { %2503 = vmatprep.mubr.msk.bf16.mxu0 %vm2863_vm0, %v2862_v1  ;;  %2539 = vmatprep.mubr.msk.bf16.mxu1 %vm2863_vm0, %v2862_v1  ;;  %v969_v31 = vsel %vm934_vm3, %v959_v13, %v968_v24 }
  0x5f   : > { %2557 = vmatprep.subr.bf16.mxu0 %v2862_v1  ;;  %2592 = vmatpush3.bf16.msra.mxu1 %v2808_v28  ;;  %v974_v28 = vshll.u32 %v3166_v36, 16 }
  0x60   : > { %2593 = vmatprep.subr.bf16.mxu1 %v2862_v1 }
  0x61   : > { %2558 = vmatpush3.bf16.msra.mxu0 %v2807_v30  ;;  %v2829_v30 = vld [vmem:[%s3531_s1 + $0x1e0] sm:$0xff]  }
  0x62   : > { %2559 = vmatprep.subr.bf16.mxu0 %v2862_v1 }
  0x63   : > { %2594 = vmatpush3.bf16.msra.mxu1 %v2810_v32  ;;  %v2828_v32 = vld [vmem:[%s3531_s1 + $0x198] sm:$0xff]  }
  0x64   : > { %2504 = vmatmul.mubr.bf16.gmra.mxu0 %v569_v33  ;;  %2595 = vmatprep.subr.bf16.mxu1 %v2862_v1  ;;  %v973_v33 = vrot.slane %v971_v26, 1  ;;  %v1550_v26 = vrot.slane %v1548_v22, 3 }
  0x65   : > { %2540 = vmatmul.mubr.bf16.gmra.mxu1 %v772_v35  ;;  %2560 = vmatpush3.bf16.msra.mxu0 %v2809_v34  ;;  %v976_v34 = vrot.slane %v974_v28, 2  ;;  %v2834_v35 = vld [vmem:[%s2934_s6 + $0x2c] ss:$0 sps:$4 sm:$0x33]  }
  0x66   : > { %2507 = vmatprep.mubr.msk.bf16.mxu0 %vm2863_vm0, %v2862_v1  ;;  %2543 = vmatprep.mubr.msk.bf16.mxu1 %vm2863_vm0, %v2862_v1  ;;  %v980_v40 = vshrl.u32 %v2834_v35, 16  ;;  %v3372_v28 = vld [vmem:[%s2934_s6 + $0x28] sm:$0xff]  }
  0x67   : > { %2561 = vmatprep.subr.bf16.mxu0 %v2862_v1  ;;  %2596 = vmatpush3.bf16.msra.mxu1 %v2812_v37  ;;  %v2830_v37 = vld [vmem:[%s3531_s1 + $0x1d8] sm:$0xff]   ;;  %v977_v38 = vor.u32 %v976_v34, %v973_v33  ;;  %v1557_v33 = vshll.u32 %v3372_v28, 16 }
  0x68   : > { %2597 = vmatprep.subr.bf16.mxu1 %v2862_v1  ;;  %v982_v47 = vrot.slane %v980_v40, 1  ;;  %v1356_v40 = vrot.slane %v3372_v28, 2 }
  0x69   : > { %2562 = vmatpush3.bf16.msra.mxu0 %v2813_v39  ;;  %v2831_v39 = vld [vmem:[%s3531_s1 + $0x190] sm:$0xff]  }
  0x6a   : > { %2563 = vmatprep.subr.bf16.mxu0 %v2862_v1 }
  0x6b   : > { %2598 = vmatpush3.bf16.msra.mxu1 %v2814_v41  ;;  %v983_v41 = vshll.u32 %v2834_v35, 16 }
  0x6c   : > { %2508 = vmatmul.mubr.bf16.gmra.mxu0 %v571_v42  ;;  %2599 = vmatprep.subr.bf16.mxu1 %v2862_v1  ;;  %v1153_v42 = vrot.slane %v3166_v36, 2  ;;  %v2833_v36 = vld [vmem:[%s3531_s1 + $0x188] sm:$0xff]  }
  0x6d   : > { %2544 = vmatmul.mubr.bf16.gmra.mxu1 %v774_v44  ;;  %2511 = vmatprep.mubr.msk.bf16.mxu0 %vm2863_vm0, %v2862_v1  ;;  %v1293_v44 = vld [vmem:[%s2934_s6 + $0x8] sm:$0xc]  ;;  %v985_v48 = vrot.slane %v983_v41, 2  ;;  %v2848_v41 = vld [vmem:[%s3531_s1 + $0x210] sm:$0xff]  }
  0x6e   : > { %2547 = vmatprep.mubr.msk.bf16.mxu1 %vm2863_vm0, %v2862_v1  ;;  %2564 = vmatpush3.bf16.msra.mxu0 %v2815_v45  ;;  %v3300_v45 = vld [vmem:[%s2934_s6 + $0xc] sm:$0xf]  ;;  %v1154_v49 = vsel %vm1145_vm4, %v1151_v29, %v1153_v42  ;;  %v1354_v29 = vrot.slane %v3351_v17, 2 }
  0x6f   : > { %2600 = vmatpush3.bf16.msra.mxu1 %v2817_v46  ;;  %2565 = vmatprep.subr.bf16.mxu0 %v2862_v1  ;;  %v978_v46 = vsel %vm934_vm3, %v968_v24, %v977_v38  ;;  %v2174_v50 = vcombine.low %v1293_v44, %v3300_v45 }
  0x70   : > { %2601 = vmatprep.subr.bf16.mxu1 %v2862_v1 }
  0x71   : > { %v1522_v57 = vshll.u32 %v2174_v50, 16  ;;  %v1349_v5 = vrot.slane %v2174_v50, 2 }
  0x72   : > { %2566 = vmatpush3.bf16.msra.mxu0 %v2818_v53  ;;  %v986_v53 = vor.u32 %v985_v48, %v982_v47  ;;  %v2850_v47 = vld [vmem:[%s2934_s6 + $0x30] ss:$0 sps:$4 sm:$0x33]  }
  0x73   : > { %2602 = vmatpush3.bf16.msra.mxu1 %v2819_v54  ;;  %2623 = vmatprep.subr.bf16.mxu0 %v2862_v1  ;;  %v1155_v54 = vrot.slane %v2834_v35, 2  ;;  %v1524_v0 = vrot.slane %v1522_v57, 3  ;;  %v2846_v35 = vld [vmem:[%s3531_s1 + $0x218] sm:$0xff]  }
  0x74   : > { %2512 = vmatmul.mubr.bf16.gmra.mxu0 %v573_v56  ;;  %2659 = vmatprep.subr.bf16.mxu1 %v2862_v1  ;;  %v1519_v56 = vshrl.u32 %v2174_v50, 16 }
  0x75   : > { %2548 = vmatmul.mubr.bf16.gmra.mxu1 %v776_v61  ;;  %2567 = vmatprep.mubr.msk.bf16.mxu0 %vm2863_vm0, %v2862_v1  ;;  %v987_v61 = vsel %vm934_vm3, %v977_v38, %v986_v53  ;;  %v1156_v62 = vsel %vm1145_vm4, %v1153_v42, %v1155_v54  ;;  %v1559_v38 = vrot.slane %v1557_v33, 3  ;;  %v2852_v54 = vld [vmem:[%s3531_s1 + $0x200] sm:$0xff]  }
  0x76   : > { %2603 = vmatprep.mubr.msk.bf16.mxu1 %vm2863_vm0, %v2862_v1  ;;  %v1521_v63 = vrot.slane %v1519_v56, 2 }
  0x7c   : > { %2568 = vmatmul.mubr.bf16.vlgmr.msra.gmra.mxu0 %v951_v6  ;;  %v1350_v6 = vrot.slane %v3311_v51, 2 }
  0x7d   : > { %2604 = vmatmul.mubr.bf16.vlgmr.msra.gmra.mxu1 %v1148_v11  ;;  %2624 = vmatpush3.bf16.msra.mxu0 %v2821_v7  ;;  %v1525_v7 = vor.u32 %v1524_v0, %v1521_v63  ;;  %v1539_v11 = vshll.u32 %v3334_v4, 16  ;;  %v1732_v0 = vrot.slane %v3334_v4, 3 }
  0x7e   : > { %2625 = vmatprep.subr.bf16.mxu0 %v2862_v1  ;;  %2571 = vmatprep.mubr.msk.bf16.mxu0 %vm2863_vm0, %v2862_v1 }
  0x7f   : > { %2607 = vmatprep.mubr.msk.bf16.mxu1 %vm2863_vm0, %v2862_v1  ;;  %2660 = vmatpush3.bf16.msra.mxu1 %v2823_v12  ;;  %v1351_v12 = vsel %vm1145_vm4, %v1349_v5, %v1350_v6  ;;  %v1534_v13 = vsel %vm1517_vm5, %v1525_v7, %v1533_v8  ;;  %v1541_v16 = vrot.slane %v1539_v11, 3 }
  0x80   : > { %2661 = vmatprep.subr.bf16.mxu1 %v2862_v1 }
  0x81   : > { %2626 = vmatpush3.bf16.msra.mxu0 %v2822_v10  ;;  %v2840_v10 = vld [vmem:[%s3531_s1 + $0x238] sm:$0xff]  }
  0x82   : > { %2627 = vmatprep.subr.bf16.mxu0 %v2862_v1 }
  0x83   : > { %2662 = vmatpush3.bf16.msra.mxu1 %v2825_v18  ;;  %v2841_v18 = vld [vmem:[%s3531_s1 + $0x230] sm:$0xff]  }
  0x84   : > { %2572 = vmatmul.mubr.bf16.gmra.mxu0 %v960_v15  ;;  %2663 = vmatprep.subr.bf16.mxu1 %v2862_v1  ;;  %v1352_v15 = vrot.slane %v3334_v4, 2 }
  0x85   : > { %2608 = vmatmul.mubr.bf16.gmra.mxu1 %v1150_v19  ;;  %2628 = vmatpush3.bf16.msra.mxu0 %v2824_v20  ;;  %v1542_v20 = vor.u32 %v1541_v16, %v1538_v14 }
  0x86   : > { %2575 = vmatprep.mubr.msk.bf16.mxu0 %vm2863_vm0, %v2862_v1  ;;  %2611 = vmatprep.mubr.msk.bf16.mxu1 %vm2863_vm0, %v2862_v1  ;;  %v1353_v19 = vsel %vm1145_vm4, %v1350_v6, %v1352_v15  ;;  %v1355_v34 = vsel %vm1145_vm4, %v1352_v15, %v1354_v29 }
  0x87   : > { %2629 = vmatprep.subr.bf16.mxu0 %v2862_v1  ;;  %2664 = vmatpush3.bf16.msra.mxu1 %v2827_v23  ;;  %v2843_v23 = vld [vmem:[%s3531_s1 + $0x228] sm:$0xff]   ;;  %v1543_v24 = vsel %vm1517_vm5, %v1533_v8, %v1542_v20 }
  0x88   : > { %2665 = vmatprep.subr.bf16.mxu1 %v2862_v1 }
  0x89   : > { %2630 = vmatpush3.bf16.msra.mxu0 %v2826_v25  ;;  %v1547_v25 = vrot.slane %v1545_v21, 2 }
  0x8a   : > { %2631 = vmatprep.subr.bf16.mxu0 %v2862_v1 }
  0x8b   : > { %2666 = vmatpush3.bf16.msra.mxu1 %v2829_v30  ;;  %v2845_v30 = vld [vmem:[%s3531_s1 + $0x220] sm:$0xff]  }
  0x8c   : > { %2576 = vmatmul.mubr.bf16.gmra.mxu0 %v969_v31  ;;  %2667 = vmatprep.subr.bf16.mxu1 %v2862_v1  ;;  %v1551_v31 = vor.u32 %v1550_v26, %v1547_v25 }
  0x8d   : > { %2612 = vmatmul.mubr.bf16.gmra.mxu1 %v1152_v27  ;;  %2632 = vmatpush3.bf16.msra.mxu0 %v2828_v32  ;;  %v1554_v32 = vshrl.u32 %v3372_v28, 16 }
  0x8e   : > { %2579 = vmatprep.mubr.msk.bf16.mxu0 %vm2863_vm0, %v2862_v1  ;;  %2615 = vmatprep.mubr.msk.bf16.mxu1 %vm2863_vm0, %v2862_v1  ;;  %v1552_v27 = vsel %vm1517_vm5, %v1542_v20, %v1551_v31 }
  0x8f   : > { %2633 = vmatprep.subr.bf16.mxu0 %v2862_v1  ;;  %2668 = vmatpush3.bf16.msra.mxu1 %v2830_v37  ;;  %v1556_v37 = vrot.slane %v1554_v32, 2 }
  0x90   : > { %2669 = vmatprep.subr.bf16.mxu1 %v2862_v1 }
  0x91   : > { %2634 = vmatpush3.bf16.msra.mxu0 %v2831_v39  ;;  %v3394_v39 = vld [vmem:[%s2934_s6 + $0x30] ss:$0 sps:$4 sm:$0x77]   ;;  %v1560_v42 = vor.u32 %v1559_v38, %v1556_v37 }
  0x92   : > { %2635 = vmatprep.subr.bf16.mxu0 %v2862_v1  ;;  %v1566_v44 = vshll.u32 %v3394_v39, 16 }
  0x93   : > { %2670 = vmatpush3.bf16.msra.mxu1 %v2832_v43  ;;  %v1563_v43 = vshrl.u32 %v3394_v39, 16  ;;  %v1561_v48 = vsel %vm1517_vm5, %v1551_v31, %v1560_v42 }
  0x94   : > { %2580 = vmatmul.mubr.bf16.gmra.mxu0 %v978_v46  ;;  %2671 = vmatprep.subr.bf16.mxu1 %v2862_v1  ;;  %v1357_v46 = vsel %vm1145_vm4, %v1354_v29, %v1356_v40  ;;  %v1568_v50 = vrot.slane %v1566_v44, 3 }
  0x95   : > { %2616 = vmatmul.mubr.bf16.gmra.mxu1 %v1154_v49  ;;  %2583 = vmatprep.mubr.msk.bf16.mxu0 %vm2863_vm0, %v2862_v1  ;;  %v2849_v49 = vld [vmem:[%s3531_s1 + $0x208] sm:$0xff]  }
  0x96   : > { %2619 = vmatprep.mubr.msk.bf16.mxu1 %vm2863_vm0, %v2862_v1  ;;  %2636 = vmatpush3.bf16.msra.mxu0 %v2833_v36  ;;  %v1565_v36 = vrot.slane %v1563_v43, 2 }
  0x97   : > { %2672 = vmatpush3.bf16.msra.mxu1 %v2835_v52  ;;  %2637 = vmatprep.subr.bf16.mxu0 %v2862_v1  ;;  %v1358_v52 = vrot.slane %v2850_v47, 2 }
  0x98   : > { %2673 = vmatprep.subr.bf16.mxu1 %v2862_v1  ;;  %v1569_v53 = vor.u32 %v1568_v50, %v1565_v36 }
  0x99   : > { %v1359_v56 = vsel %vm1145_vm4, %v1356_v40, %v1358_v52 }
  0x9a   : > { %2638 = vmatpush3.bf16.msra.mxu0 %v2836_v55  ;;  %v1707_v55 = vld [vmem:[%s2934_s6 + $0x8] sm:$0x8]  ;;  %v1570_v58 = vsel %vm1517_vm5, %v1560_v42, %v1569_v53 }
  0x9b   : > { %2674 = vmatpush3.bf16.msra.mxu1 %v2837_v60  ;;  %2695 = vmatprep.subr.bf16.mxu0 %v2862_v1  ;;  %v2229_v57 = vcombine.low %v1707_v55, %v3300_v45  ;;  %v1730_v60 = vrot.slane %v3311_v51, 3  ;;  %v1736_v45 = vrot.slane %v3372_v28, 3  ;;  %v1738_v51 = vrot.slane %v3394_v39, 3 }
  0x9c   : > { %2584 = vmatmul.mubr.bf16.gmra.mxu0 %v987_v61  ;;  %2731 = vmatprep.subr.bf16.mxu1 %v2862_v1  ;;  %v1734_v61 = vrot.slane %v3351_v17, 3 }
  0x9d   : > { %2620 = vmatmul.mubr.bf16.gmra.mxu1 %v1156_v62  ;;  %2639 = vmatprep.mubr.msk.bf16.mxu0 %vm2863_vm0, %v2862_v1  ;;  %v1729_v59 = vrot.slane %v2229_v57, 3  ;;  %v1733_v2 = vsel %vm1728_vm6, %v1730_v60, %v1732_v0  ;;  %v1739_v3 = vsel %vm1728_vm6, %v1736_v45, %v1738_v51 }
  0x9e   : > { %2675 = vmatprep.mubr.msk.bf16.mxu1 %vm2863_vm0, %v2862_v1  ;;  %v1737_v63 = vsel %vm1728_vm6, %v1734_v61, %v1736_v45  ;;  %v1735_v5 = vsel %vm1728_vm6, %v1732_v0, %v1734_v61 }
  0x9f   : > { %v1731_v62 = vsel %vm1728_vm6, %v1729_v59, %v1730_v60 }
  0xa4   : > { %2640 = vmatmul.mubr.bf16.vlgmr.msra.gmra.mxu0 %v1351_v12 }
  0xa5   : > { %2676 = vmatmul.mubr.bf16.vlgmr.msra.gmra.mxu1 %v1534_v13  ;;  %2696 = vmatpush3.bf16.msra.mxu0 %v2840_v10 }
  0xa6   : > { %2697 = vmatprep.subr.bf16.mxu0 %v2862_v1  ;;  %2643 = vmatprep.mubr.msk.bf16.mxu0 %vm2863_vm0, %v2862_v1 }
  0xa7   : > { %2679 = vmatprep.mubr.msk.bf16.mxu1 %vm2863_vm0, %v2862_v1  ;;  %2739 = vmatpush3.bf16.msra.mxu1 %v2840_v10 }
  0xa8   : > { %2732 = vmatprep.subr.bf16.mxu1 %v2862_v1 }
  0xa9   : > { %2698 = vmatpush3.bf16.msra.mxu0 %v2841_v18 }
  0xaa   : > { %2699 = vmatprep.subr.bf16.mxu0 %v2862_v1 }
  0xab   : > { %2740 = vmatpush3.bf16.msra.mxu1 %v2841_v18 }
  0xac   : > { %2644 = vmatmul.mubr.bf16.gmra.mxu0 %v1353_v19  ;;  %2733 = vmatprep.subr.bf16.mxu1 %v2862_v1 }
  0xad   : > { %2680 = vmatmul.mubr.bf16.gmra.mxu1 %v1543_v24  ;;  %2700 = vmatpush3.bf16.msra.mxu0 %v2843_v23 }
  0xae   : > { %2647 = vmatprep.mubr.msk.bf16.mxu0 %vm2863_vm0, %v2862_v1  ;;  %2683 = vmatprep.mubr.msk.bf16.mxu1 %vm2863_vm0, %v2862_v1 }
  0xaf   : > { %2701 = vmatprep.subr.bf16.mxu0 %v2862_v1  ;;  %2741 = vmatpush3.bf16.msra.mxu1 %v2843_v23 }
  0xb0   : > { %2734 = vmatprep.subr.bf16.mxu1 %v2862_v1 }
  0xb1   : > { %2702 = vmatpush3.bf16.msra.mxu0 %v2845_v30 }
  0xb2   : > { %2703 = vmatprep.subr.bf16.mxu0 %v2862_v1 }
  0xb3   : > { %2742 = vmatpush3.bf16.msra.mxu1 %v2845_v30 }
  0xb4   : > { %2648 = vmatmul.mubr.bf16.gmra.mxu0 %v1355_v34  ;;  %2735 = vmatprep.subr.bf16.mxu1 %v2862_v1 }
  0xb5   : > { %2684 = vmatmul.mubr.bf16.gmra.mxu1 %v1552_v27  ;;  %2704 = vmatpush3.bf16.msra.mxu0 %v2846_v35 }
  0xb6   : > { %2651 = vmatprep.mubr.msk.bf16.mxu0 %vm2863_vm0, %v2862_v1  ;;  %2687 = vmatprep.mubr.msk.bf16.mxu1 %vm2863_vm0, %v2862_v1 }
  0xb7   : > { %2743 = vmatpush3.bf16.msra.mxu1 %v2846_v35  ;;  %2705 = vmatprep.subr.bf16.mxu0 %v2862_v1 }
  0xb8   : > { %2736 = vmatprep.subr.bf16.mxu1 %v2862_v1 }
  0xb9   : > { %2706 = vmatpush3.bf16.msra.mxu0 %v2848_v41 }
  0xba   : > { %2707 = vmatprep.subr.bf16.mxu0 %v2862_v1 }
  0xbb   : > { %2744 = vmatpush3.bf16.msra.mxu1 %v2848_v41 }
  0xbc   : > { %2652 = vmatmul.mubr.bf16.gmra.mxu0 %v1357_v46  ;;  %2737 = vmatprep.subr.bf16.mxu1 %v2862_v1 }
  0xbd   : > { %2688 = vmatmul.mubr.bf16.gmra.mxu1 %v1561_v48  ;;  %2655 = vmatprep.mubr.msk.bf16.mxu0 %vm2863_vm0, %v2862_v1 }
  0xbe   : > { %2691 = vmatprep.mubr.msk.bf16.mxu1 %vm2863_vm0, %v2862_v1  ;;  %2708 = vmatpush3.bf16.msra.mxu0 %v2849_v49 }
  0xbf   : > { %2745 = vmatpush3.bf16.msra.mxu1 %v2849_v49  ;;  %2709 = vmatprep.subr.bf16.mxu0 %v2862_v1 }
  0xc0   : > { %2738 = vmatprep.subr.bf16.mxu1 %v2862_v1 }
  0xc2   : > { %2710 = vmatpush3.bf16.msra.mxu0 %v2852_v54 }
  0xc3   : > { %2746 = vmatpush3.bf16.msra.mxu1 %v2852_v54 }
  0xc4   : > { %2656 = vmatmul.mubr.bf16.gmra.mxu0 %v1359_v56 }
  0xc5   : > { %2692 = vmatmul.mubr.bf16.gmra.mxu1 %v1570_v58  ;;  %2711 = vmatprep.mubr.msk.bf16.mxu0 %vm2863_vm0, %v2862_v1 }
  0xc6   : > { %2723 = vmatprep.mubr.msk.bf16.mxu1 %vm2863_vm0, %v2862_v1 }
  0xcc   : > { %2712 = vmatmul.mubr.bf16.vlgmr.msra.gmra.mxu0 %v1731_v62 }
  0xcd   : > { %2724 = vmatmul.mubr.bf16.vlgmr.msra.gmra.mxu1 %v1737_v63  ;;  %2715 = vmatprep.mubr.msk.bf16.mxu0 %vm2863_vm0, %v2862_v1 }
  0xce   : > { %2727 = vmatprep.mubr.msk.bf16.mxu1 %vm2863_vm0, %v2862_v1 }
  0xd4   : > { %2716 = vmatmul.mubr.bf16.gmra.mxu0 %v1733_v2 }
  0xd5   : > { %2728 = vmatmul.mubr.bf16.gmra.mxu1 %v1739_v3  ;;  %2719 = vmatprep.mubr.msk.bf16.mxu0 %vm2863_vm0, %v2862_v1 }
  0xdc   : > { %2720 = vmatmul.mubr.bf16.gmra.mxu0 %v1735_v5 }
  0xec   : > { %v376_v6 = vpop.f32.mrf.mxu0 }
  0xed   : > { %v502_v7 = vpop.f32.mrf.mxu1 }
  0xee   : > { %v503_v4 = vadd.f32 %v502_v7, %v376_v6  ;;  %v2425_v8 = vpop.f32.mrf.mxu0 }
  0xef   : > { %v2461_v9 = vpop.f32.mrf.mxu1 }
  0xf0   : > { %v379_v11 = vpop.f32.mrf.mxu0 }
  0xf1   : > { %v505_v12 = vpop.f32.mrf.mxu1 }
  0xf2   : > { %v506_v10 = vadd.f32 %v505_v12, %v379_v11  ;;  %v2426_v13 = vpop.f32.mrf.mxu0 }
  0xf3   : > { %v2462_v14 = vpop.f32.mrf.mxu1 }
  0xf4   : > { %v384_v16 = vpop.f32.mrf.mxu0 }
  0xf5   : > { %v510_v17 = vpop.f32.mrf.mxu1 }
  0xf6   : > { %v511_v18 = vadd.f32 %v510_v17, %v384_v16  ;;  %v2429_v15 = vpop.f32.mrf.mxu0 }
  0xf7   : > { %v2465_v20 = vpop.f32.mrf.mxu1 }
  0xf8   : > { %v387_v21 = vpop.f32.mrf.mxu0 }
  0xf9   : > { %v513_v1 = vpop.f32.mrf.mxu1 }
  0xfa   : > { %v514_v22 = vadd.f32 %v513_v1, %v387_v21  ;;  %v2430_v19 = vpop.f32.mrf.mxu0 }
  0xfb   : > { %v2466_v23 = vpop.f32.mrf.mxu1 }
  0xfc   : > { %v392_v24 = vpop.f32.mrf.mxu0 }
  0xfd   : > { %v518_v25 = vpop.f32.mrf.mxu1 }
  0xfe   : > { %v519_v26 = vadd.f32 %v518_v25, %v392_v24  ;;  %v2433_v28 = vpop.f32.mrf.mxu0 }
  0xff   : > { %v2469_v29 = vpop.f32.mrf.mxu1 }
 0x100   : > { %v395_v30 = vpop.f32.mrf.mxu0 }
 0x101   : > { %v521_v31 = vpop.f32.mrf.mxu1 }
 0x102   : > { %v522_v32 = vadd.f32 %v521_v31, %v395_v30  ;;  %v2434_v33 = vpop.f32.mrf.mxu0 }
 0x103   : > { %v2470_v34 = vpop.f32.mrf.mxu1 }
 0x104   : > { %v400_v35 = vpop.f32.mrf.mxu0 }
 0x105   : > { %v526_v27 = vpop.f32.mrf.mxu1 }
 0x106   : > { %v527_v37 = vadd.f32 %v526_v27, %v400_v35  ;;  %v2437_v38 = vpop.f32.mrf.mxu0 }
 0x107   : > { %v2473_v39 = vpop.f32.mrf.mxu1 }
 0x108   : > { %v403_v40 = vpop.f32.mrf.mxu0 }
 0x109   : > { %v529_v41 = vpop.f32.mrf.mxu1 }
 0x10a   : > { %v530_v42 = vadd.f32 %v529_v41, %v403_v40  ;;  %v2438_v43 = vpop.f32.mrf.mxu0 }
 0x10b   : > { %v2474_v44 = vpop.f32.mrf.mxu1 }
 0x10c   : > { %v408_v46 = vpop.f32.mrf.mxu0 }
 0x10d   : > { %v534_v47 = vpop.f32.mrf.mxu1 }
 0x10e   : > { %v535_v48 = vadd.f32 %v534_v47, %v408_v46  ;;  %v2441_v49 = vpop.f32.mrf.mxu0 }
 0x10f   : > { %v2477_v36 = vpop.f32.mrf.mxu1 }
 0x110   : > { %v411_v50 = vpop.f32.mrf.mxu0 }
 0x111   : > { %v537_v52 = vpop.f32.mrf.mxu1 }
 0x112   : > { %v538_v53 = vadd.f32 %v537_v52, %v411_v50  ;;  %v2442_v54 = vpop.f32.mrf.mxu0 }
 0x113   : > { %v2478_v55 = vpop.f32.mrf.mxu1 }
 0x114   : > { %v661_v56 = vpop.f32.mrf.mxu0 }
 0x115   : > { %v700_v57 = vadd.f32 %v661_v56, %v503_v4  ;;  %v864_v58 = vpop.f32.mrf.mxu1 }
 0x116   : > { %v2497_v59 = vpop.f32.mrf.mxu0 }
 0x117   : > { %v903_v60 = vadd.f32 %v864_v58, %v700_v57  ;;  %v2533_v61 = vpop.f32.mrf.mxu1 }
 0x118   : > { %v664_v45 = vpop.f32.mrf.mxu0 }
 0x119   : > { %v701_v62 = vadd.f32 %v664_v45, %v506_v10  ;;  %v867_v63 = vpop.f32.mrf.mxu1 }
 0x11a   : > { %v2498_v0 = vpop.f32.mrf.mxu0 }
 0x11b   : > { %v904_v51 = vadd.f32 %v867_v63, %v701_v62  ;;  %v2534_v2 = vpop.f32.mrf.mxu1 }
 0x11c   : > { %v669_v3 = vpop.f32.mrf.mxu0 }
 0x11d   : > { %v702_v5 = vadd.f32 %v669_v3, %v511_v18  ;;  %v872_v6 = vpop.f32.mrf.mxu1 }
 0x11e   : > { %v2501_v7 = vpop.f32.mrf.mxu0 }
 0x11f   : > { %v905_v8 = vadd.f32 %v872_v6, %v702_v5  ;;  %v2537_v9 = vpop.f32.mrf.mxu1 }
 0x120   : > { %v672_v11 = vpop.f32.mrf.mxu0 }
 0x121   : > { %v703_v12 = vadd.f32 %v672_v11, %v514_v22  ;;  %v875_v13 = vpop.f32.mrf.mxu1 }
 0x122   : > { %v2502_v4 = vpop.f32.mrf.mxu0 }
 0x123   : > { %v906_v14 = vadd.f32 %v875_v13, %v703_v12  ;;  %v2538_v16 = vpop.f32.mrf.mxu1 }
 0x124   : > { %v677_v17 = vpop.f32.mrf.mxu0 }
 0x125   : > { %v704_v15 = vadd.f32 %v677_v17, %v519_v26  ;;  %v880_v20 = vpop.f32.mrf.mxu1 }
 0x126   : > { %v2505_v10 = vpop.f32.mrf.mxu0 }
 0x127   : > { %v907_v21 = vadd.f32 %v880_v20, %v704_v15  ;;  %v2541_v1 = vpop.f32.mrf.mxu1 }
 0x128   : > { %v680_v19 = vpop.f32.mrf.mxu0 }
 0x129   : > { %v705_v23 = vadd.f32 %v680_v19, %v522_v32  ;;  %v883_v24 = vpop.f32.mrf.mxu1 }
 0x12a   : > { %v2506_v18 = vpop.f32.mrf.mxu0 }
 0x12b   : > { %v908_v25 = vadd.f32 %v883_v24, %v705_v23  ;;  %v2542_v28 = vpop.f32.mrf.mxu1 }
 0x12c   : > { %v685_v29 = vpop.f32.mrf.mxu0 }
 0x12d   : > { %v706_v30 = vadd.f32 %v685_v29, %v527_v37  ;;  %v888_v31 = vpop.f32.mrf.mxu1 }
 0x12e   : > { %v2509_v22 = vpop.f32.mrf.mxu0 }
 0x12f   : > { %v3450_v33 = vadd.f32 %v888_v31, %v706_v30  ;;  %v2545_v34 = vpop.f32.mrf.mxu1 }
 0x130   : > { %v688_v35 = vpop.f32.mrf.mxu0 }
 0x131   : > { %v707_v27 = vadd.f32 %v688_v35, %v530_v42  ;;  %v891_v26 = vpop.f32.mrf.mxu1 }
 0x132   : > { %v2510_v38 = vpop.f32.mrf.mxu0 }
 0x133   : > { %v3452_v39 = vadd.f32 %v891_v26, %v707_v27  ;;  %v2546_v40 = vpop.f32.mrf.mxu1 }
 0x134   : > { %v693_v41 = vpop.f32.mrf.mxu0 }
 0x135   : > { %v708_v32 = vadd.f32 %v693_v41, %v535_v48  ;;  %v896_v43 = vpop.f32.mrf.mxu1 }
 0x136   : > { %v2513_v44 = vpop.f32.mrf.mxu0 }
 0x137   : > { %v3454_v46 = vadd.f32 %v896_v43, %v708_v32  ;;  %v2549_v47 = vpop.f32.mrf.mxu1 }
 0x138   : > { %v696_v37 = vpop.f32.mrf.mxu0 }
 0x139   : > { %v709_v49 = vadd.f32 %v696_v37, %v538_v53  ;;  %v899_v36 = vpop.f32.mrf.mxu1 }
 0x13a   : > { %v2514_v50 = vpop.f32.mrf.mxu0 }
 0x13b   : > { %v3456_v52 = vadd.f32 %v899_v36, %v709_v49  ;;  %v2550_v54 = vpop.f32.mrf.mxu1 }
 0x13c   : > { %v1075_v42 = vpop.f32.mrf.mxu0 }
 0x13d   : > { %v1114_v55 = vadd.f32 %v1075_v42, %v903_v60  ;;  %v1244_v56 = vpop.f32.mrf.mxu1 }
 0x13e   : > { %v2569_v57 = vpop.f32.mrf.mxu0 }
 0x13f   : > { %v3458_v58 = vadd.f32 %v1244_v56, %v1114_v55  ;;  %v2605_v59 = vpop.f32.mrf.mxu1 }
 0x140   : > { %v1078_v48 = vpop.f32.mrf.mxu0 }
 0x141   : > { %v1115_v61 = vadd.f32 %v1078_v48, %v904_v51  ;;  %v1247_v45 = vpop.f32.mrf.mxu1 }
 0x142   : > { %v2570_v62 = vpop.f32.mrf.mxu0 }
 0x143   : > { %v3460_v63 = vadd.f32 %v1247_v45, %v1115_v61  ;;  %v2606_v0 = vpop.f32.mrf.mxu1 }
 0x144   : > { %v1083_v53 = vpop.f32.mrf.mxu0 }
 0x145   : > { %v1116_v2 = vadd.f32 %v1083_v53, %v905_v8  ;;  %v1252_v3 = vpop.f32.mrf.mxu1 }
 0x146   : > { %v2573_v5 = vpop.f32.mrf.mxu0 }
 0x147   : > { %v3462_v6 = vadd.f32 %v1252_v3, %v1116_v2  ;;  %v2609_v7 = vpop.f32.mrf.mxu1 }
 0x148   : > { %v1086_v60 = vpop.f32.mrf.mxu0 }
 0x149   : > { %v1117_v9 = vadd.f32 %v1086_v60, %v906_v14  ;;  %v1255_v11 = vpop.f32.mrf.mxu1 }
 0x14a   : > { %v2574_v12 = vpop.f32.mrf.mxu0 }
 0x14b   : > { %v3464_v13 = vadd.f32 %v1255_v11, %v1117_v9  ;;  %v2610_v4 = vpop.f32.mrf.mxu1 }
 0x14c   : > { %v1091_v51 = vpop.f32.mrf.mxu0 }
 0x14d   : > { %v1118_v16 = vadd.f32 %v1091_v51, %v907_v21  ;;  %v1260_v17 = vpop.f32.mrf.mxu1 }
 0x14e   : > { %v2577_v15 = vpop.f32.mrf.mxu0 }
 0x14f   : > { %v3466_v20 = vadd.f32 %v1260_v17, %v1118_v16  ;;  %v2613_v10 = vpop.f32.mrf.mxu1 }
 0x150   : > { %v1094_v8 = vpop.f32.mrf.mxu0 }
 0x151   : > { %v1119_v1 = vadd.f32 %v1094_v8, %v908_v25  ;;  %v1263_v19 = vpop.f32.mrf.mxu1 }
 0x152   : > { %v2578_v23 = vpop.f32.mrf.mxu0 }
 0x153   : > { %v3468_v24 = vadd.f32 %v1263_v19, %v1119_v1  ;;  %v2614_v18 = vpop.f32.mrf.mxu1 }
 0x154   : > { %v1099_v14 = vpop.f32.mrf.mxu0 }
 0x155   : > { %v1268_v28 = vpop.f32.mrf.mxu1  ;;  %v1120_v17 = vadd.f32 %v1099_v14, %v3450_v33 }
 0x156   : > { %v2581_v29 = vpop.f32.mrf.mxu0 }
 0x157   : > { %v2617_v30 = vpop.f32.mrf.mxu1  ;;  %v1289_v19 = vadd.f32 %v1268_v28, %v1120_v17 }
 0x158   : > { %v1102_v31 = vpop.f32.mrf.mxu0 }
 0x159   : > { %v1271_v22 = vpop.f32.mrf.mxu1  ;;  %v1121_v23 = vadd.f32 %v1102_v31, %v3452_v39 }
 0x15a   : > { %v2582_v34 = vpop.f32.mrf.mxu0 }
 0x15b   : > { %v2618_v21 = vpop.f32.mrf.mxu1 }
 0x15c   : > { %v1107_v35 = vpop.f32.mrf.mxu0 }
 0x15d   : > { %v1276_v27 = vpop.f32.mrf.mxu1 }
 0x15e   : > { %v2585_v26 = vpop.f32.mrf.mxu0 }
 0x15f   : > { %v2621_v38 = vpop.f32.mrf.mxu1 }
 0x160   : > { %v1110_v40 = vpop.f32.mrf.mxu0  ;;  %v1290_v38 = vadd.f32 %v1271_v22, %v1121_v23  ;;  %v3493_v22 = vld [vmem:[%s3532_s2] ss:$0 sm:$0xff] }
 0x161   : > { %v3470_v41 = vpop.f32.mrf.mxu1 }
 0x162   : > { %v2586_v25 = vpop.f32.mrf.mxu0 }
 0x163   : > { %v2622_v32 = vpop.f32.mrf.mxu1  ;;  %v1122_v25 = vadd.f32 %v1107_v35, %v3454_v46 }
 0x164   : > { %v1447_v43 = vpop.f32.mrf.mxu0 }
 0x165   : > { %v1658_v44 = vpop.f32.mrf.mxu1  ;;  %v1486_v29 = vadd.f32 %v1447_v43, %v3458_v58  ;;  %v1291_v31 = vadd.f32 %v1276_v27, %v1122_v25  ;;  %v1123_v58 = vadd.f32 %v1110_v40, %v3456_v52 }
 0x166   : > { %v2641_v47 = vpop.f32.mrf.mxu0 }
 0x167   : > { %v2677_v37 = vpop.f32.mrf.mxu1  ;;  %v1697_v47 = vadd.f32 %v1658_v44, %v1486_v29  ;;  %v1292_v52 = vadd.f32 %v3470_v41, %v1123_v58 }
 0x168   : > { %v1450_v49 = vpop.f32.mrf.mxu0 }
 0x169   : > { %v1661_v36 = vpop.f32.mrf.mxu1  ;;  %v1487_v33 = vadd.f32 %v1450_v49, %v3460_v63 }
 0x16a   : > { %v2642_v50 = vpop.f32.mrf.mxu0 }
 0x16b   : > { %v2678_v54 = vpop.f32.mrf.mxu1  ;;  %v1698_v43 = vadd.f32 %v1661_v36, %v1487_v33 }
 0x16c   : > { %v1455_v42 = vpop.f32.mrf.mxu0 }
 0x16d   : > { %v3472_v55 = vpop.f32.mrf.mxu1  ;;  %v1488_v63 = vadd.f32 %v1455_v42, %v3462_v6 }
 0x16e   : > { %v2645_v56 = vpop.f32.mrf.mxu0 }
 0x16f   : > { %v2681_v57 = vpop.f32.mrf.mxu1 }
 0x170   : > { %v1458_v59 = vpop.f32.mrf.mxu0 }
 0x171   : > { %v3474_v48 = vpop.f32.mrf.mxu1  ;;  %v1489_v36 = vadd.f32 %v1458_v59, %v3464_v13 }
 0x172   : > { %v2646_v61 = vpop.f32.mrf.mxu0 }
 0x173   : > { %v2682_v45 = vpop.f32.mrf.mxu1 }
 0x174   : > { %v3476_v62 = vpop.f32.mrf.mxu0 }
 0x175   : > { %v3478_v0 = vpop.f32.mrf.mxu1 }
 0x176   : > { %v2649_v53 = vpop.f32.mrf.mxu0 }
 0x177   : > { %v2685_v2 = vpop.f32.mrf.mxu1 }
 0x178   : > { %v3480_v3 = vpop.f32.mrf.mxu0 }
 0x179   : > { %v3482_v5 = vpop.f32.mrf.mxu1 }
 0x17a   : > { %v2650_v7 = vpop.f32.mrf.mxu0 }
 0x17b   : > { %v2686_v60 = vpop.f32.mrf.mxu1  ;;  %v1699_v7 = vadd.f32 %v3472_v55, %v1488_v63 }
 0x17c   : > { %v1471_v9 = vpop.f32.mrf.mxu0 }
 0x17d   : > { %v1682_v11 = vpop.f32.mrf.mxu1  ;;  %v1492_v34 = vadd.f32 %v1471_v9, %v1289_v19 }
 0x17e   : > { %v2653_v12 = vpop.f32.mrf.mxu0 }
 0x17f   : > { %v2689_v4 = vpop.f32.mrf.mxu1  ;;  %v1703_v37 = vadd.f32 %v1682_v11, %v1492_v34 }
 0x180   : > { %v1474_v51 = vpop.f32.mrf.mxu0 }
 0x181   : > { %v1685_v16 = vpop.f32.mrf.mxu1  ;;  %v1493_v50 = vadd.f32 %v1474_v51, %v1290_v38 }
 0x182   : > { %v2654_v15 = vpop.f32.mrf.mxu0 }
 0x183   : > { %v2690_v10 = vpop.f32.mrf.mxu1  ;;  %v1704_v49 = vadd.f32 %v1685_v16, %v1493_v50  ;;  %v1700_v15 = vadd.f32 %v3474_v48, %v1489_v36 }
 0x184   : > { %v1479_v8 = vpop.f32.mrf.mxu0  ;;  %v1490_v10 = vadd.f32 %v3476_v62, %v3466_v20  ;;  %v1491_v20 = vadd.f32 %v3480_v3, %v3468_v24 }
 0x185   : > { %v1690_v1 = vpop.f32.mrf.mxu1  ;;  %v1494_v56 = vadd.f32 %v1479_v8, %v1291_v31 }
 0x186   : > { %v2657_v18 = vpop.f32.mrf.mxu0  ;;  %v1701_v48 = vadd.f32 %v3478_v0, %v1490_v10  ;;  %v1702_v0 = vadd.f32 %v3482_v5, %v1491_v20 }
 0x187   : > { %v2693_v30 = vpop.f32.mrf.mxu1  ;;  %v1705_v60 = vadd.f32 %v1690_v1, %v1494_v56 }
 0x188   : > { %v1482_v21 = vpop.f32.mrf.mxu0 }
 0x189   : > { %v1693_v26 = vpop.f32.mrf.mxu1  ;;  %v1495_v9 = vadd.f32 %v1482_v21, %v1292_v52 }
 0x18a   : > { %v2658_v32 = vpop.f32.mrf.mxu0 }
 0x18b   : > { %v2694_v14 = vpop.f32.mrf.mxu1  ;;  %v1706_v19 = vadd.f32 %v1693_v26, %v1495_v9 }
 0x18c   : > { %v1827_v28 = vpop.f32.mrf.mxu0 }
 0x18d   : > { %v1866_v54 = vadd.f32 %v1827_v28, %v1697_v47  ;;  %v1851_v39 = vpop.f32.mrf.mxu1 }
 0x18e   : > { %v1872_v46 = vadd.f32 %v1851_v39, %v1703_v37  ;;  %v2713_v35 = vpop.f32.mrf.mxu0 }
 0x18f   : > { %v2725_v44 = vpop.f32.mrf.mxu1  ;;  %v1883_v61 = vadd.f32 %v3493_v22, %v1866_v54 }
 0x190   : > { %v1830_v57 = vpop.f32.mrf.mxu0  ;;  %v1889_v40 = vadd.f32 %v3493_v22, %v1872_v46 }
 0x191   : > { %v1867_v27 = vadd.f32 %v1830_v57, %v1698_v43  ;;  %v1854_v45 = vpop.f32.mrf.mxu1  ;;  %v1893_v4 = vmax.f32 %v1883_v61, 0.0 }
 0x192   : > { %v1873_v53 = vadd.f32 %v1854_v45, %v1704_v49  ;;  %v2714_v2 = vpop.f32.mrf.mxu0  ;;  %v1899_v17 = vmax.f32 %v1889_v40, 0.0 }
 0x193   : > { %v1884_v6 = vadd.f32 %v3493_v22, %v1867_v27  ;;  %v2726_v42 = vpop.f32.mrf.mxu1 }
 0x194   : > { %v1890_v11 = vadd.f32 %v3493_v22, %v1873_v53  ;;  %v1835_v12 = vpop.f32.mrf.mxu0 }
 0x195   : > { %v1894_v51 = vmax.f32 %v1884_v6, 0.0  ;;  %v1868_v41 = vadd.f32 %v1835_v12, %v1699_v7  ;;  %v1859_v16 = vpop.f32.mrf.mxu1 }
 0x196   : > { %v1900_v13 = vmax.f32 %v1890_v11, 0.0  ;;  %v1874_v55 = vadd.f32 %v1859_v16, %v1705_v60  ;;  %v2717_v59 = vpop.f32.mrf.mxu0 }
 0x197   : > { %v2264_v8 = vpack.c.bf16 %v1894_v51, %v1893_v4  ;;  %v2729_v1 = vpop.f32.mrf.mxu1  ;;  %v1885_v29 = vadd.f32 %v3493_v22, %v1868_v41 }
 0x198   : > { %v2279_v23 = vpack.c.bf16 %v1900_v13, %v1899_v17  ;;  %v1838_v18 = vpop.f32.mrf.mxu0  ;;  %v1891_v21 = vadd.f32 %v3493_v22, %v1874_v55 }
 0x199   : > { %2265 = vst [vmem:[%s3507_s20] sm:$0xff] %v2264_v8   ;;  %v1869_v30 = vadd.f32 %v1838_v18, %v1700_v15  ;;  %v1862_v34 = vpop.f32.mrf.mxu1  ;;  %v1895_v33 = vmax.f32 %v1885_v29, 0.0 }
 0x19a   : > { %2288 = vst [vmem:[%s3507_s20 + $0x18] sm:$0xff] %v2279_v23   ;;  %v1875_v38 = vadd.f32 %v1862_v34, %v1706_v19  ;;  %v2718_v25 = vpop.f32.mrf.mxu0  ;;  %v1901_v50 = vmax.f32 %v1891_v21, 0.0 }
 0x19b   : > { %v1886_v62 = vadd.f32 %v3493_v22, %v1869_v30  ;;  %v2730_v26 = vpop.f32.mrf.mxu1 }
 0x19c   : > { %v1892_v32 = vadd.f32 %v3493_v22, %v1875_v38  ;;  %v1843_v47 = vpop.f32.mrf.mxu0 }
 0x19d   : > { %v1896_v14 = vmax.f32 %v1886_v62, 0.0  ;;  %v1870_v37 = vadd.f32 %v1843_v47, %v1701_v48 }
 0x19e   : > { %v1902_v28 = vmax.f32 %v1892_v32, 0.0  ;;  %v2721_v54 = vpop.f32.mrf.mxu0 }
 0x19f   : > { %v2269_v39 = vpack.c.bf16 %v1896_v14, %v1895_v33  ;;  %v1887_v24 = vadd.f32 %v3493_v22, %v1870_v37 }
 0x1a0   : > { %v2284_v31 = vpack.c.bf16 %v1902_v28, %v1901_v50  ;;  %v1846_v58 = vpop.f32.mrf.mxu0 }
 0x1a1   : > { %2286 = vst [vmem:[%s3507_s20 + $0x8] sm:$0xff] %v2269_v39   ;;  %v1871_v3 = vadd.f32 %v1846_v58, %v1702_v0  ;;  %v1897_v43 = vmax.f32 %v1887_v24, 0.0 }
 0x1a2   : > { %2289 = vst [vmem:[%s3507_s20 + $0x20] sm:$0xff] %v2284_v31   ;;  %v2722_v46 = vpop.f32.mrf.mxu0 }
 0x1a3   : > { %v1888_v35 = vadd.f32 %v3493_v22, %v1871_v3 }
 0x1a5   : > { %v1898_v63 = vmax.f32 %v1888_v35, 0.0 }
 0x1a7   : > { %v2274_v44 = vpack.c.bf16 %v1898_v63, %v1897_v43 }
 0x1a9   : > { %2287 = vst [vmem:[%s3507_s20 + $0x10] sm:$0xff] %v2274_v44  }
 0x1aa PF: > { %s13_s12 = sadd.s32 1, %s2860_s12  }
 0x1ab   : > { %p10_p4 = scmp.ge.s32.totalorder %s13_s12, 4  }
 0x1ad   :  { %12 = sbr.rel (!%p10_p4) target bundleno = 1 (0x1), region = 70 }

// kernel: unet_forward.11
= control target key start
LH: loop header
LB: loop body
LE: loop exit
PB: predicated region body
PF: predicated region fallthrough
CT: control target
= control target key end

     0   :  { %s2132_s12 = smov 0   ;;  %s2622_s0 = inlined_call_operand.vmem [shape: bf16[2,20,128], index: 0, kind: input, shape index: {}]   ;;  %s2623_s1 = inlined_call_operand.vmem [shape: bf16[9,128,256], index: 1, kind: input, shape index: {}]   ;;  %s2624_s2 = inlined_call_operand.vmem [shape: f32[1,256], index: 2, kind: input, shape index: {}]   ;;  %s2625_s3 = inlined_call_operand.vmem [shape: bf16[2,8,256], index: 3, kind: output, shape index: {}]  }
   0x1 LB: > { %s1578_s13 = sadd.s32 4294967295, %s2109_s12   ;;  %p1582_p0 = scmp.ge.s32.totalorder %s2109_s12, 1  ;;  %s2109_s12 = sphi %s2132_s12, %s13_s12  }
   0x2   : > { %p137_p1 = scmp.lt.s32.totalorder %s2109_s12, 3 }
   0x4   : > { %p138_p2 = pnand %p1582_p0, %p137_p1 }
   0x5   : > { %p161_p3 = scmp.lt.s32.totalorder (!%p138_p2), %s1578_s13, 1 }
   0x6   : > { %141 = sbr.rel (%p138_p2) target bundleno = 377 (0x179), region = 32 }
   0xb   : > { %v1880_v0 = vld [vmem:[%s2623_s1 + $0xf4] ss:$8 sps:$4 sm:$0xff]   ;;  %v2111_v2 = vmov 0   ;;  %v1884_v3 = vld [vmem:[%s2623_s1 + $0xf0] ss:$8 sps:$4 sm:$0xff]   ;;  %s2627_s13 = smov (!%p161_p3, %s1578_s13), 1 }
   0xc   : > { %v1882_v1 = vld [vmem:[%s2623_s1 + $0x74] ss:$8 sps:$4 sm:$0xff]   ;;  %332 = vmatprep.mubr.bf16.mxu0 %v2111_v2  ;;  %453 = vmatprep.mubr.bf16.mxu1 %v2111_v2  ;;  %v1885_v4 = vld [vmem:[%s2623_s1 + $0x70] ss:$8 sps:$4 sm:$0xff]   ;;  %v1886_v5 = vld [vmem:[%s2623_s1 + $0xe4] ss:$8 sps:$4 sm:$0xff]  }
   0xd   : > { %300 = vmatprep.subr.bf16.mxu0 %v1880_v0  ;;  %421 = vmatprep.subr.bf16.mxu1 %v1882_v1  ;;  %v1888_v6 = vld [vmem:[%s2623_s1 + $0x64] ss:$8 sps:$4 sm:$0xff]   ;;  %v1890_v7 = vld [vmem:[%s2623_s1 + $0xe0] ss:$8 sps:$4 sm:$0xff]   ;;  %v1892_v9 = vld [vmem:[%s2623_s1 + $0xd4] ss:$8 sps:$4 sm:$0xff]  }
   0xe   : > { %301 = vmatpush1.bf16.msra.mxu0 %v1884_v3  ;;  %422 = vmatpush1.bf16.msra.mxu1 %v1885_v4  ;;  %v1891_v8 = vld [vmem:[%s2623_s1 + $0x60] ss:$8 sps:$4 sm:$0xff]   ;;  %v1894_v10 = vld [vmem:[%s2623_s1 + $0x54] ss:$8 sps:$4 sm:$0xff]   ;;  %v1896_v11 = vld [vmem:[%s2623_s1 + $0xd0] ss:$8 sps:$4 sm:$0xff]  }
   0xf   : > { %302 = vmatprep.subr.bf16.mxu0 %v1886_v5  ;;  %423 = vmatprep.subr.bf16.mxu1 %v1888_v6  ;;  %v1897_v12 = vld [vmem:[%s2623_s1 + $0x50] ss:$8 sps:$4 sm:$0xff]   ;;  %v1898_v13 = vld [vmem:[%s2623_s1 + $0xc4] ss:$8 sps:$4 sm:$0xff]   ;;  %v1902_v15 = vld [vmem:[%s2623_s1 + $0xc0] ss:$8 sps:$4 sm:$0xff]  }
  0x10   : > { %v1900_v14 = vld [vmem:[%s2623_s1 + $0x44] ss:$8 sps:$4 sm:$0xff]   ;;  %v1903_v16 = vld [vmem:[%s2623_s1 + $0x40] ss:$8 sps:$4 sm:$0xff]   ;;  %v1904_v17 = vld [vmem:[%s2623_s1 + $0xb4] ss:$8 sps:$4 sm:$0xff]  }
  0x11   : > { %v1906_v18 = vld [vmem:[%s2623_s1 + $0x34] ss:$8 sps:$4 sm:$0xff]   ;;  %s1870_s25 = smul.u32 12, %s2627_s13  ;;  %v1908_v19 = vld [vmem:[%s2623_s1 + $0xb0] ss:$8 sps:$4 sm:$0xff]   ;;  %s1868_s17 = sshll.u32 %s2627_s13, 3 }
  0x12   : > { %303 = vmatpush1.bf16.msra.mxu0 %v1890_v7  ;;  %424 = vmatpush1.bf16.msra.mxu1 %v1891_v8  ;;  %v1909_v20 = vld [vmem:[%s2623_s1 + $0x30] ss:$8 sps:$4 sm:$0xff]   ;;  %v1910_v21 = vld [vmem:[%s2623_s1 + $0xa4] ss:$8 sps:$4 sm:$0xff]   ;;  %v1914_v23 = vld [vmem:[%s2623_s1 + $0xa0] ss:$8 sps:$4 sm:$0xff]   ;;  %s170_s20 = scalar_lea.vmem %s2625_s3, %s1868_s17 }
  0x13   : > { %304 = vmatprep.subr.bf16.mxu0 %v1892_v9  ;;  %425 = vmatprep.subr.bf16.mxu1 %v1894_v10  ;;  %v1912_v22 = vld [vmem:[%s2623_s1 + $0x24] ss:$8 sps:$4 sm:$0xff]   ;;  %s2218_s9 = scalar_lea.vmem %s2622_s0, %s1870_s25  ;;  %v1915_v24 = vld [vmem:[%s2623_s1 + $0x20] ss:$8 sps:$4 sm:$0xff]   ;;  %v1916_v25 = vld [vmem:[%s2623_s1 + $0x94] ss:$8 sps:$4 sm:$0xff]  }
  0x14   : > { %v1918_v26 = vld [vmem:[%s2623_s1 + $0x14] ss:$8 sps:$4 sm:$0xff]   ;;  %v172_v27 = vld [vmem:[%s2218_s9] sm:$0xf]  ;;  %v2234_v28 = vld [vmem:[%s2218_s9 + $0x4] sm:$0x1] }
  0x15   : > { %v1602_v29 = vcombine.low %v172_v27, %v2234_v28  ;;  %v1920_v30 = vld [vmem:[%s2623_s1 + $0x90] ss:$8 sps:$4 sm:$0xff]   ;;  %v1922_v32 = vld [vmem:[%s2623_s1 + $0x84] ss:$8 sps:$4 sm:$0xff]   ;;  %v1926_v35 = vld [vmem:[%s2623_s1 + $0x80] ss:$8 sps:$4 sm:$0xff]  }
  0x16   : > { %305 = vmatpush1.bf16.msra.mxu0 %v1896_v11  ;;  %426 = vmatpush1.bf16.msra.mxu1 %v1897_v12  ;;  %v1921_v31 = vld [vmem:[%s2623_s1 + $0x10] ss:$8 sps:$4 sm:$0xff]   ;;  %v1924_v34 = vld [vmem:[%s2623_s1 + $0x4] ss:$8 sps:$4 sm:$0xff]   ;;  %v1927_v38 = vld [vmem:[%s2623_s1] ss:$8 sps:$4 sm:$0xff]  }
  0x17   : > { %306 = vmatprep.subr.bf16.mxu0 %v1898_v13  ;;  %427 = vmatprep.subr.bf16.mxu1 %v1900_v14  ;;  %v215_v33 = vshll.u32 %v1602_v29, 16  ;;  %v213_v36 = vshrl.u32 %v1602_v29, 16  ;;  %v1931_v39 = vld [vmem:[%s2623_s1 + $0x174] ss:$8 sps:$4 sm:$0xff]   ;;  %v1929_v42 = vld [vmem:[%s2623_s1 + $0x170] ss:$8 sps:$4 sm:$0xff]  }
  0x18   : > { %v1934_v40 = vld [vmem:[%s2623_s1 + $0x1f4] ss:$8 sps:$4 sm:$0xff]   ;;  %v1932_v43 = vld [vmem:[%s2623_s1 + $0x1f0] ss:$8 sps:$4 sm:$0xff]   ;;  %v1937_v44 = vld [vmem:[%s2623_s1 + $0x164] ss:$8 sps:$4 sm:$0xff]  }
  0x19   : > { %v217_v37 = vrot.slane %v215_v33, 1  ;;  %v1940_v45 = vld [vmem:[%s2623_s1 + $0x1e4] ss:$8 sps:$4 sm:$0xff]   ;;  %v1935_v46 = vld [vmem:[%s2623_s1 + $0x160] ss:$8 sps:$4 sm:$0xff]  }
  0x1a   : > { %307 = vmatpush1.bf16.msra.mxu0 %v1902_v15  ;;  %428 = vmatpush1.bf16.msra.mxu1 %v1903_v16  ;;  %v1938_v47 = vld [vmem:[%s2623_s1 + $0x1e0] ss:$8 sps:$4 sm:$0xff]   ;;  %v1943_v48 = vld [vmem:[%s2623_s1 + $0x154] ss:$8 sps:$4 sm:$0xff]   ;;  %v1941_v50 = vld [vmem:[%s2623_s1 + $0x150] ss:$8 sps:$4 sm:$0xff]  }
  0x1b   : > { %308 = vmatprep.subr.bf16.mxu0 %v1904_v17  ;;  %429 = vmatprep.subr.bf16.mxu1 %v1906_v18  ;;  %v218_v41 = vor.u32 %v217_v37, %v213_v36  ;;  %v1946_v49 = vld [vmem:[%s2623_s1 + $0x1d4] ss:$8 sps:$4 sm:$0xff]   ;;  %v1944_v51 = vld [vmem:[%s2623_s1 + $0x1d0] ss:$8 sps:$4 sm:$0xff]   ;;  %v1949_v52 = vld [vmem:[%s2623_s1 + $0x144] ss:$8 sps:$4 sm:$0xff]  }
  0x1c   : > { %v1952_v53 = vld [vmem:[%s2623_s1 + $0x1c4] ss:$8 sps:$4 sm:$0xff]   ;;  %v1947_v54 = vld [vmem:[%s2623_s1 + $0x140] ss:$8 sps:$4 sm:$0xff]   ;;  %v1955_v56 = vld [vmem:[%s2623_s1 + $0x134] ss:$8 sps:$4 sm:$0xff]  }
  0x1d   : > { %v1950_v55 = vld [vmem:[%s2623_s1 + $0x1c0] ss:$8 sps:$4 sm:$0xff]   ;;  %v1958_v57 = vld [vmem:[%s2623_s1 + $0x1b4] ss:$8 sps:$4 sm:$0xff]   ;;  %v1953_v58 = vld [vmem:[%s2623_s1 + $0x130] ss:$8 sps:$4 sm:$0xff]  }
  0x1e   : > { %309 = vmatpush1.bf16.msra.mxu0 %v1908_v19  ;;  %430 = vmatpush1.bf16.msra.mxu1 %v1909_v20  ;;  %v1956_v59 = vld [vmem:[%s2623_s1 + $0x1b0] ss:$8 sps:$4 sm:$0xff]   ;;  %v1961_v60 = vld [vmem:[%s2623_s1 + $0x124] ss:$8 sps:$4 sm:$0xff]   ;;  %v1959_v62 = vld [vmem:[%s2623_s1 + $0x120] ss:$8 sps:$4 sm:$0xff]  }
  0x1f   : > { %310 = vmatprep.subr.bf16.mxu0 %v1910_v21  ;;  %431 = vmatprep.subr.bf16.mxu1 %v1912_v22  ;;  %v1964_v61 = vld [vmem:[%s2623_s1 + $0x1a4] ss:$8 sps:$4 sm:$0xff]   ;;  %v1962_v63 = vld [vmem:[%s2623_s1 + $0x1a0] ss:$8 sps:$4 sm:$0xff]   ;;  %v1967_v0 = vld [vmem:[%s2623_s1 + $0x114] ss:$8 sps:$4 sm:$0xff]  }
  0x20   : > { %v1970_v1 = vld [vmem:[%s2623_s1 + $0x194] ss:$8 sps:$4 sm:$0xff]   ;;  %v1965_v3 = vld [vmem:[%s2623_s1 + $0x110] ss:$8 sps:$4 sm:$0xff]   ;;  %v1973_v5 = vld [vmem:[%s2623_s1 + $0x104] ss:$8 sps:$4 sm:$0xff]  }
  0x21   : > { %v1968_v4 = vld [vmem:[%s2623_s1 + $0x190] ss:$8 sps:$4 sm:$0xff]   ;;  %v462_v6 = vld [vmem:[%s2218_s9] sm:$0xe]  ;;  %v609_v8 = vld [vmem:[%s2218_s9 + $0x4] sm:$0x3] }
  0x22   : > { %311 = vmatpush1.bf16.msra.mxu0 %v1914_v23  ;;  %432 = vmatpush1.bf16.msra.mxu1 %v1915_v24  ;;  %v608_v7 = vld [vmem:[%s2218_s9] sm:$0xc]  ;;  %v1976_v9 = vld [vmem:[%s2623_s1 + $0x184] ss:$8 sps:$4 sm:$0xff]   ;;  %v1651_v11 = vcombine.low %v462_v6, %v2234_v28  ;;  %v1980_v14 = vld [vmem:[%s2623_s1 + $0x274] ss:$8 sps:$4 sm:$0xff]  }
  0x23   : > { %312 = vmatprep.subr.bf16.mxu0 %v1916_v25  ;;  %433 = vmatprep.subr.bf16.mxu1 %v1918_v26  ;;  %v1971_v10 = vld [vmem:[%s2623_s1 + $0x100] ss:$8 sps:$4 sm:$0xff]   ;;  %v1684_v12 = vcombine.low %v608_v7, %v609_v8  ;;  %v1985_v15 = vld [vmem:[%s2623_s1 + $0x2f4] ss:$8 sps:$4 sm:$0xff]   ;;  %v1978_v17 = vld [vmem:[%s2623_s1 + $0x270] ss:$8 sps:$4 sm:$0xff]  }
  0x24   : > { %v1974_v13 = vld [vmem:[%s2623_s1 + $0x180] ss:$8 sps:$4 sm:$0xff]   ;;  %v483_v16 = vrot.slane %v1651_v11, 1  ;;  %v1983_v19 = vld [vmem:[%s2623_s1 + $0x2f0] ss:$8 sps:$4 sm:$0xff]  }
  0x25   : > { %v632_v18 = vrot.slane %v1684_v12, 2  ;;  %v1988_v20 = vld [vmem:[%s2623_s1 + $0x264] ss:$8 sps:$4 sm:$0xff]   ;;  %v1986_v22 = vld [vmem:[%s2623_s1 + $0x260] ss:$8 sps:$4 sm:$0xff]  }
  0x26   : > { %313 = vmatpush1.bf16.msra.mxu0 %v1920_v30  ;;  %434 = vmatpush1.bf16.msra.mxu1 %v1921_v31  ;;  %v1991_v21 = vld [vmem:[%s2623_s1 + $0x2e4] ss:$8 sps:$4 sm:$0xff]   ;;  %v1989_v23 = vld [vmem:[%s2623_s1 + $0x2e0] ss:$8 sps:$4 sm:$0xff]   ;;  %v1994_v24 = vld [vmem:[%s2623_s1 + $0x254] ss:$8 sps:$4 sm:$0xff]  }
  0x27   : > { %314 = vmatprep.subr.bf16.mxu0 %v1922_v32  ;;  %435 = vmatprep.subr.bf16.mxu1 %v1924_v34  ;;  %v1997_v25 = vld [vmem:[%s2623_s1 + $0x2d4] ss:$8 sps:$4 sm:$0xff]   ;;  %v1992_v26 = vld [vmem:[%s2623_s1 + $0x250] ss:$8 sps:$4 sm:$0xff]   ;;  %v2000_v28 = vld [vmem:[%s2623_s1 + $0x244] ss:$8 sps:$4 sm:$0xff]  }
  0x28   : > { %v2003_v29 = vld [vmem:[%s2623_s1 + $0x2c4] ss:$8 sps:$4 sm:$0xff]   ;;  %v1998_v30 = vld [vmem:[%s2623_s1 + $0x240] ss:$8 sps:$4 sm:$0xff]   ;;  %v2006_v32 = vld [vmem:[%s2623_s1 + $0x234] ss:$8 sps:$4 sm:$0xff]  }
  0x29   : > { %v2001_v31 = vld [vmem:[%s2623_s1 + $0x2c0] ss:$8 sps:$4 sm:$0xff]   ;;  %v2009_v33 = vld [vmem:[%s2623_s1 + $0x2b4] ss:$8 sps:$4 sm:$0xff]   ;;  %v757_v34 = vld [vmem:[%s2218_s9 + $0x4] sm:$0x7] }
  0x2a   : > { %315 = vmatpush1.bf16.msra.mxu0 %v1926_v35  ;;  %436 = vmatpush1.bf16.msra.mxu1 %v1927_v38  ;;  %v2004_v35 = vld [vmem:[%s2623_s1 + $0x230] ss:$8 sps:$4 sm:$0xff]   ;;  %v2012_v37 = vld [vmem:[%s2623_s1 + $0x224] ss:$8 sps:$4 sm:$0xff]   ;;  %v2055_v11 = vld [vmem:[%s2623_s1 + $0x334] ss:$8 sps:$4 sm:$0xff]  }
  0x2b   : > { %565 = vmatprep.subr.bf16.mxu0 %v1931_v39  ;;  %714 = vmatprep.subr.bf16.mxu1 %v1934_v40  ;;  %v2007_v36 = vld [vmem:[%s2623_s1 + $0x2b0] ss:$8 sps:$4 sm:$0xff]   ;;  %v2015_v38 = vld [vmem:[%s2623_s1 + $0x2a4] ss:$8 sps:$4 sm:$0xff]   ;;  %v1717_v39 = vcombine.low %v608_v7, %v757_v34  ;;  %v2010_v40 = vld [vmem:[%s2623_s1 + $0x220] ss:$8 sps:$4 sm:$0xff]  }
  0x2c   : > { %v2044_v6 = vld [vmem:[%s2623_s1 + $0x3d0] ss:$8 sps:$4 sm:$0xff]   ;;  %v2049_v7 = vld [vmem:[%s2623_s1 + $0x344] ss:$8 sps:$4 sm:$0xff]   ;;  %v2058_v12 = vld [vmem:[%s2623_s1 + $0x3b4] ss:$8 sps:$4 sm:$0xff]  }
  0x2d   : > { %333 = vmatmul.mubr.bf16.vlgmr.msra.gmra.mxu0 %v218_v41  ;;  %454 = vmatmul.mubr.bf16.vlgmr.msra.gmra.mxu1 %v172_v27  ;;  %v1995_v27 = vld [vmem:[%s2623_s1 + $0x2d0] ss:$8 sps:$4 sm:$0xff]   ;;  %v2013_v41 = vld [vmem:[%s2623_s1 + $0x2a0] ss:$8 sps:$4 sm:$0xff]   ;;  %v2052_v8 = vld [vmem:[%s2623_s1 + $0x3c4] ss:$8 sps:$4 sm:$0xff]  }
  0x2e   : > { %566 = vmatpush1.bf16.msra.mxu0 %v1929_v42  ;;  %715 = vmatpush1.bf16.msra.mxu1 %v1932_v43  ;;  %v2018_v42 = vld [vmem:[%s2623_s1 + $0x214] ss:$8 sps:$4 sm:$0xff]  }
  0x2f   : > { %567 = vmatprep.subr.bf16.mxu0 %v1937_v44  ;;  %716 = vmatprep.subr.bf16.mxu1 %v1940_v45  ;;  %v2021_v43 = vld [vmem:[%s2623_s1 + $0x294] ss:$8 sps:$4 sm:$0xff]   ;;  %v779_v44 = vshrl.u32 %v1717_v39, 16  ;;  %v2016_v45 = vld [vmem:[%s2623_s1 + $0x210] ss:$8 sps:$4 sm:$0xff]  }
  0x30   : > { %597 = vmatprep.mubr.bf16.mxu0 %v2111_v2  ;;  %746 = vmatprep.mubr.bf16.mxu1 %v2111_v2 }
  0x32   : > { %568 = vmatpush1.bf16.msra.mxu0 %v1935_v46  ;;  %717 = vmatpush1.bf16.msra.mxu1 %v1938_v47  ;;  %v2019_v46 = vld [vmem:[%s2623_s1 + $0x290] ss:$8 sps:$4 sm:$0xff]   ;;  %v782_v47 = vshll.u32 %v1717_v39, 16  ;;  %v2086_v39 = vld [vmem:[%s2623_s1 + $0x454] ss:$8 sps:$4 sm:$0xff]  }
  0x33   : > { %569 = vmatprep.subr.bf16.mxu0 %v1943_v48  ;;  %718 = vmatprep.subr.bf16.mxu1 %v1946_v49  ;;  %v910_v48 = vld [vmem:[%s2218_s9] sm:$0x8]  ;;  %v2024_v49 = vld [vmem:[%s2623_s1 + $0x204] ss:$8 sps:$4 sm:$0xff]  }
  0x36   : > { %570 = vmatpush1.bf16.msra.mxu0 %v1941_v50  ;;  %719 = vmatpush1.bf16.msra.mxu1 %v1944_v51  ;;  %v2027_v50 = vld [vmem:[%s2623_s1 + $0x284] ss:$8 sps:$4 sm:$0xff]   ;;  %v2022_v51 = vld [vmem:[%s2623_s1 + $0x200] ss:$8 sps:$4 sm:$0xff]  }
  0x37   : > { %571 = vmatprep.subr.bf16.mxu0 %v1949_v52  ;;  %720 = vmatprep.subr.bf16.mxu1 %v1952_v53  ;;  %v781_v52 = vrot.slane %v779_v44, 2  ;;  %v784_v53 = vrot.slane %v782_v47, 3  ;;  %v2095_v44 = vld [vmem:[%s2623_s1 + $0x424] ss:$8 sps:$4 sm:$0xff]   ;;  %v2096_v47 = vld [vmem:[%s2623_s1 + $0x410] ss:$8 sps:$4 sm:$0xff]  }
  0x3a   : > { %572 = vmatpush1.bf16.msra.mxu0 %v1947_v54  ;;  %721 = vmatpush1.bf16.msra.mxu1 %v1950_v55  ;;  %v1750_v54 = vcombine.low %v910_v48, %v757_v34  ;;  %v2025_v55 = vld [vmem:[%s2623_s1 + $0x280] ss:$8 sps:$4 sm:$0xff]   ;;  %v1352_v48 = vld [vmem:[%s2218_s9 + $0x4] sm:$0xe] }
  0x3b   : > { %573 = vmatprep.subr.bf16.mxu0 %v1955_v56  ;;  %722 = vmatprep.subr.bf16.mxu1 %v1958_v57  ;;  %v2030_v56 = vld [vmem:[%s2623_s1 + $0x374] ss:$8 sps:$4 sm:$0xff]  }
  0x3c   : > { %v2034_v57 = vld [vmem:[%s2623_s1 + $0x3f4] ss:$8 sps:$4 sm:$0xff]  }
  0x3e   : > { %574 = vmatpush1.bf16.msra.mxu0 %v1953_v58  ;;  %723 = vmatpush1.bf16.msra.mxu1 %v1956_v59  ;;  %v785_v58 = vor.u32 %v784_v53, %v781_v52  ;;  %v2028_v59 = vld [vmem:[%s2623_s1 + $0x370] ss:$8 sps:$4 sm:$0xff]  }
  0x3f   : > { %575 = vmatprep.subr.bf16.mxu0 %v1961_v60  ;;  %724 = vmatprep.subr.bf16.mxu1 %v1964_v61  ;;  %v931_v60 = vrot.slane %v1750_v54, 3  ;;  %v2032_v61 = vld [vmem:[%s2623_s1 + $0x3f0] ss:$8 sps:$4 sm:$0xff]  }
  0x42   : > { %576 = vmatpush1.bf16.msra.mxu0 %v1959_v62  ;;  %725 = vmatpush1.bf16.msra.mxu1 %v1962_v63  ;;  %v2037_v62 = vld [vmem:[%s2623_s1 + $0x364] ss:$8 sps:$4 sm:$0xff]  }
  0x43   : > { %577 = vmatprep.subr.bf16.mxu0 %v1967_v0  ;;  %726 = vmatprep.subr.bf16.mxu1 %v1970_v1  ;;  %v2040_v63 = vld [vmem:[%s2623_s1 + $0x3e4] ss:$8 sps:$4 sm:$0xff]   ;;  %v2035_v0 = vld [vmem:[%s2623_s1 + $0x360] ss:$8 sps:$4 sm:$0xff]  }
  0x44   : > { %v2038_v1 = vld [vmem:[%s2623_s1 + $0x3e0] ss:$8 sps:$4 sm:$0xff]  }
  0x46   : > { %578 = vmatpush1.bf16.msra.mxu0 %v1965_v3  ;;  %727 = vmatpush1.bf16.msra.mxu1 %v1968_v4  ;;  %v2043_v3 = vld [vmem:[%s2623_s1 + $0x354] ss:$8 sps:$4 sm:$0xff]  }
  0x47   : > { %579 = vmatprep.subr.bf16.mxu0 %v1973_v5  ;;  %728 = vmatprep.subr.bf16.mxu1 %v1976_v9  ;;  %v2046_v4 = vld [vmem:[%s2623_s1 + $0x3d4] ss:$8 sps:$4 sm:$0xff]   ;;  %v2041_v5 = vld [vmem:[%s2623_s1 + $0x350] ss:$8 sps:$4 sm:$0xff]   ;;  %v2047_v9 = vld [vmem:[%s2623_s1 + $0x340] ss:$8 sps:$4 sm:$0xff]  }
  0x4a   : > { %580 = vmatpush1.bf16.msra.mxu0 %v1971_v10  ;;  %729 = vmatpush1.bf16.msra.mxu1 %v1974_v13  ;;  %v2050_v10 = vld [vmem:[%s2623_s1 + $0x3c0] ss:$8 sps:$4 sm:$0xff]   ;;  %v2053_v13 = vld [vmem:[%s2623_s1 + $0x330] ss:$8 sps:$4 sm:$0xff]  }
  0x4b   : > { %867 = vmatprep.subr.bf16.mxu0 %v1980_v14  ;;  %1013 = vmatprep.subr.bf16.mxu1 %v1985_v15  ;;  %v2056_v14 = vld [vmem:[%s2623_s1 + $0x3b0] ss:$8 sps:$4 sm:$0xff]   ;;  %v1197_v15 = vld [vmem:[%s2218_s9 + $0x4] sm:$0xf] }
  0x4d   : > { %598 = vmatmul.mubr.bf16.vlgmr.msra.gmra.mxu0 %v483_v16  ;;  %747 = vmatmul.mubr.bf16.vlgmr.msra.gmra.mxu1 %v632_v18  ;;  %v2521_v16 = vld [vmem:[%s2218_s9 + $0x8] sm:$0x1]  ;;  %v2064_v18 = vld [vmem:[%s2623_s1 + $0x3a4] ss:$8 sps:$4 sm:$0xff]  }
  0x4e   : > { %868 = vmatpush1.bf16.msra.mxu0 %v1978_v17  ;;  %1014 = vmatpush1.bf16.msra.mxu1 %v1983_v19  ;;  %v2061_v17 = vld [vmem:[%s2623_s1 + $0x324] ss:$8 sps:$4 sm:$0xff]   ;;  %v1815_v19 = vcombine.low %v1197_v15, %v2521_v16 }
  0x4f   : > { %869 = vmatprep.subr.bf16.mxu0 %v1988_v20  ;;  %1015 = vmatprep.subr.bf16.mxu1 %v1991_v21  ;;  %v2059_v20 = vld [vmem:[%s2623_s1 + $0x320] ss:$8 sps:$4 sm:$0xff]  }
  0x50   : > { %899 = vmatprep.mubr.bf16.mxu0 %v2111_v2  ;;  %1045 = vmatprep.mubr.bf16.mxu1 %v2111_v2  ;;  %v2062_v21 = vld [vmem:[%s2623_s1 + $0x3a0] ss:$8 sps:$4 sm:$0xff]  }
  0x52   : > { %870 = vmatpush1.bf16.msra.mxu0 %v1986_v22  ;;  %1016 = vmatpush1.bf16.msra.mxu1 %v1989_v23  ;;  %v2067_v22 = vld [vmem:[%s2623_s1 + $0x314] ss:$8 sps:$4 sm:$0xff]  }
  0x53   : > { %871 = vmatprep.subr.bf16.mxu0 %v1994_v24  ;;  %1017 = vmatprep.subr.bf16.mxu1 %v1997_v25  ;;  %v2070_v23 = vld [vmem:[%s2623_s1 + $0x394] ss:$8 sps:$4 sm:$0xff]   ;;  %v1224_v24 = vshll.u32 %v1815_v19, 16  ;;  %v2065_v25 = vld [vmem:[%s2623_s1 + $0x310] ss:$8 sps:$4 sm:$0xff]  }
  0x56   : > { %872 = vmatpush1.bf16.msra.mxu0 %v1992_v26  ;;  %1018 = vmatpush1.bf16.msra.mxu1 %v1995_v27  ;;  %v2068_v26 = vld [vmem:[%s2623_s1 + $0x390] ss:$8 sps:$4 sm:$0xff]   ;;  %v2073_v27 = vld [vmem:[%s2623_s1 + $0x304] ss:$8 sps:$4 sm:$0xff]  }
  0x57   : > { %873 = vmatprep.subr.bf16.mxu0 %v2000_v28  ;;  %1019 = vmatprep.subr.bf16.mxu1 %v2003_v29  ;;  %v2076_v28 = vld [vmem:[%s2623_s1 + $0x384] ss:$8 sps:$4 sm:$0xff]   ;;  %v1222_v29 = vshrl.u32 %v1815_v19, 16 }
  0x5a   : > { %874 = vmatpush1.bf16.msra.mxu0 %v1998_v30  ;;  %1020 = vmatpush1.bf16.msra.mxu1 %v2001_v31  ;;  %v1226_v30 = vrot.slane %v1224_v24, 1  ;;  %v2071_v31 = vld [vmem:[%s2623_s1 + $0x300] ss:$8 sps:$4 sm:$0xff]  }
  0x5b   : > { %875 = vmatprep.subr.bf16.mxu0 %v2006_v32  ;;  %1021 = vmatprep.subr.bf16.mxu1 %v2009_v33  ;;  %v2074_v32 = vld [vmem:[%s2623_s1 + $0x380] ss:$8 sps:$4 sm:$0xff]   ;;  %v2079_v33 = vld [vmem:[%s2623_s1 + $0x474] ss:$8 sps:$4 sm:$0xff]  }
  0x5c   : > { %v1227_v34 = vor.u32 %v1226_v30, %v1222_v29 }
  0x5e   : > { %876 = vmatpush1.bf16.msra.mxu0 %v2004_v35  ;;  %1022 = vmatpush1.bf16.msra.mxu1 %v2007_v36  ;;  %v1056_v35 = vld [vmem:[%s2218_s9 + $0x4] sm:$0xf]  ;;  %v2077_v36 = vld [vmem:[%s2623_s1 + $0x470] ss:$8 sps:$4 sm:$0xff]  }
  0x5f   : > { %877 = vmatprep.subr.bf16.mxu0 %v2012_v37  ;;  %1023 = vmatprep.subr.bf16.mxu1 %v2015_v38  ;;  %v2083_v37 = vld [vmem:[%s2623_s1 + $0x464] ss:$8 sps:$4 sm:$0xff]   ;;  %v2081_v38 = vld [vmem:[%s2623_s1 + $0x460] ss:$8 sps:$4 sm:$0xff]  }
  0x62   : > { %878 = vmatpush1.bf16.msra.mxu0 %v2010_v40  ;;  %1024 = vmatpush1.bf16.msra.mxu1 %v2013_v41  ;;  %v2084_v40 = vld [vmem:[%s2623_s1 + $0x450] ss:$8 sps:$4 sm:$0xff]   ;;  %v2089_v41 = vld [vmem:[%s2623_s1 + $0x444] ss:$8 sps:$4 sm:$0xff]  }
  0x63   : > { %879 = vmatprep.subr.bf16.mxu0 %v2018_v42  ;;  %1025 = vmatprep.subr.bf16.mxu1 %v2021_v43  ;;  %v2092_v42 = vld [vmem:[%s2623_s1 + $0x434] ss:$8 sps:$4 sm:$0xff]   ;;  %v2090_v43 = vld [vmem:[%s2623_s1 + $0x430] ss:$8 sps:$4 sm:$0xff]  }
  0x66   : > { %880 = vmatpush1.bf16.msra.mxu0 %v2016_v45  ;;  %1026 = vmatpush1.bf16.msra.mxu1 %v2019_v46  ;;  %v2093_v45 = vld [vmem:[%s2623_s1 + $0x420] ss:$8 sps:$4 sm:$0xff]   ;;  %v2098_v46 = vld [vmem:[%s2623_s1 + $0x414] ss:$8 sps:$4 sm:$0xff]  }
  0x67   : > { %881 = vmatprep.subr.bf16.mxu0 %v2024_v49  ;;  %1027 = vmatprep.subr.bf16.mxu1 %v2027_v50  ;;  %v2101_v49 = vld [vmem:[%s2623_s1 + $0x404] ss:$8 sps:$4 sm:$0xff]   ;;  %v1848_v50 = vcombine.low %v1352_v48, %v2521_v16 }
  0x69   : > { %v1373_v52 = vrot.slane %v1848_v50, 1 }
  0x6a   : > { %882 = vmatpush1.bf16.msra.mxu0 %v2022_v51  ;;  %1028 = vmatpush1.bf16.msra.mxu1 %v2025_v55  ;;  %v2099_v51 = vld [vmem:[%s2623_s1 + $0x400] ss:$8 sps:$4 sm:$0xff]  }
  0x6b   : > { %1154 = vmatprep.subr.bf16.mxu0 %v2030_v56  ;;  %1309 = vmatprep.subr.bf16.mxu1 %v2034_v57 }
  0x6d   : > { %900 = vmatmul.mubr.bf16.vlgmr.msra.gmra.mxu0 %v785_v58  ;;  %1046 = vmatmul.mubr.bf16.vlgmr.msra.gmra.mxu1 %v931_v60 }
  0x6e   : > { %1155 = vmatpush1.bf16.msra.mxu0 %v2028_v59  ;;  %1310 = vmatpush1.bf16.msra.mxu1 %v2032_v61 }
  0x6f   : > { %1156 = vmatprep.subr.bf16.mxu0 %v2037_v62  ;;  %1311 = vmatprep.subr.bf16.mxu1 %v2040_v63 }
  0x70   : > { %1186 = vmatprep.mubr.bf16.mxu0 %v2111_v2  ;;  %1341 = vmatprep.mubr.bf16.mxu1 %v2111_v2 }
  0x72   : > { %1157 = vmatpush1.bf16.msra.mxu0 %v2035_v0  ;;  %1312 = vmatpush1.bf16.msra.mxu1 %v2038_v1 }
  0x73   : > { %1158 = vmatprep.subr.bf16.mxu0 %v2043_v3  ;;  %1313 = vmatprep.subr.bf16.mxu1 %v2046_v4 }
  0x76   : > { %1159 = vmatpush1.bf16.msra.mxu0 %v2041_v5  ;;  %1314 = vmatpush1.bf16.msra.mxu1 %v2044_v6 }
  0x77   : > { %1160 = vmatprep.subr.bf16.mxu0 %v2049_v7  ;;  %1315 = vmatprep.subr.bf16.mxu1 %v2052_v8 }
  0x7a   : > { %1161 = vmatpush1.bf16.msra.mxu0 %v2047_v9  ;;  %1316 = vmatpush1.bf16.msra.mxu1 %v2050_v10 }
  0x7b   : > { %1162 = vmatprep.subr.bf16.mxu0 %v2055_v11  ;;  %1317 = vmatprep.subr.bf16.mxu1 %v2058_v12 }
  0x7e   : > { %1163 = vmatpush1.bf16.msra.mxu0 %v2053_v13  ;;  %1318 = vmatpush1.bf16.msra.mxu1 %v2056_v14 }
  0x7f   : > { %1164 = vmatprep.subr.bf16.mxu0 %v2061_v17  ;;  %1319 = vmatprep.subr.bf16.mxu1 %v2064_v18 }
  0x82   : > { %1165 = vmatpush1.bf16.msra.mxu0 %v2059_v20  ;;  %1320 = vmatpush1.bf16.msra.mxu1 %v2062_v21 }
  0x83   : > { %1166 = vmatprep.subr.bf16.mxu0 %v2067_v22  ;;  %1321 = vmatprep.subr.bf16.mxu1 %v2070_v23 }
  0x86   : > { %1167 = vmatpush1.bf16.msra.mxu0 %v2065_v25  ;;  %1322 = vmatpush1.bf16.msra.mxu1 %v2068_v26 }
  0x87   : > { %1168 = vmatprep.subr.bf16.mxu0 %v2073_v27  ;;  %1323 = vmatprep.subr.bf16.mxu1 %v2076_v28  ;;  %v1500_v28 = vlaneseq }
  0x8a   : > { %1169 = vmatpush1.bf16.msra.mxu0 %v2071_v31  ;;  %1324 = vmatpush1.bf16.msra.mxu1 %v2074_v32  ;;  %v1501_v31 = vshrl.u32 %v1500_v28, 7 }
  0x8b   : > { %1455 = vmatprep.subr.bf16.mxu0 %v2079_v33 }
  0x8d   : > { %1187 = vmatmul.mubr.bf16.vlgmr.msra.gmra.mxu0 %v1056_v35  ;;  %1342 = vmatmul.mubr.bf16.vlgmr.msra.gmra.mxu1 %v1227_v34  ;;  %v1502_v35 = vsub.s32 0, %v1501_v31 }
  0x8e   : > { %1456 = vmatpush1.bf16.msra.mxu0 %v2077_v36  ;;  %1487 = vmatprep.mubr.bf16.mxu0 %v2111_v2  ;;  %v2087_v2 = vld [vmem:[%s2623_s1 + $0x440] ss:$8 sps:$4 sm:$0xff]  }
  0x8f   : > { %1457 = vmatprep.subr.bf16.mxu0 %v2083_v37  ;;  %v1498_v36 = vld [vmem:[%s2624_s2] sm:$0x3] }
  0x92   : > { %1458 = vmatpush1.bf16.msra.mxu0 %v2081_v38  ;;  %v1506_v38 = vsub.s32 1, %v1501_v31 }
  0x93   : > { %1459 = vmatprep.subr.bf16.mxu0 %v2086_v39 }
  0x96   : > { %1460 = vmatpush1.bf16.msra.mxu0 %v2084_v40  ;;  %v1503_v40 = vrot.slane %v1498_v36, %v1502_v35 }
  0x97   : > { %1461 = vmatprep.subr.bf16.mxu0 %v2089_v41 }
  0x9a   : > { %1462 = vmatpush1.bf16.msra.mxu0 %v2087_v2 }
  0x9b   : > { %1463 = vmatprep.subr.bf16.mxu0 %v2092_v42 }
  0x9e   : > { %1464 = vmatpush1.bf16.msra.mxu0 %v2090_v43  ;;  %v1507_v43 = vrot.slane %v1498_v36, %v1506_v38 }
  0x9f   : > { %1465 = vmatprep.subr.bf16.mxu0 %v2095_v44 }
  0xa2   : > { %1466 = vmatpush1.bf16.msra.mxu0 %v2093_v45 }
  0xa3   : > { %1467 = vmatprep.subr.bf16.mxu0 %v2098_v46 }
  0xa6   : > { %1468 = vmatpush1.bf16.msra.mxu0 %v2096_v47 }
  0xa7   : > { %1469 = vmatprep.subr.bf16.mxu0 %v2101_v49 }
  0xaa   : > { %1470 = vmatpush1.bf16.msra.mxu0 %v2099_v51 }
  0xad   : > { %1488 = vmatmul.mubr.bf16.vlgmr.msra.gmra.mxu0 %v1373_v52 }
  0xed   : > { %v334_v53 = vpop.f32.mrf.mxu0  ;;  %v455_v54 = vpop.f32.mrf.mxu1 }
  0xee   : > { %v456_v55 = vadd.f32 %v455_v54, %v334_v53 }
  0xef   : > { %v336_v56 = vpop.f32.mrf.mxu0  ;;  %v457_v57 = vpop.f32.mrf.mxu1 }
  0xf0   : > { %v458_v58 = vadd.f32 %v457_v57, %v336_v56 }
  0xf1   : > { %v338_v59 = vpop.f32.mrf.mxu0  ;;  %v459_v60 = vpop.f32.mrf.mxu1 }
  0xf3   : > { %v339_v61 = vpop.f32.mrf.mxu0  ;;  %v460_v62 = vpop.f32.mrf.mxu1 }
 0x10d   : > { %v599_v63 = vpop.f32.mrf.mxu0  ;;  %v748_v0 = vpop.f32.mrf.mxu1 }
 0x10e   : > { %v606_v1 = vadd.f32 %v599_v63, %v456_v55 }
 0x10f   : > { %v601_v3 = vpop.f32.mrf.mxu0  ;;  %v750_v4 = vpop.f32.mrf.mxu1 }
 0x110   : > { %v607_v5 = vadd.f32 %v601_v3, %v458_v58  ;;  %v755_v6 = vadd.f32 %v748_v0, %v606_v1 }
 0x111   : > { %v603_v7 = vpop.f32.mrf.mxu0  ;;  %v752_v8 = vpop.f32.mrf.mxu1 }
 0x112   : > { %v756_v9 = vadd.f32 %v750_v4, %v607_v5 }
 0x113   : > { %v604_v10 = vpop.f32.mrf.mxu0  ;;  %v753_v11 = vpop.f32.mrf.mxu1 }
 0x12d   : > { %v901_v12 = vpop.f32.mrf.mxu0  ;;  %v1047_v13 = vpop.f32.mrf.mxu1 }
 0x12e   : > { %v908_v29 = vadd.f32 %v901_v12, %v755_v6 }
 0x12f   : > { %v903_v14 = vpop.f32.mrf.mxu0  ;;  %v1049_v15 = vpop.f32.mrf.mxu1 }
 0x130   : > { %v909_v30 = vadd.f32 %v903_v14, %v756_v9  ;;  %v1054_v32 = vadd.f32 %v1047_v13, %v908_v29 }
 0x131   : > { %v905_v16 = vpop.f32.mrf.mxu0  ;;  %v1051_v17 = vpop.f32.mrf.mxu1 }
 0x132   : > { %v1055_v33 = vadd.f32 %v1049_v15, %v909_v30 }
 0x133   : > { %v906_v18 = vpop.f32.mrf.mxu0  ;;  %v1052_v19 = vpop.f32.mrf.mxu1 }
 0x14d   : > { %v1188_v20 = vpop.f32.mrf.mxu0  ;;  %v1343_v21 = vpop.f32.mrf.mxu1 }
 0x14e   : > { %v1195_v34 = vadd.f32 %v1188_v20, %v1054_v32 }
 0x14f   : > { %v1190_v22 = vpop.f32.mrf.mxu0  ;;  %v1345_v23 = vpop.f32.mrf.mxu1 }
 0x150   : > { %v1196_v37 = vadd.f32 %v1190_v22, %v1055_v33  ;;  %v1350_v39 = vadd.f32 %v1343_v21, %v1195_v34 }
 0x151   : > { %v1192_v24 = vpop.f32.mrf.mxu0  ;;  %v1347_v25 = vpop.f32.mrf.mxu1 }
 0x152   : > { %v1351_v2 = vadd.f32 %v1345_v23, %v1196_v37 }
 0x153   : > { %v1193_v26 = vpop.f32.mrf.mxu0  ;;  %v1348_v27 = vpop.f32.mrf.mxu1 }
 0x16d   : > { %v1489_v41 = vpop.f32.mrf.mxu0 }
 0x16e   : > { %v1496_v42 = vadd.f32 %v1489_v41, %v1350_v39 }
 0x16f   : > { %v1491_v44 = vpop.f32.mrf.mxu0 }
 0x170   : > { %v1510_v45 = vadd.f32 %v1503_v40, %v1496_v42  ;;  %v1497_v46 = vadd.f32 %v1491_v44, %v1351_v2 }
 0x171   : > { %v1493_v47 = vpop.f32.mrf.mxu0 }
 0x172   : > { %v1511_v48 = vadd.f32 %v1507_v43, %v1497_v46  ;;  %v1512_v50 = vmax.f32 %v1510_v45, 0.0 }
 0x173   : > { %v1494_v49 = vpop.f32.mrf.mxu0 }
 0x174   : > { %v1513_v51 = vmax.f32 %v1511_v48, 0.0 }
 0x176   : > { %v1869_v52 = vpack.c.bf16 %v1513_v51, %v1512_v50 }
 0x178   : > { %1522 = vst [vmem:[%s170_s20] sm:$0xff] %v1869_v52 }
 0x179 PF: > { %s13_s12 = sadd.s32 1, %s2109_s12  }
 0x17a   : > { %p10_p4 = scmp.ge.s32.totalorder %s13_s12, 4  }
 0x17c   :  { %12 = sbr.rel (!%p10_p4) target bundleno = 1 (0x1), region = 70 }

// kernel: unet_forward.13
= control target key start
LH: loop header
LB: loop body
LE: loop exit
PB: predicated region body
PF: predicated region fallthrough
CT: control target
= control target key end

     0   :  { %s2242_s18 = smov 0   ;;  %s2706_s0 = inlined_call_operand.vmem [shape: bf16[2,30,128], index: 0, kind: input, shape index: {}]   ;;  %s2707_s1 = inlined_call_operand.vmem [shape: bf16[2,30,128], index: 1, kind: input, shape index: {}]   ;;  %s2708_s2 = inlined_call_operand.vmem [shape: bf16[4,128,256], index: 2, kind: input, shape index: {}]   ;;  %s2709_s3 = inlined_call_operand.vmem [shape: bf16[4,128,256], index: 3, kind: input, shape index: {}]   ;;  %s2710_s4 = inlined_call_operand.vmem [shape: f32[1,256], index: 4, kind: input, shape index: {}]   ;;  %s2711_s5 = inlined_call_operand.vmem [shape: bf16[2,20,256], index: 5, kind: output, shape index: {}]  }
   0x1 LB: > { %s1733_s19 = sadd.s32 4294967295, %s2209_s18   ;;  %p1737_p0 = scmp.ge.s32.totalorder %s2209_s18, 1  ;;  %s2209_s18 = sphi %s2242_s18, %s15_s18  }
   0x2   : > { %p197_p1 = scmp.lt.s32.totalorder %s2209_s18, 3 }
   0x4   : > { %p198_p2 = pnand %p1737_p0, %p197_p1 }
   0x5   : > { %p230_p3 = scmp.lt.s32.totalorder (!%p198_p2), %s1733_s19, 1 }
   0x6   : > { %201 = sbr.rel (%p198_p2) target bundleno = 355 (0x163), region = 40 }
   0xb   : > { %v1999_v0 = vld [vmem:[%s2708_s2 + $0xf4] ss:$8 sps:$4 sm:$0xff]   ;;  %v2211_v2 = vmov 0   ;;  %v2003_v3 = vld [vmem:[%s2708_s2 + $0xf0] ss:$8 sps:$4 sm:$0xff]   ;;  %s2713_s19 = smov (!%p230_p3, %s1733_s19), 1 }
   0xc   : > { %v2001_v1 = vld [vmem:[%s2708_s2 + $0x74] ss:$8 sps:$4 sm:$0xff]   ;;  %421 = vmatprep.mubr.bf16.mxu0 %v2211_v2  ;;  %557 = vmatprep.mubr.bf16.mxu1 %v2211_v2  ;;  %v2004_v4 = vld [vmem:[%s2708_s2 + $0x70] ss:$8 sps:$4 sm:$0xff]   ;;  %v2005_v5 = vld [vmem:[%s2708_s2 + $0xe4] ss:$8 sps:$4 sm:$0xff]  }
   0xd   : > { %389 = vmatprep.subr.bf16.mxu0 %v1999_v0  ;;  %525 = vmatprep.subr.bf16.mxu1 %v2001_v1  ;;  %v2007_v6 = vld [vmem:[%s2708_s2 + $0x64] ss:$8 sps:$4 sm:$0xff]   ;;  %v2009_v7 = vld [vmem:[%s2708_s2 + $0xe0] ss:$8 sps:$4 sm:$0xff]   ;;  %v2011_v9 = vld [vmem:[%s2708_s2 + $0xd4] ss:$8 sps:$4 sm:$0xff]  }
   0xe   : > { %390 = vmatpush1.bf16.msra.mxu0 %v2003_v3  ;;  %526 = vmatpush1.bf16.msra.mxu1 %v2004_v4  ;;  %v2010_v8 = vld [vmem:[%s2708_s2 + $0x60] ss:$8 sps:$4 sm:$0xff]   ;;  %v2013_v10 = vld [vmem:[%s2708_s2 + $0x54] ss:$8 sps:$4 sm:$0xff]   ;;  %v2015_v11 = vld [vmem:[%s2708_s2 + $0xd0] ss:$8 sps:$4 sm:$0xff]  }
   0xf   : > { %391 = vmatprep.subr.bf16.mxu0 %v2005_v5  ;;  %527 = vmatprep.subr.bf16.mxu1 %v2007_v6  ;;  %v2016_v12 = vld [vmem:[%s2708_s2 + $0x50] ss:$8 sps:$4 sm:$0xff]   ;;  %v2017_v13 = vld [vmem:[%s2708_s2 + $0xc4] ss:$8 sps:$4 sm:$0xff]   ;;  %v2021_v15 = vld [vmem:[%s2708_s2 + $0xc0] ss:$8 sps:$4 sm:$0xff]  }
  0x10   : > { %v2019_v14 = vld [vmem:[%s2708_s2 + $0x44] ss:$8 sps:$4 sm:$0xff]   ;;  %v2022_v16 = vld [vmem:[%s2708_s2 + $0x40] ss:$8 sps:$4 sm:$0xff]   ;;  %v2023_v17 = vld [vmem:[%s2708_s2 + $0xb4] ss:$8 sps:$4 sm:$0xff]  }
  0x11   : > { %v2025_v18 = vld [vmem:[%s2708_s2 + $0x34] ss:$8 sps:$4 sm:$0xff]   ;;  %v2027_v19 = vld [vmem:[%s2708_s2 + $0xb0] ss:$8 sps:$4 sm:$0xff]   ;;  %v2029_v21 = vld [vmem:[%s2708_s2 + $0xa4] ss:$8 sps:$4 sm:$0xff]  }
  0x12   : > { %392 = vmatpush1.bf16.msra.mxu0 %v2009_v7  ;;  %528 = vmatpush1.bf16.msra.mxu1 %v2010_v8  ;;  %v2028_v20 = vld [vmem:[%s2708_s2 + $0x30] ss:$8 sps:$4 sm:$0xff]   ;;  %s1984_s14 = sshll.u32 %s2713_s19, 4  ;;  %v2031_v22 = vld [vmem:[%s2708_s2 + $0x24] ss:$8 sps:$4 sm:$0xff]   ;;  %vm785_vm2 = vcmask 1044480  }
  0x13   : > { %393 = vmatprep.subr.bf16.mxu0 %v2011_v9  ;;  %529 = vmatprep.subr.bf16.mxu1 %v2013_v10  ;;  %v2033_v23 = vld [vmem:[%s2708_s2 + $0xa0] ss:$8 sps:$4 sm:$0xff]   ;;  %s2333_s23 = scalar_lea.vmem %s2706_s0, %s1984_s14  ;;  %v2035_v25 = vld [vmem:[%s2708_s2 + $0x94] ss:$8 sps:$4 sm:$0xff]   ;;  %v2039_v29 = vld [vmem:[%s2708_s2 + $0x90] ss:$8 sps:$4 sm:$0xff]   ;;  %s2506_s13 = scalar_lea.vmem %s2707_s1, %s1984_s14 }
  0x14   : > { %v2034_v24 = vld [vmem:[%s2708_s2 + $0x20] ss:$8 sps:$4 sm:$0xff]   ;;  %v2037_v26 = vld [vmem:[%s2708_s2 + $0x14] ss:$8 sps:$4 sm:$0xff]   ;;  %v2040_v30 = vld [vmem:[%s2708_s2 + $0x10] ss:$8 sps:$4 sm:$0xff]  }
  0x15   : > { %v2047_v27 = vld [vmem:[%s2333_s23] sm:$0xff]   ;;  %v2048_v28 = vld [vmem:[%s2333_s23 + $0x8] ss:$0 sps:$4 sm:$0x77]   ;;  %vm291_vm0 = vsmask.f32 7424 }
  0x16   : > { %394 = vmatpush1.bf16.msra.mxu0 %v2015_v11  ;;  %530 = vmatpush1.bf16.msra.mxu1 %v2016_v12  ;;  %v293_v31 = vshrl.u32 %v2047_v27, 16  ;;  %v295_v32 = vshll.u32 %v2047_v27, 16  ;;  %v300_v33 = vshll.u32 %v2048_v28, 16  ;;  %v2041_v34 = vld [vmem:[%s2708_s2 + $0x84] ss:$8 sps:$4 sm:$0xff]   ;;  %v304_v48 = vshrl.u32 %v2048_v28, 16 }
  0x17   : > { %395 = vmatprep.subr.bf16.mxu0 %v2017_v13  ;;  %531 = vmatprep.subr.bf16.mxu1 %v2019_v14  ;;  %v2043_v35 = vld [vmem:[%s2708_s2 + $0x4] ss:$8 sps:$4 sm:$0xff]   ;;  %v2045_v37 = vld [vmem:[%s2708_s2 + $0x80] ss:$8 sps:$4 sm:$0xff]   ;;  %v2051_v41 = vld [vmem:[%s2708_s2 + $0x174] ss:$8 sps:$4 sm:$0xff]  }
  0x18   : > { %v297_v36 = vrot.slane %v295_v32, 1  ;;  %v2046_v38 = vld [vmem:[%s2708_s2] ss:$8 sps:$4 sm:$0xff]   ;;  %v302_v40 = vrot.slane %v300_v33, 1  ;;  %v2054_v42 = vld [vmem:[%s2708_s2 + $0x1f4] ss:$8 sps:$4 sm:$0xff]  }
  0x19   : > { %v2049_v44 = vld [vmem:[%s2708_s2 + $0x170] ss:$8 sps:$4 sm:$0xff]   ;;  %v2057_v46 = vld [vmem:[%s2708_s2 + $0x164] ss:$8 sps:$4 sm:$0xff]   ;;  %v2055_v49 = vld [vmem:[%s2708_s2 + $0x160] ss:$8 sps:$4 sm:$0xff]  }
  0x1a   : > { %396 = vmatpush1.bf16.msra.mxu0 %v2021_v15  ;;  %532 = vmatpush1.bf16.msra.mxu1 %v2022_v16  ;;  %v298_v39 = vor.u32 %v297_v36, %v293_v31  ;;  %v2052_v45 = vld [vmem:[%s2708_s2 + $0x1f0] ss:$8 sps:$4 sm:$0xff]   ;;  %v2060_v47 = vld [vmem:[%s2708_s2 + $0x1e4] ss:$8 sps:$4 sm:$0xff]   ;;  %v2058_v50 = vld [vmem:[%s2708_s2 + $0x1e0] ss:$8 sps:$4 sm:$0xff]   ;;  %v306_v55 = vor.u32 %v304_v48, %v302_v40 }
  0x1b   : > { %397 = vmatprep.subr.bf16.mxu0 %v2023_v17  ;;  %533 = vmatprep.subr.bf16.mxu1 %v2025_v18  ;;  %v2063_v51 = vld [vmem:[%s2708_s2 + $0x154] ss:$8 sps:$4 sm:$0xff]   ;;  %v2061_v53 = vld [vmem:[%s2708_s2 + $0x150] ss:$8 sps:$4 sm:$0xff]   ;;  %v2069_v56 = vld [vmem:[%s2708_s2 + $0x144] ss:$8 sps:$4 sm:$0xff]  }
  0x1c   : > { %v303_v43 = vsel %vm291_vm0, %v298_v39, %v302_v40  ;;  %v2066_v52 = vld [vmem:[%s2708_s2 + $0x1d4] ss:$8 sps:$4 sm:$0xff]   ;;  %v2064_v54 = vld [vmem:[%s2708_s2 + $0x1d0] ss:$8 sps:$4 sm:$0xff]   ;;  %v2072_v58 = vld [vmem:[%s2708_s2 + $0x1c4] ss:$8 sps:$4 sm:$0xff]  }
  0x1d   : > { %v2085_v57 = vld [vmem:[%s2333_s23 + $0x8] ss:$0 sps:$4 sm:$0x33]   ;;  %v2075_v61 = vld [vmem:[%s2708_s2 + $0x134] ss:$8 sps:$4 sm:$0xff]   ;;  %s1989_s20 = smul.u32 24, %s2713_s19 }
  0x1e   : > { %398 = vmatpush1.bf16.msra.mxu0 %v2027_v19  ;;  %534 = vmatpush1.bf16.msra.mxu1 %v2028_v20  ;;  %v2067_v59 = vld [vmem:[%s2708_s2 + $0x140] ss:$8 sps:$4 sm:$0xff]   ;;  %v2078_v62 = vld [vmem:[%s2708_s2 + $0x1b4] ss:$8 sps:$4 sm:$0xff]   ;;  %v577_v0 = vld [vmem:[%s2333_s23 + $0x4] sm:$0xf] }
  0x1f   : > { %399 = vmatprep.subr.bf16.mxu0 %v2029_v21  ;;  %535 = vmatprep.subr.bf16.mxu1 %v2031_v22  ;;  %v2070_v60 = vld [vmem:[%s2708_s2 + $0x1c0] ss:$8 sps:$4 sm:$0xff]   ;;  %v2073_v1 = vld [vmem:[%s2708_s2 + $0x130] ss:$8 sps:$4 sm:$0xff]   ;;  %v2081_v4 = vld [vmem:[%s2708_s2 + $0x124] ss:$8 sps:$4 sm:$0xff]   ;;  %s244_s14 = scalar_lea.vmem %s2711_s5, %s1989_s20 }
  0x20   : > { %v576_v63 = vld [vmem:[%s2333_s23] sm:$0xc]  ;;  %v2076_v3 = vld [vmem:[%s2708_s2 + $0x1b0] ss:$8 sps:$4 sm:$0xff]   ;;  %v2436_v6 = vld [vmem:[%s2333_s23 + $0x8] sm:$0x1f]  }
  0x21   : > { %v1810_v5 = vcombine.low %v576_v63, %v577_v0  ;;  %v2084_v7 = vld [vmem:[%s2708_s2 + $0x1a4] ss:$8 sps:$4 sm:$0xff]   ;;  %v2079_v8 = vld [vmem:[%s2708_s2 + $0x120] ss:$8 sps:$4 sm:$0xff]   ;;  %v617_v13 = vshrl.u32 %v2436_v6, 16  ;;  %v620_v14 = vshll.u32 %v2436_v6, 16 }
  0x22   : > { %400 = vmatpush1.bf16.msra.mxu0 %v2033_v23  ;;  %536 = vmatpush1.bf16.msra.mxu1 %v2034_v24  ;;  %v2082_v9 = vld [vmem:[%s2708_s2 + $0x1a0] ss:$8 sps:$4 sm:$0xff]   ;;  %v2088_v15 = vld [vmem:[%s2708_s2 + $0x114] ss:$8 sps:$4 sm:$0xff]   ;;  %v2086_v17 = vld [vmem:[%s2708_s2 + $0x110] ss:$8 sps:$4 sm:$0xff]  }
  0x23   : > { %401 = vmatprep.subr.bf16.mxu0 %v2035_v25  ;;  %537 = vmatprep.subr.bf16.mxu1 %v2037_v26  ;;  %v764_v10 = vld [vmem:[%s2333_s23] sm:$0x8]  ;;  %v609_v11 = vshrl.u32 %v1810_v5, 16  ;;  %v612_v12 = vshll.u32 %v1810_v5, 16  ;;  %v2091_v16 = vld [vmem:[%s2708_s2 + $0x194] ss:$8 sps:$4 sm:$0xff]  }
  0x24   : > { %v2089_v18 = vld [vmem:[%s2708_s2 + $0x190] ss:$8 sps:$4 sm:$0xff]   ;;  %v1844_v19 = vcombine.low %v764_v10, %v577_v0  ;;  %v619_v22 = vrot.slane %v617_v13, 2  ;;  %v622_v23 = vrot.slane %v620_v14, 3  ;;  %v2094_v24 = vld [vmem:[%s2708_s2 + $0x104] ss:$8 sps:$4 sm:$0xff]  }
  0x25   : > { %v611_v20 = vrot.slane %v609_v11, 2  ;;  %v614_v21 = vrot.slane %v612_v12, 3  ;;  %v2097_v25 = vld [vmem:[%s2708_s2 + $0x184] ss:$8 sps:$4 sm:$0xff]   ;;  %v2092_v26 = vld [vmem:[%s2708_s2 + $0x100] ss:$8 sps:$4 sm:$0xff]  }
  0x26   : > { %402 = vmatpush1.bf16.msra.mxu0 %v2039_v29  ;;  %538 = vmatpush1.bf16.msra.mxu1 %v2040_v30  ;;  %vm607_vm1 = vsmask.f32 5376  ;;  %v623_v29 = vor.u32 %v622_v23, %v619_v22  ;;  %v786_v30 = vrot.slane %v1844_v19, 3  ;;  %v787_v31 = vrot.slane %v2436_v6, 3  ;;  %v2103_v32 = vld [vmem:[%s2709_s3 + $0x74] ss:$8 sps:$4 sm:$0xff]  }
  0x27   : > { %403 = vmatprep.subr.bf16.mxu0 %v2041_v34  ;;  %539 = vmatprep.subr.bf16.mxu1 %v2043_v35  ;;  %v615_v28 = vor.u32 %v614_v21, %v611_v20  ;;  %v2106_v33 = vld [vmem:[%s2709_s3 + $0xf4] ss:$8 sps:$4 sm:$0xff]   ;;  %v2101_v36 = vld [vmem:[%s2709_s3 + $0x70] ss:$8 sps:$4 sm:$0xff]   ;;  %v2112_v39 = vld [vmem:[%s2709_s3 + $0xe4] ss:$8 sps:$4 sm:$0xff]  }
  0x28   : > { %v788_v35 = vsel %vm785_vm2, %v786_v30, %v787_v31  ;;  %v2107_v40 = vld [vmem:[%s2709_s3 + $0x60] ss:$8 sps:$4 sm:$0xff]   ;;  %v2137_v63 = vld [vmem:[%s2709_s3 + $0x10] ss:$8 sps:$4 sm:$0xff]   ;;  %v2145_v5 = vld [vmem:[%s2709_s3 + $0x4] ss:$8 sps:$4 sm:$0xff]  }
  0x29   : > { %v624_v34 = vsel %vm607_vm1, %v615_v28, %v623_v29  ;;  %v2119_v48 = vld [vmem:[%s2709_s3 + $0x40] ss:$8 sps:$4 sm:$0xff]   ;;  %v2140_v0 = vld [vmem:[%s2709_s3 + $0x90] ss:$8 sps:$4 sm:$0xff]   ;;  %v2148_v6 = vld [vmem:[%s2709_s3 + $0x84] ss:$8 sps:$4 sm:$0xff]  }
  0x2a   : > { %404 = vmatpush1.bf16.msra.mxu0 %v2045_v37  ;;  %540 = vmatpush1.bf16.msra.mxu1 %v2046_v38  ;;  %v2104_v37 = vld [vmem:[%s2709_s3 + $0xf0] ss:$8 sps:$4 sm:$0xff]   ;;  %v2109_v38 = vld [vmem:[%s2709_s3 + $0x64] ss:$8 sps:$4 sm:$0xff]   ;;  %v2153_v11 = vld [vmem:[%s2709_s3 + $0x174] ss:$8 sps:$4 sm:$0xff]  }
  0x2b   : > { %707 = vmatprep.subr.bf16.mxu0 %v2051_v41  ;;  %871 = vmatprep.subr.bf16.mxu1 %v2054_v42  ;;  %v2110_v41 = vld [vmem:[%s2709_s3 + $0xe0] ss:$8 sps:$4 sm:$0xff]   ;;  %v2115_v42 = vld [vmem:[%s2709_s3 + $0x54] ss:$8 sps:$4 sm:$0xff]   ;;  %v2151_v14 = vld [vmem:[%s2709_s3 + $0x170] ss:$8 sps:$4 sm:$0xff]  }
  0x2c   : > { %v2156_v12 = vld [vmem:[%s2709_s3 + $0x1f4] ss:$8 sps:$4 sm:$0xff]   ;;  %v2157_v19 = vld [vmem:[%s2709_s3 + $0x160] ss:$8 sps:$4 sm:$0xff]   ;;  %v2175_v28 = vld [vmem:[%s2709_s3 + $0x1c4] ss:$8 sps:$4 sm:$0xff]  }
  0x2d   : > { %422 = vmatmul.mubr.bf16.vlgmr.msra.gmra.mxu0 %v303_v43  ;;  %558 = vmatmul.mubr.bf16.vlgmr.msra.gmra.mxu1 %v2047_v27  ;;  %v2095_v27 = vld [vmem:[%s2708_s2 + $0x180] ss:$8 sps:$4 sm:$0xff]   ;;  %v2118_v43 = vld [vmem:[%s2709_s3 + $0xd4] ss:$8 sps:$4 sm:$0xff]  }
  0x2e   : > { %708 = vmatpush1.bf16.msra.mxu0 %v2049_v44  ;;  %872 = vmatpush1.bf16.msra.mxu1 %v2052_v45  ;;  %v2113_v44 = vld [vmem:[%s2709_s3 + $0x50] ss:$8 sps:$4 sm:$0xff]   ;;  %v2160_v20 = vld [vmem:[%s2709_s3 + $0x1e0] ss:$8 sps:$4 sm:$0xff]   ;;  %v2166_v21 = vld [vmem:[%s2709_s3 + $0x154] ss:$8 sps:$4 sm:$0xff]  }
  0x2f   : > { %709 = vmatprep.subr.bf16.mxu0 %v2057_v46  ;;  %873 = vmatprep.subr.bf16.mxu1 %v2060_v47  ;;  %v2116_v45 = vld [vmem:[%s2709_s3 + $0xd0] ss:$8 sps:$4 sm:$0xff]   ;;  %v2121_v46 = vld [vmem:[%s2709_s3 + $0x44] ss:$8 sps:$4 sm:$0xff]   ;;  %v2169_v22 = vld [vmem:[%s2709_s3 + $0x1d4] ss:$8 sps:$4 sm:$0xff]  }
  0x30   : > { %431 = vmatprep.mubr.bf16.mxu0 %v2211_v2  ;;  %567 = vmatprep.mubr.bf16.mxu1 %v2211_v2  ;;  %v2124_v47 = vld [vmem:[%s2709_s3 + $0xc4] ss:$8 sps:$4 sm:$0xff]   ;;  %v2163_v23 = vld [vmem:[%s2506_s13 + $0x8] ss:$0 sps:$4 sm:$0x33]  }
  0x31   : > { %v2173_v30 = vld [vmem:[%s2709_s3 + $0x1c0] ss:$8 sps:$4 sm:$0xff]  }
  0x32   : > { %710 = vmatpush1.bf16.msra.mxu0 %v2055_v49  ;;  %874 = vmatpush1.bf16.msra.mxu1 %v2058_v50  ;;  %v2122_v49 = vld [vmem:[%s2709_s3 + $0xc0] ss:$8 sps:$4 sm:$0xff]   ;;  %v2127_v50 = vld [vmem:[%s2709_s3 + $0x34] ss:$8 sps:$4 sm:$0xff]  }
  0x33   : > { %711 = vmatprep.subr.bf16.mxu0 %v2063_v51  ;;  %875 = vmatprep.subr.bf16.mxu1 %v2066_v52  ;;  %v2130_v51 = vld [vmem:[%s2709_s3 + $0xb4] ss:$8 sps:$4 sm:$0xff]   ;;  %v2125_v52 = vld [vmem:[%s2709_s3 + $0x30] ss:$8 sps:$4 sm:$0xff]  }
  0x35   : > { %432 = vmatmul.mubr.bf16.gmra.mxu0 %v306_v55  ;;  %568 = vmatmul.mubr.bf16.gmra.mxu1 %v2085_v57  ;;  %v2133_v55 = vld [vmem:[%s2709_s3 + $0x24] ss:$8 sps:$4 sm:$0xff]   ;;  %v2131_v57 = vld [vmem:[%s2709_s3 + $0x20] ss:$8 sps:$4 sm:$0xff]  }
  0x36   : > { %712 = vmatpush1.bf16.msra.mxu0 %v2061_v53  ;;  %876 = vmatpush1.bf16.msra.mxu1 %v2064_v54  ;;  %v2128_v53 = vld [vmem:[%s2709_s3 + $0xb0] ss:$8 sps:$4 sm:$0xff]   ;;  %v2149_v54 = vld [vmem:[%s2506_s13] sm:$0xff]  }
  0x37   : > { %713 = vmatprep.subr.bf16.mxu0 %v2069_v56  ;;  %877 = vmatprep.subr.bf16.mxu1 %v2072_v58  ;;  %v2136_v56 = vld [vmem:[%s2709_s3 + $0xa4] ss:$8 sps:$4 sm:$0xff]   ;;  %v2134_v58 = vld [vmem:[%s2709_s3 + $0xa0] ss:$8 sps:$4 sm:$0xff]  }
  0x38   : > { %739 = vmatprep.mubr.bf16.mxu0 %v2211_v2  ;;  %903 = vmatprep.mubr.bf16.mxu1 %v2211_v2 }
  0x3a   : > { %714 = vmatpush1.bf16.msra.mxu0 %v2067_v59  ;;  %878 = vmatpush1.bf16.msra.mxu1 %v2070_v60  ;;  %v2150_v59 = vld [vmem:[%s2506_s13 + $0x8] ss:$0 sps:$4 sm:$0x77]   ;;  %v1118_v60 = vshll.u32 %v2149_v54, 16 }
  0x3b   : > { %715 = vmatprep.subr.bf16.mxu0 %v2075_v61  ;;  %879 = vmatprep.subr.bf16.mxu1 %v2078_v62  ;;  %v2139_v61 = vld [vmem:[%s2709_s3 + $0x14] ss:$8 sps:$4 sm:$0xff]  }
  0x3c   : > { %v2142_v62 = vld [vmem:[%s2709_s3 + $0x94] ss:$8 sps:$4 sm:$0xff]  }
  0x3e   : > { %716 = vmatpush1.bf16.msra.mxu0 %v2073_v1  ;;  %880 = vmatpush1.bf16.msra.mxu1 %v2076_v3  ;;  %v1116_v1 = vshrl.u32 %v2149_v54, 16  ;;  %v1120_v3 = vrot.slane %v1118_v60, 1  ;;  %v2197_v60 = vld [vmem:[%s2709_s3 + $0x180] ss:$8 sps:$4 sm:$0xff]  }
  0x3f   : > { %717 = vmatprep.subr.bf16.mxu0 %v2081_v4  ;;  %881 = vmatprep.subr.bf16.mxu1 %v2084_v7  ;;  %v1123_v4 = vshll.u32 %v2150_v59, 16  ;;  %v2143_v7 = vld [vmem:[%s2709_s3] ss:$8 sps:$4 sm:$0xff]  }
  0x41   : > { %v1125_v10 = vrot.slane %v1123_v4, 1 }
  0x42   : > { %718 = vmatpush1.bf16.msra.mxu0 %v2079_v8  ;;  %882 = vmatpush1.bf16.msra.mxu1 %v2082_v9  ;;  %v2146_v8 = vld [vmem:[%s2709_s3 + $0x80] ss:$8 sps:$4 sm:$0xff]   ;;  %v1121_v9 = vor.u32 %v1120_v3, %v1116_v1 }
  0x43   : > { %719 = vmatprep.subr.bf16.mxu0 %v2088_v15  ;;  %883 = vmatprep.subr.bf16.mxu1 %v2091_v16  ;;  %v2154_v15 = vld [vmem:[%s2709_s3 + $0x1f0] ss:$8 sps:$4 sm:$0xff]   ;;  %v2159_v16 = vld [vmem:[%s2709_s3 + $0x164] ss:$8 sps:$4 sm:$0xff]  }
  0x44   : > { %v1126_v13 = vsel %vm291_vm0, %v1121_v9, %v1125_v10 }
  0x46   : > { %720 = vmatpush1.bf16.msra.mxu0 %v2086_v17  ;;  %884 = vmatpush1.bf16.msra.mxu1 %v2089_v18  ;;  %v2162_v17 = vld [vmem:[%s2709_s3 + $0x1e4] ss:$8 sps:$4 sm:$0xff]   ;;  %v1127_v18 = vshrl.u32 %v2150_v59, 16  ;;  %v2194_v59 = vld [vmem:[%s2709_s3 + $0x100] ss:$8 sps:$4 sm:$0xff]  }
  0x47   : > { %721 = vmatprep.subr.bf16.mxu0 %v2094_v24  ;;  %885 = vmatprep.subr.bf16.mxu1 %v2097_v25  ;;  %v2164_v25 = vld [vmem:[%s2709_s3 + $0x150] ss:$8 sps:$4 sm:$0xff]  }
  0x48   : > { %v1129_v24 = vor.u32 %v1127_v18, %v1125_v10 }
  0x4a   : > { %722 = vmatpush1.bf16.msra.mxu0 %v2092_v26  ;;  %886 = vmatpush1.bf16.msra.mxu1 %v2095_v27  ;;  %v2167_v26 = vld [vmem:[%s2709_s3 + $0x1d0] ss:$8 sps:$4 sm:$0xff]   ;;  %v2172_v27 = vld [vmem:[%s2709_s3 + $0x144] ss:$8 sps:$4 sm:$0xff]  }
  0x4b   : > { %1037 = vmatprep.subr.bf16.mxu0 %v2103_v32  ;;  %1212 = vmatprep.subr.bf16.mxu1 %v2106_v33  ;;  %v2181_v32 = vld [vmem:[%s2709_s3 + $0x1b4] ss:$8 sps:$4 sm:$0xff]   ;;  %v1269_v33 = vld [vmem:[%s2506_s13] sm:$0xc] }
  0x4d   : > { %740 = vmatmul.mubr.bf16.vlgmr.msra.gmra.mxu0 %v624_v34  ;;  %904 = vmatmul.mubr.bf16.vlgmr.msra.gmra.mxu1 %v788_v35  ;;  %v1270_v34 = vld [vmem:[%s2506_s13 + $0x4] sm:$0xf]  ;;  %v2176_v35 = vld [vmem:[%s2709_s3 + $0x130] ss:$8 sps:$4 sm:$0xff]  }
  0x4e   : > { %1038 = vmatpush1.bf16.msra.mxu0 %v2101_v36  ;;  %1213 = vmatpush1.bf16.msra.mxu1 %v2104_v37  ;;  %v2179_v36 = vld [vmem:[%s2709_s3 + $0x1b0] ss:$8 sps:$4 sm:$0xff]   ;;  %v1928_v37 = vcombine.low %v1269_v33, %v1270_v34 }
  0x4f   : > { %1039 = vmatprep.subr.bf16.mxu0 %v2109_v38  ;;  %1214 = vmatprep.subr.bf16.mxu1 %v2112_v39  ;;  %v2201_v38 = vld [vmem:[%s2506_s13 + $0x8] sm:$0x1f]  }
  0x50   : > { %749 = vmatprep.mubr.bf16.mxu0 %v2211_v2  ;;  %913 = vmatprep.mubr.bf16.mxu1 %v2211_v2  ;;  %v2184_v39 = vld [vmem:[%s2709_s3 + $0x124] ss:$8 sps:$4 sm:$0xff]  }
  0x52   : > { %1040 = vmatpush1.bf16.msra.mxu0 %v2107_v40  ;;  %1215 = vmatpush1.bf16.msra.mxu1 %v2110_v41  ;;  %v2187_v40 = vld [vmem:[%s2709_s3 + $0x1a4] ss:$8 sps:$4 sm:$0xff]   ;;  %v2182_v41 = vld [vmem:[%s2709_s3 + $0x120] ss:$8 sps:$4 sm:$0xff]  }
  0x53   : > { %1041 = vmatprep.subr.bf16.mxu0 %v2115_v42  ;;  %1216 = vmatprep.subr.bf16.mxu1 %v2118_v43  ;;  %v2185_v42 = vld [vmem:[%s2709_s3 + $0x1a0] ss:$8 sps:$4 sm:$0xff]   ;;  %v1301_v43 = vshrl.u32 %v1928_v37, 16 }
  0x55   : > { %750 = vmatmul.mubr.bf16.gmra.mxu0 %v623_v29  ;;  %914 = vmatmul.mubr.bf16.gmra.mxu1 %v787_v31  ;;  %v2170_v29 = vld [vmem:[%s2709_s3 + $0x140] ss:$8 sps:$4 sm:$0xff]   ;;  %v2178_v31 = vld [vmem:[%s2709_s3 + $0x134] ss:$8 sps:$4 sm:$0xff]  }
  0x56   : > { %1042 = vmatpush1.bf16.msra.mxu0 %v2113_v44  ;;  %1217 = vmatpush1.bf16.msra.mxu1 %v2116_v45  ;;  %v1304_v44 = vshll.u32 %v1928_v37, 16  ;;  %v1309_v45 = vshrl.u32 %v2201_v38, 16 }
  0x57   : > { %1043 = vmatprep.subr.bf16.mxu0 %v2121_v46  ;;  %1218 = vmatprep.subr.bf16.mxu1 %v2124_v47  ;;  %v1312_v46 = vshll.u32 %v2201_v38, 16  ;;  %v1456_v47 = vld [vmem:[%s2506_s13] sm:$0x8] }
  0x58   : > { %1069 = vmatprep.mubr.bf16.mxu0 %v2211_v2  ;;  %1244 = vmatprep.mubr.bf16.mxu1 %v2211_v2 }
  0x5a   : > { %1044 = vmatpush1.bf16.msra.mxu0 %v2119_v48  ;;  %1219 = vmatpush1.bf16.msra.mxu1 %v2122_v49  ;;  %v2190_v48 = vld [vmem:[%s2709_s3 + $0x114] ss:$8 sps:$4 sm:$0xff]  }
  0x5b   : > { %1045 = vmatprep.subr.bf16.mxu0 %v2127_v50  ;;  %1220 = vmatprep.subr.bf16.mxu1 %v2130_v51  ;;  %v2193_v49 = vld [vmem:[%s2709_s3 + $0x194] ss:$8 sps:$4 sm:$0xff]   ;;  %v2188_v50 = vld [vmem:[%s2709_s3 + $0x110] ss:$8 sps:$4 sm:$0xff]   ;;  %v1962_v51 = vcombine.low %v1456_v47, %v1270_v34 }
  0x5e   : > { %1046 = vmatpush1.bf16.msra.mxu0 %v2125_v52  ;;  %1221 = vmatpush1.bf16.msra.mxu1 %v2128_v53  ;;  %v2191_v52 = vld [vmem:[%s2709_s3 + $0x190] ss:$8 sps:$4 sm:$0xff]   ;;  %v1303_v53 = vrot.slane %v1301_v43, 2 }
  0x5f   : > { %1047 = vmatprep.subr.bf16.mxu0 %v2133_v55  ;;  %1222 = vmatprep.subr.bf16.mxu1 %v2136_v56  ;;  %v1311_v55 = vrot.slane %v1309_v45, 2  ;;  %v1314_v56 = vrot.slane %v1312_v46, 3 }
  0x62   : > { %1048 = vmatpush1.bf16.msra.mxu0 %v2131_v57  ;;  %1223 = vmatpush1.bf16.msra.mxu1 %v2134_v58  ;;  %v2196_v57 = vld [vmem:[%s2709_s3 + $0x104] ss:$8 sps:$4 sm:$0xff]  }
  0x63   : > { %1049 = vmatprep.subr.bf16.mxu0 %v2139_v61  ;;  %1224 = vmatprep.subr.bf16.mxu1 %v2142_v62  ;;  %v2199_v58 = vld [vmem:[%s2709_s3 + $0x184] ss:$8 sps:$4 sm:$0xff]   ;;  %v1315_v62 = vor.u32 %v1314_v56, %v1311_v55 }
  0x66   : > { %1050 = vmatpush1.bf16.msra.mxu0 %v2137_v63  ;;  %1225 = vmatpush1.bf16.msra.mxu1 %v2140_v0  ;;  %v1477_v63 = vrot.slane %v1962_v51, 3  ;;  %v1478_v0 = vrot.slane %v2201_v38, 3 }
  0x67   : > { %1051 = vmatprep.subr.bf16.mxu0 %v2145_v5  ;;  %1226 = vmatprep.subr.bf16.mxu1 %v2148_v6 }
  0x68   : > { %v1479_v3 = vsel %vm785_vm2, %v1477_v63, %v1478_v0 }
  0x6a   : > { %1052 = vmatpush1.bf16.msra.mxu0 %v2143_v7  ;;  %1227 = vmatpush1.bf16.msra.mxu1 %v2146_v8 }
  0x6b   : > { %1399 = vmatprep.subr.bf16.mxu0 %v2153_v11  ;;  %1562 = vmatprep.subr.bf16.mxu1 %v2156_v12 }
  0x6d   : > { %1070 = vmatmul.mubr.bf16.vlgmr.msra.gmra.mxu0 %v2149_v54  ;;  %1245 = vmatmul.mubr.bf16.vlgmr.msra.gmra.mxu1 %v1126_v13  ;;  %v1306_v54 = vrot.slane %v1304_v44, 3 }
  0x6e   : > { %1400 = vmatpush1.bf16.msra.mxu0 %v2151_v14  ;;  %1563 = vmatpush1.bf16.msra.mxu1 %v2154_v15 }
  0x6f   : > { %1401 = vmatprep.subr.bf16.mxu0 %v2159_v16  ;;  %1564 = vmatprep.subr.bf16.mxu1 %v2162_v17  ;;  %v1307_v61 = vor.u32 %v1306_v54, %v1303_v53 }
  0x70   : > { %1079 = vmatprep.mubr.bf16.mxu0 %v2211_v2  ;;  %1254 = vmatprep.mubr.bf16.mxu1 %v2211_v2 }
  0x71   : > { %v1316_v1 = vsel %vm607_vm1, %v1307_v61, %v1315_v62 }
  0x72   : > { %1402 = vmatpush1.bf16.msra.mxu0 %v2157_v19  ;;  %1565 = vmatpush1.bf16.msra.mxu1 %v2160_v20 }
  0x73   : > { %1403 = vmatprep.subr.bf16.mxu0 %v2166_v21  ;;  %1566 = vmatprep.subr.bf16.mxu1 %v2169_v22 }
  0x75   : > { %1080 = vmatmul.mubr.bf16.gmra.mxu0 %v2163_v23  ;;  %1255 = vmatmul.mubr.bf16.gmra.mxu1 %v1129_v24 }
  0x76   : > { %1404 = vmatpush1.bf16.msra.mxu0 %v2164_v25  ;;  %1567 = vmatpush1.bf16.msra.mxu1 %v2167_v26 }
  0x77   : > { %1405 = vmatprep.subr.bf16.mxu0 %v2172_v27  ;;  %1568 = vmatprep.subr.bf16.mxu1 %v2175_v28 }
  0x78   : > { %1431 = vmatprep.mubr.bf16.mxu0 %v2211_v2  ;;  %1594 = vmatprep.mubr.bf16.mxu1 %v2211_v2 }
  0x7a   : > { %1406 = vmatpush1.bf16.msra.mxu0 %v2170_v29  ;;  %1569 = vmatpush1.bf16.msra.mxu1 %v2173_v30 }
  0x7b   : > { %1407 = vmatprep.subr.bf16.mxu0 %v2178_v31  ;;  %1570 = vmatprep.subr.bf16.mxu1 %v2181_v32 }
  0x7e   : > { %1408 = vmatpush1.bf16.msra.mxu0 %v2176_v35  ;;  %1571 = vmatpush1.bf16.msra.mxu1 %v2179_v36 }
  0x7f   : > { %1409 = vmatprep.subr.bf16.mxu0 %v2184_v39  ;;  %1572 = vmatprep.subr.bf16.mxu1 %v2187_v40 }
  0x82   : > { %1410 = vmatpush1.bf16.msra.mxu0 %v2182_v41  ;;  %1573 = vmatpush1.bf16.msra.mxu1 %v2185_v42 }
  0x83   : > { %1411 = vmatprep.subr.bf16.mxu0 %v2190_v48  ;;  %1574 = vmatprep.subr.bf16.mxu1 %v2193_v49 }
  0x86   : > { %1412 = vmatpush1.bf16.msra.mxu0 %v2188_v50  ;;  %1575 = vmatpush1.bf16.msra.mxu1 %v2191_v52 }
  0x87   : > { %1413 = vmatprep.subr.bf16.mxu0 %v2196_v57  ;;  %1576 = vmatprep.subr.bf16.mxu1 %v2199_v58  ;;  %v1621_v57 = vlaneseq }
  0x8a   : > { %1414 = vmatpush1.bf16.msra.mxu0 %v2194_v59  ;;  %1577 = vmatpush1.bf16.msra.mxu1 %v2197_v60  ;;  %v1622_v60 = vshrl.u32 %v1621_v57, 7 }
  0x8d   : > { %1432 = vmatmul.mubr.bf16.vlgmr.msra.gmra.mxu0 %v1316_v1  ;;  %1595 = vmatmul.mubr.bf16.vlgmr.msra.gmra.mxu1 %v1479_v3  ;;  %v1623_v3 = vsub.s32 0, %v1622_v60 }
  0x8e   : > { %1441 = vmatprep.mubr.bf16.mxu0 %v2211_v2  ;;  %1604 = vmatprep.mubr.bf16.mxu1 %v2211_v2 }
  0x95   : > { %1442 = vmatmul.mubr.bf16.gmra.mxu0 %v1315_v62  ;;  %1605 = vmatmul.mubr.bf16.gmra.mxu1 %v1478_v0 }
  0xed   : > { %v423_v4 = vpop.f32.mrf.mxu0  ;;  %v559_v5 = vpop.f32.mrf.mxu1 }
  0xee   : > { %v560_v6 = vadd.f32 %v559_v5, %v423_v4 }
  0xef   : > { %v425_v7 = vpop.f32.mrf.mxu0  ;;  %v561_v8 = vpop.f32.mrf.mxu1 }
  0xf0   : > { %v562_v9 = vadd.f32 %v561_v8, %v425_v7  ;;  %v1619_v8 = vld [vmem:[%s2710_s4] sm:$0x3] }
  0xf1   : > { %v427_v10 = vpop.f32.mrf.mxu0  ;;  %v563_v11 = vpop.f32.mrf.mxu1 }
  0xf2   : > { %v564_v12 = vadd.f32 %v563_v11, %v427_v10  ;;  %v1627_v10 = vsub.s32 1, %v1622_v60 }
  0xf3   : > { %v429_v13 = vpop.f32.mrf.mxu0  ;;  %v565_v14 = vpop.f32.mrf.mxu1 }
  0xf4   : > { %v566_v15 = vadd.f32 %v565_v14, %v429_v13 }
  0xf5   : > { %v433_v16 = vpop.f32.mrf.mxu0  ;;  %v569_v17 = vpop.f32.mrf.mxu1 }
  0xf6   : > { %v570_v18 = vadd.f32 %v569_v17, %v433_v16  ;;  %v1624_v17 = vrot.slane %v1619_v8, %v1623_v3 }
  0xf7   : > { %v435_v19 = vpop.f32.mrf.mxu0  ;;  %v571_v20 = vpop.f32.mrf.mxu1 }
  0xf8   : > { %v572_v2 = vadd.f32 %v571_v20, %v435_v19 }
  0xf9   : > { %v437_v21 = vpop.f32.mrf.mxu0  ;;  %v573_v22 = vpop.f32.mrf.mxu1 }
  0xfa   : > { %v1628_v22 = vrot.slane %v1619_v8, %v1627_v10 }
  0xfb   : > { %v438_v23 = vpop.f32.mrf.mxu0  ;;  %v574_v24 = vpop.f32.mrf.mxu1 }
 0x10d   : > { %v741_v25 = vpop.f32.mrf.mxu0  ;;  %v905_v26 = vpop.f32.mrf.mxu1 }
 0x10e   : > { %v758_v58 = vadd.f32 %v741_v25, %v560_v6 }
 0x10f   : > { %v743_v27 = vpop.f32.mrf.mxu0  ;;  %v907_v28 = vpop.f32.mrf.mxu1 }
 0x110   : > { %v759_v59 = vadd.f32 %v743_v27, %v562_v9  ;;  %v922_v61 = vadd.f32 %v905_v26, %v758_v58 }
 0x111   : > { %v745_v29 = vpop.f32.mrf.mxu0  ;;  %v909_v30 = vpop.f32.mrf.mxu1 }
 0x112   : > { %v760_v62 = vadd.f32 %v745_v29, %v564_v12  ;;  %v923_v63 = vadd.f32 %v907_v28, %v759_v59 }
 0x113   : > { %v747_v31 = vpop.f32.mrf.mxu0  ;;  %v911_v32 = vpop.f32.mrf.mxu1 }
 0x114   : > { %v761_v0 = vadd.f32 %v747_v31, %v566_v15  ;;  %v924_v4 = vadd.f32 %v909_v30, %v760_v62 }
 0x115   : > { %v751_v33 = vpop.f32.mrf.mxu0  ;;  %v915_v34 = vpop.f32.mrf.mxu1 }
 0x116   : > { %v762_v5 = vadd.f32 %v751_v33, %v570_v18  ;;  %v925_v11 = vadd.f32 %v911_v32, %v761_v0 }
 0x117   : > { %v753_v35 = vpop.f32.mrf.mxu0  ;;  %v917_v36 = vpop.f32.mrf.mxu1 }
 0x118   : > { %v763_v6 = vadd.f32 %v753_v35, %v572_v2  ;;  %v926_v12 = vadd.f32 %v915_v34, %v762_v5 }
 0x119   : > { %v755_v37 = vpop.f32.mrf.mxu0  ;;  %v919_v38 = vpop.f32.mrf.mxu1 }
 0x11a   : > { %v927_v27 = vadd.f32 %v917_v36, %v763_v6 }
 0x11b   : > { %v756_v39 = vpop.f32.mrf.mxu0  ;;  %v920_v40 = vpop.f32.mrf.mxu1 }
 0x12d   : > { %v1071_v41 = vpop.f32.mrf.mxu0  ;;  %v1246_v42 = vpop.f32.mrf.mxu1 }
 0x12e   : > { %v1088_v1 = vadd.f32 %v1071_v41, %v922_v61 }
 0x12f   : > { %v1073_v43 = vpop.f32.mrf.mxu0  ;;  %v1248_v44 = vpop.f32.mrf.mxu1 }
 0x130   : > { %v1089_v7 = vadd.f32 %v1073_v43, %v923_v63  ;;  %v1263_v13 = vadd.f32 %v1246_v42, %v1088_v1 }
 0x131   : > { %v1075_v45 = vpop.f32.mrf.mxu0  ;;  %v1250_v46 = vpop.f32.mrf.mxu1 }
 0x132   : > { %v1090_v14 = vadd.f32 %v1075_v45, %v924_v4  ;;  %v1264_v19 = vadd.f32 %v1248_v44, %v1089_v7 }
 0x133   : > { %v1077_v47 = vpop.f32.mrf.mxu0  ;;  %v1252_v48 = vpop.f32.mrf.mxu1 }
 0x134   : > { %v1091_v15 = vadd.f32 %v1077_v47, %v925_v11  ;;  %v1265_v23 = vadd.f32 %v1250_v46, %v1090_v14 }
 0x135   : > { %v1081_v49 = vpop.f32.mrf.mxu0  ;;  %v1256_v50 = vpop.f32.mrf.mxu1 }
 0x136   : > { %v1092_v24 = vadd.f32 %v1081_v49, %v926_v12  ;;  %v1266_v30 = vadd.f32 %v1252_v48, %v1091_v15 }
 0x137   : > { %v1083_v51 = vpop.f32.mrf.mxu0  ;;  %v1258_v52 = vpop.f32.mrf.mxu1 }
 0x138   : > { %v1093_v33 = vadd.f32 %v1083_v51, %v927_v27  ;;  %v1267_v37 = vadd.f32 %v1256_v50, %v1092_v24 }
 0x139   : > { %v1085_v53 = vpop.f32.mrf.mxu0  ;;  %v1260_v54 = vpop.f32.mrf.mxu1 }
 0x13a   : > { %v1268_v47 = vadd.f32 %v1258_v52, %v1093_v33 }
 0x13b   : > { %v1086_v55 = vpop.f32.mrf.mxu0  ;;  %v1261_v56 = vpop.f32.mrf.mxu1 }
 0x14d   : > { %v1433_v9 = vpop.f32.mrf.mxu0  ;;  %v1596_v16 = vpop.f32.mrf.mxu1 }
 0x14e   : > { %v1450_v20 = vadd.f32 %v1433_v9, %v1263_v13 }
 0x14f   : > { %v1435_v21 = vpop.f32.mrf.mxu0  ;;  %v1598_v18 = vpop.f32.mrf.mxu1 }
 0x150   : > { %v1613_v25 = vadd.f32 %v1596_v16, %v1450_v20  ;;  %v1451_v26 = vadd.f32 %v1435_v21, %v1264_v19 }
 0x151   : > { %v1437_v28 = vpop.f32.mrf.mxu0  ;;  %v1600_v29 = vpop.f32.mrf.mxu1 }
 0x152   : > { %v1631_v2 = vadd.f32 %v1624_v17, %v1613_v25  ;;  %v1614_v31 = vadd.f32 %v1598_v18, %v1451_v26  ;;  %v1452_v32 = vadd.f32 %v1437_v28, %v1265_v23 }
 0x153   : > { %v1439_v34 = vpop.f32.mrf.mxu0  ;;  %v1602_v35 = vpop.f32.mrf.mxu1 }
 0x154   : > { %v1632_v38 = vadd.f32 %v1628_v22, %v1614_v31  ;;  %v1615_v39 = vadd.f32 %v1600_v29, %v1452_v32  ;;  %v1453_v40 = vadd.f32 %v1439_v34, %v1266_v30  ;;  %v1637_v41 = vmax.f32 %v1631_v2, 0.0 }
 0x155   : > { %v1443_v42 = vpop.f32.mrf.mxu0  ;;  %v1606_v43 = vpop.f32.mrf.mxu1 }
 0x156   : > { %v1638_v44 = vmax.f32 %v1632_v38, 0.0  ;;  %v1633_v45 = vadd.f32 %v1624_v17, %v1615_v39  ;;  %v1616_v36 = vadd.f32 %v1602_v35, %v1453_v40  ;;  %v1454_v46 = vadd.f32 %v1443_v42, %v1267_v37 }
 0x157   : > { %v1445_v48 = vpop.f32.mrf.mxu0  ;;  %v1608_v49 = vpop.f32.mrf.mxu1 }
 0x158   : > { %v1986_v51 = vpack.c.bf16 %v1638_v44, %v1637_v41  ;;  %v1634_v53 = vadd.f32 %v1628_v22, %v1616_v36  ;;  %v1617_v50 = vadd.f32 %v1606_v43, %v1454_v46  ;;  %v1455_v54 = vadd.f32 %v1445_v48, %v1268_v47 }
 0x159   : > { %v1447_v55 = vpop.f32.mrf.mxu0  ;;  %v1610_v56 = vpop.f32.mrf.mxu1  ;;  %v1639_v57 = vmax.f32 %v1633_v45, 0.0 }
 0x15a   : > { %1663 = vst [vmem:[%s244_s14] sm:$0xff] %v1986_v51  ;;  %v1640_v58 = vmax.f32 %v1634_v53, 0.0  ;;  %v1635_v59 = vadd.f32 %v1624_v17, %v1617_v50  ;;  %v1618_v60 = vadd.f32 %v1608_v49, %v1455_v54 }
 0x15b   : > { %v1448_v61 = vpop.f32.mrf.mxu0  ;;  %v1611_v62 = vpop.f32.mrf.mxu1 }
 0x15c   : > { %v1987_v52 = vpack.c.bf16 %v1640_v58, %v1639_v57  ;;  %v1636_v63 = vadd.f32 %v1628_v22, %v1618_v60  ;;  %v1641_v0 = vmax.f32 %v1635_v59, 0.0 }
 0x15e   : > { %1664 = vst [vmem:[%s244_s14 + $0x8] sm:$0xff] %v1987_v52  ;;  %v1642_v1 = vmax.f32 %v1636_v63, 0.0 }
 0x160   : > { %v1988_v3 = vpack.c.bf16 %v1642_v1, %v1641_v0 }
 0x162   : > { %1665 = vst [vmem:[%s244_s14 + $0x10] sm:$0x33] %v1988_v3 }
 0x163 PF: > { %s15_s18 = sadd.s32 1, %s2209_s18  }
 0x164   : > { %p12_p4 = scmp.ge.s32.totalorder %s15_s18, 4  }
 0x166   :  { %14 = sbr.rel (!%p12_p4) target bundleno = 1 (0x1), region = 79 }

// kernel: unet_forward.12
= control target key start
LH: loop header
LB: loop body
LE: loop exit
PB: predicated region body
PF: predicated region fallthrough
CT: control target
= control target key end

     0   :  { %s3118_s12 = smov 0   ;;  %s3944_s0 = inlined_call_operand.vmem [shape: bf16[2,12,256], index: 0, kind: input, shape index: {}]   ;;  %s3945_s1 = inlined_call_operand.vmem [shape: bf16[4,256,512], index: 1, kind: input, shape index: {}]   ;;  %s3946_s2 = inlined_call_operand.vmem [shape: f32[1,512], index: 2, kind: input, shape index: {}]   ;;  %s3947_s3 = inlined_call_operand.vmem [shape: bf16[2,6,512], index: 3, kind: output, shape index: {}]  }
   0x1 LB: > { %s2217_s13 = sadd.s32 4294967295, %s3096_s12   ;;  %p2221_p0 = scmp.ge.s32.totalorder %s3096_s12, 1  ;;  %s3096_s12 = sphi %s3118_s12, %s13_s12  }
   0x2   : > { %p137_p1 = scmp.lt.s32.totalorder %s3096_s12, 3 }
   0x4   : > { %p138_p2 = pnand %p2221_p0, %p137_p1 }
   0x5   : > { %p161_p3 = scmp.lt.s32.totalorder (!%p138_p2), %s2217_s13, 1 }
   0x6   : > { %141 = sbr.rel (%p138_p2) target bundleno = 472 (0x1d8), region = 32 }
   0xb   : > { %v2698_v0 = vld [vmem:[%s3945_s1 + $0x2e4] ss:$16 sps:$4 sm:$0xff]   ;;  %v2700_v1 = vld [vmem:[%s3945_s1 + $0x2ec] ss:$16 sps:$4 sm:$0xff]   ;;  %v2702_v2 = vld [vmem:[%s3945_s1 + $0x2e0] ss:$16 sps:$4 sm:$0xff]  }
   0xc   : > { %643 = vmatprep.subr.bf16.mxu0 %v2698_v0  ;;  %v2703_v3 = vld [vmem:[%s3945_s1 + $0x2e8] ss:$16 sps:$4 sm:$0xff]   ;;  %684 = vmatprep.subr.bf16.mxu1 %v2700_v1  ;;  %v2704_v4 = vld [vmem:[%s3945_s1 + $0x2c4] ss:$16 sps:$4 sm:$0xff]   ;;  %v2706_v5 = vld [vmem:[%s3945_s1 + $0x2cc] ss:$16 sps:$4 sm:$0xff]  }
   0xd   : > { %644 = vmatpush1.bf16.msra.mxu0 %v2702_v2  ;;  %685 = vmatpush1.bf16.msra.mxu1 %v2703_v3  ;;  %v2708_v6 = vld [vmem:[%s3945_s1 + $0x2c0] ss:$16 sps:$4 sm:$0xff]   ;;  %v2709_v7 = vld [vmem:[%s3945_s1 + $0x2c8] ss:$16 sps:$4 sm:$0xff]   ;;  %v2710_v8 = vld [vmem:[%s3945_s1 + $0x2a4] ss:$16 sps:$4 sm:$0xff]  }
   0xe   : > { %645 = vmatprep.subr.bf16.mxu0 %v2704_v4  ;;  %686 = vmatprep.subr.bf16.mxu1 %v2706_v5  ;;  %v2712_v9 = vld [vmem:[%s3945_s1 + $0x2ac] ss:$16 sps:$4 sm:$0xff]   ;;  %v2714_v10 = vld [vmem:[%s3945_s1 + $0x2a0] ss:$16 sps:$4 sm:$0xff]   ;;  %v2715_v11 = vld [vmem:[%s3945_s1 + $0x2a8] ss:$16 sps:$4 sm:$0xff]  }
   0xf   : > { %v2716_v12 = vld [vmem:[%s3945_s1 + $0x284] ss:$16 sps:$4 sm:$0xff]   ;;  %v2718_v13 = vld [vmem:[%s3945_s1 + $0x28c] ss:$16 sps:$4 sm:$0xff]   ;;  %v2720_v14 = vld [vmem:[%s3945_s1 + $0x280] ss:$16 sps:$4 sm:$0xff]  }
  0x10   : > { %v2721_v15 = vld [vmem:[%s3945_s1 + $0x288] ss:$16 sps:$4 sm:$0xff]   ;;  %v2722_v16 = vld [vmem:[%s3945_s1 + $0x264] ss:$16 sps:$4 sm:$0xff]   ;;  %v2724_v17 = vld [vmem:[%s3945_s1 + $0x26c] ss:$16 sps:$4 sm:$0xff]  }
  0x11   : > { %646 = vmatpush1.bf16.msra.mxu0 %v2708_v6  ;;  %687 = vmatpush1.bf16.msra.mxu1 %v2709_v7  ;;  %v2726_v18 = vld [vmem:[%s3945_s1 + $0x260] ss:$16 sps:$4 sm:$0xff]   ;;  %v2727_v19 = vld [vmem:[%s3945_s1 + $0x268] ss:$16 sps:$4 sm:$0xff]   ;;  %v2728_v20 = vld [vmem:[%s3945_s1 + $0x244] ss:$16 sps:$4 sm:$0xff]  }
  0x12   : > { %647 = vmatprep.subr.bf16.mxu0 %v2710_v8  ;;  %688 = vmatprep.subr.bf16.mxu1 %v2712_v9  ;;  %v2730_v21 = vld [vmem:[%s3945_s1 + $0x24c] ss:$16 sps:$4 sm:$0xff]   ;;  %v2732_v22 = vld [vmem:[%s3945_s1 + $0x240] ss:$16 sps:$4 sm:$0xff]   ;;  %v2733_v23 = vld [vmem:[%s3945_s1 + $0x248] ss:$16 sps:$4 sm:$0xff]  }
  0x13   : > { %v2734_v24 = vld [vmem:[%s3945_s1 + $0x224] ss:$16 sps:$4 sm:$0xff]   ;;  %v2736_v25 = vld [vmem:[%s3945_s1 + $0x22c] ss:$16 sps:$4 sm:$0xff]   ;;  %v2738_v26 = vld [vmem:[%s3945_s1 + $0x220] ss:$16 sps:$4 sm:$0xff]  }
  0x14   : > { %v2739_v27 = vld [vmem:[%s3945_s1 + $0x228] ss:$16 sps:$4 sm:$0xff]   ;;  %v2740_v28 = vld [vmem:[%s3945_s1 + $0x204] ss:$16 sps:$4 sm:$0xff]   ;;  %v2742_v29 = vld [vmem:[%s3945_s1 + $0x20c] ss:$16 sps:$4 sm:$0xff]  }
  0x15   : > { %648 = vmatpush1.bf16.msra.mxu0 %v2714_v10  ;;  %689 = vmatpush1.bf16.msra.mxu1 %v2715_v11  ;;  %v2744_v30 = vld [vmem:[%s3945_s1 + $0x200] ss:$16 sps:$4 sm:$0xff]   ;;  %v2745_v31 = vld [vmem:[%s3945_s1 + $0x208] ss:$16 sps:$4 sm:$0xff]   ;;  %v2746_v32 = vld [vmem:[%s3945_s1 + $0x3e4] ss:$16 sps:$4 sm:$0xff]  }
  0x16   : > { %649 = vmatprep.subr.bf16.mxu0 %v2716_v12  ;;  %690 = vmatprep.subr.bf16.mxu1 %v2718_v13  ;;  %v2748_v33 = vld [vmem:[%s3945_s1 + $0x3ec] ss:$16 sps:$4 sm:$0xff]   ;;  %v2750_v34 = vld [vmem:[%s3945_s1 + $0x3e0] ss:$16 sps:$4 sm:$0xff]   ;;  %v2751_v35 = vld [vmem:[%s3945_s1 + $0x3e8] ss:$16 sps:$4 sm:$0xff]  }
  0x17   : > { %v2752_v36 = vld [vmem:[%s3945_s1 + $0x3c4] ss:$16 sps:$4 sm:$0xff]   ;;  %s3949_s13 = smov (!%p161_p3, %s2217_s13), 1  ;;  %v2754_v37 = vld [vmem:[%s3945_s1 + $0x3cc] ss:$16 sps:$4 sm:$0xff]  }
  0x18   : > { %v2756_v38 = vld [vmem:[%s3945_s1 + $0x3c0] ss:$16 sps:$4 sm:$0xff]   ;;  %v2757_v39 = vld [vmem:[%s3945_s1 + $0x3c8] ss:$16 sps:$4 sm:$0xff]   ;;  %v2758_v40 = vld [vmem:[%s3945_s1 + $0x3a4] ss:$16 sps:$4 sm:$0xff]  }
  0x19   : > { %650 = vmatpush1.bf16.msra.mxu0 %v2720_v14  ;;  %691 = vmatpush1.bf16.msra.mxu1 %v2721_v15  ;;  %s2686_s21 = sshll.u32 %s3949_s13, 4  ;;  %v2760_v41 = vld [vmem:[%s3945_s1 + $0x3ac] ss:$16 sps:$4 sm:$0xff]   ;;  %v2762_v42 = vld [vmem:[%s3945_s1 + $0x3a0] ss:$16 sps:$4 sm:$0xff]  }
  0x1a   : > { %651 = vmatprep.subr.bf16.mxu0 %v2722_v16  ;;  %692 = vmatprep.subr.bf16.mxu1 %v2724_v17  ;;  %v2763_v43 = vld [vmem:[%s3945_s1 + $0x3a8] ss:$16 sps:$4 sm:$0xff]   ;;  %s3270_s30 = scalar_lea.vmem %s3944_s0, %s2686_s21  ;;  %v2764_v44 = vld [vmem:[%s3945_s1 + $0x384] ss:$16 sps:$4 sm:$0xff]   ;;  %v2766_v45 = vld [vmem:[%s3945_s1 + $0x38c] ss:$16 sps:$4 sm:$0xff]   ;;  %s170_s14 = scalar_lea.vmem %s3947_s3, %s2686_s21 }
  0x1b   : > { %v236_v46 = vld [vmem:[%s3270_s30] sm:$0xff]  ;;  %v2769_v49 = vld [vmem:[%s3945_s1 + $0x388] ss:$16 sps:$4 sm:$0xff]   ;;  %v2772_v51 = vld [vmem:[%s3945_s1 + $0x36c] ss:$16 sps:$4 sm:$0xff]  }
  0x1c   : > { %v2768_v47 = vld [vmem:[%s3945_s1 + $0x380] ss:$16 sps:$4 sm:$0xff]   ;;  %v2291_v48 = vcombine.high %v236_v46, %v236_v46  ;;  %v2770_v50 = vld [vmem:[%s3945_s1 + $0x364] ss:$16 sps:$4 sm:$0xff]   ;;  %v2775_v55 = vld [vmem:[%s3945_s1 + $0x368] ss:$16 sps:$4 sm:$0xff]   ;;  %v2290_v62 = vcombine.low %v236_v46, %v236_v46 }
  0x1d   : > { %652 = vmatpush1.bf16.msra.mxu0 %v2726_v18  ;;  %693 = vmatpush1.bf16.msra.mxu1 %v2727_v19  ;;  %v2774_v54 = vld [vmem:[%s3945_s1 + $0x360] ss:$16 sps:$4 sm:$0xff]   ;;  %v2776_v57 = vld [vmem:[%s3945_s1 + $0x344] ss:$16 sps:$4 sm:$0xff]   ;;  %v2778_v58 = vld [vmem:[%s3945_s1 + $0x34c] ss:$16 sps:$4 sm:$0xff]  }
  0x1e   : > { %653 = vmatprep.subr.bf16.mxu0 %v2728_v20  ;;  %694 = vmatprep.subr.bf16.mxu1 %v2730_v21  ;;  %v315_v52 = vshrl.u32 %v2291_v48, 16  ;;  %v317_v53 = vshll.u32 %v2291_v48, 16  ;;  %v2780_v60 = vld [vmem:[%s3945_s1 + $0x340] ss:$16 sps:$4 sm:$0xff]   ;;  %v2781_v61 = vld [vmem:[%s3945_s1 + $0x348] ss:$16 sps:$4 sm:$0xff]  }
  0x1f   : > { %v2782_v63 = vld [vmem:[%s3945_s1 + $0x324] ss:$16 sps:$4 sm:$0xff]   ;;  %v2784_v0 = vld [vmem:[%s3945_s1 + $0x32c] ss:$16 sps:$4 sm:$0xff]   ;;  %v2786_v1 = vld [vmem:[%s3945_s1 + $0x320] ss:$16 sps:$4 sm:$0xff]  }
  0x20   : > { %v319_v56 = vrot.slane %v317_v53, 1  ;;  %v2787_v2 = vld [vmem:[%s3945_s1 + $0x328] ss:$16 sps:$4 sm:$0xff]   ;;  %v310_v3 = vshll.u32 %v2290_v62, 16  ;;  %v2788_v4 = vld [vmem:[%s3945_s1 + $0x304] ss:$16 sps:$4 sm:$0xff]  }
  0x21   : > { %654 = vmatpush1.bf16.msra.mxu0 %v2732_v22  ;;  %695 = vmatpush1.bf16.msra.mxu1 %v2733_v23  ;;  %v2790_v5 = vld [vmem:[%s3945_s1 + $0x30c] ss:$16 sps:$4 sm:$0xff]   ;;  %v2792_v6 = vld [vmem:[%s3945_s1 + $0x300] ss:$16 sps:$4 sm:$0xff]   ;;  %v2793_v7 = vld [vmem:[%s3945_s1 + $0x308] ss:$16 sps:$4 sm:$0xff]  }
  0x22   : > { %655 = vmatprep.subr.bf16.mxu0 %v2734_v24  ;;  %696 = vmatprep.subr.bf16.mxu1 %v2736_v25  ;;  %v320_v59 = vor.u32 %v319_v56, %v315_v52  ;;  %v308_v8 = vshrl.u32 %v2290_v62, 16  ;;  %v312_v9 = vrot.slane %v310_v3, 1  ;;  %v2798_v10 = vld [vmem:[%s3945_s1 + $0xe4] ss:$16 sps:$4 sm:$0xff]   ;;  %v2801_v11 = vld [vmem:[%s3945_s1 + $0xec] ss:$16 sps:$4 sm:$0xff]  }
  0x23   : > { %v2796_v13 = vld [vmem:[%s3945_s1 + $0xe0] ss:$16 sps:$4 sm:$0xff]   ;;  %v2799_v14 = vld [vmem:[%s3945_s1 + $0xe8] ss:$16 sps:$4 sm:$0xff]   ;;  %v2804_v15 = vld [vmem:[%s3945_s1 + $0xc4] ss:$16 sps:$4 sm:$0xff]  }
  0x24   : > { %675 = vmatprep.mubr.bf16.mxu0 %v320_v59  ;;  %716 = vmatprep.mubr.bf16.mxu1 %v320_v59  ;;  %v313_v12 = vor.u32 %v312_v9, %v308_v8  ;;  %v2807_v16 = vld [vmem:[%s3945_s1 + $0xcc] ss:$16 sps:$4 sm:$0xff]   ;;  %v2802_v17 = vld [vmem:[%s3945_s1 + $0xc0] ss:$16 sps:$4 sm:$0xff]   ;;  %v2805_v18 = vld [vmem:[%s3945_s1 + $0xc8] ss:$16 sps:$4 sm:$0xff]  }
  0x25   : > { %656 = vmatpush1.bf16.msra.mxu0 %v2738_v26  ;;  %697 = vmatpush1.bf16.msra.mxu1 %v2739_v27  ;;  %v2810_v19 = vld [vmem:[%s3945_s1 + $0xa4] ss:$16 sps:$4 sm:$0xff]   ;;  %v2813_v20 = vld [vmem:[%s3945_s1 + $0xac] ss:$16 sps:$4 sm:$0xff]   ;;  %v2808_v21 = vld [vmem:[%s3945_s1 + $0xa0] ss:$16 sps:$4 sm:$0xff]  }
  0x26   : > { %657 = vmatprep.subr.bf16.mxu0 %v2740_v28  ;;  %698 = vmatprep.subr.bf16.mxu1 %v2742_v29  ;;  %v2811_v22 = vld [vmem:[%s3945_s1 + $0xa8] ss:$16 sps:$4 sm:$0xff]   ;;  %v2816_v23 = vld [vmem:[%s3945_s1 + $0x84] ss:$16 sps:$4 sm:$0xff]   ;;  %v2819_v24 = vld [vmem:[%s3945_s1 + $0x8c] ss:$16 sps:$4 sm:$0xff]  }
  0x27   : > { %v2814_v25 = vld [vmem:[%s3945_s1 + $0x80] ss:$16 sps:$4 sm:$0xff]   ;;  %v2817_v26 = vld [vmem:[%s3945_s1 + $0x88] ss:$16 sps:$4 sm:$0xff]   ;;  %v2822_v27 = vld [vmem:[%s3945_s1 + $0x64] ss:$16 sps:$4 sm:$0xff]  }
  0x28   : > { %v2825_v28 = vld [vmem:[%s3945_s1 + $0x6c] ss:$16 sps:$4 sm:$0xff]   ;;  %v2820_v29 = vld [vmem:[%s3945_s1 + $0x60] ss:$16 sps:$4 sm:$0xff]   ;;  %v2847_v48 = vld [vmem:[%s3945_s1 + $0x1e8] ss:$16 sps:$4 sm:$0xff]  }
  0x29   : > { %658 = vmatpush1.bf16.msra.mxu0 %v2744_v30  ;;  %699 = vmatpush1.bf16.msra.mxu1 %v2745_v31  ;;  %v2823_v30 = vld [vmem:[%s3945_s1 + $0x68] ss:$16 sps:$4 sm:$0xff]   ;;  %v2828_v31 = vld [vmem:[%s3945_s1 + $0x44] ss:$16 sps:$4 sm:$0xff]   ;;  %v2849_v46 = vld [vmem:[%s3945_s1 + $0x1ec] ss:$16 sps:$4 sm:$0xff]  }
  0x2a   : > { %659 = vmatprep.subr.bf16.mxu0 %v2746_v32  ;;  %700 = vmatprep.subr.bf16.mxu1 %v2748_v33  ;;  %v2831_v32 = vld [vmem:[%s3945_s1 + $0x4c] ss:$16 sps:$4 sm:$0xff]   ;;  %v2826_v33 = vld [vmem:[%s3945_s1 + $0x40] ss:$16 sps:$4 sm:$0xff]   ;;  %v2853_v52 = vld [vmem:[%s3945_s1 + $0x1c8] ss:$16 sps:$4 sm:$0xff]  }
  0x2b   : > { %v2858_v53 = vld [vmem:[%s3945_s1 + $0x1a4] ss:$16 sps:$4 sm:$0xff]   ;;  %v2859_v56 = vld [vmem:[%s3945_s1 + $0x1a8] ss:$16 sps:$4 sm:$0xff]   ;;  %v2862_v59 = vld [vmem:[%s3945_s1 + $0x180] ss:$16 sps:$4 sm:$0xff]  }
  0x2c   : > { %v2873_v62 = vld [vmem:[%s3945_s1 + $0x16c] ss:$16 sps:$4 sm:$0xff]   ;;  %v2874_v3 = vld [vmem:[%s3945_s1 + $0x140] ss:$16 sps:$4 sm:$0xff]   ;;  %v2883_v8 = vld [vmem:[%s3945_s1 + $0x128] ss:$16 sps:$4 sm:$0xff]  }
  0x2d   : > { %660 = vmatpush2.bf16.msra.mxu0 %v2750_v34  ;;  %701 = vmatpush2.bf16.msra.mxu1 %v2751_v35  ;;  %v2829_v34 = vld [vmem:[%s3945_s1 + $0x48] ss:$16 sps:$4 sm:$0xff]   ;;  %v2834_v35 = vld [vmem:[%s3945_s1 + $0x24] ss:$16 sps:$4 sm:$0xff]  }
  0x2e   : > { %661 = vmatprep.subr.bf16.mxu0 %v2752_v36  ;;  %702 = vmatprep.subr.bf16.mxu1 %v2754_v37  ;;  %v2837_v36 = vld [vmem:[%s3945_s1 + $0x2c] ss:$16 sps:$4 sm:$0xff]   ;;  %v3412_v37 = vld [vmem:[%s3270_s30] sm:$0x77] }
  0x2f   : > { %v2888_v9 = vld [vmem:[%s3945_s1 + $0x104] ss:$16 sps:$4 sm:$0xff]  }
  0x31   : > { %662 = vmatpush2.bf16.msra.mxu0 %v2756_v38  ;;  %703 = vmatpush2.bf16.msra.mxu1 %v2757_v39  ;;  %v2832_v38 = vld [vmem:[%s3945_s1 + $0x20] ss:$16 sps:$4 sm:$0xff]   ;;  %v2357_v39 = vcombine.high %v3412_v37, %v3412_v37 }
  0x32   : > { %663 = vmatprep.subr.bf16.mxu0 %v2758_v40  ;;  %704 = vmatprep.subr.bf16.mxu1 %v2760_v41  ;;  %v2835_v40 = vld [vmem:[%s3945_s1 + $0x28] ss:$16 sps:$4 sm:$0xff]   ;;  %v2840_v41 = vld [vmem:[%s3945_s1 + $0x4] ss:$16 sps:$4 sm:$0xff]  }
  0x35   : > { %664 = vmatpush2.bf16.msra.mxu0 %v2762_v42  ;;  %705 = vmatpush2.bf16.msra.mxu1 %v2763_v43  ;;  %v2843_v42 = vld [vmem:[%s3945_s1 + $0xc] ss:$16 sps:$4 sm:$0xff]   ;;  %v2838_v43 = vld [vmem:[%s3945_s1] ss:$16 sps:$4 sm:$0xff]  }
  0x36   : > { %665 = vmatprep.subr.bf16.mxu0 %v2764_v44  ;;  %706 = vmatprep.subr.bf16.mxu1 %v2766_v45  ;;  %v2841_v44 = vld [vmem:[%s3945_s1 + $0x8] ss:$16 sps:$4 sm:$0xff]   ;;  %v2846_v45 = vld [vmem:[%s3945_s1 + $0x1e4] ss:$16 sps:$4 sm:$0xff]  }
  0x39   : > { %666 = vmatpush2.bf16.msra.mxu0 %v2768_v47  ;;  %707 = vmatpush2.bf16.msra.mxu1 %v2769_v49  ;;  %v2844_v47 = vld [vmem:[%s3945_s1 + $0x1e0] ss:$16 sps:$4 sm:$0xff]   ;;  %v2852_v49 = vld [vmem:[%s3945_s1 + $0x1c4] ss:$16 sps:$4 sm:$0xff]  }
  0x3a   : > { %667 = vmatprep.subr.bf16.mxu0 %v2770_v50  ;;  %708 = vmatprep.subr.bf16.mxu1 %v2772_v51  ;;  %v2855_v50 = vld [vmem:[%s3945_s1 + $0x1cc] ss:$16 sps:$4 sm:$0xff]   ;;  %v2850_v51 = vld [vmem:[%s3945_s1 + $0x1c0] ss:$16 sps:$4 sm:$0xff]  }
  0x3d   : > { %668 = vmatpush2.bf16.msra.mxu0 %v2774_v54  ;;  %709 = vmatpush2.bf16.msra.mxu1 %v2775_v55  ;;  %v2861_v54 = vld [vmem:[%s3945_s1 + $0x1ac] ss:$16 sps:$4 sm:$0xff]   ;;  %v2856_v55 = vld [vmem:[%s3945_s1 + $0x1a0] ss:$16 sps:$4 sm:$0xff]  }
  0x3e   : > { %669 = vmatprep.subr.bf16.mxu0 %v2776_v57  ;;  %710 = vmatprep.subr.bf16.mxu1 %v2778_v58  ;;  %v2864_v57 = vld [vmem:[%s3945_s1 + $0x184] ss:$16 sps:$4 sm:$0xff]   ;;  %v2867_v58 = vld [vmem:[%s3945_s1 + $0x18c] ss:$16 sps:$4 sm:$0xff]  }
  0x41   : > { %670 = vmatpush2.bf16.msra.mxu0 %v2780_v60  ;;  %711 = vmatpush2.bf16.msra.mxu1 %v2781_v61  ;;  %v2865_v60 = vld [vmem:[%s3945_s1 + $0x188] ss:$16 sps:$4 sm:$0xff]   ;;  %v2870_v61 = vld [vmem:[%s3945_s1 + $0x164] ss:$16 sps:$4 sm:$0xff]  }
  0x42   : > { %671 = vmatprep.subr.bf16.mxu0 %v2782_v63  ;;  %712 = vmatprep.subr.bf16.mxu1 %v2784_v0  ;;  %v2868_v63 = vld [vmem:[%s3945_s1 + $0x160] ss:$16 sps:$4 sm:$0xff]   ;;  %v2871_v0 = vld [vmem:[%s3945_s1 + $0x168] ss:$16 sps:$4 sm:$0xff]  }
  0x45   : > { %672 = vmatpush2.bf16.msra.mxu0 %v2786_v1  ;;  %713 = vmatpush2.bf16.msra.mxu1 %v2787_v2  ;;  %v2876_v1 = vld [vmem:[%s3945_s1 + $0x144] ss:$16 sps:$4 sm:$0xff]   ;;  %v2879_v2 = vld [vmem:[%s3945_s1 + $0x14c] ss:$16 sps:$4 sm:$0xff]  }
  0x46   : > { %673 = vmatprep.subr.bf16.mxu0 %v2788_v4  ;;  %714 = vmatprep.subr.bf16.mxu1 %v2790_v5  ;;  %v2877_v4 = vld [vmem:[%s3945_s1 + $0x148] ss:$16 sps:$4 sm:$0xff]   ;;  %v2882_v5 = vld [vmem:[%s3945_s1 + $0x124] ss:$16 sps:$4 sm:$0xff]  }
  0x49   : > { %674 = vmatpush2.bf16.msra.mxu0 %v2792_v6  ;;  %715 = vmatpush2.bf16.msra.mxu1 %v2793_v7  ;;  %v2885_v6 = vld [vmem:[%s3945_s1 + $0x12c] ss:$16 sps:$4 sm:$0xff]   ;;  %v2880_v7 = vld [vmem:[%s3945_s1 + $0x120] ss:$16 sps:$4 sm:$0xff]  }
  0x4a   : > { %1052 = vmatprep.subr.bf16.mxu0 %v2798_v10  ;;  %1093 = vmatprep.subr.bf16.mxu1 %v2801_v11  ;;  %v2891_v10 = vld [vmem:[%s3945_s1 + $0x10c] ss:$16 sps:$4 sm:$0xff]   ;;  %v2886_v11 = vld [vmem:[%s3945_s1 + $0x100] ss:$16 sps:$4 sm:$0xff]  }
  0x4c   : > { %676 = vmatmul.mubr.bf16.vlgmr.msra.gmra.mxu0 %v313_v12  ;;  %717 = vmatmul.mubr.bf16.vlgmr.msra.gmra.mxu1 %v313_v12  ;;  %v2889_v12 = vld [vmem:[%s3945_s1 + $0x108] ss:$16 sps:$4 sm:$0xff]  }
  0x4d   : > { %1053 = vmatpush1.bf16.msra.mxu0 %v2796_v13  ;;  %1094 = vmatpush1.bf16.msra.mxu1 %v2799_v14  ;;  %v2896_v13 = vld [vmem:[%s3945_s1 + $0x4e4] ss:$16 sps:$4 sm:$0xff]   ;;  %v2899_v14 = vld [vmem:[%s3945_s1 + $0x4ec] ss:$16 sps:$4 sm:$0xff]  }
  0x4e   : > { %1054 = vmatprep.subr.bf16.mxu0 %v2804_v15  ;;  %1095 = vmatprep.subr.bf16.mxu1 %v2807_v16  ;;  %v2356_v15 = vcombine.low %v3412_v37, %v3412_v37  ;;  %v2894_v16 = vld [vmem:[%s3945_s1 + $0x4e0] ss:$16 sps:$4 sm:$0xff]   ;;  %v2915_v37 = vld [vmem:[%s3945_s1 + $0x488] ss:$16 sps:$4 sm:$0xff]  }
  0x4f   : > { %1084 = vmatprep.mubr.bf16.mxu0 %v2357_v39  ;;  %1125 = vmatprep.mubr.bf16.mxu1 %v2357_v39  ;;  %v2923_v39 = vld [vmem:[%s3945_s1 + $0x46c] ss:$16 sps:$4 sm:$0xff]  }
  0x51   : > { %1055 = vmatpush1.bf16.msra.mxu0 %v2802_v17  ;;  %1096 = vmatpush1.bf16.msra.mxu1 %v2805_v18  ;;  %v2897_v17 = vld [vmem:[%s3945_s1 + $0x4e8] ss:$16 sps:$4 sm:$0xff]   ;;  %v2902_v18 = vld [vmem:[%s3945_s1 + $0x4c4] ss:$16 sps:$4 sm:$0xff]  }
  0x52   : > { %1056 = vmatprep.subr.bf16.mxu0 %v2810_v19  ;;  %1097 = vmatprep.subr.bf16.mxu1 %v2813_v20  ;;  %v2905_v19 = vld [vmem:[%s3945_s1 + $0x4cc] ss:$16 sps:$4 sm:$0xff]   ;;  %v3551_v20 = vld [vmem:[%s3270_s30] sm:$0xee] }
  0x55   : > { %1057 = vmatpush1.bf16.msra.mxu0 %v2808_v21  ;;  %1098 = vmatpush1.bf16.msra.mxu1 %v2811_v22  ;;  %v3554_v21 = vld [vmem:[%s3270_s30 + $0x8] sm:$0x11]  ;;  %v2900_v22 = vld [vmem:[%s3945_s1 + $0x4c0] ss:$16 sps:$4 sm:$0xff]  }
  0x56   : > { %1058 = vmatprep.subr.bf16.mxu0 %v2816_v23  ;;  %1099 = vmatprep.subr.bf16.mxu1 %v2819_v24  ;;  %v2487_v23 = vcombine.high %v3551_v20, %v3554_v21  ;;  %v2903_v24 = vld [vmem:[%s3945_s1 + $0x4c8] ss:$16 sps:$4 sm:$0xff]  }
  0x59   : > { %1059 = vmatpush1.bf16.msra.mxu0 %v2814_v25  ;;  %1100 = vmatpush1.bf16.msra.mxu1 %v2817_v26  ;;  %v2908_v25 = vld [vmem:[%s3945_s1 + $0x4a4] ss:$16 sps:$4 sm:$0xff]   ;;  %v2911_v26 = vld [vmem:[%s3945_s1 + $0x4ac] ss:$16 sps:$4 sm:$0xff]  }
  0x5a   : > { %1060 = vmatprep.subr.bf16.mxu0 %v2822_v27  ;;  %1101 = vmatprep.subr.bf16.mxu1 %v2825_v28  ;;  %v1218_v27 = vshrl.u32 %v2487_v23, 16  ;;  %v1221_v28 = vshll.u32 %v2487_v23, 16  ;;  %v2989_v23 = vld [vmem:[%s3945_s1 + $0x50c] ss:$16 sps:$4 sm:$0xff]  }
  0x5d   : > { %1061 = vmatpush1.bf16.msra.mxu0 %v2820_v29  ;;  %1102 = vmatpush1.bf16.msra.mxu1 %v2823_v30  ;;  %v1220_v29 = vrot.slane %v1218_v27, 1  ;;  %v1223_v30 = vrot.slane %v1221_v28, 2  ;;  %v2984_v27 = vld [vmem:[%s3945_s1 + $0x500] ss:$16 sps:$4 sm:$0xff]   ;;  %v2987_v28 = vld [vmem:[%s3945_s1 + $0x508] ss:$16 sps:$4 sm:$0xff]  }
  0x5e   : > { %1062 = vmatprep.subr.bf16.mxu0 %v2828_v31  ;;  %1103 = vmatprep.subr.bf16.mxu1 %v2831_v32  ;;  %v2906_v31 = vld [vmem:[%s3945_s1 + $0x4a0] ss:$16 sps:$4 sm:$0xff]   ;;  %v2909_v32 = vld [vmem:[%s3945_s1 + $0x4a8] ss:$16 sps:$4 sm:$0xff]  }
  0x61   : > { %1063 = vmatpush1.bf16.msra.mxu0 %v2826_v33  ;;  %1104 = vmatpush1.bf16.msra.mxu1 %v2829_v34  ;;  %v2914_v33 = vld [vmem:[%s3945_s1 + $0x484] ss:$16 sps:$4 sm:$0xff]   ;;  %v2917_v34 = vld [vmem:[%s3945_s1 + $0x48c] ss:$16 sps:$4 sm:$0xff]  }
  0x62   : > { %1064 = vmatprep.subr.bf16.mxu0 %v2834_v35  ;;  %1105 = vmatprep.subr.bf16.mxu1 %v2837_v36  ;;  %v1224_v35 = vor.u32 %v1223_v30, %v1220_v29  ;;  %v2912_v36 = vld [vmem:[%s3945_s1 + $0x480] ss:$16 sps:$4 sm:$0xff]   ;;  %v2994_v29 = vld [vmem:[%s3945_s1 + $0x6e4] ss:$16 sps:$4 sm:$0xff]   ;;  %v2997_v30 = vld [vmem:[%s3945_s1 + $0x6ec] ss:$16 sps:$4 sm:$0xff]  }
  0x65   : > { %1065 = vmatpush1.bf16.msra.mxu0 %v2832_v38  ;;  %1106 = vmatpush1.bf16.msra.mxu1 %v2835_v40  ;;  %v2920_v38 = vld [vmem:[%s3945_s1 + $0x464] ss:$16 sps:$4 sm:$0xff]   ;;  %v2918_v40 = vld [vmem:[%s3945_s1 + $0x460] ss:$16 sps:$4 sm:$0xff]  }
  0x66   : > { %1066 = vmatprep.subr.bf16.mxu0 %v2840_v41  ;;  %1107 = vmatprep.subr.bf16.mxu1 %v2843_v42  ;;  %v2921_v41 = vld [vmem:[%s3945_s1 + $0x468] ss:$16 sps:$4 sm:$0xff]   ;;  %v2926_v42 = vld [vmem:[%s3945_s1 + $0x444] ss:$16 sps:$4 sm:$0xff]  }
  0x69   : > { %1067 = vmatpush1.bf16.msra.mxu0 %v2838_v43  ;;  %1108 = vmatpush1.bf16.msra.mxu1 %v2841_v44  ;;  %v2929_v43 = vld [vmem:[%s3945_s1 + $0x44c] ss:$16 sps:$4 sm:$0xff]   ;;  %v2924_v44 = vld [vmem:[%s3945_s1 + $0x440] ss:$16 sps:$4 sm:$0xff]  }
  0x6a   : > { %1068 = vmatprep.subr.bf16.mxu0 %v2846_v45  ;;  %1109 = vmatprep.subr.bf16.mxu1 %v2849_v46  ;;  %v2927_v45 = vld [vmem:[%s3945_s1 + $0x448] ss:$16 sps:$4 sm:$0xff]   ;;  %v2932_v46 = vld [vmem:[%s3945_s1 + $0x424] ss:$16 sps:$4 sm:$0xff]  }
  0x6d   : > { %1069 = vmatpush2.bf16.msra.mxu0 %v2844_v47  ;;  %1110 = vmatpush2.bf16.msra.mxu1 %v2847_v48  ;;  %v2935_v47 = vld [vmem:[%s3945_s1 + $0x42c] ss:$16 sps:$4 sm:$0xff]   ;;  %v2930_v48 = vld [vmem:[%s3945_s1 + $0x420] ss:$16 sps:$4 sm:$0xff]  }
  0x6e   : > { %1070 = vmatprep.subr.bf16.mxu0 %v2852_v49  ;;  %1111 = vmatprep.subr.bf16.mxu1 %v2855_v50  ;;  %v2933_v49 = vld [vmem:[%s3945_s1 + $0x428] ss:$16 sps:$4 sm:$0xff]   ;;  %v2938_v50 = vld [vmem:[%s3945_s1 + $0x404] ss:$16 sps:$4 sm:$0xff]  }
  0x71   : > { %1071 = vmatpush2.bf16.msra.mxu0 %v2850_v51  ;;  %1112 = vmatpush2.bf16.msra.mxu1 %v2853_v52  ;;  %v2941_v51 = vld [vmem:[%s3945_s1 + $0x40c] ss:$16 sps:$4 sm:$0xff]   ;;  %v2936_v52 = vld [vmem:[%s3945_s1 + $0x400] ss:$16 sps:$4 sm:$0xff]  }
  0x72   : > { %1072 = vmatprep.subr.bf16.mxu0 %v2858_v53  ;;  %1113 = vmatprep.subr.bf16.mxu1 %v2861_v54  ;;  %v2939_v53 = vld [vmem:[%s3945_s1 + $0x408] ss:$16 sps:$4 sm:$0xff]   ;;  %v2944_v54 = vld [vmem:[%s3945_s1 + $0x5e4] ss:$16 sps:$4 sm:$0xff]  }
  0x75   : > { %1073 = vmatpush2.bf16.msra.mxu0 %v2856_v55  ;;  %1114 = vmatpush2.bf16.msra.mxu1 %v2859_v56  ;;  %v2947_v55 = vld [vmem:[%s3945_s1 + $0x5ec] ss:$16 sps:$4 sm:$0xff]   ;;  %v2942_v56 = vld [vmem:[%s3945_s1 + $0x5e0] ss:$16 sps:$4 sm:$0xff]  }
  0x76   : > { %1074 = vmatprep.subr.bf16.mxu0 %v2864_v57  ;;  %1115 = vmatprep.subr.bf16.mxu1 %v2867_v58  ;;  %v2945_v57 = vld [vmem:[%s3945_s1 + $0x5e8] ss:$16 sps:$4 sm:$0xff]   ;;  %v2950_v58 = vld [vmem:[%s3945_s1 + $0x5c4] ss:$16 sps:$4 sm:$0xff]  }
  0x79   : > { %1075 = vmatpush2.bf16.msra.mxu0 %v2862_v59  ;;  %1116 = vmatpush2.bf16.msra.mxu1 %v2865_v60  ;;  %v2953_v59 = vld [vmem:[%s3945_s1 + $0x5cc] ss:$16 sps:$4 sm:$0xff]   ;;  %v2948_v60 = vld [vmem:[%s3945_s1 + $0x5c0] ss:$16 sps:$4 sm:$0xff]  }
  0x7a   : > { %1076 = vmatprep.subr.bf16.mxu0 %v2870_v61  ;;  %1117 = vmatprep.subr.bf16.mxu1 %v2873_v62  ;;  %v2951_v61 = vld [vmem:[%s3945_s1 + $0x5c8] ss:$16 sps:$4 sm:$0xff]   ;;  %v2956_v62 = vld [vmem:[%s3945_s1 + $0x5a4] ss:$16 sps:$4 sm:$0xff]  }
  0x7d   : > { %1077 = vmatpush2.bf16.msra.mxu0 %v2868_v63  ;;  %1118 = vmatpush2.bf16.msra.mxu1 %v2871_v0  ;;  %v2959_v63 = vld [vmem:[%s3945_s1 + $0x5ac] ss:$16 sps:$4 sm:$0xff]   ;;  %v2954_v0 = vld [vmem:[%s3945_s1 + $0x5a0] ss:$16 sps:$4 sm:$0xff]  }
  0x7e   : > { %1078 = vmatprep.subr.bf16.mxu0 %v2876_v1  ;;  %1119 = vmatprep.subr.bf16.mxu1 %v2879_v2  ;;  %v2957_v1 = vld [vmem:[%s3945_s1 + $0x5a8] ss:$16 sps:$4 sm:$0xff]   ;;  %v2962_v2 = vld [vmem:[%s3945_s1 + $0x584] ss:$16 sps:$4 sm:$0xff]  }
  0x81   : > { %1079 = vmatpush2.bf16.msra.mxu0 %v2874_v3  ;;  %1120 = vmatpush2.bf16.msra.mxu1 %v2877_v4  ;;  %v2965_v3 = vld [vmem:[%s3945_s1 + $0x58c] ss:$16 sps:$4 sm:$0xff]   ;;  %v2960_v4 = vld [vmem:[%s3945_s1 + $0x580] ss:$16 sps:$4 sm:$0xff]  }
  0x82   : > { %1080 = vmatprep.subr.bf16.mxu0 %v2882_v5  ;;  %1121 = vmatprep.subr.bf16.mxu1 %v2885_v6  ;;  %v2963_v5 = vld [vmem:[%s3945_s1 + $0x588] ss:$16 sps:$4 sm:$0xff]   ;;  %v2968_v6 = vld [vmem:[%s3945_s1 + $0x564] ss:$16 sps:$4 sm:$0xff]  }
  0x85   : > { %1081 = vmatpush2.bf16.msra.mxu0 %v2880_v7  ;;  %1122 = vmatpush2.bf16.msra.mxu1 %v2883_v8  ;;  %v2971_v7 = vld [vmem:[%s3945_s1 + $0x56c] ss:$16 sps:$4 sm:$0xff]   ;;  %v2966_v8 = vld [vmem:[%s3945_s1 + $0x560] ss:$16 sps:$4 sm:$0xff]  }
  0x86   : > { %1082 = vmatprep.subr.bf16.mxu0 %v2888_v9  ;;  %1123 = vmatprep.subr.bf16.mxu1 %v2891_v10  ;;  %v2969_v9 = vld [vmem:[%s3945_s1 + $0x568] ss:$16 sps:$4 sm:$0xff]   ;;  %v2974_v10 = vld [vmem:[%s3945_s1 + $0x544] ss:$16 sps:$4 sm:$0xff]  }
  0x89   : > { %1083 = vmatpush2.bf16.msra.mxu0 %v2886_v11  ;;  %1124 = vmatpush2.bf16.msra.mxu1 %v2889_v12  ;;  %v2977_v11 = vld [vmem:[%s3945_s1 + $0x54c] ss:$16 sps:$4 sm:$0xff]   ;;  %v2486_v12 = vcombine.low %v3551_v20, %v3554_v21  ;;  %v2981_v20 = vld [vmem:[%s3945_s1 + $0x528] ss:$16 sps:$4 sm:$0xff]  }
  0x8a   : > { %1547 = vmatprep.subr.bf16.mxu0 %v2896_v13  ;;  %1588 = vmatprep.subr.bf16.mxu1 %v2899_v14  ;;  %v2972_v13 = vld [vmem:[%s3945_s1 + $0x540] ss:$16 sps:$4 sm:$0xff]   ;;  %v2975_v14 = vld [vmem:[%s3945_s1 + $0x548] ss:$16 sps:$4 sm:$0xff]  }
  0x8c   : > { %1085 = vmatmul.mubr.bf16.vlgmr.msra.gmra.mxu0 %v2356_v15  ;;  %1126 = vmatmul.mubr.bf16.vlgmr.msra.gmra.mxu1 %v2356_v15  ;;  %v2980_v15 = vld [vmem:[%s3945_s1 + $0x524] ss:$16 sps:$4 sm:$0xff]  }
  0x8d   : > { %1548 = vmatpush1.bf16.msra.mxu0 %v2894_v16  ;;  %1589 = vmatpush1.bf16.msra.mxu1 %v2897_v17  ;;  %v2983_v16 = vld [vmem:[%s3945_s1 + $0x52c] ss:$16 sps:$4 sm:$0xff]   ;;  %v1210_v17 = vshrl.u32 %v2486_v12, 16 }
  0x8e   : > { %1549 = vmatprep.subr.bf16.mxu0 %v2902_v18  ;;  %1590 = vmatprep.subr.bf16.mxu1 %v2905_v19  ;;  %v1213_v18 = vshll.u32 %v2486_v12, 16  ;;  %v2978_v19 = vld [vmem:[%s3945_s1 + $0x520] ss:$16 sps:$4 sm:$0xff]   ;;  %v3060_v12 = vld [vmem:[%s3945_s1 + $0x784] ss:$16 sps:$4 sm:$0xff]  }
  0x8f   : > { %1579 = vmatprep.mubr.bf16.mxu0 %v1224_v35  ;;  %1620 = vmatprep.mubr.bf16.mxu1 %v1224_v35  ;;  %v3000_v35 = vld [vmem:[%s3945_s1 + $0x6c4] ss:$16 sps:$4 sm:$0xff]  }
  0x91   : > { %1550 = vmatpush1.bf16.msra.mxu0 %v2900_v22  ;;  %1591 = vmatpush1.bf16.msra.mxu1 %v2903_v24  ;;  %v2986_v22 = vld [vmem:[%s3945_s1 + $0x504] ss:$16 sps:$4 sm:$0xff]   ;;  %v1212_v24 = vrot.slane %v1210_v17, 1  ;;  %v3069_v17 = vld [vmem:[%s3945_s1 + $0x76c] ss:$16 sps:$4 sm:$0xff]  }
  0x92   : > { %1551 = vmatprep.subr.bf16.mxu0 %v2908_v25  ;;  %1592 = vmatprep.subr.bf16.mxu1 %v2911_v26  ;;  %v1215_v25 = vrot.slane %v1213_v18, 2  ;;  %v3729_v26 = vld [vmem:[%s3270_s30] sm:$0xcc] }
  0x93   : > { %v3064_v18 = vld [vmem:[%s3945_s1 + $0x760] ss:$16 sps:$4 sm:$0xff]  }
  0x95   : > { %1552 = vmatpush1.bf16.msra.mxu0 %v2906_v31  ;;  %1593 = vmatpush1.bf16.msra.mxu1 %v2909_v32  ;;  %v2617_v31 = vcombine.high %v3729_v26, %v3554_v21  ;;  %v1216_v32 = vor.u32 %v1215_v25, %v1212_v24  ;;  %v3073_v24 = vld [vmem:[%s3945_s1 + $0x748] ss:$16 sps:$4 sm:$0xff]   ;;  %v3078_v25 = vld [vmem:[%s3945_s1 + $0x724] ss:$16 sps:$4 sm:$0xff]  }
  0x96   : > { %1553 = vmatprep.subr.bf16.mxu0 %v2914_v33  ;;  %1594 = vmatprep.subr.bf16.mxu1 %v2917_v34  ;;  %v2992_v33 = vld [vmem:[%s3945_s1 + $0x6e0] ss:$16 sps:$4 sm:$0xff]   ;;  %v2995_v34 = vld [vmem:[%s3945_s1 + $0x6e8] ss:$16 sps:$4 sm:$0xff]  }
  0x99   : > { %1554 = vmatpush1.bf16.msra.mxu0 %v2912_v36  ;;  %1595 = vmatpush1.bf16.msra.mxu1 %v2915_v37  ;;  %v3003_v36 = vld [vmem:[%s3945_s1 + $0x6cc] ss:$16 sps:$4 sm:$0xff]   ;;  %v1705_v37 = vrot.slane %v2617_v31, 2 }
  0x9a   : > { %1555 = vmatprep.subr.bf16.mxu0 %v2920_v38  ;;  %1596 = vmatprep.subr.bf16.mxu1 %v2923_v39  ;;  %v2998_v38 = vld [vmem:[%s3945_s1 + $0x6c0] ss:$16 sps:$4 sm:$0xff]   ;;  %v3001_v39 = vld [vmem:[%s3945_s1 + $0x6c8] ss:$16 sps:$4 sm:$0xff]   ;;  %v3087_v31 = vld [vmem:[%s3945_s1 + $0x70c] ss:$16 sps:$4 sm:$0xff]  }
  0x9d   : > { %1556 = vmatpush1.bf16.msra.mxu0 %v2918_v40  ;;  %1597 = vmatpush1.bf16.msra.mxu1 %v2921_v41  ;;  %v3006_v40 = vld [vmem:[%s3945_s1 + $0x6a4] ss:$16 sps:$4 sm:$0xff]   ;;  %v3009_v41 = vld [vmem:[%s3945_s1 + $0x6ac] ss:$16 sps:$4 sm:$0xff]  }
  0x9e   : > { %1557 = vmatprep.subr.bf16.mxu0 %v2926_v42  ;;  %1598 = vmatprep.subr.bf16.mxu1 %v2929_v43  ;;  %v3004_v42 = vld [vmem:[%s3945_s1 + $0x6a0] ss:$16 sps:$4 sm:$0xff]   ;;  %v3007_v43 = vld [vmem:[%s3945_s1 + $0x6a8] ss:$16 sps:$4 sm:$0xff]  }
  0xa1   : > { %1558 = vmatpush1.bf16.msra.mxu0 %v2924_v44  ;;  %1599 = vmatpush1.bf16.msra.mxu1 %v2927_v45  ;;  %v3012_v44 = vld [vmem:[%s3945_s1 + $0x684] ss:$16 sps:$4 sm:$0xff]   ;;  %v3015_v45 = vld [vmem:[%s3945_s1 + $0x68c] ss:$16 sps:$4 sm:$0xff]  }
  0xa2   : > { %1559 = vmatprep.subr.bf16.mxu0 %v2932_v46  ;;  %1600 = vmatprep.subr.bf16.mxu1 %v2935_v47  ;;  %v3010_v46 = vld [vmem:[%s3945_s1 + $0x680] ss:$16 sps:$4 sm:$0xff]   ;;  %v3013_v47 = vld [vmem:[%s3945_s1 + $0x688] ss:$16 sps:$4 sm:$0xff]  }
  0xa5   : > { %1560 = vmatpush1.bf16.msra.mxu0 %v2930_v48  ;;  %1601 = vmatpush1.bf16.msra.mxu1 %v2933_v49  ;;  %v3018_v48 = vld [vmem:[%s3945_s1 + $0x664] ss:$16 sps:$4 sm:$0xff]   ;;  %v3021_v49 = vld [vmem:[%s3945_s1 + $0x66c] ss:$16 sps:$4 sm:$0xff]  }
  0xa6   : > { %1561 = vmatprep.subr.bf16.mxu0 %v2938_v50  ;;  %1602 = vmatprep.subr.bf16.mxu1 %v2941_v51  ;;  %v3016_v50 = vld [vmem:[%s3945_s1 + $0x660] ss:$16 sps:$4 sm:$0xff]   ;;  %v3019_v51 = vld [vmem:[%s3945_s1 + $0x668] ss:$16 sps:$4 sm:$0xff]  }
  0xa9   : > { %1562 = vmatpush1.bf16.msra.mxu0 %v2936_v52  ;;  %1603 = vmatpush1.bf16.msra.mxu1 %v2939_v53  ;;  %v3024_v52 = vld [vmem:[%s3945_s1 + $0x644] ss:$16 sps:$4 sm:$0xff]   ;;  %v3027_v53 = vld [vmem:[%s3945_s1 + $0x64c] ss:$16 sps:$4 sm:$0xff]  }
  0xaa   : > { %1563 = vmatprep.subr.bf16.mxu0 %v2944_v54  ;;  %1604 = vmatprep.subr.bf16.mxu1 %v2947_v55  ;;  %v3022_v54 = vld [vmem:[%s3945_s1 + $0x640] ss:$16 sps:$4 sm:$0xff]   ;;  %v3025_v55 = vld [vmem:[%s3945_s1 + $0x648] ss:$16 sps:$4 sm:$0xff]  }
  0xad   : > { %1564 = vmatpush2.bf16.msra.mxu0 %v2942_v56  ;;  %1605 = vmatpush2.bf16.msra.mxu1 %v2945_v57  ;;  %v3030_v56 = vld [vmem:[%s3945_s1 + $0x624] ss:$16 sps:$4 sm:$0xff]   ;;  %v3033_v57 = vld [vmem:[%s3945_s1 + $0x62c] ss:$16 sps:$4 sm:$0xff]  }
  0xae   : > { %1565 = vmatprep.subr.bf16.mxu0 %v2950_v58  ;;  %1606 = vmatprep.subr.bf16.mxu1 %v2953_v59  ;;  %v3028_v58 = vld [vmem:[%s3945_s1 + $0x620] ss:$16 sps:$4 sm:$0xff]   ;;  %v3031_v59 = vld [vmem:[%s3945_s1 + $0x628] ss:$16 sps:$4 sm:$0xff]  }
  0xb1   : > { %1566 = vmatpush2.bf16.msra.mxu0 %v2948_v60  ;;  %1607 = vmatpush2.bf16.msra.mxu1 %v2951_v61  ;;  %v3036_v60 = vld [vmem:[%s3945_s1 + $0x604] ss:$16 sps:$4 sm:$0xff]   ;;  %v3039_v61 = vld [vmem:[%s3945_s1 + $0x60c] ss:$16 sps:$4 sm:$0xff]  }
  0xb2   : > { %1567 = vmatprep.subr.bf16.mxu0 %v2956_v62  ;;  %1608 = vmatprep.subr.bf16.mxu1 %v2959_v63  ;;  %v3034_v62 = vld [vmem:[%s3945_s1 + $0x600] ss:$16 sps:$4 sm:$0xff]   ;;  %v3037_v63 = vld [vmem:[%s3945_s1 + $0x608] ss:$16 sps:$4 sm:$0xff]  }
  0xb5   : > { %1568 = vmatpush2.bf16.msra.mxu0 %v2954_v0  ;;  %1609 = vmatpush2.bf16.msra.mxu1 %v2957_v1  ;;  %v3042_v0 = vld [vmem:[%s3945_s1 + $0x7e4] ss:$16 sps:$4 sm:$0xff]   ;;  %v3045_v1 = vld [vmem:[%s3945_s1 + $0x7ec] ss:$16 sps:$4 sm:$0xff]  }
  0xb6   : > { %1569 = vmatprep.subr.bf16.mxu0 %v2962_v2  ;;  %1610 = vmatprep.subr.bf16.mxu1 %v2965_v3  ;;  %v3040_v2 = vld [vmem:[%s3945_s1 + $0x7e0] ss:$16 sps:$4 sm:$0xff]   ;;  %v3043_v3 = vld [vmem:[%s3945_s1 + $0x7e8] ss:$16 sps:$4 sm:$0xff]  }
  0xb9   : > { %1570 = vmatpush2.bf16.msra.mxu0 %v2960_v4  ;;  %1611 = vmatpush2.bf16.msra.mxu1 %v2963_v5  ;;  %v3048_v4 = vld [vmem:[%s3945_s1 + $0x7c4] ss:$16 sps:$4 sm:$0xff]   ;;  %v3051_v5 = vld [vmem:[%s3945_s1 + $0x7cc] ss:$16 sps:$4 sm:$0xff]  }
  0xba   : > { %1571 = vmatprep.subr.bf16.mxu0 %v2968_v6  ;;  %1612 = vmatprep.subr.bf16.mxu1 %v2971_v7  ;;  %v3046_v6 = vld [vmem:[%s3945_s1 + $0x7c0] ss:$16 sps:$4 sm:$0xff]   ;;  %v3049_v7 = vld [vmem:[%s3945_s1 + $0x7c8] ss:$16 sps:$4 sm:$0xff]  }
  0xbd   : > { %1572 = vmatpush2.bf16.msra.mxu0 %v2966_v8  ;;  %1613 = vmatpush2.bf16.msra.mxu1 %v2969_v9  ;;  %v3054_v8 = vld [vmem:[%s3945_s1 + $0x7a4] ss:$16 sps:$4 sm:$0xff]   ;;  %v3057_v9 = vld [vmem:[%s3945_s1 + $0x7ac] ss:$16 sps:$4 sm:$0xff]  }
  0xbe   : > { %1573 = vmatprep.subr.bf16.mxu0 %v2974_v10  ;;  %1614 = vmatprep.subr.bf16.mxu1 %v2977_v11  ;;  %v3052_v10 = vld [vmem:[%s3945_s1 + $0x7a0] ss:$16 sps:$4 sm:$0xff]   ;;  %v3055_v11 = vld [vmem:[%s3945_s1 + $0x7a8] ss:$16 sps:$4 sm:$0xff]  }
  0xc1   : > { %1574 = vmatpush2.bf16.msra.mxu0 %v2972_v13  ;;  %1615 = vmatpush2.bf16.msra.mxu1 %v2975_v14  ;;  %v3063_v13 = vld [vmem:[%s3945_s1 + $0x78c] ss:$16 sps:$4 sm:$0xff]   ;;  %v3058_v14 = vld [vmem:[%s3945_s1 + $0x780] ss:$16 sps:$4 sm:$0xff]  }
  0xc2   : > { %1575 = vmatprep.subr.bf16.mxu0 %v2980_v15  ;;  %1616 = vmatprep.subr.bf16.mxu1 %v2983_v16  ;;  %v3061_v15 = vld [vmem:[%s3945_s1 + $0x788] ss:$16 sps:$4 sm:$0xff]   ;;  %v3066_v16 = vld [vmem:[%s3945_s1 + $0x764] ss:$16 sps:$4 sm:$0xff]  }
  0xc5   : > { %1576 = vmatpush2.bf16.msra.mxu0 %v2978_v19  ;;  %1617 = vmatpush2.bf16.msra.mxu1 %v2981_v20  ;;  %v3067_v19 = vld [vmem:[%s3945_s1 + $0x768] ss:$16 sps:$4 sm:$0xff]   ;;  %v3072_v20 = vld [vmem:[%s3945_s1 + $0x744] ss:$16 sps:$4 sm:$0xff]  }
  0xc6   : > { %1577 = vmatprep.subr.bf16.mxu0 %v2986_v22  ;;  %1618 = vmatprep.subr.bf16.mxu1 %v2989_v23  ;;  %v3075_v22 = vld [vmem:[%s3945_s1 + $0x74c] ss:$16 sps:$4 sm:$0xff]   ;;  %v3070_v23 = vld [vmem:[%s3945_s1 + $0x740] ss:$16 sps:$4 sm:$0xff]  }
  0xc9   : > { %1578 = vmatpush2.bf16.msra.mxu0 %v2984_v27  ;;  %1619 = vmatpush2.bf16.msra.mxu1 %v2987_v28  ;;  %v3081_v27 = vld [vmem:[%s3945_s1 + $0x72c] ss:$16 sps:$4 sm:$0xff]   ;;  %v3076_v28 = vld [vmem:[%s3945_s1 + $0x720] ss:$16 sps:$4 sm:$0xff]  }
  0xca   : > { %2028 = vmatprep.subr.bf16.mxu0 %v2994_v29  ;;  %2069 = vmatprep.subr.bf16.mxu1 %v2997_v30  ;;  %v3079_v29 = vld [vmem:[%s3945_s1 + $0x728] ss:$16 sps:$4 sm:$0xff]   ;;  %v3084_v30 = vld [vmem:[%s3945_s1 + $0x704] ss:$16 sps:$4 sm:$0xff]  }
  0xcc   : > { %1580 = vmatmul.mubr.bf16.vlgmr.msra.gmra.mxu0 %v1216_v32  ;;  %1621 = vmatmul.mubr.bf16.vlgmr.msra.gmra.mxu1 %v1216_v32  ;;  %v2616_v32 = vcombine.low %v3729_v26, %v3554_v21 }
  0xcd   : > { %2029 = vmatpush1.bf16.msra.mxu0 %v2992_v33  ;;  %2070 = vmatpush1.bf16.msra.mxu1 %v2995_v34  ;;  %v3082_v33 = vld [vmem:[%s3945_s1 + $0x700] ss:$16 sps:$4 sm:$0xff]   ;;  %v3085_v34 = vld [vmem:[%s3945_s1 + $0x708] ss:$16 sps:$4 sm:$0xff]  }
  0xce   : > { %2030 = vmatprep.subr.bf16.mxu0 %v3000_v35  ;;  %2071 = vmatprep.subr.bf16.mxu1 %v3003_v36  ;;  %v1704_v35 = vrot.slane %v2616_v32, 2 }
  0xcf   : > { %2060 = vmatprep.mubr.bf16.mxu0 %v1705_v37  ;;  %2101 = vmatprep.mubr.bf16.mxu1 %v1705_v37 }
  0xd1   : > { %2031 = vmatpush1.bf16.msra.mxu0 %v2998_v38  ;;  %2072 = vmatpush1.bf16.msra.mxu1 %v3001_v39 }
  0xd2   : > { %2032 = vmatprep.subr.bf16.mxu0 %v3006_v40  ;;  %2073 = vmatprep.subr.bf16.mxu1 %v3009_v41 }
  0xd5   : > { %2033 = vmatpush1.bf16.msra.mxu0 %v3004_v42  ;;  %2074 = vmatpush1.bf16.msra.mxu1 %v3007_v43 }
  0xd6   : > { %2034 = vmatprep.subr.bf16.mxu0 %v3012_v44  ;;  %2075 = vmatprep.subr.bf16.mxu1 %v3015_v45 }
  0xd9   : > { %2035 = vmatpush1.bf16.msra.mxu0 %v3010_v46  ;;  %2076 = vmatpush1.bf16.msra.mxu1 %v3013_v47 }
  0xda   : > { %2036 = vmatprep.subr.bf16.mxu0 %v3018_v48  ;;  %2077 = vmatprep.subr.bf16.mxu1 %v3021_v49 }
  0xdd   : > { %2037 = vmatpush1.bf16.msra.mxu0 %v3016_v50  ;;  %2078 = vmatpush1.bf16.msra.mxu1 %v3019_v51 }
  0xde   : > { %2038 = vmatprep.subr.bf16.mxu0 %v3024_v52  ;;  %2079 = vmatprep.subr.bf16.mxu1 %v3027_v53 }
  0xe1   : > { %2039 = vmatpush1.bf16.msra.mxu0 %v3022_v54  ;;  %2080 = vmatpush1.bf16.msra.mxu1 %v3025_v55 }
  0xe2   : > { %2040 = vmatprep.subr.bf16.mxu0 %v3030_v56  ;;  %2081 = vmatprep.subr.bf16.mxu1 %v3033_v57 }
  0xe5   : > { %2041 = vmatpush1.bf16.msra.mxu0 %v3028_v58  ;;  %2082 = vmatpush1.bf16.msra.mxu1 %v3031_v59 }
  0xe6   : > { %2042 = vmatprep.subr.bf16.mxu0 %v3036_v60  ;;  %2083 = vmatprep.subr.bf16.mxu1 %v3039_v61 }
  0xe9   : > { %2043 = vmatpush1.bf16.msra.mxu0 %v3034_v62  ;;  %2084 = vmatpush1.bf16.msra.mxu1 %v3037_v63 }
  0xea   : > { %2044 = vmatprep.subr.bf16.mxu0 %v3042_v0  ;;  %2085 = vmatprep.subr.bf16.mxu1 %v3045_v1  ;;  %v2116_v0 = vlaneseq }
  0xec   : > { %v2117_v1 = vshrl.u32 %v2116_v0, 7 }
  0xed   : > { %2045 = vmatpush2.bf16.msra.mxu0 %v3040_v2  ;;  %2086 = vmatpush2.bf16.msra.mxu1 %v3043_v3 }
  0xee   : > { %2046 = vmatprep.subr.bf16.mxu0 %v3048_v4  ;;  %2087 = vmatprep.subr.bf16.mxu1 %v3051_v5  ;;  %v2118_v2 = vsub.s32 0, %v2117_v1  ;;  %v2126_v3 = vsub.s32 2, %v2117_v1  ;;  %v2114_v4 = vld [vmem:[%s3946_s2] sm:$0xf]  ;;  %v2122_v5 = vsub.s32 1, %v2117_v1 }
  0xf1   : > { %2047 = vmatpush2.bf16.msra.mxu0 %v3046_v6  ;;  %2088 = vmatpush2.bf16.msra.mxu1 %v3049_v7  ;;  %v2130_v6 = vsub.s32 3, %v2117_v1  ;;  %v2119_v7 = vrot.slane %v2114_v4, %v2118_v2 }
  0xf2   : > { %2048 = vmatprep.subr.bf16.mxu0 %v3054_v8  ;;  %2089 = vmatprep.subr.bf16.mxu1 %v3057_v9  ;;  %v2127_v8 = vrot.slane %v2114_v4, %v2126_v3 }
  0xf5   : > { %2049 = vmatpush2.bf16.msra.mxu0 %v3052_v10  ;;  %2090 = vmatpush2.bf16.msra.mxu1 %v3055_v11  ;;  %v2123_v11 = vrot.slane %v2114_v4, %v2122_v5 }
  0xf6   : > { %2050 = vmatprep.subr.bf16.mxu0 %v3060_v12  ;;  %2091 = vmatprep.subr.bf16.mxu1 %v3063_v13  ;;  %v2131_v12 = vrot.slane %v2114_v4, %v2130_v6 }
  0xf9   : > { %2051 = vmatpush2.bf16.msra.mxu0 %v3058_v14  ;;  %2092 = vmatpush2.bf16.msra.mxu1 %v3061_v15 }
  0xfa   : > { %2052 = vmatprep.subr.bf16.mxu0 %v3066_v16  ;;  %2093 = vmatprep.subr.bf16.mxu1 %v3069_v17 }
  0xfd   : > { %2053 = vmatpush2.bf16.msra.mxu0 %v3064_v18  ;;  %2094 = vmatpush2.bf16.msra.mxu1 %v3067_v19 }
  0xfe   : > { %2054 = vmatprep.subr.bf16.mxu0 %v3072_v20  ;;  %2095 = vmatprep.subr.bf16.mxu1 %v3075_v22 }
 0x101   : > { %2055 = vmatpush2.bf16.msra.mxu0 %v3070_v23  ;;  %2096 = vmatpush2.bf16.msra.mxu1 %v3073_v24 }
 0x102   : > { %2056 = vmatprep.subr.bf16.mxu0 %v3078_v25  ;;  %2097 = vmatprep.subr.bf16.mxu1 %v3081_v27 }
 0x105   : > { %2057 = vmatpush2.bf16.msra.mxu0 %v3076_v28  ;;  %2098 = vmatpush2.bf16.msra.mxu1 %v3079_v29 }
 0x106   : > { %2058 = vmatprep.subr.bf16.mxu0 %v3084_v30  ;;  %2099 = vmatprep.subr.bf16.mxu1 %v3087_v31 }
 0x109   : > { %2059 = vmatpush2.bf16.msra.mxu0 %v3082_v33  ;;  %2100 = vmatpush2.bf16.msra.mxu1 %v3085_v34 }
 0x10c   : > { %v677_v36 = vpop.f32.mrf.mxu0  ;;  %v718_v37 = vpop.f32.mrf.mxu1  ;;  %2061 = vmatmul.mubr.bf16.vlgmr.msra.gmra.mxu0 %v1704_v35  ;;  %2102 = vmatmul.mubr.bf16.vlgmr.msra.gmra.mxu1 %v1704_v35 }
 0x10e   : > { %v679_v21 = vpop.f32.mrf.mxu0  ;;  %v720_v26 = vpop.f32.mrf.mxu1 }
 0x110   : > { %v681_v38 = vpop.f32.mrf.mxu0  ;;  %v722_v39 = vpop.f32.mrf.mxu1 }
 0x112   : > { %v682_v40 = vpop.f32.mrf.mxu0  ;;  %v723_v41 = vpop.f32.mrf.mxu1 }
 0x14c   : > { %v1086_v42 = vpop.f32.mrf.mxu0  ;;  %v1127_v43 = vpop.f32.mrf.mxu1 }
 0x14d   : > { %v1087_v44 = vadd.f32 %v1086_v42, %v677_v36  ;;  %v1128_v45 = vadd.f32 %v1127_v43, %v718_v37 }
 0x14e   : > { %v1088_v46 = vpop.f32.mrf.mxu0  ;;  %v1129_v47 = vpop.f32.mrf.mxu1 }
 0x14f   : > { %v1089_v48 = vadd.f32 %v1088_v46, %v679_v21  ;;  %v1130_v49 = vadd.f32 %v1129_v47, %v720_v26 }
 0x150   : > { %v1090_v50 = vpop.f32.mrf.mxu0  ;;  %v1131_v51 = vpop.f32.mrf.mxu1 }
 0x152   : > { %v1091_v52 = vpop.f32.mrf.mxu0  ;;  %v1132_v53 = vpop.f32.mrf.mxu1 }
 0x18c   : > { %v1581_v54 = vpop.f32.mrf.mxu0  ;;  %v1622_v55 = vpop.f32.mrf.mxu1 }
 0x18d   : > { %v1629_v56 = vadd.f32 %v1581_v54, %v1087_v44  ;;  %v1631_v57 = vadd.f32 %v1622_v55, %v1128_v45 }
 0x18e   : > { %v1583_v58 = vpop.f32.mrf.mxu0  ;;  %v1624_v59 = vpop.f32.mrf.mxu1 }
 0x18f   : > { %v1630_v13 = vadd.f32 %v1583_v58, %v1089_v48  ;;  %v1632_v14 = vadd.f32 %v1624_v59, %v1130_v49 }
 0x190   : > { %v1585_v60 = vpop.f32.mrf.mxu0  ;;  %v1626_v61 = vpop.f32.mrf.mxu1 }
 0x192   : > { %v1586_v62 = vpop.f32.mrf.mxu0  ;;  %v1627_v63 = vpop.f32.mrf.mxu1 }
 0x1cc   : > { %v2062_v9 = vpop.f32.mrf.mxu0  ;;  %v2103_v10 = vpop.f32.mrf.mxu1 }
 0x1cd   : > { %v2110_v15 = vadd.f32 %v2062_v9, %v1629_v56  ;;  %v2112_v16 = vadd.f32 %v2103_v10, %v1631_v57 }
 0x1ce   : > { %v2064_v17 = vpop.f32.mrf.mxu0  ;;  %v2105_v18 = vpop.f32.mrf.mxu1 }
 0x1cf   : > { %v2136_v19 = vadd.f32 %v2119_v7, %v2110_v15  ;;  %v2138_v20 = vadd.f32 %v2127_v8, %v2112_v16  ;;  %v2111_v22 = vadd.f32 %v2064_v17, %v1630_v13  ;;  %v2113_v23 = vadd.f32 %v2105_v18, %v1632_v14 }
 0x1d0   : > { %v2066_v24 = vpop.f32.mrf.mxu0  ;;  %v2107_v25 = vpop.f32.mrf.mxu1 }
 0x1d1   : > { %v2137_v27 = vadd.f32 %v2123_v11, %v2111_v22  ;;  %v2139_v28 = vadd.f32 %v2131_v12, %v2113_v23  ;;  %v2140_v31 = vmax.f32 %v2136_v19, 0.0  ;;  %v2142_v32 = vmax.f32 %v2138_v20, 0.0 }
 0x1d2   : > { %v2067_v29 = vpop.f32.mrf.mxu0  ;;  %v2108_v30 = vpop.f32.mrf.mxu1 }
 0x1d3   : > { %v2141_v33 = vmax.f32 %v2137_v27, 0.0  ;;  %v2143_v34 = vmax.f32 %v2139_v28, 0.0 }
 0x1d5   : > { %v2688_v35 = vpack.c.bf16 %v2141_v33, %v2140_v31  ;;  %v2689_v36 = vpack.c.bf16 %v2143_v34, %v2142_v32 }
 0x1d7   : > { %2160 = vst [vmem:[%s170_s14] sm:$0x77] %v2688_v35  ;;  %2161 = vst [vmem:[%s170_s14 + $0x8] sm:$0x77] %v2689_v36 }
 0x1d8 PF: > { %s13_s12 = sadd.s32 1, %s3096_s12  }
 0x1d9   : > { %p10_p4 = scmp.ge.s32.totalorder %s13_s12, 4  }
 0x1db   :  { %12 = sbr.rel (!%p10_p4) target bundleno = 1 (0x1), region = 65 }

// kernel: unet_forward.14
= control target key start
LH: loop header
LB: loop body
LE: loop exit
PB: predicated region body
PF: predicated region fallthrough
CT: control target
= control target key end

     0   :  { %s2530_s18 = smov 0   ;;  %s3030_s0 = inlined_call_operand.vmem [shape: bf16[2,90,64], index: 0, kind: input, shape index: {}]   ;;  %s3031_s1 = inlined_call_operand.vmem [shape: bf16[2,90,128], index: 1, kind: input, shape index: {}]   ;;  %s3032_s2 = inlined_call_operand.vmem [shape: bf16[4,64,128], index: 2, kind: input, shape index: {}]   ;;  %s3033_s3 = inlined_call_operand.vmem [shape: bf16[4,128,128], index: 3, kind: input, shape index: {}]   ;;  %s3034_s4 = inlined_call_operand.vmem [shape: f32[1,128], index: 4, kind: input, shape index: {}]   ;;  %s3035_s5 = inlined_call_operand.vmem [shape: bf16[2,72,128], index: 5, kind: output, shape index: {}]  }
   0x1 LB: > { %s1838_s19 = sadd.s32 4294967295, %s2496_s18   ;;  %p1842_p0 = scmp.ge.s32.totalorder %s2496_s18, 1  ;;  %s2496_s18 = sphi %s2530_s18, %s15_s18  }
   0x2   : > { %p197_p1 = scmp.lt.s32.totalorder %s2496_s18, 3 }
   0x4   : > { %p198_p2 = pnand %p1842_p0, %p197_p1 }
   0x5   : > { %p230_p3 = scmp.lt.s32.totalorder (!%p198_p2), %s1838_s19, 1 }
   0x6   : > { %201 = sbr.rel (%p198_p2) target bundleno = 384 (0x180), region = 40 }
   0xb   : > { %v2414_v0 = vld [vmem:[%s3032_s2 + $0x38] sm:$0xff]   ;;  %v2498_v1 = vmov 0.0   ;;  %v2416_v3 = vld [vmem:[%s3032_s2 + $0x30] sm:$0xff]   ;;  %vm2499_vm0 = vmmov 0   ;;  %s3037_s19 = smov (!%p230_p3, %s1838_s19), 1  ;;  %v2418_v5 = vld [vmem:[%s3032_s2 + $0x28] sm:$0xff]  }
   0xc   : > { %2146 = vmatprep.subr.bf16.mxu0 %v2498_v1  ;;  %2174 = vmatprep.subr.bf16.mxu1 %v2498_v1  ;;  %v2415_v2 = vld [vmem:[%s3032_s2 + $0x18] sm:$0xff]   ;;  %v2417_v4 = vld [vmem:[%s3032_s2 + $0x10] sm:$0xff]   ;;  %s2402_s30 = smul.u32 48, %s3037_s19  ;;  %v2419_v6 = vld [vmem:[%s3032_s2 + $0x8] sm:$0xff]   ;;  %vm362_vm1 = vcmask 523264   ;;  %vm774_vm3 = vcmask 1046528  }
   0xd   : > { %2147 = vmatpush3.bf16.msra.mxu0 %v2414_v0  ;;  %2154 = vmatprep.mubr.msk.bf16.mxu0 %vm2499_vm0, %v2498_v1  ;;  %v2420_v7 = vld [vmem:[%s3032_s2 + $0x20] sm:$0xff]   ;;  %vm298_vm2 = vsmask.f32 7424  ;;  %v2425_v17 = vld [vmem:[%s3032_s2 + $0x78] sm:$0xff]   ;;  %v2427_v24 = vld [vmem:[%s3032_s2 + $0x50] sm:$0xff]   ;;  %s2403_s10 = smul.u32 36, %s3037_s19 }
   0xe   : > { %2175 = vmatpush3.bf16.msra.mxu1 %v2415_v2  ;;  %2148 = vmatprep.subr.bf16.mxu0 %v2498_v1  ;;  %s2577_s12 = scalar_lea.vmem %s3030_s0, %s2402_s30  ;;  %v2421_v10 = vld [vmem:[%s3032_s2] sm:$0xff]   ;;  %v2424_v20 = vld [vmem:[%s3032_s2 + $0x58] sm:$0xff]   ;;  %v2428_v25 = vld [vmem:[%s3032_s2 + $0x70] sm:$0xff]   ;;  %s2655_s11 = scalar_lea.vmem %s3031_s1, %s2402_s30 }
   0xf   : > { %2176 = vmatprep.subr.bf16.mxu1 %v2498_v1  ;;  %2182 = vmatprep.mubr.msk.bf16.mxu1 %vm2499_vm0, %v2498_v1  ;;  %v2422_v8 = vld [vmem:[%s2577_s12] sm:$0xff]   ;;  %v2423_v9 = vld [vmem:[%s2577_s12 + $0x8] sm:$0xff]   ;;  %v2426_v14 = vld [vmem:[%s2577_s12 + $0x10] sm:$0xff]   ;;  %s3001_s14 = scalar_lea.vmem %s3035_s5, %s2403_s10 }
  0x10   : > { %v300_v11 = vshrl.u32 %v2422_v8, 16  ;;  %v302_v12 = vshll.u32 %v2422_v8, 16  ;;  %v307_v13 = vshll.u32 %v2423_v9, 16  ;;  %v315_v18 = vshll.u32 %v2426_v14, 16  ;;  %v2429_v26 = vld [vmem:[%s2577_s12 + $0x18] sm:$0xff]   ;;  %v2430_v29 = vld [vmem:[%s3032_s2 + $0x48] sm:$0xff]  }
  0x11   : > { %2149 = vmatpush3.bf16.msra.mxu0 %v2416_v3  ;;  %v311_v21 = vshrl.u32 %v2423_v9, 16  ;;  %v319_v28 = vshrl.u32 %v2426_v14, 16  ;;  %v323_v31 = vshll.u32 %v2429_v26, 16  ;;  %v2431_v32 = vld [vmem:[%s3032_s2 + $0x68] sm:$0xff]   ;;  %v254_v33 = vld [vmem:[%s2577_s12 + $0x20] sm:$0xf] }
  0x12   : > { %2177 = vmatpush3.bf16.msra.mxu1 %v2417_v4  ;;  %2150 = vmatprep.subr.bf16.mxu0 %v2498_v1  ;;  %v304_v15 = vrot.slane %v302_v12, 1  ;;  %v309_v16 = vrot.slane %v307_v13, 1  ;;  %v317_v23 = vrot.slane %v315_v18, 1  ;;  %v263_v34 = vld [vmem:[%s2577_s12 + $0x24] sm:$0x1]  ;;  %v327_v41 = vshrl.u32 %v2429_v26, 16 }
  0x13   : > { %2178 = vmatprep.subr.bf16.mxu1 %v2498_v1  ;;  %v325_v36 = vrot.slane %v323_v31, 1  ;;  %v1858_v37 = vcombine.low %v254_v33, %v263_v34  ;;  %v2433_v38 = vld [vmem:[%s3032_s2 + $0x40] sm:$0xff]   ;;  %v559_v46 = vld [vmem:[%s2577_s12 + $0x8] sm:$0xf]  ;;  %v2437_v51 = vld [vmem:[%s2577_s12 + $0xc] sm:$0xff]   ;;  %v1868_v53 = vcombine.low %v254_v33, %v254_v33 }
  0x14   : > { %v305_v19 = vor.u32 %v304_v15, %v300_v11  ;;  %v313_v27 = vor.u32 %v311_v21, %v309_v16  ;;  %v321_v35 = vor.u32 %v319_v28, %v317_v23  ;;  %v2435_v39 = vld [vmem:[%s3032_s2 + $0x60] sm:$0xff]   ;;  %v610_v58 = vshll.u32 %v2437_v51, 16  ;;  %v2442_v63 = vld [vmem:[%s2577_s12 + $0x14] sm:$0xff]  }
  0x15   : > { %2151 = vmatpush3.bf16.msra.mxu0 %v2418_v5  ;;  %v331_v42 = vshll.u32 %v1858_v37, 16  ;;  %v558_v43 = vld [vmem:[%s2577_s12 + $0x4] sm:$0xf]  ;;  %v329_v44 = vor.u32 %v327_v41, %v325_v36  ;;  %v335_v49 = vshrl.u32 %v1858_v37, 16  ;;  %v776_v60 = vrot.slane %v2437_v51, 1  ;;  %v2439_v0 = vld [vmem:[%s3033_s3 + $0x38] sm:$0xff]  }
  0x16   : > { %2179 = vmatpush3.bf16.msra.mxu1 %v2419_v6  ;;  %2152 = vmatprep.subr.bf16.mxu0 %v2498_v1  ;;  %v310_v22 = vsel %vm298_vm2, %v305_v19, %v309_v16  ;;  %v318_v30 = vsel %vm298_vm2, %v313_v27, %v317_v23  ;;  %v326_v40 = vsel %vm298_vm2, %v321_v35, %v325_v36  ;;  %v761_v50 = vld [vmem:[%s2577_s12 + $0x4] sm:$0xe]  ;;  %v612_v62 = vrot.slane %v610_v58, 1  ;;  %v2440_v3 = vld [vmem:[%s3033_s3 + $0x78] sm:$0xff]   ;;  %v2460_v58 = vld [vmem:[%s2655_s11 + $0x8] sm:$0xff]  }
  0x17   : > { %2180 = vmatprep.subr.bf16.mxu1 %v2498_v1  ;;  %v333_v45 = vrot.slane %v331_v42, 1  ;;  %v1886_v48 = vcombine.low %v558_v43, %v559_v46  ;;  %v1908_v55 = vcombine.low %v761_v50, %v559_v46  ;;  %v614_v5 = vshrl.u32 %v2437_v51, 16  ;;  %v2741_v34 = vld [vmem:[%s2655_s11 + $0x14] sm:$0xff]   ;;  %v2769_v46 = vld [vmem:[%s2655_s11 + $0x24] sm:$0x1f]  }
  0x18   : > { %v618_v6 = vshll.u32 %v2442_v63, 16  ;;  %v622_v18 = vshrl.u32 %v2442_v63, 16  ;;  %v2450_v35 = vld [vmem:[%s3033_s3 + $0x58] sm:$0xff]   ;;  %v2452_v43 = vld [vmem:[%s3033_s3 + $0x10] sm:$0xff]   ;;  %v2459_v51 = vld [vmem:[%s2655_s11] sm:$0xff]  }
  0x19   : > { %2153 = vmatpush3.bf16.msra.mxu0 %v2420_v7  ;;  %v334_v47 = vsel %vm298_vm2, %v329_v44, %v333_v45  ;;  %v605_v52 = vshll.u32 %v1886_v48, 16  ;;  %v337_v54 = vor.u32 %v335_v49, %v333_v45  ;;  %v603_v56 = vshrl.u32 %v1886_v48, 16  ;;  %v2443_v7 = vld [vmem:[%s3033_s3 + $0x70] sm:$0xff]  }
  0x1a   : > { %2181 = vmatpush3.bf16.msra.mxu1 %v2421_v10  ;;  %2202 = vmatprep.subr.bf16.mxu0 %v2498_v1  ;;  %v775_v59 = vrot.slane %v1908_v55, 1  ;;  %v2441_v10 = vld [vmem:[%s3033_s3 + $0x30] sm:$0xff]   ;;  %v616_v11 = vor.u32 %v614_v5, %v612_v62  ;;  %v620_v12 = vrot.slane %v618_v6, 1  ;;  %v1564_v49 = vrot.slane %v2769_v46, 1  ;;  %v2458_v6 = vld [vmem:[%s2655_s11] sm:$0xff]  }
  0x1b   : > { %2230 = vmatprep.subr.bf16.mxu1 %v2498_v1  ;;  %v607_v57 = vrot.slane %v605_v52, 1  ;;  %v2465_v5 = vld [vmem:[%s2655_s11 + $0x10] sm:$0xff]  }
  0x1c   : > { %2155 = vmatmul.mubr.msk.bf16.vlgmr.msra.gmra.mxu0 %vm362_vm1, %v310_v22  ;;  %v777_v2 = vsel %vm774_vm3, %v775_v59, %v776_v60  ;;  %v621_v16 = vsel %vm298_vm2, %v616_v11, %v620_v12  ;;  %v2448_v22 = vld [vmem:[%s3033_s3 + $0x60] sm:$0xff]   ;;  %v624_v23 = vor.u32 %v622_v18, %v620_v12  ;;  %v1141_v59 = vshll.u32 %v2459_v51, 16  ;;  %v2461_v11 = vld [vmem:[%s3033_s3 + $0xb8] sm:$0xff]  }
  0x1d   : > { %2183 = vmatmul.mubr.msk.bf16.vlgmr.msra.gmra.mxu1 %vm362_vm1, %v2422_v8  ;;  %2203 = vmatpush3.bf16.msra.mxu0 %v2424_v20  ;;  %v608_v61 = vor.u32 %v607_v57, %v603_v56  ;;  %v778_v8 = vrot.slane %v2442_v63, 1  ;;  %v2447_v20 = vld [vmem:[%s3033_s3 + $0x20] sm:$0xff]   ;;  %v2455_v56 = vld [vmem:[%s3033_s3 + $0x48] sm:$0xff]   ;;  %v1139_v63 = vshrl.u32 %v2459_v51, 16 }
  0x1e   : > { %2231 = vmatpush3.bf16.msra.mxu1 %v2425_v17  ;;  %2158 = vmatprep.mubr.msk.bf16.mxu0 %vm2499_vm0, %v2498_v1  ;;  %v2444_v17 = vld [vmem:[%s3033_s3 + $0x28] sm:$0xff]  }
  0x1f   : > { %2186 = vmatprep.mubr.msk.bf16.mxu1 %vm2499_vm0, %v2498_v1  ;;  %2204 = vmatprep.subr.bf16.mxu0 %v2498_v1  ;;  %v613_v4 = vsel %vm298_vm2, %v608_v61, %v612_v62  ;;  %v779_v13 = vsel %vm774_vm3, %v776_v60, %v778_v8  ;;  %v2456_v60 = vld [vmem:[%s3033_s3] sm:$0xff]   ;;  %v2481_v51 = vld [vmem:[%s3033_s3 + $0xc8] sm:$0xff]  }
  0x20   : > { %2232 = vmatprep.subr.bf16.mxu1 %v2498_v1  ;;  %v2457_v61 = vld [vmem:[%s3033_s3 + $0x40] sm:$0xff]  }
  0x21   : > { %2205 = vmatpush3.bf16.msra.mxu0 %v2427_v24  ;;  %v2718_v24 = vld [vmem:[%s2577_s12 + $0x24] sm:$0x1f]  }
  0x22   : > { %2233 = vmatpush3.bf16.msra.mxu1 %v2428_v25  ;;  %2206 = vmatprep.subr.bf16.mxu0 %v2498_v1  ;;  %v2449_v25 = vld [vmem:[%s3033_s3 + $0x18] sm:$0xff]   ;;  %v638_v57 = vshrl.u32 %v2718_v24, 16 }
  0x23   : > { %2234 = vmatprep.subr.bf16.mxu1 %v2498_v1 }
  0x24   : > { %2159 = vmatmul.mubr.msk.bf16.gmra.mxu0 %vm362_vm1, %v318_v30  ;;  %v1536_v30 = vld [vmem:[%s2655_s11 + $0x4] sm:$0xe] }
  0x25   : > { %2187 = vmatmul.mubr.msk.bf16.gmra.mxu1 %vm362_vm1, %v2423_v9  ;;  %2162 = vmatprep.mubr.msk.bf16.mxu0 %vm2499_vm0, %v2498_v1  ;;  %v2684_v9 = vld [vmem:[%s2577_s12 + $0x1c] sm:$0xff]  }
  0x26   : > { %2190 = vmatprep.mubr.msk.bf16.mxu1 %vm2499_vm0, %v2498_v1  ;;  %2207 = vmatpush3.bf16.msra.mxu0 %v2430_v29  ;;  %v626_v15 = vshll.u32 %v2684_v9, 16  ;;  %v780_v19 = vrot.slane %v2684_v9, 1  ;;  %v630_v28 = vshrl.u32 %v2684_v9, 16  ;;  %v2733_v29 = vld [vmem:[%s2655_s11 + $0xc] sm:$0xff]   ;;  %v1150_v9 = vshrl.u32 %v2460_v58, 16 }
  0x27   : > { %2235 = vmatpush3.bf16.msra.mxu1 %v2431_v32  ;;  %2208 = vmatprep.subr.bf16.mxu0 %v2498_v1  ;;  %v634_v32 = vshll.u32 %v2718_v24, 16  ;;  %v1558_v36 = vrot.slane %v2733_v29, 1 }
  0x28   : > { %2236 = vmatprep.subr.bf16.mxu1 %v2498_v1  ;;  %v628_v21 = vrot.slane %v626_v15, 1  ;;  %v781_v27 = vsel %vm774_vm3, %v778_v8, %v780_v19  ;;  %v2462_v8 = vld [vmem:[%s3033_s3 + $0xf8] sm:$0xff]  }
  0x29   : > { %v636_v42 = vrot.slane %v634_v32, 1  ;;  %v2470_v15 = vld [vmem:[%s2655_s11 + $0x18] sm:$0xff]  }
  0x2a   : > { %2209 = vmatpush3.bf16.msra.mxu0 %v2433_v38  ;;  %v629_v31 = vsel %vm298_vm2, %v624_v23, %v628_v21  ;;  %v1560_v38 = vrot.slane %v2741_v34, 1  ;;  %v632_v41 = vor.u32 %v630_v28, %v628_v21  ;;  %v1162_v21 = vshll.u32 %v2470_v15, 16  ;;  %v2471_v28 = vld [vmem:[%s3033_s3 + $0xa0] sm:$0xff]  }
  0x2b   : > { %2237 = vmatpush3.bf16.msra.mxu1 %v2435_v39  ;;  %2258 = vmatprep.subr.bf16.mxu0 %v2498_v1  ;;  %v782_v39 = vrot.slane %v2718_v24, 1  ;;  %v640_v62 = vor.u32 %v638_v57, %v636_v42  ;;  %v1166_v32 = vshrl.u32 %v2470_v15, 16 }
  0x2c   : > { %2294 = vmatprep.subr.bf16.mxu1 %v2498_v1  ;;  %2163 = vmatmul.mubr.msk.bf16.gmra.mxu0 %vm362_vm1, %v326_v40  ;;  %v2755_v40 = vld [vmem:[%s2655_s11 + $0x1c] sm:$0xff]   ;;  %v2766_v45 = vsel %vm774_vm3, %v1558_v36, %v1560_v38  ;;  %v1164_v24 = vrot.slane %v1162_v21, 1 }
  0x2d   : > { %2191 = vmatmul.mubr.msk.bf16.gmra.mxu1 %vm362_vm1, %v2426_v14  ;;  %2166 = vmatprep.mubr.msk.bf16.mxu0 %vm2499_vm0, %v2498_v1  ;;  %v2445_v14 = vld [vmem:[%s3033_s3 + $0x68] sm:$0xff]   ;;  %v1562_v48 = vrot.slane %v2755_v40, 1  ;;  %v783_v50 = vsel %vm774_vm3, %v780_v19, %v782_v39 }
  0x2e   : > { %2194 = vmatprep.mubr.msk.bf16.mxu1 %vm2499_vm0, %v2498_v1  ;;  %v2468_v19 = vld [vmem:[%s3033_s3 + $0xe8] sm:$0xff]  }
  0x2f   : > { %v2781_v52 = vsel %vm774_vm3, %v1560_v38, %v1562_v48  ;;  %v2790_v55 = vsel %vm774_vm3, %v1562_v48, %v1564_v49  ;;  %v2479_v48 = vld [vmem:[%s3033_s3 + $0x88] sm:$0xff]  }
  0x34   : > { %2167 = vmatmul.mubr.msk.bf16.gmra.mxu0 %vm362_vm1, %v334_v47  ;;  %v2453_v47 = vld [vmem:[%s3033_s3 + $0x50] sm:$0xff]  }
  0x35   : > { %2195 = vmatmul.mubr.msk.bf16.gmra.mxu1 %vm362_vm1, %v2429_v26  ;;  %2170 = vmatprep.mubr.msk.bf16.mxu0 %vm2499_vm0, %v2498_v1  ;;  %v2728_v26 = vld [vmem:[%s2655_s11 + $0x8] sm:$0xf] }
  0x36   : > { %2198 = vmatprep.mubr.msk.bf16.mxu1 %vm2499_vm0, %v2498_v1  ;;  %v2005_v33 = vcombine.low %v1536_v30, %v2728_v26  ;;  %v2469_v30 = vld [vmem:[%s2655_s11 + $0x10] sm:$0xff]  }
  0x38   : > { %v1557_v37 = vrot.slane %v2005_v33, 1 }
  0x3a   : > { %v2763_v44 = vsel %vm774_vm3, %v1557_v37, %v1558_v36  ;;  %v2474_v36 = vld [vmem:[%s3033_s3 + $0xd8] sm:$0xff]   ;;  %v1168_v37 = vor.u32 %v1166_v32, %v1164_v24 }
  0x3c   : > { %2171 = vmatmul.mubr.msk.bf16.gmra.mxu0 %vm362_vm1, %v337_v54  ;;  %v2454_v54 = vld [vmem:[%s3033_s3 + $0x8] sm:$0xff]  }
  0x3d   : > { %2199 = vmatmul.mubr.msk.bf16.gmra.mxu1 %vm362_vm1, %v1868_v53  ;;  %2210 = vmatprep.mubr.msk.bf16.mxu0 %vm2499_vm0, %v2498_v1  ;;  %v637_v53 = vsel %vm298_vm2, %v632_v41, %v636_v42  ;;  %v2478_v41 = vld [vmem:[%s3033_s3 + $0xd0] sm:$0xff]   ;;  %v1311_v42 = vld [vmem:[%s2655_s11 + $0x4] sm:$0xf] }
  0x3e   : > { %2238 = vmatprep.mubr.msk.bf16.mxu1 %vm2499_vm0, %v2498_v1 }
  0x44   : > { %2211 = vmatmul.mubr.msk.bf16.vlgmr.msra.gmra.mxu0 %vm362_vm1, %v613_v4 }
  0x45   : > { %2239 = vmatmul.mubr.msk.bf16.vlgmr.msra.gmra.mxu1 %vm362_vm1, %v777_v2  ;;  %2259 = vmatpush3.bf16.msra.mxu0 %v2439_v0  ;;  %v1143_v0 = vrot.slane %v1141_v59, 1  ;;  %v1146_v2 = vshll.u32 %v2460_v58, 16  ;;  %v2480_v58 = vld [vmem:[%s2655_s11 + $0x20] ss:$0 sps:$4 sm:$0xff]  }
  0x46   : > { %2295 = vmatpush3.bf16.msra.mxu1 %v2440_v3  ;;  %2214 = vmatprep.mubr.msk.bf16.mxu0 %vm2499_vm0, %v2498_v1 }
  0x47   : > { %2260 = vmatprep.subr.bf16.mxu0 %v2498_v1  ;;  %2242 = vmatprep.mubr.msk.bf16.mxu1 %vm2499_vm0, %v2498_v1  ;;  %v1144_v3 = vor.u32 %v1143_v0, %v1139_v63  ;;  %v1148_v4 = vrot.slane %v1146_v2, 1  ;;  %v1375_v2 = vshrl.u32 %v2733_v29, 16 }
  0x48   : > { %2296 = vmatprep.subr.bf16.mxu1 %v2498_v1 }
  0x49   : > { %2261 = vmatpush3.bf16.msra.mxu0 %v2441_v10  ;;  %v1154_v10 = vshll.u32 %v2465_v5, 16  ;;  %v1152_v12 = vor.u32 %v1150_v9, %v1148_v4 }
  0x4a   : > { %2297 = vmatpush3.bf16.msra.mxu1 %v2443_v7  ;;  %2262 = vmatprep.subr.bf16.mxu0 %v2498_v1  ;;  %v1149_v7 = vsel %vm298_vm2, %v1144_v3, %v1148_v4  ;;  %v1379_v3 = vshll.u32 %v2741_v34, 16 }
  0x4b   : > { %2298 = vmatprep.subr.bf16.mxu1 %v2498_v1 }
  0x4c   : > { %2215 = vmatmul.mubr.msk.bf16.gmra.mxu0 %vm362_vm1, %v621_v16  ;;  %v2463_v16 = vld [vmem:[%s3033_s3 + $0xb0] sm:$0xff]  }
  0x4d   : > { %2243 = vmatmul.mubr.msk.bf16.gmra.mxu1 %vm362_vm1, %v779_v13  ;;  %2263 = vmatpush3.bf16.msra.mxu0 %v2444_v17  ;;  %v1156_v13 = vrot.slane %v1154_v10, 1  ;;  %v2464_v17 = vld [vmem:[%s2655_s11 + $0x8] sm:$0xff]   ;;  %v1391_v10 = vshrl.u32 %v2755_v40, 16 }
  0x4e   : > { %2299 = vmatpush3.bf16.msra.mxu1 %v2445_v14  ;;  %2218 = vmatprep.mubr.msk.bf16.mxu0 %vm2499_vm0, %v2498_v1  ;;  %v2466_v14 = vld [vmem:[%s3033_s3 + $0xf0] sm:$0xff]  }
  0x4f   : > { %2246 = vmatprep.mubr.msk.bf16.mxu1 %vm2499_vm0, %v2498_v1  ;;  %2264 = vmatprep.subr.bf16.mxu0 %v2498_v1  ;;  %v1157_v18 = vsel %vm298_vm2, %v1152_v12, %v1156_v13 }
  0x50   : > { %2300 = vmatprep.subr.bf16.mxu1 %v2498_v1 }
  0x51   : > { %2265 = vmatpush3.bf16.msra.mxu0 %v2447_v20  ;;  %v1158_v20 = vshrl.u32 %v2465_v5, 16  ;;  %v1381_v5 = vrot.slane %v1379_v3, 1 }
  0x52   : > { %2301 = vmatpush3.bf16.msra.mxu1 %v2448_v22  ;;  %2266 = vmatprep.subr.bf16.mxu0 %v2498_v1  ;;  %v2467_v22 = vld [vmem:[%s3033_s3 + $0xa8] sm:$0xff]  }
  0x53   : > { %2302 = vmatprep.subr.bf16.mxu1 %v2498_v1  ;;  %v1160_v23 = vor.u32 %v1158_v20, %v1156_v13 }
  0x54   : > { %2219 = vmatmul.mubr.msk.bf16.gmra.mxu0 %vm362_vm1, %v629_v31 }
  0x55   : > { %2247 = vmatmul.mubr.msk.bf16.gmra.mxu1 %vm362_vm1, %v781_v27  ;;  %2267 = vmatpush3.bf16.msra.mxu0 %v2449_v25  ;;  %v2472_v25 = vld [vmem:[%s3033_s3 + $0xe0] sm:$0xff]   ;;  %v1165_v31 = vsel %vm298_vm2, %v1160_v23, %v1164_v24 }
  0x56   : > { %2250 = vmatprep.mubr.msk.bf16.mxu1 %vm2499_vm0, %v2498_v1  ;;  %2222 = vmatprep.mubr.msk.bf16.mxu0 %vm2499_vm0, %v2498_v1  ;;  %v2476_v27 = vld [vmem:[%s2655_s11 + $0x20] sm:$0x1f]  }
  0x57   : > { %2303 = vmatpush3.bf16.msra.mxu1 %v2450_v35  ;;  %2268 = vmatprep.subr.bf16.mxu0 %v2498_v1  ;;  %v1170_v33 = vshll.u32 %v2476_v27, 16  ;;  %v2473_v35 = vld [vmem:[%s3033_s3 + $0x98] sm:$0xff]  }
  0x58   : > { %2304 = vmatprep.subr.bf16.mxu1 %v2498_v1 }
  0x59   : > { %2269 = vmatpush3.bf16.msra.mxu0 %v2452_v43  ;;  %v1172_v38 = vrot.slane %v1170_v33, 1  ;;  %v2475_v43 = vld [vmem:[%s2655_s11 + $0x18] sm:$0xff]  }
  0x5a   : > { %2270 = vmatprep.subr.bf16.mxu0 %v2498_v1 }
  0x5b   : > { %2305 = vmatpush3.bf16.msra.mxu1 %v2453_v47  ;;  %v1173_v47 = vsel %vm298_vm2, %v1168_v37, %v1172_v38 }
  0x5c   : > { %2306 = vmatprep.subr.bf16.mxu1 %v2498_v1  ;;  %2223 = vmatmul.mubr.msk.bf16.gmra.mxu0 %vm362_vm1, %v637_v53  ;;  %v1174_v53 = vshrl.u32 %v2476_v27, 16 }
  0x5d   : > { %2251 = vmatmul.mubr.msk.bf16.gmra.mxu1 %vm362_vm1, %v783_v50  ;;  %2226 = vmatprep.mubr.msk.bf16.mxu0 %vm2499_vm0, %v2498_v1  ;;  %v1976_v50 = vcombine.low %v1311_v42, %v2728_v26  ;;  %v2482_v26 = vld [vmem:[%s3033_s3 + $0x80] sm:$0xff]  }
  0x5e   : > { %2254 = vmatprep.mubr.msk.bf16.mxu1 %vm2499_vm0, %v2498_v1  ;;  %2271 = vmatpush3.bf16.msra.mxu0 %v2454_v54  ;;  %v1176_v57 = vor.u32 %v1174_v53, %v1172_v38 }
  0x5f   : > { %2307 = vmatpush3.bf16.msra.mxu1 %v2455_v56  ;;  %2272 = vmatprep.subr.bf16.mxu0 %v2498_v1  ;;  %v1366_v54 = vshll.u32 %v1976_v50, 16  ;;  %v2483_v56 = vld [vmem:[%s3033_s3 + $0xc0] sm:$0xff]   ;;  %v1364_v59 = vshrl.u32 %v1976_v50, 16 }
  0x60   : > { %2308 = vmatprep.subr.bf16.mxu1 %v2498_v1 }
  0x62   : > { %2273 = vmatpush3.bf16.msra.mxu0 %v2456_v60  ;;  %v1368_v60 = vrot.slane %v1366_v54, 1 }
  0x63   : > { %2309 = vmatpush3.bf16.msra.mxu1 %v2457_v61  ;;  %2330 = vmatprep.subr.bf16.mxu0 %v2498_v1  ;;  %v1371_v61 = vshll.u32 %v2733_v29, 16 }
  0x64   : > { %2366 = vmatprep.subr.bf16.mxu1 %v2498_v1  ;;  %2227 = vmatmul.mubr.msk.bf16.gmra.mxu0 %vm362_vm1, %v640_v62  ;;  %v1369_v62 = vor.u32 %v1368_v60, %v1364_v59 }
  0x65   : > { %2255 = vmatmul.mubr.msk.bf16.gmra.mxu1 %vm362_vm1, %v782_v39  ;;  %2274 = vmatprep.mubr.msk.bf16.mxu0 %vm2499_vm0, %v2498_v1  ;;  %v2477_v39 = vld [vmem:[%s3033_s3 + $0x90] sm:$0xff]   ;;  %v1373_v63 = vrot.slane %v1371_v61, 1 }
  0x66   : > { %2310 = vmatprep.mubr.msk.bf16.mxu1 %vm2499_vm0, %v2498_v1 }
  0x67   : > { %v1374_v0 = vsel %vm298_vm2, %v1369_v62, %v1373_v63  ;;  %v1377_v4 = vor.u32 %v1375_v2, %v1373_v63 }
  0x6c   : > { %2275 = vmatmul.mubr.bf16.vlgmr.msra.gmra.mxu0 %v2458_v6  ;;  %v1382_v6 = vsel %vm298_vm2, %v1377_v4, %v1381_v5 }
  0x6d   : > { %2311 = vmatmul.mubr.bf16.vlgmr.msra.gmra.mxu1 %v1149_v7  ;;  %2331 = vmatpush3.bf16.msra.mxu0 %v2461_v11  ;;  %v1383_v7 = vshrl.u32 %v2741_v34, 16  ;;  %v1395_v11 = vshll.u32 %v2769_v46, 16 }
  0x6e   : > { %2367 = vmatpush3.bf16.msra.mxu1 %v2462_v8  ;;  %2278 = vmatprep.mubr.msk.bf16.mxu0 %vm2499_vm0, %v2498_v1  ;;  %v1387_v8 = vshll.u32 %v2755_v40, 16  ;;  %v1399_v40 = vshrl.u32 %v2769_v46, 16 }
  0x6f   : > { %2332 = vmatprep.subr.bf16.mxu0 %v2498_v1  ;;  %2314 = vmatprep.mubr.msk.bf16.mxu1 %vm2499_vm0, %v2498_v1  ;;  %v1385_v29 = vor.u32 %v1383_v7, %v1381_v5 }
  0x70   : > { %2368 = vmatprep.subr.bf16.mxu1 %v2498_v1 }
  0x71   : > { %2333 = vmatpush3.bf16.msra.mxu0 %v2463_v16 }
  0x72   : > { %2369 = vmatpush3.bf16.msra.mxu1 %v2466_v14  ;;  %2334 = vmatprep.subr.bf16.mxu0 %v2498_v1 }
  0x73   : > { %2370 = vmatprep.subr.bf16.mxu1 %v2498_v1 }
  0x74   : > { %2279 = vmatmul.mubr.bf16.gmra.mxu0 %v2464_v17 }
  0x75   : > { %2315 = vmatmul.mubr.bf16.gmra.mxu1 %v1157_v18  ;;  %2335 = vmatpush3.bf16.msra.mxu0 %v2467_v22 }
  0x76   : > { %2371 = vmatpush3.bf16.msra.mxu1 %v2468_v19  ;;  %2282 = vmatprep.mubr.msk.bf16.mxu0 %vm2499_vm0, %v2498_v1 }
  0x77   : > { %2318 = vmatprep.mubr.msk.bf16.mxu1 %vm2499_vm0, %v2498_v1  ;;  %2336 = vmatprep.subr.bf16.mxu0 %v2498_v1 }
  0x78   : > { %2372 = vmatprep.subr.bf16.mxu1 %v2498_v1 }
  0x79   : > { %2337 = vmatpush3.bf16.msra.mxu0 %v2471_v28 }
  0x7a   : > { %2373 = vmatpush3.bf16.msra.mxu1 %v2472_v25  ;;  %2338 = vmatprep.subr.bf16.mxu0 %v2498_v1 }
  0x7b   : > { %2374 = vmatprep.subr.bf16.mxu1 %v2498_v1 }
  0x7c   : > { %2283 = vmatmul.mubr.bf16.gmra.mxu0 %v2469_v30 }
  0x7d   : > { %2319 = vmatmul.mubr.bf16.gmra.mxu1 %v1165_v31  ;;  %2339 = vmatpush3.bf16.msra.mxu0 %v2473_v35 }
  0x7e   : > { %2322 = vmatprep.mubr.msk.bf16.mxu1 %vm2499_vm0, %v2498_v1  ;;  %2286 = vmatprep.mubr.msk.bf16.mxu0 %vm2499_vm0, %v2498_v1 }
  0x7f   : > { %2375 = vmatpush3.bf16.msra.mxu1 %v2474_v36  ;;  %2340 = vmatprep.subr.bf16.mxu0 %v2498_v1 }
  0x80   : > { %2376 = vmatprep.subr.bf16.mxu1 %v2498_v1 }
  0x81   : > { %2341 = vmatpush3.bf16.msra.mxu0 %v2477_v39 }
  0x82   : > { %2342 = vmatprep.subr.bf16.mxu0 %v2498_v1 }
  0x83   : > { %2377 = vmatpush3.bf16.msra.mxu1 %v2478_v41 }
  0x84   : > { %2378 = vmatprep.subr.bf16.mxu1 %v2498_v1  ;;  %2287 = vmatmul.mubr.bf16.gmra.mxu0 %v2475_v43 }
  0x85   : > { %2323 = vmatmul.mubr.bf16.gmra.mxu1 %v1173_v47  ;;  %2290 = vmatprep.mubr.msk.bf16.mxu0 %vm2499_vm0, %v2498_v1 }
  0x86   : > { %2326 = vmatprep.mubr.msk.bf16.mxu1 %vm2499_vm0, %v2498_v1  ;;  %2343 = vmatpush3.bf16.msra.mxu0 %v2479_v48 }
  0x87   : > { %2379 = vmatpush3.bf16.msra.mxu1 %v2481_v51  ;;  %2344 = vmatprep.subr.bf16.mxu0 %v2498_v1 }
  0x88   : > { %2380 = vmatprep.subr.bf16.mxu1 %v2498_v1 }
  0x8a   : > { %2345 = vmatpush3.bf16.msra.mxu0 %v2482_v26 }
  0x8b   : > { %2381 = vmatpush3.bf16.msra.mxu1 %v2483_v56 }
  0x8c   : > { %2291 = vmatmul.mubr.bf16.gmra.mxu0 %v2480_v58 }
  0x8d   : > { %2327 = vmatmul.mubr.bf16.gmra.mxu1 %v1176_v57  ;;  %2346 = vmatprep.mubr.msk.bf16.mxu0 %vm2499_vm0, %v2498_v1 }
  0x8e   : > { %2382 = vmatprep.mubr.msk.bf16.mxu1 %vm2499_vm0, %v2498_v1 }
  0x94   : > { %2347 = vmatmul.mubr.bf16.vlgmr.msra.gmra.mxu0 %v1374_v0 }
  0x95   : > { %2383 = vmatmul.mubr.bf16.vlgmr.msra.gmra.mxu1 %v2763_v44  ;;  %2350 = vmatprep.mubr.msk.bf16.mxu0 %vm2499_vm0, %v2498_v1  ;;  %v1389_v44 = vrot.slane %v1387_v8, 1 }
  0x96   : > { %2386 = vmatprep.mubr.msk.bf16.mxu1 %vm2499_vm0, %v2498_v1 }
  0x97   : > { %v1390_v9 = vsel %vm298_vm2, %v1385_v29, %v1389_v44  ;;  %v1393_v34 = vor.u32 %v1391_v10, %v1389_v44 }
  0x9c   : > { %2351 = vmatmul.mubr.bf16.gmra.mxu0 %v1382_v6 }
  0x9d   : > { %2387 = vmatmul.mubr.bf16.gmra.mxu1 %v2766_v45  ;;  %2354 = vmatprep.mubr.msk.bf16.mxu0 %vm2499_vm0, %v2498_v1  ;;  %v1397_v45 = vrot.slane %v1395_v11, 1 }
  0x9e   : > { %2390 = vmatprep.mubr.msk.bf16.mxu1 %vm2499_vm0, %v2498_v1 }
  0x9f   : > { %v1398_v12 = vsel %vm298_vm2, %v1393_v34, %v1397_v45 }
  0xa4   : > { %2355 = vmatmul.mubr.bf16.gmra.mxu0 %v1390_v9 }
  0xa5   : > { %2391 = vmatmul.mubr.bf16.gmra.mxu1 %v2781_v52  ;;  %2358 = vmatprep.mubr.msk.bf16.mxu0 %vm2499_vm0, %v2498_v1  ;;  %v1401_v52 = vor.u32 %v1399_v40, %v1397_v45 }
  0xa6   : > { %2394 = vmatprep.mubr.msk.bf16.mxu1 %vm2499_vm0, %v2498_v1 }
  0xac   : > { %2359 = vmatmul.mubr.bf16.gmra.mxu0 %v1398_v12 }
  0xad   : > { %2395 = vmatmul.mubr.bf16.gmra.mxu1 %v2790_v55  ;;  %2362 = vmatprep.mubr.msk.bf16.mxu0 %vm2499_vm0, %v2498_v1 }
  0xae   : > { %2398 = vmatprep.mubr.msk.bf16.mxu1 %vm2499_vm0, %v2498_v1 }
  0xb4   : > { %2363 = vmatmul.mubr.bf16.gmra.mxu0 %v1401_v52 }
  0xb5   : > { %2399 = vmatmul.mubr.bf16.gmra.mxu1 %v1564_v49 }
  0xdc   : > { %v412_v14 = vpop.f32.mrf.mxu0 }
  0xdd   : > { %v520_v13 = vpop.f32.mrf.mxu1 }
  0xde   : > { %v521_v15 = vadd.f32 %v520_v13, %v412_v14  ;;  %v2156_v17 = vpop.f32.mrf.mxu0 }
  0xdf   : > { %v2184_v16 = vpop.f32.mrf.mxu1 }
  0xe0   : > { %v415_v18 = vpop.f32.mrf.mxu0 }
  0xe1   : > { %v523_v55 = vpop.f32.mrf.mxu1 }
  0xe2   : > { %v524_v19 = vadd.f32 %v523_v55, %v415_v18  ;;  %v2157_v21 = vpop.f32.mrf.mxu0 }
  0xe3   : > { %v2185_v20 = vpop.f32.mrf.mxu1 }
  0xe4   : > { %v420_v23 = vpop.f32.mrf.mxu0 }
  0xe5   : > { %v528_v22 = vpop.f32.mrf.mxu1 }
  0xe6   : > { %v529_v24 = vadd.f32 %v528_v22, %v420_v23  ;;  %v2160_v1 = vpop.f32.mrf.mxu0 }
  0xe7   : > { %v2188_v25 = vpop.f32.mrf.mxu1 }
  0xe8   : > { %v423_v28 = vpop.f32.mrf.mxu0 }
  0xe9   : > { %v531_v27 = vpop.f32.mrf.mxu1 }
  0xea   : > { %v532_v46 = vadd.f32 %v531_v27, %v423_v28  ;;  %v2161_v30 = vpop.f32.mrf.mxu0 }
  0xeb   : > { %v2189_v49 = vpop.f32.mrf.mxu1 }
  0xec   : > { %v428_v32 = vpop.f32.mrf.mxu0 }
  0xed   : > { %v536_v31 = vpop.f32.mrf.mxu1 }
  0xee   : > { %v537_v33 = vadd.f32 %v536_v31, %v428_v32  ;;  %v2164_v36 = vpop.f32.mrf.mxu0 }
  0xef   : > { %v2192_v35 = vpop.f32.mrf.mxu1 }
  0xf0   : > { %v431_v38 = vpop.f32.mrf.mxu0 }
  0xf1   : > { %v539_v37 = vpop.f32.mrf.mxu1 }
  0xf2   : > { %v540_v39 = vadd.f32 %v539_v37, %v431_v38  ;;  %v2165_v42 = vpop.f32.mrf.mxu0 }
  0xf3   : > { %v2193_v41 = vpop.f32.mrf.mxu1 }
  0xf4   : > { %v436_v47 = vpop.f32.mrf.mxu0 }
  0xf5   : > { %v544_v43 = vpop.f32.mrf.mxu1 }
  0xf6   : > { %v545_v48 = vadd.f32 %v544_v43, %v436_v47  ;;  %v2168_v51 = vpop.f32.mrf.mxu0 }
  0xf7   : > { %v2196_v50 = vpop.f32.mrf.mxu1 }
  0xf8   : > { %v439_v26 = vpop.f32.mrf.mxu0 }
  0xf9   : > { %v547_v53 = vpop.f32.mrf.mxu1 }
  0xfa   : > { %v548_v54 = vadd.f32 %v547_v53, %v439_v26  ;;  %v2169_v57 = vpop.f32.mrf.mxu0 }
  0xfb   : > { %v2197_v56 = vpop.f32.mrf.mxu1 }
  0xfc   : > { %v444_v59 = vpop.f32.mrf.mxu0 }
  0xfd   : > { %v552_v58 = vpop.f32.mrf.mxu1 }
  0xfe   : > { %v553_v60 = vadd.f32 %v552_v58, %v444_v59  ;;  %v2172_v62 = vpop.f32.mrf.mxu0 }
  0xff   : > { %v2200_v61 = vpop.f32.mrf.mxu1 }
 0x100   : > { %v447_v0 = vpop.f32.mrf.mxu0 }
 0x101   : > { %v555_v63 = vpop.f32.mrf.mxu1 }
 0x102   : > { %v2173_v3 = vpop.f32.mrf.mxu0 }
 0x103   : > { %v2201_v2 = vpop.f32.mrf.mxu1 }
 0x104   : > { %v714_v5 = vpop.f32.mrf.mxu0 }
 0x105   : > { %v857_v4 = vpop.f32.mrf.mxu1  ;;  %v752_v6 = vadd.f32 %v714_v5, %v521_v15 }
 0x106   : > { %v2212_v8 = vpop.f32.mrf.mxu0 }
 0x107   : > { %v2240_v7 = vpop.f32.mrf.mxu1  ;;  %v2951_v29 = vadd.f32 %v857_v4, %v752_v6 }
 0x108   : > { %v717_v9 = vpop.f32.mrf.mxu0 }
 0x109   : > { %v860_v44 = vpop.f32.mrf.mxu1  ;;  %v753_v10 = vadd.f32 %v717_v9, %v524_v19 }
 0x10a   : > { %v2213_v34 = vpop.f32.mrf.mxu0 }
 0x10b   : > { %v2241_v11 = vpop.f32.mrf.mxu1  ;;  %v2953_v45 = vadd.f32 %v860_v44, %v753_v10 }
 0x10c   : > { %v722_v40 = vpop.f32.mrf.mxu0 }
 0x10d   : > { %v865_v12 = vpop.f32.mrf.mxu1  ;;  %v754_v52 = vadd.f32 %v722_v40, %v529_v24 }
 0x10e   : > { %v2216_v14 = vpop.f32.mrf.mxu0 }
 0x10f   : > { %v2244_v13 = vpop.f32.mrf.mxu1  ;;  %v2955_v16 = vadd.f32 %v865_v12, %v754_v52 }
 0x110   : > { %v725_v15 = vpop.f32.mrf.mxu0 }
 0x111   : > { %v868_v17 = vpop.f32.mrf.mxu1  ;;  %v755_v55 = vadd.f32 %v725_v15, %v532_v46 }
 0x112   : > { %v2217_v20 = vpop.f32.mrf.mxu0 }
 0x113   : > { %v2245_v18 = vpop.f32.mrf.mxu1  ;;  %v2957_v21 = vadd.f32 %v868_v17, %v755_v55 }
 0x114   : > { %v730_v19 = vpop.f32.mrf.mxu0 }
 0x115   : > { %v873_v22 = vpop.f32.mrf.mxu1  ;;  %v756_v23 = vadd.f32 %v730_v19, %v537_v33 }
 0x116   : > { %v2220_v1 = vpop.f32.mrf.mxu0 }
 0x117   : > { %v2248_v25 = vpop.f32.mrf.mxu1  ;;  %v2959_v27 = vadd.f32 %v873_v22, %v756_v23 }
 0x118   : > { %v733_v24 = vpop.f32.mrf.mxu0 }
 0x119   : > { %v876_v28 = vpop.f32.mrf.mxu1  ;;  %v757_v49 = vadd.f32 %v733_v24, %v540_v39 }
 0x11a   : > { %v2221_v31 = vpop.f32.mrf.mxu0 }
 0x11b   : > { %v2249_v30 = vpop.f32.mrf.mxu1  ;;  %v2961_v32 = vadd.f32 %v876_v28, %v757_v49 }
 0x11c   : > { %v738_v46 = vpop.f32.mrf.mxu0 }
 0x11d   : > { %v881_v35 = vpop.f32.mrf.mxu1  ;;  %v758_v36 = vadd.f32 %v738_v46, %v545_v48 }
 0x11e   : > { %v2224_v38 = vpop.f32.mrf.mxu0 }
 0x11f   : > { %v2252_v37 = vpop.f32.mrf.mxu1  ;;  %v2963_v41 = vadd.f32 %v881_v35, %v758_v36 }
 0x120   : > { %v741_v33 = vpop.f32.mrf.mxu0 }
 0x121   : > { %v884_v42 = vpop.f32.mrf.mxu1  ;;  %v759_v43 = vadd.f32 %v741_v33, %v548_v54 }
 0x122   : > { %v2225_v50 = vpop.f32.mrf.mxu0 }
 0x123   : > { %v2253_v47 = vpop.f32.mrf.mxu1  ;;  %v2965_v51 = vadd.f32 %v884_v42, %v759_v43 }
 0x124   : > { %v746_v39 = vpop.f32.mrf.mxu0 }
 0x125   : > { %v889_v53 = vpop.f32.mrf.mxu1  ;;  %v760_v26 = vadd.f32 %v746_v39, %v553_v60 }
 0x126   : > { %v2228_v57 = vpop.f32.mrf.mxu0 }
 0x127   : > { %v2256_v56 = vpop.f32.mrf.mxu1  ;;  %v2967_v58 = vadd.f32 %v889_v53, %v760_v26 }
 0x128   : > { %v749_v48 = vpop.f32.mrf.mxu0 }
 0x129   : > { %v892_v59 = vpop.f32.mrf.mxu1 }
 0x12a   : > { %v2229_v62 = vpop.f32.mrf.mxu0 }
 0x12b   : > { %v2257_v61 = vpop.f32.mrf.mxu1 }
 0x12c   : > { %v1039_v0 = vpop.f32.mrf.mxu0 }
 0x12d   : > { %v1264_v63 = vpop.f32.mrf.mxu1  ;;  %v1077_v35 = vadd.f32 %v1039_v0, %v2951_v29  ;;  %v2991_v29 = vld [vmem:[%s3034_s4] ss:$0 sm:$0xff] }
 0x12e   : > { %v2276_v3 = vpop.f32.mrf.mxu0 }
 0x12f   : > { %v2312_v2 = vpop.f32.mrf.mxu1  ;;  %v1302_v42 = vadd.f32 %v1264_v63, %v1077_v35 }
 0x130   : > { %v1042_v4 = vpop.f32.mrf.mxu0 }
 0x131   : > { %v1267_v54 = vpop.f32.mrf.mxu1  ;;  %v1078_v33 = vadd.f32 %v1042_v4, %v2953_v45 }
 0x132   : > { %v2277_v6 = vpop.f32.mrf.mxu0 }
 0x133   : > { %v2313_v5 = vpop.f32.mrf.mxu1  ;;  %v1303_v26 = vadd.f32 %v1267_v54, %v1078_v33 }
 0x134   : > { %v1047_v8 = vpop.f32.mrf.mxu0 }
 0x135   : > { %v1272_v7 = vpop.f32.mrf.mxu1  ;;  %v1079_v56 = vadd.f32 %v1047_v8, %v2955_v16 }
 0x136   : > { %v2280_v60 = vpop.f32.mrf.mxu0 }
 0x137   : > { %v2316_v44 = vpop.f32.mrf.mxu1  ;;  %v1304_v0 = vadd.f32 %v1272_v7, %v1079_v56 }
 0x138   : > { %v1050_v10 = vpop.f32.mrf.mxu0 }
 0x139   : > { %v1275_v9 = vpop.f32.mrf.mxu1  ;;  %v1080_v45 = vadd.f32 %v1050_v10, %v2957_v21 }
 0x13a   : > { %v2281_v34 = vpop.f32.mrf.mxu0 }
 0x13b   : > { %v2317_v11 = vpop.f32.mrf.mxu1  ;;  %v1305_v8 = vadd.f32 %v1275_v9, %v1080_v45 }
 0x13c   : > { %v1055_v40 = vpop.f32.mrf.mxu0 }
 0x13d   : > { %v2969_v12 = vpop.f32.mrf.mxu1  ;;  %v1081_v60 = vadd.f32 %v1055_v40, %v2959_v27 }
 0x13e   : > { %v2284_v13 = vpop.f32.mrf.mxu0 }
 0x13f   : > { %v2320_v52 = vpop.f32.mrf.mxu1 }
 0x140   : > { %v1058_v17 = vpop.f32.mrf.mxu0 }
 0x141   : > { %v2971_v14 = vpop.f32.mrf.mxu1 }
 0x142   : > { %v2285_v55 = vpop.f32.mrf.mxu0 }
 0x143   : > { %v2321_v15 = vpop.f32.mrf.mxu1  ;;  %v1082_v55 = vadd.f32 %v1058_v17, %v2961_v32 }
 0x144   : > { %v2975_v20 = vpop.f32.mrf.mxu0 }
 0x145   : > { %v2973_v18 = vpop.f32.mrf.mxu1  ;;  %v1307_v35 = vadd.f32 %v2971_v14, %v1082_v55  ;;  %v1083_v32 = vadd.f32 %v2975_v20, %v2963_v41 }
 0x146   : > { %v2288_v19 = vpop.f32.mrf.mxu0 }
 0x147   : > { %v2324_v22 = vpop.f32.mrf.mxu1 }
 0x148   : > { %v2979_v25 = vpop.f32.mrf.mxu0  ;;  %v1306_v22 = vadd.f32 %v2969_v12, %v1081_v60 }
 0x149   : > { %v2977_v23 = vpop.f32.mrf.mxu1 }
 0x14a   : > { %v2289_v28 = vpop.f32.mrf.mxu0 }
 0x14b   : > { %v2325_v1 = vpop.f32.mrf.mxu1 }
 0x14c   : > { %v2983_v49 = vpop.f32.mrf.mxu0 }
 0x14d   : > { %v2981_v24 = vpop.f32.mrf.mxu1 }
 0x14e   : > { %v2292_v31 = vpop.f32.mrf.mxu0 }
 0x14f   : > { %v2328_v30 = vpop.f32.mrf.mxu1 }
 0x150   : > { %v1074_v36 = vpop.f32.mrf.mxu0 }
 0x151   : > { %v1299_v46 = vpop.f32.mrf.mxu1 }
 0x152   : > { %v2293_v38 = vpop.f32.mrf.mxu0 }
 0x153   : > { %v2329_v37 = vpop.f32.mrf.mxu1 }
 0x154   : > { %v1489_v47 = vpop.f32.mrf.mxu0 }
 0x155   : > { %v1653_v43 = vpop.f32.mrf.mxu1  ;;  %v1527_v50 = vadd.f32 %v1489_v47, %v1302_v42  ;;  %v1084_v47 = vadd.f32 %v2979_v25, %v2965_v51  ;;  %v1085_v51 = vadd.f32 %v2983_v49, %v2967_v58 }
 0x156   : > { %v2348_v39 = vpop.f32.mrf.mxu0 }
 0x157   : > { %v2384_v53 = vpop.f32.mrf.mxu1  ;;  %v1691_v57 = vadd.f32 %v1653_v43, %v1527_v50 }
 0x158   : > { %v1492_v48 = vpop.f32.mrf.mxu0  ;;  %v1308_v53 = vadd.f32 %v2973_v18, %v1083_v32 }
 0x159   : > { %v1656_v59 = vpop.f32.mrf.mxu1  ;;  %v1528_v61 = vadd.f32 %v1492_v48, %v1303_v26  ;;  %v1707_v2 = vadd.f32 %v2991_v29, %v1691_v57 }
 0x15a   : > { %v2349_v63 = vpop.f32.mrf.mxu0 }
 0x15b   : > { %v2385_v62 = vpop.f32.mrf.mxu1  ;;  %v1692_v3 = vadd.f32 %v1656_v59, %v1528_v61  ;;  %v1716_v11 = vmax.f32 %v1707_v2, 0.0  ;;  %v1309_v59 = vadd.f32 %v2977_v23, %v1084_v47 }
 0x15c   : > { %v1497_v16 = vpop.f32.mrf.mxu0 }
 0x15d   : > { %v1661_v54 = vpop.f32.mrf.mxu1  ;;  %v1708_v4 = vadd.f32 %v2991_v29, %v1692_v3  ;;  %v1529_v5 = vadd.f32 %v1497_v16, %v1304_v0 }
 0x15e   : > { %v2352_v44 = vpop.f32.mrf.mxu0 }
 0x15f   : > { %v2388_v6 = vpop.f32.mrf.mxu1  ;;  %v1717_v34 = vmax.f32 %v1708_v4, 0.0  ;;  %v1693_v52 = vadd.f32 %v1661_v54, %v1529_v5  ;;  %v1310_v54 = vadd.f32 %v2981_v24, %v1085_v51 }
 0x160   : > { %v1500_v7 = vpop.f32.mrf.mxu0 }
 0x161   : > { %v1664_v21 = vpop.f32.mrf.mxu1  ;;  %v2038_v10 = vpack.c.bf16 %v1717_v34, %v1716_v11  ;;  %v1530_v13 = vadd.f32 %v1500_v7, %v1305_v8  ;;  %v1709_v27 = vadd.f32 %v2991_v29, %v1693_v52 }
 0x162   : > { %v2353_v9 = vpop.f32.mrf.mxu0 }
 0x163   : > { %v2389_v15 = vpop.f32.mrf.mxu1  ;;  %2039 = vst [vmem:[%s3001_s14] sm:$0xff] %v2038_v10   ;;  %v1694_v40 = vadd.f32 %v1664_v21, %v1530_v13  ;;  %v1718_v17 = vmax.f32 %v1709_v27, 0.0 }
 0x164   : > { %v1505_v1 = vpop.f32.mrf.mxu0 }
 0x165   : > { %v1669_v19 = vpop.f32.mrf.mxu1  ;;  %v1710_v28 = vadd.f32 %v2991_v29, %v1694_v40  ;;  %v1531_v30 = vadd.f32 %v1505_v1, %v1306_v22 }
 0x166   : > { %v2356_v46 = vpop.f32.mrf.mxu0 }
 0x167   : > { %v2392_v31 = vpop.f32.mrf.mxu1  ;;  %v1719_v36 = vmax.f32 %v1710_v28, 0.0  ;;  %v1695_v12 = vadd.f32 %v1669_v19, %v1531_v30 }
 0x168   : > { %v1508_v38 = vpop.f32.mrf.mxu0 }
 0x169   : > { %v1672_v37 = vpop.f32.mrf.mxu1  ;;  %v2043_v42 = vpack.c.bf16 %v1719_v36, %v1718_v17  ;;  %v1532_v33 = vadd.f32 %v1508_v38, %v1307_v35  ;;  %v1711_v14 = vadd.f32 %v2991_v29, %v1695_v12 }
 0x16a   : > { %v2357_v50 = vpop.f32.mrf.mxu0 }
 0x16b   : > { %v2393_v43 = vpop.f32.mrf.mxu1  ;;  %2055 = vst [vmem:[%s3001_s14 + $0x8] sm:$0xff] %v2043_v42   ;;  %v1696_v39 = vadd.f32 %v1672_v37, %v1532_v33  ;;  %v1720_v25 = vmax.f32 %v1711_v14, 0.0 }
 0x16c   : > { %v1513_v41 = vpop.f32.mrf.mxu0 }
 0x16d   : > { %v1677_v26 = vpop.f32.mrf.mxu1  ;;  %v1712_v20 = vadd.f32 %v2991_v29, %v1696_v39  ;;  %v1533_v56 = vadd.f32 %v1513_v41, %v1308_v53 }
 0x16e   : > { %v2360_v48 = vpop.f32.mrf.mxu0 }
 0x16f   : > { %v2396_v57 = vpop.f32.mrf.mxu1  ;;  %v1721_v61 = vmax.f32 %v1712_v20, 0.0  ;;  %v1697_v18 = vadd.f32 %v1677_v26, %v1533_v56 }
 0x170   : > { %v1516_v45 = vpop.f32.mrf.mxu0 }
 0x171   : > { %v1680_v62 = vpop.f32.mrf.mxu1  ;;  %v2048_v63 = vpack.c.bf16 %v1721_v61, %v1720_v25  ;;  %v1534_v0 = vadd.f32 %v1516_v45, %v1309_v59  ;;  %v1713_v16 = vadd.f32 %v2991_v29, %v1697_v18 }
 0x172   : > { %v2361_v3 = vpop.f32.mrf.mxu0 }
 0x173   : > { %v2397_v2 = vpop.f32.mrf.mxu1  ;;  %2056 = vst [vmem:[%s3001_s14 + $0x10] sm:$0xff] %v2048_v63   ;;  %v1698_v4 = vadd.f32 %v1680_v62, %v1534_v0  ;;  %v1722_v44 = vmax.f32 %v1713_v16, 0.0 }
 0x174   : > { %v1521_v5 = vpop.f32.mrf.mxu0 }
 0x175   : > { %v1685_v23 = vpop.f32.mrf.mxu1  ;;  %v1714_v58 = vadd.f32 %v2991_v29, %v1698_v4  ;;  %v1535_v49 = vadd.f32 %v1521_v5, %v1310_v54 }
 0x176   : > { %v2364_v8 = vpop.f32.mrf.mxu0 }
 0x177   : > { %v2400_v6 = vpop.f32.mrf.mxu1  ;;  %v1723_v60 = vmax.f32 %v1714_v58, 0.0  ;;  %v1699_v11 = vadd.f32 %v1685_v23, %v1535_v49 }
 0x178   : > { %v1524_v52 = vpop.f32.mrf.mxu0 }
 0x179   : > { %v1688_v34 = vpop.f32.mrf.mxu1  ;;  %v2053_v21 = vpack.c.bf16 %v1723_v60, %v1722_v44  ;;  %v1715_v24 = vadd.f32 %v2991_v29, %v1699_v11 }
 0x17a   : > { %v2365_v10 = vpop.f32.mrf.mxu0 }
 0x17b   : > { %v2401_v7 = vpop.f32.mrf.mxu1  ;;  %2057 = vst [vmem:[%s3001_s14 + $0x18] sm:$0xff] %v2053_v21   ;;  %v1724_v13 = vmax.f32 %v1715_v24, 0.0 }
 0x17d   : > { %v2034_v15 = vpack.c.bf16 %v1724_v13, %v1724_v13 }
 0x17f   : > { %1770 = vst [vmem:[%s3001_s14 + $0x20] sm:$0xf] %v2034_v15 }
 0x180 PF: > { %s15_s18 = sadd.s32 1, %s2496_s18  }
 0x181   : > { %p12_p4 = scmp.ge.s32.totalorder %s15_s18, 4  }
 0x183   :  { %14 = sbr.rel (!%p12_p4) target bundleno = 1 (0x1), region = 79 }

// kernel: unet_forward.15
= control target key start
LH: loop header
LB: loop body
LE: loop exit
PB: predicated region body
PF: predicated region fallthrough
CT: control target
= control target key end

     0   :  { %s1364_s18 = smov 0   ;;  %s1541_s0 = inlined_call_operand.vmem [shape: bf16[2,256,32], index: 0, kind: input, shape index: {}]   ;;  %s1542_s1 = inlined_call_operand.vmem [shape: bf16[2,256,128], index: 1, kind: input, shape index: {}]   ;;  %s1543_s2 = inlined_call_operand.vmem [shape: bf16[1,32,128], index: 2, kind: input, shape index: {}]   ;;  %s1544_s3 = inlined_call_operand.vmem [shape: bf16[1,128,128], index: 3, kind: input, shape index: {}]   ;;  %s1545_s4 = inlined_call_operand.vmem [shape: f32[1,128], index: 4, kind: input, shape index: {}]   ;;  %s1546_s5 = inlined_call_operand.vmem [shape: f32[2,256,128], index: 5, kind: output, shape index: {}]  }
   0x1 LB: > { %s1075_s19 = sadd.s32 4294967295, %s1332_s18   ;;  %p1079_p0 = scmp.ge.s32.totalorder %s1332_s18, 1  ;;  %s1332_s18 = sphi %s1364_s18, %s15_s18  }
   0x2   : > { %p197_p1 = scmp.lt.s32.totalorder %s1332_s18, 3 }
   0x4   : > { %p198_p2 = pnand %p1079_p0, %p197_p1 }
   0x5   : > { %p230_p3 = scmp.lt.s32.totalorder (!%p198_p2), %s1075_s19, 1 }
   0x6   : > { %201 = sbr.rel (%p198_p2) target bundleno = 304 (0x130), region = 40 }
   0xb   : > { %v1284_v0 = vld [vmem:[%s1544_s3 + $0x38] sm:$0xff]   ;;  %v1285_v1 = vld [vmem:[%s1544_s3 + $0x30] sm:$0xff]   ;;  %s1548_s19 = smov (!%p230_p3, %s1075_s19), 1  ;;  %v1286_v2 = vld [vmem:[%s1544_s3 + $0x28] sm:$0xff]   ;;  %vm727_vm0 = vcmask 261120  }
   0xc   : > { %1192 = vmatprep.subr.bf16.mxu0 %v1284_v0  ;;  %s1147_s26 = sshll.u32 %s1548_s19, 7  ;;  %v1289_v3 = vld [vmem:[%s1543_s2 + $0x8] sm:$0xff]   ;;  %v1291_v4 = vld [vmem:[%s1543_s2] sm:$0xff]   ;;  %v1288_v7 = vld [vmem:[%s1544_s3 + $0x18] sm:$0xff]   ;;  %s1149_s24 = sshll.u32 %s1548_s19, 8 }
   0xd   : > { %1193 = vmatpush3.bf16.msra.mxu0 %v1284_v0  ;;  %s1390_s6 = scalar_lea.vmem %s1541_s0, %s1147_s26  ;;  %1240 = vmatprep.subr.bf16.mxu1 %v1289_v3  ;;  %v1287_v5 = vld [vmem:[%s1544_s3 + $0x20] sm:$0xff]   ;;  %s1402_s13 = scalar_lea.vmem %s1542_s1, %s1147_s26  ;;  %v1290_v11 = vld [vmem:[%s1544_s3 + $0x10] sm:$0xff]   ;;  %v1292_v12 = vld [vmem:[%s1544_s3 + $0x8] sm:$0xff]  }
   0xe   : > { %1194 = vmatprep.subr.bf16.mxu0 %v1285_v1  ;;  %1241 = vmatpush3.bf16.msra.mxu1 %v1289_v3  ;;  %v1293_v6 = vld [vmem:[%s1390_s6] sm:$0xff]   ;;  %v1294_v8 = vld [vmem:[%s1390_s6 + $0x8] sm:$0xff]   ;;  %v1298_v10 = vld [vmem:[%s1390_s6 + $0x10] sm:$0xff]   ;;  %s1472_s29 = scalar_lea.vmem %s1546_s5, %s1149_s24 }
   0xf   : > { %1242 = vmatprep.subr.bf16.mxu1 %v1291_v4  ;;  %1244 = vmatprep.mubr.msk.bf16.mxu1 %vm727_vm0, %v1293_v6  ;;  %v1296_v9 = vld [vmem:[%s1402_s13] sm:$0xff]   ;;  %v1299_v13 = vld [vmem:[%s1390_s6 + $0x18] sm:$0xff]   ;;  %v1303_v16 = vld [vmem:[%s1390_s6 + $0x28] sm:$0xff]  }
  0x10   : > { %1208 = vmatprep.mubr.bf16.mxu0 %v1296_v9  ;;  %v1302_v14 = vld [vmem:[%s1390_s6 + $0x20] sm:$0xff]   ;;  %v1306_v17 = vld [vmem:[%s1390_s6 + $0x30] sm:$0xff]   ;;  %v1297_v18 = vld [vmem:[%s1402_s13 + $0x8] sm:$0xff]  }
  0x11   : > { %1195 = vmatpush3.bf16.msra.mxu0 %v1285_v1  ;;  %v1295_v15 = vld [vmem:[%s1544_s3] sm:$0xff]   ;;  %v1300_v19 = vld [vmem:[%s1402_s13 + $0x10] sm:$0xff]   ;;  %v1307_v20 = vld [vmem:[%s1390_s6 + $0x38] sm:$0xff]  }
  0x12   : > { %1196 = vmatprep.subr.bf16.mxu0 %v1286_v2  ;;  %1243 = vmatpush3.bf16.msra.mxu1 %v1291_v4  ;;  %v1310_v21 = vld [vmem:[%s1390_s6 + $0x40] sm:$0xff]   ;;  %v1301_v22 = vld [vmem:[%s1402_s13 + $0x18] sm:$0xff]   ;;  %v1311_v24 = vld [vmem:[%s1390_s6 + $0x48] sm:$0xff]  }
  0x13   : > { %v1304_v23 = vld [vmem:[%s1402_s13 + $0x20] sm:$0xff]   ;;  %v1314_v25 = vld [vmem:[%s1390_s6 + $0x50] sm:$0xff]   ;;  %v1305_v26 = vld [vmem:[%s1402_s13 + $0x28] sm:$0xff]  }
  0x14   : > { %v1308_v27 = vld [vmem:[%s1402_s13 + $0x30] sm:$0xff]   ;;  %v1315_v28 = vld [vmem:[%s1390_s6 + $0x58] sm:$0xff]   ;;  %v1318_v29 = vld [vmem:[%s1390_s6 + $0x60] sm:$0xff]  }
  0x15   : > { %1197 = vmatpush3.bf16.msra.mxu0 %v1286_v2  ;;  %1245 = vmatmul.mubr.msk.bf16.vlgmr.msra.gmra.mxu1 %vm727_vm0, %v1294_v8  ;;  %v1309_v30 = vld [vmem:[%s1402_s13 + $0x38] sm:$0xff]   ;;  %v1312_v31 = vld [vmem:[%s1402_s13 + $0x40] sm:$0xff]   ;;  %v1319_v32 = vld [vmem:[%s1390_s6 + $0x68] sm:$0xff]  }
  0x16   : > { %1198 = vmatprep.subr.bf16.mxu0 %v1287_v5  ;;  %1248 = vmatprep.mubr.msk.bf16.mxu1 %vm727_vm0, %v1298_v10  ;;  %v1322_v33 = vld [vmem:[%s1390_s6 + $0x70] sm:$0xff]   ;;  %v1313_v34 = vld [vmem:[%s1402_s13 + $0x48] sm:$0xff]   ;;  %v1323_v36 = vld [vmem:[%s1390_s6 + $0x78] sm:$0xff]  }
  0x17   : > { %v1316_v35 = vld [vmem:[%s1402_s13 + $0x50] sm:$0xff]   ;;  %v1317_v37 = vld [vmem:[%s1402_s13 + $0x58] sm:$0xff]   ;;  %v1320_v38 = vld [vmem:[%s1402_s13 + $0x60] sm:$0xff]  }
  0x18   : > { %v1321_v39 = vld [vmem:[%s1402_s13 + $0x68] sm:$0xff]   ;;  %v1324_v40 = vld [vmem:[%s1402_s13 + $0x70] sm:$0xff]   ;;  %v1325_v41 = vld [vmem:[%s1402_s13 + $0x78] sm:$0xff]  }
  0x19   : > { %1199 = vmatpush3.bf16.msra.mxu0 %v1287_v5  ;;  %v1467_v53 = vld [vmem:[%s1545_s4] ss:$0 sm:$0xff] }
  0x1a   : > { %1200 = vmatprep.subr.bf16.mxu0 %v1288_v7 }
  0x1d   : > { %1201 = vmatpush3.bf16.msra.mxu0 %v1288_v7  ;;  %1249 = vmatmul.mubr.msk.bf16.gmra.mxu1 %vm727_vm0, %v1299_v13 }
  0x1e   : > { %1202 = vmatprep.subr.bf16.mxu0 %v1290_v11  ;;  %1252 = vmatprep.mubr.msk.bf16.mxu1 %vm727_vm0, %v1302_v14 }
  0x21   : > { %1203 = vmatpush3.bf16.msra.mxu0 %v1290_v11 }
  0x22   : > { %1204 = vmatprep.subr.bf16.mxu0 %v1292_v12 }
  0x25   : > { %1205 = vmatpush3.bf16.msra.mxu0 %v1292_v12  ;;  %1253 = vmatmul.mubr.msk.bf16.gmra.mxu1 %vm727_vm0, %v1303_v16 }
  0x26   : > { %1206 = vmatprep.subr.bf16.mxu0 %v1295_v15  ;;  %1256 = vmatprep.mubr.msk.bf16.mxu1 %vm727_vm0, %v1306_v17 }
  0x29   : > { %1207 = vmatpush3.bf16.msra.mxu0 %v1295_v15 }
  0x2c   : > { %1209 = vmatmul.mubr.bf16.vlgmr.msra.gmra.mxu0 %v1297_v18 }
  0x2d   : > { %1212 = vmatprep.mubr.bf16.mxu0 %v1300_v19  ;;  %1257 = vmatmul.mubr.msk.bf16.gmra.mxu1 %vm727_vm0, %v1307_v20 }
  0x2e   : > { %1260 = vmatprep.mubr.msk.bf16.mxu1 %vm727_vm0, %v1310_v21 }
  0x34   : > { %1213 = vmatmul.mubr.bf16.gmra.mxu0 %v1301_v22 }
  0x35   : > { %1216 = vmatprep.mubr.bf16.mxu0 %v1304_v23  ;;  %1261 = vmatmul.mubr.msk.bf16.gmra.mxu1 %vm727_vm0, %v1311_v24 }
  0x36   : > { %1264 = vmatprep.mubr.msk.bf16.mxu1 %vm727_vm0, %v1314_v25 }
  0x3c   : > { %1217 = vmatmul.mubr.bf16.gmra.mxu0 %v1305_v26 }
  0x3d   : > { %1220 = vmatprep.mubr.bf16.mxu0 %v1308_v27  ;;  %1265 = vmatmul.mubr.msk.bf16.gmra.mxu1 %vm727_vm0, %v1315_v28 }
  0x3e   : > { %1268 = vmatprep.mubr.msk.bf16.mxu1 %vm727_vm0, %v1318_v29 }
  0x44   : > { %1221 = vmatmul.mubr.bf16.gmra.mxu0 %v1309_v30 }
  0x45   : > { %1224 = vmatprep.mubr.bf16.mxu0 %v1312_v31  ;;  %1269 = vmatmul.mubr.msk.bf16.gmra.mxu1 %vm727_vm0, %v1319_v32 }
  0x46   : > { %1272 = vmatprep.mubr.msk.bf16.mxu1 %vm727_vm0, %v1322_v33 }
  0x4c   : > { %1225 = vmatmul.mubr.bf16.gmra.mxu0 %v1313_v34 }
  0x4d   : > { %1228 = vmatprep.mubr.bf16.mxu0 %v1316_v35  ;;  %1273 = vmatmul.mubr.msk.bf16.gmra.mxu1 %vm727_vm0, %v1323_v36 }
  0x54   : > { %1229 = vmatmul.mubr.bf16.gmra.mxu0 %v1317_v37 }
  0x55   : > { %1232 = vmatprep.mubr.bf16.mxu0 %v1320_v38 }
  0x5c   : > { %1233 = vmatmul.mubr.bf16.gmra.mxu0 %v1321_v39 }
  0x5d   : > { %1236 = vmatprep.mubr.bf16.mxu0 %v1324_v40 }
  0x64   : > { %1237 = vmatmul.mubr.bf16.gmra.mxu0 %v1325_v41 }
  0xd5   : > { %v1246_v42 = vpop.f32.mrf.mxu1 }
  0xd7   : > { %v810_v43 = vpop.f32.mrf.mxu1 }
  0xd9   : > { %v1247_v44 = vpop.f32.mrf.mxu1 }
  0xdb   : > { %v813_v45 = vpop.f32.mrf.mxu1 }
  0xdd   : > { %v1250_v46 = vpop.f32.mrf.mxu1 }
  0xdf   : > { %v826_v47 = vpop.f32.mrf.mxu1 }
  0xe1   : > { %v1251_v48 = vpop.f32.mrf.mxu1 }
  0xe3   : > { %v829_v49 = vpop.f32.mrf.mxu1 }
  0xe5   : > { %v1254_v50 = vpop.f32.mrf.mxu1 }
  0xe7   : > { %v842_v51 = vpop.f32.mrf.mxu1 }
  0xe9   : > { %v1255_v55 = vpop.f32.mrf.mxu1 }
  0xeb   : > { %v845_v59 = vpop.f32.mrf.mxu1 }
  0xec   : > { %v1210_v52 = vpop.f32.mrf.mxu0 }
  0xed   : > { %v819_v54 = vadd.f32 %v1246_v42, %v1210_v52  ;;  %v1258_v63 = vpop.f32.mrf.mxu1 }
  0xee   : > { %v508_v56 = vpop.f32.mrf.mxu0 }
  0xef   : > { %v946_v57 = vadd.f32 %v1467_v53, %v819_v54  ;;  %v811_v58 = vadd.f32 %v810_v43, %v508_v56  ;;  %v858_v3 = vpop.f32.mrf.mxu1 }
  0xf0   : > { %v1211_v60 = vpop.f32.mrf.mxu0 }
  0xf1   : > { %978 = vst [vmem:[%s1472_s29 + $0x10] sm:$0xff] %v946_v57  ;;  %v944_v61 = vadd.f32 %v1467_v53, %v811_v58  ;;  %v822_v62 = vadd.f32 %v1247_v44, %v1211_v60  ;;  %v1259_v7 = vpop.f32.mrf.mxu1 }
  0xf2   : > { %v511_v0 = vpop.f32.mrf.mxu0 }
  0xf3   : > { %976 = vst [vmem:[%s1472_s29] sm:$0xff] %v944_v61  ;;  %v947_v1 = vadd.f32 %v1467_v53, %v822_v62  ;;  %v814_v2 = vadd.f32 %v813_v45, %v511_v0  ;;  %v861_v11 = vpop.f32.mrf.mxu1 }
  0xf4   : > { %v1214_v4 = vpop.f32.mrf.mxu0 }
  0xf5   : > { %979 = vst [vmem:[%s1472_s29 + $0x18] sm:$0xff] %v947_v1  ;;  %v945_v5 = vadd.f32 %v1467_v53, %v814_v2  ;;  %v835_v6 = vadd.f32 %v1250_v46, %v1214_v4  ;;  %v1262_v15 = vpop.f32.mrf.mxu1 }
  0xf6   : > { %v524_v8 = vpop.f32.mrf.mxu0 }
  0xf7   : > { %977 = vst [vmem:[%s1472_s29 + $0x8] sm:$0xff] %v945_v5  ;;  %v950_v9 = vadd.f32 %v1467_v53, %v835_v6  ;;  %v827_v10 = vadd.f32 %v826_v47, %v524_v8  ;;  %v874_v19 = vpop.f32.mrf.mxu1 }
  0xf8   : > { %v1215_v12 = vpop.f32.mrf.mxu0 }
  0xf9   : > { %982 = vst [vmem:[%s1472_s29 + $0x30] sm:$0xff] %v950_v9  ;;  %v948_v13 = vadd.f32 %v1467_v53, %v827_v10  ;;  %v838_v14 = vadd.f32 %v1251_v48, %v1215_v12  ;;  %v1263_v23 = vpop.f32.mrf.mxu1 }
  0xfa   : > { %v527_v16 = vpop.f32.mrf.mxu0 }
  0xfb   : > { %980 = vst [vmem:[%s1472_s29 + $0x20] sm:$0xff] %v948_v13  ;;  %v951_v17 = vadd.f32 %v1467_v53, %v838_v14  ;;  %v830_v18 = vadd.f32 %v829_v49, %v527_v16  ;;  %v877_v27 = vpop.f32.mrf.mxu1 }
  0xfc   : > { %v1218_v20 = vpop.f32.mrf.mxu0 }
  0xfd   : > { %983 = vst [vmem:[%s1472_s29 + $0x38] sm:$0xff] %v951_v17  ;;  %v949_v21 = vadd.f32 %v1467_v53, %v830_v18  ;;  %v851_v22 = vadd.f32 %v1254_v50, %v1218_v20  ;;  %v1266_v31 = vpop.f32.mrf.mxu1 }
  0xfe   : > { %v540_v24 = vpop.f32.mrf.mxu0 }
  0xff   : > { %981 = vst [vmem:[%s1472_s29 + $0x28] sm:$0xff] %v949_v21  ;;  %v954_v25 = vadd.f32 %v1467_v53, %v851_v22  ;;  %v843_v26 = vadd.f32 %v842_v51, %v540_v24  ;;  %v890_v35 = vpop.f32.mrf.mxu1 }
 0x100   : > { %v1219_v28 = vpop.f32.mrf.mxu0 }
 0x101   : > { %986 = vst [vmem:[%s1472_s29 + $0x50] sm:$0xff] %v954_v25  ;;  %v952_v29 = vadd.f32 %v1467_v53, %v843_v26  ;;  %v854_v30 = vadd.f32 %v1255_v55, %v1219_v28  ;;  %v1267_v40 = vpop.f32.mrf.mxu1 }
 0x102   : > { %v543_v32 = vpop.f32.mrf.mxu0 }
 0x103   : > { %984 = vst [vmem:[%s1472_s29 + $0x40] sm:$0xff] %v952_v29  ;;  %v955_v33 = vadd.f32 %v1467_v53, %v854_v30  ;;  %v846_v34 = vadd.f32 %v845_v59, %v543_v32  ;;  %v893_v47 = vpop.f32.mrf.mxu1 }
 0x104   : > { %v1222_v36 = vpop.f32.mrf.mxu0 }
 0x105   : > { %987 = vst [vmem:[%s1472_s29 + $0x58] sm:$0xff] %v955_v33  ;;  %v953_v37 = vadd.f32 %v1467_v53, %v846_v34  ;;  %v867_v38 = vadd.f32 %v1258_v63, %v1222_v36  ;;  %v1270_v55 = vpop.f32.mrf.mxu1 }
 0x106   : > { %v556_v39 = vpop.f32.mrf.mxu0 }
 0x107   : > { %985 = vst [vmem:[%s1472_s29 + $0x48] sm:$0xff] %v953_v37  ;;  %v958_v41 = vadd.f32 %v1467_v53, %v867_v38  ;;  %v859_v42 = vadd.f32 %v858_v3, %v556_v39  ;;  %v906_v62 = vpop.f32.mrf.mxu1 }
 0x108   : > { %v1223_v43 = vpop.f32.mrf.mxu0 }
 0x109   : > { %990 = vst [vmem:[%s1472_s29 + $0x70] sm:$0xff] %v958_v41  ;;  %v956_v44 = vadd.f32 %v1467_v53, %v859_v42  ;;  %v870_v45 = vadd.f32 %v1259_v7, %v1223_v43  ;;  %v1271_v5 = vpop.f32.mrf.mxu1 }
 0x10a   : > { %v559_v46 = vpop.f32.mrf.mxu0 }
 0x10b   : > { %988 = vst [vmem:[%s1472_s29 + $0x60] sm:$0xff] %v956_v44  ;;  %v959_v48 = vadd.f32 %v1467_v53, %v870_v45  ;;  %v862_v49 = vadd.f32 %v861_v11, %v559_v46  ;;  %v909_v12 = vpop.f32.mrf.mxu1 }
 0x10c   : > { %v1226_v50 = vpop.f32.mrf.mxu0 }
 0x10d   : > { %991 = vst [vmem:[%s1472_s29 + $0x78] sm:$0xff] %v959_v48  ;;  %v957_v51 = vadd.f32 %v1467_v53, %v862_v49  ;;  %v883_v52 = vadd.f32 %v1262_v15, %v1226_v50 }
 0x10e   : > { %v572_v54 = vpop.f32.mrf.mxu0 }
 0x10f   : > { %989 = vst [vmem:[%s1472_s29 + $0x68] sm:$0xff] %v957_v51  ;;  %v962_v56 = vadd.f32 %v1467_v53, %v883_v52  ;;  %v875_v57 = vadd.f32 %v874_v19, %v572_v54  ;;  %v1274_v19 = vpop.f32.mrf.mxu1 }
 0x110   : > { %v1227_v58 = vpop.f32.mrf.mxu0 }
 0x111   : > { %994 = vst [vmem:[%s1472_s29 + $0x90] sm:$0xff] %v962_v56  ;;  %v960_v59 = vadd.f32 %v1467_v53, %v875_v57  ;;  %v886_v60 = vadd.f32 %v1263_v23, %v1227_v58  ;;  %v922_v25 = vpop.f32.mrf.mxu1 }
 0x112   : > { %v575_v61 = vpop.f32.mrf.mxu0 }
 0x113   : > { %992 = vst [vmem:[%s1472_s29 + $0x80] sm:$0xff] %v960_v59  ;;  %v963_v63 = vadd.f32 %v1467_v53, %v886_v60  ;;  %v878_v0 = vadd.f32 %v877_v27, %v575_v61  ;;  %v1275_v32 = vpop.f32.mrf.mxu1 }
 0x114   : > { %v1230_v1 = vpop.f32.mrf.mxu0 }
 0x115   : > { %995 = vst [vmem:[%s1472_s29 + $0x98] sm:$0xff] %v963_v63  ;;  %v961_v2 = vadd.f32 %v1467_v53, %v878_v0  ;;  %v899_v3 = vadd.f32 %v1266_v31, %v1230_v1  ;;  %v925_v39 = vpop.f32.mrf.mxu1 }
 0x116   : > { %v588_v4 = vpop.f32.mrf.mxu0 }
 0x117   : > { %993 = vst [vmem:[%s1472_s29 + $0x88] sm:$0xff] %v961_v2  ;;  %v966_v6 = vadd.f32 %v1467_v53, %v899_v3  ;;  %v891_v7 = vadd.f32 %v890_v35, %v588_v4 }
 0x118   : > { %v1231_v8 = vpop.f32.mrf.mxu0 }
 0x119   : > { %998 = vst [vmem:[%s1472_s29 + $0xb0] sm:$0xff] %v966_v6  ;;  %v964_v9 = vadd.f32 %v1467_v53, %v891_v7  ;;  %v902_v10 = vadd.f32 %v1267_v40, %v1231_v8 }
 0x11a   : > { %v591_v11 = vpop.f32.mrf.mxu0 }
 0x11b   : > { %996 = vst [vmem:[%s1472_s29 + $0xa0] sm:$0xff] %v964_v9  ;;  %v967_v13 = vadd.f32 %v1467_v53, %v902_v10  ;;  %v894_v14 = vadd.f32 %v893_v47, %v591_v11 }
 0x11c   : > { %v1234_v15 = vpop.f32.mrf.mxu0 }
 0x11d   : > { %999 = vst [vmem:[%s1472_s29 + $0xb8] sm:$0xff] %v967_v13  ;;  %v965_v16 = vadd.f32 %v1467_v53, %v894_v14  ;;  %v915_v17 = vadd.f32 %v1270_v55, %v1234_v15 }
 0x11e   : > { %v604_v18 = vpop.f32.mrf.mxu0 }
 0x11f   : > { %997 = vst [vmem:[%s1472_s29 + $0xa8] sm:$0xff] %v965_v16  ;;  %v970_v20 = vadd.f32 %v1467_v53, %v915_v17  ;;  %v907_v21 = vadd.f32 %v906_v62, %v604_v18 }
 0x120   : > { %v1235_v22 = vpop.f32.mrf.mxu0 }
 0x121   : > { %1002 = vst [vmem:[%s1472_s29 + $0xd0] sm:$0xff] %v970_v20  ;;  %v968_v23 = vadd.f32 %v1467_v53, %v907_v21  ;;  %v918_v24 = vadd.f32 %v1271_v5, %v1235_v22 }
 0x122   : > { %v607_v26 = vpop.f32.mrf.mxu0 }
 0x123   : > { %1000 = vst [vmem:[%s1472_s29 + $0xc0] sm:$0xff] %v968_v23  ;;  %v971_v27 = vadd.f32 %v1467_v53, %v918_v24  ;;  %v910_v28 = vadd.f32 %v909_v12, %v607_v26 }
 0x124   : > { %v1238_v29 = vpop.f32.mrf.mxu0 }
 0x125   : > { %1003 = vst [vmem:[%s1472_s29 + $0xd8] sm:$0xff] %v971_v27  ;;  %v969_v30 = vadd.f32 %v1467_v53, %v910_v28  ;;  %v931_v31 = vadd.f32 %v1274_v19, %v1238_v29 }
 0x126   : > { %v620_v33 = vpop.f32.mrf.mxu0 }
 0x127   : > { %1001 = vst [vmem:[%s1472_s29 + $0xc8] sm:$0xff] %v969_v30  ;;  %v974_v34 = vadd.f32 %v1467_v53, %v931_v31  ;;  %v923_v35 = vadd.f32 %v922_v25, %v620_v33 }
 0x128   : > { %v1239_v36 = vpop.f32.mrf.mxu0 }
 0x129   : > { %1006 = vst [vmem:[%s1472_s29 + $0xf0] sm:$0xff] %v974_v34  ;;  %v972_v37 = vadd.f32 %v1467_v53, %v923_v35  ;;  %v934_v38 = vadd.f32 %v1275_v32, %v1239_v36 }
 0x12a   : > { %v623_v40 = vpop.f32.mrf.mxu0 }
 0x12b   : > { %1004 = vst [vmem:[%s1472_s29 + $0xe0] sm:$0xff] %v972_v37  ;;  %v975_v41 = vadd.f32 %v1467_v53, %v934_v38  ;;  %v926_v42 = vadd.f32 %v925_v39, %v623_v40 }
 0x12d   : > { %1007 = vst [vmem:[%s1472_s29 + $0xf8] sm:$0xff] %v975_v41  ;;  %v973_v43 = vadd.f32 %v1467_v53, %v926_v42 }
 0x12f   : > { %1005 = vst [vmem:[%s1472_s29 + $0xe8] sm:$0xff] %v973_v43 }
 0x130 PF: > { %s15_s18 = sadd.s32 1, %s1332_s18  }
 0x131   : > { %p12_p4 = scmp.ge.s32.totalorder %s15_s18, 4  }
 0x133   :  { %14 = sbr.rel (!%p12_p4) target bundleno = 1 (0x1), region = 73 }

</bundles_post_ra>
